<compile_context>
chip_gen: v5e
topology: v5e:2x2
jax: 0.10.0
libtpu: 0.0.40
codegen_flags: <defaults>
</compile_context>

<pallas_src>
import jax
import jax.numpy as jnp
import numpy as np
from jax import lax
from jax.experimental import pallas as pl
from jax.experimental.pallas import tpu as pltpu


# -----------------------------------------------------------------------------
# Fused Pallas kernel: all LSTM layers + head in one invocation (no grid).
# -----------------------------------------------------------------------------
def _make_fused_kernel(num_layers, B, T, D_in, H, E, C):
    """Builds the fused kernel closure (static shapes / static layer count)."""

    def kernel(*refs):
        # ---- unpack: inputs, outputs, scratch -------------------------------
        n_in = 1 + 3 * num_layers + 4
        x_ref = refs[0]                                    # (B, T, D_in)
        lstm_refs = refs[1:1 + 3 * num_layers]             # per layer: w_ih_t, w_hh_t, b
        we_ref, be_ref, wo_ref, bo_ref = refs[1 + 3 * num_layers:n_in]
        pred_ref, dvec_ref = refs[n_in:n_in + 2]
        xseq_scr, hseq_scr = refs[n_in + 2:n_in + 4]       # (T*B, D_in), (T*B, H)

        # ---- batch-first -> time-major flat layout, once, inside VMEM --------
        x = x_ref[...]                                     # (B, T, D_in)
        for t in range(T):                                 # static slices, no XLA transpose
            xseq_scr[t * B:(t + 1) * B, :] = x[:, t, :]    # row = t*B + b

        # ---- LSTM stack: hidden sequences stay resident in VMEM --------------
        h_last = None
        cur_scr = xseq_scr
        for l in range(num_layers):
            wih = lstm_refs[3 * l][...]                    # (D_l, 4H)
            whh = lstm_refs[3 * l + 1][...]                # (H, 4H)
            bias = lstm_refs[3 * l + 2][...]               # (1, 4H)

            # Hoisted input projection: one big matmul instead of T tiny ones.
            inp = cur_scr[...]                             # (T*B, D_l)
            proj = jnp.dot(inp, wih,
                           preferred_element_type=jnp.float32) + bias   # (T*B, 4H)

            h = jnp.zeros((B, H), jnp.float32)
            c = jnp.zeros((B, H), jnp.float32)
            for t in range(T):                             # fully unrolled recurrence
                g = proj[t * B:(t + 1) * B, :] + jnp.dot(
                    h, whh, preferred_element_type=jnp.float32)          # (B, 4H)
                i_g = jax.nn.sigmoid(g[:, 0 * H:1 * H])
                f_g = jax.nn.sigmoid(g[:, 1 * H:2 * H])
                g_g = jnp.tanh(g[:, 2 * H:3 * H])
                o_g = jax.nn.sigmoid(g[:, 3 * H:4 * H])
                c = f_g * c + i_g * g_g
                h = o_g * jnp.tanh(c)
                if l < num_layers - 1:                     # last layer: only h_last is consumed
                    hseq_scr[t * B:(t + 1) * B, :] = h
            cur_scr = hseq_scr
            h_last = h

        # ---- head: embedding Linear -> L2 normalize -> output Linear ---------
        emb = jnp.dot(h_last, we_ref[...],
                      preferred_element_type=jnp.float32) + be_ref[...]  # (B, E)
        ssq = jnp.sum(emb * emb, axis=-1, keepdims=True)
        dvec_ref[...] = emb * lax.rsqrt(ssq + 1e-12)       # rsqrt -> EUP; eps avoids div-by-0
        pred_ref[...] = jnp.dot(emb, wo_ref[...],
                                preferred_element_type=jnp.float32) + bo_ref[...]

    return kernel


# -----------------------------------------------------------------------------
# Full LstmDV forward (batch-first input, same as the PyTorch module)
# -----------------------------------------------------------------------------
@jax.jit
def lstm_dv_forward(x, params):
    """x: (B, T, D_in) batch-first, like nn.LSTM(batch_first=True)."""
    B, T, D_in = x.shape
    num_layers = len(params["lstm"])
    H = params["lstm"][0]["w_hh_t"].shape[0]
    E = params["w_emb_t"].shape[1]
    C = params["w_out_t"].shape[1]

    flat = [x]
    for layer in params["lstm"]:
        flat += [layer["w_ih_t"], layer["w_hh_t"], layer["b"]]
    flat += [params["w_emb_t"], params["b_emb"], params["w_out_t"], params["b_out"]]

    kernel = _make_fused_kernel(num_layers, B, T, D_in, H, E, C)
    predictions, d_vec = pl.pallas_call(
        kernel,
        out_shape=(
            jax.ShapeDtypeStruct((B, C), jnp.float32),     # predictions
            jax.ShapeDtypeStruct((B, E), jnp.float32),     # d_vec
        ),
        scratch_shapes=[
            pltpu.VMEM((T * B, D_in), jnp.float32),        # time-major layer-0 input
            pltpu.VMEM((T * B, H), jnp.float32),           # hidden sequence between layers
        ],
    )(*flat)
    return predictions, d_vec


# -----------------------------------------------------------------------------
# Deterministic parameter init (synthetic; shapes follow nn.LSTM / nn.Linear)
# -----------------------------------------------------------------------------
def init_params(key, num_layers, dim_input, dim_cell, dim_emb, num_classes):
    params = {"lstm": []}
    scale = 0.1
    for l in range(num_layers):
        d_in = dim_input if l == 0 else dim_cell
        key, k1, k2, k3, k4 = jax.random.split(key, 5)
        # PyTorch shapes: weight_ih (4H, d_in), weight_hh (4H, H), biases (4H,)
        w_ih = scale * jax.random.normal(k1, (4 * dim_cell, d_in), jnp.float32)
        w_hh = scale * jax.random.normal(k2, (4 * dim_cell, dim_cell), jnp.float32)
        b_ih = scale * jax.random.normal(k3, (4 * dim_cell,), jnp.float32)
        b_hh = scale * jax.random.normal(k4, (4 * dim_cell,), jnp.float32)
        params["lstm"].append({
            "w_ih_t": w_ih.T,                              # (d_in, 4H)
            "w_hh_t": w_hh.T,                              # (H, 4H)
            "b": (b_ih + b_hh)[None, :],                   # (1, 4H)
        })
    key, k5, k6, k7, k8 = jax.random.split(key, 5)
    w_emb = scale * jax.random.normal(k5, (dim_emb, dim_cell), jnp.float32)
    b_emb = scale * jax.random.normal(k6, (dim_emb,), jnp.float32)
    w_out = scale * jax.random.normal(k7, (num_classes, dim_emb), jnp.float32)
    b_out = scale * jax.random.normal(k8, (num_classes,), jnp.float32)
    params["w_emb_t"] = w_emb.T                 # (H, E)
    params["b_emb"] = b_emb[None, :]            # (1, E)
    params["w_out_t"] = w_out.T                 # (E, C)
    params["b_out"] = b_out[None, :]            # (1, C)
    return params


# -----------------------------------------------------------------------------
# Pure-JAX reference for correctness checking
# -----------------------------------------------------------------------------
def reference_forward(x, params):
    B = x.shape[0]
    h_seq = jnp.transpose(x, (1, 0, 2))  # (T, B, D)
    for layer in params["lstm"]:
        H = layer["w_hh_t"].shape[0]

        def step(carry, x_t, layer=layer, H=H):
            h, c = carry
            g = x_t @ layer["w_ih_t"] + h @ layer["w_hh_t"] + layer["b"]
            i = jax.nn.sigmoid(g[:, 0 * H:1 * H])
            f = jax.nn.sigmoid(g[:, 1 * H:2 * H])
            gg = jnp.tanh(g[:, 2 * H:3 * H])
            o = jax.nn.sigmoid(g[:, 3 * H:4 * H])
            c = f * c + i * gg
            h = o * jnp.tanh(c)
            return (h, c), h

        init = (jnp.zeros((B, H), jnp.float32), jnp.zeros((B, H), jnp.float32))
        _, h_seq = jax.lax.scan(step, init, h_seq)
    h_last = h_seq[-1]
    emb = h_last @ params["w_emb_t"] + params["b_emb"]
    d_vec = emb / jnp.linalg.norm(emb, axis=-1, keepdims=True)
    pred = emb @ params["w_out_t"] + params["b_out"]
    return pred, d_vec


if __name__ == "__main__":
    # Small shapes consistent with the module's forward (defaults shrunk)
    B, T = 2, 8
    num_layers = 3
    dim_input, dim_cell, dim_emb, num_classes = 80, 128, 128, 128

    key = jax.random.PRNGKey(0)
    key, kx, kp = jax.random.split(key, 3)
    x = jax.random.normal(kx, (B, T, dim_input), jnp.float32)
    params = init_params(kp, num_layers, dim_input, dim_cell, dim_emb, num_classes)

    predictions, d_vec = lstm_dv_forward(x, params)
    jax.block_until_ready((predictions, d_vec))

    pred_ref, dvec_ref = reference_forward(x, params)
    np.testing.assert_allclose(np.asarray(predictions), np.asarray(pred_ref),
                               rtol=1e-4, atol=1e-4)
    np.testing.assert_allclose(np.asarray(d_vec), np.asarray(dvec_ref),
                               rtol=1e-4, atol=1e-4)

    assert predictions.shape == (B, num_classes)
    assert d_vec.shape == (B, dim_emb)
    print("KERNEL_OK")
</pallas_src>

<mosaic_0001>
module attributes {stable_mosaic.version = 11 : i64} {
  func.func @kernel(%arg0: memref<2x8x80xf32, #tpu.memory_space<vmem>>, %arg1: memref<80x512xf32, #tpu.memory_space<vmem>>, %arg2: memref<128x512xf32, #tpu.memory_space<vmem>>, %arg3: memref<1x512xf32, #tpu.memory_space<vmem>>, %arg4: memref<128x512xf32, #tpu.memory_space<vmem>>, %arg5: memref<128x512xf32, #tpu.memory_space<vmem>>, %arg6: memref<1x512xf32, #tpu.memory_space<vmem>>, %arg7: memref<128x512xf32, #tpu.memory_space<vmem>>, %arg8: memref<128x512xf32, #tpu.memory_space<vmem>>, %arg9: memref<1x512xf32, #tpu.memory_space<vmem>>, %arg10: memref<128x128xf32, #tpu.memory_space<vmem>>, %arg11: memref<1x128xf32, #tpu.memory_space<vmem>>, %arg12: memref<128x128xf32, #tpu.memory_space<vmem>>, %arg13: memref<1x128xf32, #tpu.memory_space<vmem>>, %arg14: memref<2x128xf32, #tpu.memory_space<vmem>>, %arg15: memref<2x128xf32, #tpu.memory_space<vmem>>, %arg16: memref<16x80xf32, #tpu.memory_space<vmem>>, %arg17: memref<16x128xf32, #tpu.memory_space<vmem>>) attributes {dimension_semantics = [], scalar_prefetch = 0 : i64, scratch_operands = 2 : i64, tpu.core_type = #tpu.core_type<tc>} {
    %c0 = arith.constant 0 : index
    %c0_0 = arith.constant 0 : index
    %c0_1 = arith.constant 0 : index
    %0 = vector.load %arg0[%c0, %c0_0, %c0_1] : memref<2x8x80xf32, #tpu.memory_space<vmem>>, vector<2x8x80xf32>
    %1 = vector.extract_strided_slice %0 {offsets = [0, 0, 0], sizes = [2, 1, 80], strides = [1, 1, 1]} : vector<2x8x80xf32> to vector<2x1x80xf32>
    %2 = vector.shape_cast %1 : vector<2x1x80xf32> to vector<2x80xf32>
    %c0_2 = arith.constant 0 : index
    %c0_3 = arith.constant 0 : index
    %3 = vector.load %arg16[%c0_2, %c0_3] : memref<16x80xf32, #tpu.memory_space<vmem>>, vector<2x80xf32>
    tpu.vector_store %arg16[%c0_2, %c0_3], %2 {strides = array<i32>} : memref<16x80xf32, #tpu.memory_space<vmem>>, vector<2x80xf32>,
    %4 = vector.extract_strided_slice %0 {offsets = [0, 1, 0], sizes = [2, 1, 80], strides = [1, 1, 1]} : vector<2x8x80xf32> to vector<2x1x80xf32>
    %5 = vector.shape_cast %4 : vector<2x1x80xf32> to vector<2x80xf32>
    %c2 = arith.constant 2 : index
    %c0_4 = arith.constant 0 : index
    %6 = vector.load %arg16[%c2, %c0_4] : memref<16x80xf32, #tpu.memory_space<vmem>>, vector<2x80xf32>
    tpu.vector_store %arg16[%c2, %c0_4], %5 {strides = array<i32>} : memref<16x80xf32, #tpu.memory_space<vmem>>, vector<2x80xf32>,
    %7 = vector.extract_strided_slice %0 {offsets = [0, 2, 0], sizes = [2, 1, 80], strides = [1, 1, 1]} : vector<2x8x80xf32> to vector<2x1x80xf32>
    %8 = vector.shape_cast %7 : vector<2x1x80xf32> to vector<2x80xf32>
    %c4 = arith.constant 4 : index
    %c0_5 = arith.constant 0 : index
    %9 = vector.load %arg16[%c4, %c0_5] : memref<16x80xf32, #tpu.memory_space<vmem>>, vector<2x80xf32>
    tpu.vector_store %arg16[%c4, %c0_5], %8 {strides = array<i32>} : memref<16x80xf32, #tpu.memory_space<vmem>>, vector<2x80xf32>,
    %10 = vector.extract_strided_slice %0 {offsets = [0, 3, 0], sizes = [2, 1, 80], strides = [1, 1, 1]} : vector<2x8x80xf32> to vector<2x1x80xf32>
    %11 = vector.shape_cast %10 : vector<2x1x80xf32> to vector<2x80xf32>
    %c6 = arith.constant 6 : index
    %c0_6 = arith.constant 0 : index
    %12 = vector.load %arg16[%c6, %c0_6] : memref<16x80xf32, #tpu.memory_space<vmem>>, vector<2x80xf32>
    tpu.vector_store %arg16[%c6, %c0_6], %11 {strides = array<i32>} : memref<16x80xf32, #tpu.memory_space<vmem>>, vector<2x80xf32>,
    %13 = vector.extract_strided_slice %0 {offsets = [0, 4, 0], sizes = [2, 1, 80], strides = [1, 1, 1]} : vector<2x8x80xf32> to vector<2x1x80xf32>
    %14 = vector.shape_cast %13 : vector<2x1x80xf32> to vector<2x80xf32>
    %c8 = arith.constant 8 : index
    %c0_7 = arith.constant 0 : index
    %15 = vector.load %arg16[%c8, %c0_7] : memref<16x80xf32, #tpu.memory_space<vmem>>, vector<2x80xf32>
    tpu.vector_store %arg16[%c8, %c0_7], %14 {strides = array<i32>} : memref<16x80xf32, #tpu.memory_space<vmem>>, vector<2x80xf32>,
    %16 = vector.extract_strided_slice %0 {offsets = [0, 5, 0], sizes = [2, 1, 80], strides = [1, 1, 1]} : vector<2x8x80xf32> to vector<2x1x80xf32>
    %17 = vector.shape_cast %16 : vector<2x1x80xf32> to vector<2x80xf32>
    %c10 = arith.constant 10 : index
    %c0_8 = arith.constant 0 : index
    %18 = vector.load %arg16[%c10, %c0_8] : memref<16x80xf32, #tpu.memory_space<vmem>>, vector<2x80xf32>
    tpu.vector_store %arg16[%c10, %c0_8], %17 {strides = array<i32>} : memref<16x80xf32, #tpu.memory_space<vmem>>, vector<2x80xf32>,
    %19 = vector.extract_strided_slice %0 {offsets = [0, 6, 0], sizes = [2, 1, 80], strides = [1, 1, 1]} : vector<2x8x80xf32> to vector<2x1x80xf32>
    %20 = vector.shape_cast %19 : vector<2x1x80xf32> to vector<2x80xf32>
    %c12 = arith.constant 12 : index
    %c0_9 = arith.constant 0 : index
    %21 = vector.load %arg16[%c12, %c0_9] : memref<16x80xf32, #tpu.memory_space<vmem>>, vector<2x80xf32>
    tpu.vector_store %arg16[%c12, %c0_9], %20 {strides = array<i32>} : memref<16x80xf32, #tpu.memory_space<vmem>>, vector<2x80xf32>,
    %22 = vector.extract_strided_slice %0 {offsets = [0, 7, 0], sizes = [2, 1, 80], strides = [1, 1, 1]} : vector<2x8x80xf32> to vector<2x1x80xf32>
    %23 = vector.shape_cast %22 : vector<2x1x80xf32> to vector<2x80xf32>
    %c14 = arith.constant 14 : index
    %c0_10 = arith.constant 0 : index
    %24 = vector.load %arg16[%c14, %c0_10] : memref<16x80xf32, #tpu.memory_space<vmem>>, vector<2x80xf32>
    tpu.vector_store %arg16[%c14, %c0_10], %23 {strides = array<i32>} : memref<16x80xf32, #tpu.memory_space<vmem>>, vector<2x80xf32>,
    %c0_11 = arith.constant 0 : index
    %c0_12 = arith.constant 0 : index
    %25 = vector.load %arg1[%c0_11, %c0_12] : memref<80x512xf32, #tpu.memory_space<vmem>>, vector<80x512xf32>
    %c0_13 = arith.constant 0 : index
    %c0_14 = arith.constant 0 : index
    %26 = vector.load %arg2[%c0_13, %c0_14] : memref<128x512xf32, #tpu.memory_space<vmem>>, vector<128x512xf32>
    %c0_15 = arith.constant 0 : index
    %c0_16 = arith.constant 0 : index
    %27 = vector.load %arg3[%c0_15, %c0_16] : memref<1x512xf32, #tpu.memory_space<vmem>>, vector<1x512xf32>
    %c0_17 = arith.constant 0 : index
    %c0_18 = arith.constant 0 : index
    %28 = vector.load %arg16[%c0_17, %c0_18] : memref<16x80xf32, #tpu.memory_space<vmem>>, vector<16x80xf32>
    %cst = arith.constant dense<0.000000e+00> : vector<16x512xf32>
    %29 = tpu.matmul %28, %25, %cst {dimension_numbers = #tpu.dot_dimension_numbers<[1], [0], [0], [1], [0, 0, 1, 1], [], []>} : vector<16x80xf32>, vector<80x512xf32>, vector<16x512xf32> -> vector<16x512xf32>
    %30 = vector.broadcast %27 : vector<1x512xf32> to vector<16x512xf32>
    %31 = arith.addf %29, %30 : vector<16x512xf32>
    %cst_19 = arith.constant 0.000000e+00 : f32
    %32 = vector.broadcast %cst_19 : f32 to vector<2x128xf32>
    %cst_20 = arith.constant 0.000000e+00 : f32
    %33 = vector.broadcast %cst_20 : f32 to vector<2x128xf32>
    %34 = vector.extract_strided_slice %31 {offsets = [0, 0], sizes = [2, 512], strides = [1, 1]} : vector<16x512xf32> to vector<2x512xf32>
    %cst_21 = arith.constant dense<0.000000e+00> : vector<2x512xf32>
    %35 = tpu.matmul %32, %26, %cst_21 {dimension_numbers = #tpu.dot_dimension_numbers<[1], [0], [0], [1], [0, 0, 1, 1], [], []>} : vector<2x128xf32>, vector<128x512xf32>, vector<2x512xf32> -> vector<2x512xf32>
    %36 = arith.addf %34, %35 : vector<2x512xf32>
    %37 = vector.extract_strided_slice %36 {offsets = [0, 0], sizes = [2, 128], strides = [1, 1]} : vector<2x512xf32> to vector<2x128xf32>
    %38 = arith.negf %37 : vector<2x128xf32>
    %39 = math.exp %38 : vector<2x128xf32>
    %cst_22 = arith.constant 1.000000e+00 : f32
    %40 = vector.broadcast %cst_22 : f32 to vector<2x128xf32>
    %41 = arith.addf %40, %39 : vector<2x128xf32>
    %42 = arith.divf %40, %41 : vector<2x128xf32>
    %43 = vector.extract_strided_slice %36 {offsets = [0, 128], sizes = [2, 128], strides = [1, 1]} : vector<2x512xf32> to vector<2x128xf32>
    %44 = arith.negf %43 : vector<2x128xf32>
    %45 = math.exp %44 : vector<2x128xf32>
    %cst_23 = arith.constant 1.000000e+00 : f32
    %46 = vector.broadcast %cst_23 : f32 to vector<2x128xf32>
    %47 = arith.addf %46, %45 : vector<2x128xf32>
    %48 = arith.divf %46, %47 : vector<2x128xf32>
    %49 = vector.extract_strided_slice %36 {offsets = [0, 256], sizes = [2, 128], strides = [1, 1]} : vector<2x512xf32> to vector<2x128xf32>
    %50 = math.tanh %49 : vector<2x128xf32>
    %51 = vector.extract_strided_slice %36 {offsets = [0, 384], sizes = [2, 128], strides = [1, 1]} : vector<2x512xf32> to vector<2x128xf32>
    %52 = arith.negf %51 : vector<2x128xf32>
    %53 = math.exp %52 : vector<2x128xf32>
    %cst_24 = arith.constant 1.000000e+00 : f32
    %54 = vector.broadcast %cst_24 : f32 to vector<2x128xf32>
    %55 = arith.addf %54, %53 : vector<2x128xf32>
    %56 = arith.divf %54, %55 : vector<2x128xf32>
    %57 = arith.mulf %48, %33 : vector<2x128xf32>
    %58 = arith.mulf %42, %50 : vector<2x128xf32>
    %59 = arith.addf %57, %58 : vector<2x128xf32>
    %60 = math.tanh %59 : vector<2x128xf32>
    %61 = arith.mulf %56, %60 : vector<2x128xf32>
    %c0_25 = arith.constant 0 : index
    %c0_26 = arith.constant 0 : index
    %62 = vector.load %arg17[%c0_25, %c0_26] : memref<16x128xf32, #tpu.memory_space<vmem>>, vector<2x128xf32>
    tpu.vector_store %arg17[%c0_25, %c0_26], %61 {strides = array<i32>} : memref<16x128xf32, #tpu.memory_space<vmem>>, vector<2x128xf32>,
    %63 = vector.extract_strided_slice %31 {offsets = [2, 0], sizes = [2, 512], strides = [1, 1]} : vector<16x512xf32> to vector<2x512xf32>
    %cst_27 = arith.constant dense<0.000000e+00> : vector<2x512xf32>
    %64 = tpu.matmul %61, %26, %cst_27 {dimension_numbers = #tpu.dot_dimension_numbers<[1], [0], [0], [1], [0, 0, 1, 1], [], []>} : vector<2x128xf32>, vector<128x512xf32>, vector<2x512xf32> -> vector<2x512xf32>
    %65 = arith.addf %63, %64 : vector<2x512xf32>
    %66 = vector.extract_strided_slice %65 {offsets = [0, 0], sizes = [2, 128], strides = [1, 1]} : vector<2x512xf32> to vector<2x128xf32>
    %67 = arith.negf %66 : vector<2x128xf32>
    %68 = math.exp %67 : vector<2x128xf32>
    %cst_28 = arith.constant 1.000000e+00 : f32
    %69 = vector.broadcast %cst_28 : f32 to vector<2x128xf32>
    %70 = arith.addf %69, %68 : vector<2x128xf32>
    %71 = arith.divf %69, %70 : vector<2x128xf32>
    %72 = vector.extract_strided_slice %65 {offsets = [0, 128], sizes = [2, 128], strides = [1, 1]} : vector<2x512xf32> to vector<2x128xf32>
    %73 = arith.negf %72 : vector<2x128xf32>
    %74 = math.exp %73 : vector<2x128xf32>
    %cst_29 = arith.constant 1.000000e+00 : f32
    %75 = vector.broadcast %cst_29 : f32 to vector<2x128xf32>
    %76 = arith.addf %75, %74 : vector<2x128xf32>
    %77 = arith.divf %75, %76 : vector<2x128xf32>
    %78 = vector.extract_strided_slice %65 {offsets = [0, 256], sizes = [2, 128], strides = [1, 1]} : vector<2x512xf32> to vector<2x128xf32>
    %79 = math.tanh %78 : vector<2x128xf32>
    %80 = vector.extract_strided_slice %65 {offsets = [0, 384], sizes = [2, 128], strides = [1, 1]} : vector<2x512xf32> to vector<2x128xf32>
    %81 = arith.negf %80 : vector<2x128xf32>
    %82 = math.exp %81 : vector<2x128xf32>
    %cst_30 = arith.constant 1.000000e+00 : f32
    %83 = vector.broadcast %cst_30 : f32 to vector<2x128xf32>
    %84 = arith.addf %83, %82 : vector<2x128xf32>
    %85 = arith.divf %83, %84 : vector<2x128xf32>
    %86 = arith.mulf %77, %59 : vector<2x128xf32>
    %87 = arith.mulf %71, %79 : vector<2x128xf32>
    %88 = arith.addf %86, %87 : vector<2x128xf32>
    %89 = math.tanh %88 : vector<2x128xf32>
    %90 = arith.mulf %85, %89 : vector<2x128xf32>
    %c2_31 = arith.constant 2 : index
    %c0_32 = arith.constant 0 : index
    %91 = vector.load %arg17[%c2_31, %c0_32] : memref<16x128xf32, #tpu.memory_space<vmem>>, vector<2x128xf32>
    tpu.vector_store %arg17[%c2_31, %c0_32], %90 {strides = array<i32>} : memref<16x128xf32, #tpu.memory_space<vmem>>, vector<2x128xf32>,
    %92 = vector.extract_strided_slice %31 {offsets = [4, 0], sizes = [2, 512], strides = [1, 1]} : vector<16x512xf32> to vector<2x512xf32>
    %cst_33 = arith.constant dense<0.000000e+00> : vector<2x512xf32>
    %93 = tpu.matmul %90, %26, %cst_33 {dimension_numbers = #tpu.dot_dimension_numbers<[1], [0], [0], [1], [0, 0, 1, 1], [], []>} : vector<2x128xf32>, vector<128x512xf32>, vector<2x512xf32> -> vector<2x512xf32>
    %94 = arith.addf %92, %93 : vector<2x512xf32>
    %95 = vector.extract_strided_slice %94 {offsets = [0, 0], sizes = [2, 128], strides = [1, 1]} : vector<2x512xf32> to vector<2x128xf32>
    %96 = arith.negf %95 : vector<2x128xf32>
    %97 = math.exp %96 : vector<2x128xf32>
    %cst_34 = arith.constant 1.000000e+00 : f32
    %98 = vector.broadcast %cst_34 : f32 to vector<2x128xf32>
    %99 = arith.addf %98, %97 : vector<2x128xf32>
    %100 = arith.divf %98, %99 : vector<2x128xf32>
    %101 = vector.extract_strided_slice %94 {offsets = [0, 128], sizes = [2, 128], strides = [1, 1]} : vector<2x512xf32> to vector<2x128xf32>
    %102 = arith.negf %101 : vector<2x128xf32>
    %103 = math.exp %102 : vector<2x128xf32>
    %cst_35 = arith.constant 1.000000e+00 : f32
    %104 = vector.broadcast %cst_35 : f32 to vector<2x128xf32>
    %105 = arith.addf %104, %103 : vector<2x128xf32>
    %106 = arith.divf %104, %105 : vector<2x128xf32>
    %107 = vector.extract_strided_slice %94 {offsets = [0, 256], sizes = [2, 128], strides = [1, 1]} : vector<2x512xf32> to vector<2x128xf32>
    %108 = math.tanh %107 : vector<2x128xf32>
    %109 = vector.extract_strided_slice %94 {offsets = [0, 384], sizes = [2, 128], strides = [1, 1]} : vector<2x512xf32> to vector<2x128xf32>
    %110 = arith.negf %109 : vector<2x128xf32>
    %111 = math.exp %110 : vector<2x128xf32>
    %cst_36 = arith.constant 1.000000e+00 : f32
    %112 = vector.broadcast %cst_36 : f32 to vector<2x128xf32>
    %113 = arith.addf %112, %111 : vector<2x128xf32>
    %114 = arith.divf %112, %113 : vector<2x128xf32>
    %115 = arith.mulf %106, %88 : vector<2x128xf32>
    %116 = arith.mulf %100, %108 : vector<2x128xf32>
    %117 = arith.addf %115, %116 : vector<2x128xf32>
    %118 = math.tanh %117 : vector<2x128xf32>
    %119 = arith.mulf %114, %118 : vector<2x128xf32>
    %c4_37 = arith.constant 4 : index
    %c0_38 = arith.constant 0 : index
    %120 = vector.load %arg17[%c4_37, %c0_38] : memref<16x128xf32, #tpu.memory_space<vmem>>, vector<2x128xf32>
    tpu.vector_store %arg17[%c4_37, %c0_38], %119 {strides = array<i32>} : memref<16x128xf32, #tpu.memory_space<vmem>>, vector<2x128xf32>,
    %121 = vector.extract_strided_slice %31 {offsets = [6, 0], sizes = [2, 512], strides = [1, 1]} : vector<16x512xf32> to vector<2x512xf32>
    %cst_39 = arith.constant dense<0.000000e+00> : vector<2x512xf32>
    %122 = tpu.matmul %119, %26, %cst_39 {dimension_numbers = #tpu.dot_dimension_numbers<[1], [0], [0], [1], [0, 0, 1, 1], [], []>} : vector<2x128xf32>, vector<128x512xf32>, vector<2x512xf32> -> vector<2x512xf32>
    %123 = arith.addf %121, %122 : vector<2x512xf32>
    %124 = vector.extract_strided_slice %123 {offsets = [0, 0], sizes = [2, 128], strides = [1, 1]} : vector<2x512xf32> to vector<2x128xf32>
    %125 = arith.negf %124 : vector<2x128xf32>
    %126 = math.exp %125 : vector<2x128xf32>
    %cst_40 = arith.constant 1.000000e+00 : f32
    %127 = vector.broadcast %cst_40 : f32 to vector<2x128xf32>
    %128 = arith.addf %127, %126 : vector<2x128xf32>
    %129 = arith.divf %127, %128 : vector<2x128xf32>
    %130 = vector.extract_strided_slice %123 {offsets = [0, 128], sizes = [2, 128], strides = [1, 1]} : vector<2x512xf32> to vector<2x128xf32>
    %131 = arith.negf %130 : vector<2x128xf32>
    %132 = math.exp %131 : vector<2x128xf32>
    %cst_41 = arith.constant 1.000000e+00 : f32
    %133 = vector.broadcast %cst_41 : f32 to vector<2x128xf32>
    %134 = arith.addf %133, %132 : vector<2x128xf32>
    %135 = arith.divf %133, %134 : vector<2x128xf32>
    %136 = vector.extract_strided_slice %123 {offsets = [0, 256], sizes = [2, 128], strides = [1, 1]} : vector<2x512xf32> to vector<2x128xf32>
    %137 = math.tanh %136 : vector<2x128xf32>
    %138 = vector.extract_strided_slice %123 {offsets = [0, 384], sizes = [2, 128], strides = [1, 1]} : vector<2x512xf32> to vector<2x128xf32>
    %139 = arith.negf %138 : vector<2x128xf32>
    %140 = math.exp %139 : vector<2x128xf32>
    %cst_42 = arith.constant 1.000000e+00 : f32
    %141 = vector.broadcast %cst_42 : f32 to vector<2x128xf32>
    %142 = arith.addf %141, %140 : vector<2x128xf32>
    %143 = arith.divf %141, %142 : vector<2x128xf32>
    %144 = arith.mulf %135, %117 : vector<2x128xf32>
    %145 = arith.mulf %129, %137 : vector<2x128xf32>
    %146 = arith.addf %144, %145 : vector<2x128xf32>
    %147 = math.tanh %146 : vector<2x128xf32>
    %148 = arith.mulf %143, %147 : vector<2x128xf32>
    %c6_43 = arith.constant 6 : index
    %c0_44 = arith.constant 0 : index
    %149 = vector.load %arg17[%c6_43, %c0_44] : memref<16x128xf32, #tpu.memory_space<vmem>>, vector<2x128xf32>
    tpu.vector_store %arg17[%c6_43, %c0_44], %148 {strides = array<i32>} : memref<16x128xf32, #tpu.memory_space<vmem>>, vector<2x128xf32>,
    %150 = vector.extract_strided_slice %31 {offsets = [8, 0], sizes = [2, 512], strides = [1, 1]} : vector<16x512xf32> to vector<2x512xf32>
    %cst_45 = arith.constant dense<0.000000e+00> : vector<2x512xf32>
    %151 = tpu.matmul %148, %26, %cst_45 {dimension_numbers = #tpu.dot_dimension_numbers<[1], [0], [0], [1], [0, 0, 1, 1], [], []>} : vector<2x128xf32>, vector<128x512xf32>, vector<2x512xf32> -> vector<2x512xf32>
    %152 = arith.addf %150, %151 : vector<2x512xf32>
    %153 = vector.extract_strided_slice %152 {offsets = [0, 0], sizes = [2, 128], strides = [1, 1]} : vector<2x512xf32> to vector<2x128xf32>
    %154 = arith.negf %153 : vector<2x128xf32>
    %155 = math.exp %154 : vector<2x128xf32>
    %cst_46 = arith.constant 1.000000e+00 : f32
    %156 = vector.broadcast %cst_46 : f32 to vector<2x128xf32>
    %157 = arith.addf %156, %155 : vector<2x128xf32>
    %158 = arith.divf %156, %157 : vector<2x128xf32>
    %159 = vector.extract_strided_slice %152 {offsets = [0, 128], sizes = [2, 128], strides = [1, 1]} : vector<2x512xf32> to vector<2x128xf32>
    %160 = arith.negf %159 : vector<2x128xf32>
    %161 = math.exp %160 : vector<2x128xf32>
    %cst_47 = arith.constant 1.000000e+00 : f32
    %162 = vector.broadcast %cst_47 : f32 to vector<2x128xf32>
    %163 = arith.addf %162, %161 : vector<2x128xf32>
    %164 = arith.divf %162, %163 : vector<2x128xf32>
    %165 = vector.extract_strided_slice %152 {offsets = [0, 256], sizes = [2, 128], strides = [1, 1]} : vector<2x512xf32> to vector<2x128xf32>
    %166 = math.tanh %165 : vector<2x128xf32>
    %167 = vector.extract_strided_slice %152 {offsets = [0, 384], sizes = [2, 128], strides = [1, 1]} : vector<2x512xf32> to vector<2x128xf32>
    %168 = arith.negf %167 : vector<2x128xf32>
    %169 = math.exp %168 : vector<2x128xf32>
    %cst_48 = arith.constant 1.000000e+00 : f32
    %170 = vector.broadcast %cst_48 : f32 to vector<2x128xf32>
    %171 = arith.addf %170, %169 : vector<2x128xf32>
    %172 = arith.divf %170, %171 : vector<2x128xf32>
    %173 = arith.mulf %164, %146 : vector<2x128xf32>
    %174 = arith.mulf %158, %166 : vector<2x128xf32>
    %175 = arith.addf %173, %174 : vector<2x128xf32>
    %176 = math.tanh %175 : vector<2x128xf32>
    %177 = arith.mulf %172, %176 : vector<2x128xf32>
    %c8_49 = arith.constant 8 : index
    %c0_50 = arith.constant 0 : index
    %178 = vector.load %arg17[%c8_49, %c0_50] : memref<16x128xf32, #tpu.memory_space<vmem>>, vector<2x128xf32>
    tpu.vector_store %arg17[%c8_49, %c0_50], %177 {strides = array<i32>} : memref<16x128xf32, #tpu.memory_space<vmem>>, vector<2x128xf32>,
    %179 = vector.extract_strided_slice %31 {offsets = [10, 0], sizes = [2, 512], strides = [1, 1]} : vector<16x512xf32> to vector<2x512xf32>
    %cst_51 = arith.constant dense<0.000000e+00> : vector<2x512xf32>
    %180 = tpu.matmul %177, %26, %cst_51 {dimension_numbers = #tpu.dot_dimension_numbers<[1], [0], [0], [1], [0, 0, 1, 1], [], []>} : vector<2x128xf32>, vector<128x512xf32>, vector<2x512xf32> -> vector<2x512xf32>
    %181 = arith.addf %179, %180 : vector<2x512xf32>
    %182 = vector.extract_strided_slice %181 {offsets = [0, 0], sizes = [2, 128], strides = [1, 1]} : vector<2x512xf32> to vector<2x128xf32>
    %183 = arith.negf %182 : vector<2x128xf32>
    %184 = math.exp %183 : vector<2x128xf32>
    %cst_52 = arith.constant 1.000000e+00 : f32
    %185 = vector.broadcast %cst_52 : f32 to vector<2x128xf32>
    %186 = arith.addf %185, %184 : vector<2x128xf32>
    %187 = arith.divf %185, %186 : vector<2x128xf32>
    %188 = vector.extract_strided_slice %181 {offsets = [0, 128], sizes = [2, 128], strides = [1, 1]} : vector<2x512xf32> to vector<2x128xf32>
    %189 = arith.negf %188 : vector<2x128xf32>
    %190 = math.exp %189 : vector<2x128xf32>
    %cst_53 = arith.constant 1.000000e+00 : f32
    %191 = vector.broadcast %cst_53 : f32 to vector<2x128xf32>
    %192 = arith.addf %191, %190 : vector<2x128xf32>
    %193 = arith.divf %191, %192 : vector<2x128xf32>
    %194 = vector.extract_strided_slice %181 {offsets = [0, 256], sizes = [2, 128], strides = [1, 1]} : vector<2x512xf32> to vector<2x128xf32>
    %195 = math.tanh %194 : vector<2x128xf32>
    %196 = vector.extract_strided_slice %181 {offsets = [0, 384], sizes = [2, 128], strides = [1, 1]} : vector<2x512xf32> to vector<2x128xf32>
    %197 = arith.negf %196 : vector<2x128xf32>
    %198 = math.exp %197 : vector<2x128xf32>
    %cst_54 = arith.constant 1.000000e+00 : f32
    %199 = vector.broadcast %cst_54 : f32 to vector<2x128xf32>
    %200 = arith.addf %199, %198 : vector<2x128xf32>
    %201 = arith.divf %199, %200 : vector<2x128xf32>
    %202 = arith.mulf %193, %175 : vector<2x128xf32>
    %203 = arith.mulf %187, %195 : vector<2x128xf32>
    %204 = arith.addf %202, %203 : vector<2x128xf32>
    %205 = math.tanh %204 : vector<2x128xf32>
    %206 = arith.mulf %201, %205 : vector<2x128xf32>
    %c10_55 = arith.constant 10 : index
    %c0_56 = arith.constant 0 : index
    %207 = vector.load %arg17[%c10_55, %c0_56] : memref<16x128xf32, #tpu.memory_space<vmem>>, vector<2x128xf32>
    tpu.vector_store %arg17[%c10_55, %c0_56], %206 {strides = array<i32>} : memref<16x128xf32, #tpu.memory_space<vmem>>, vector<2x128xf32>,
    %208 = vector.extract_strided_slice %31 {offsets = [12, 0], sizes = [2, 512], strides = [1, 1]} : vector<16x512xf32> to vector<2x512xf32>
    %cst_57 = arith.constant dense<0.000000e+00> : vector<2x512xf32>
    %209 = tpu.matmul %206, %26, %cst_57 {dimension_numbers = #tpu.dot_dimension_numbers<[1], [0], [0], [1], [0, 0, 1, 1], [], []>} : vector<2x128xf32>, vector<128x512xf32>, vector<2x512xf32> -> vector<2x512xf32>
    %210 = arith.addf %208, %209 : vector<2x512xf32>
    %211 = vector.extract_strided_slice %210 {offsets = [0, 0], sizes = [2, 128], strides = [1, 1]} : vector<2x512xf32> to vector<2x128xf32>
    %212 = arith.negf %211 : vector<2x128xf32>
    %213 = math.exp %212 : vector<2x128xf32>
    %cst_58 = arith.constant 1.000000e+00 : f32
    %214 = vector.broadcast %cst_58 : f32 to vector<2x128xf32>
    %215 = arith.addf %214, %213 : vector<2x128xf32>
    %216 = arith.divf %214, %215 : vector<2x128xf32>
    %217 = vector.extract_strided_slice %210 {offsets = [0, 128], sizes = [2, 128], strides = [1, 1]} : vector<2x512xf32> to vector<2x128xf32>
    %218 = arith.negf %217 : vector<2x128xf32>
    %219 = math.exp %218 : vector<2x128xf32>
    %cst_59 = arith.constant 1.000000e+00 : f32
    %220 = vector.broadcast %cst_59 : f32 to vector<2x128xf32>
    %221 = arith.addf %220, %219 : vector<2x128xf32>
    %222 = arith.divf %220, %221 : vector<2x128xf32>
    %223 = vector.extract_strided_slice %210 {offsets = [0, 256], sizes = [2, 128], strides = [1, 1]} : vector<2x512xf32> to vector<2x128xf32>
    %224 = math.tanh %223 : vector<2x128xf32>
    %225 = vector.extract_strided_slice %210 {offsets = [0, 384], sizes = [2, 128], strides = [1, 1]} : vector<2x512xf32> to vector<2x128xf32>
    %226 = arith.negf %225 : vector<2x128xf32>
    %227 = math.exp %226 : vector<2x128xf32>
    %cst_60 = arith.constant 1.000000e+00 : f32
    %228 = vector.broadcast %cst_60 : f32 to vector<2x128xf32>
    %229 = arith.addf %228, %227 : vector<2x128xf32>
    %230 = arith.divf %228, %229 : vector<2x128xf32>
    %231 = arith.mulf %222, %204 : vector<2x128xf32>
    %232 = arith.mulf %216, %224 : vector<2x128xf32>
    %233 = arith.addf %231, %232 : vector<2x128xf32>
    %234 = math.tanh %233 : vector<2x128xf32>
    %235 = arith.mulf %230, %234 : vector<2x128xf32>
    %c12_61 = arith.constant 12 : index
    %c0_62 = arith.constant 0 : index
    %236 = vector.load %arg17[%c12_61, %c0_62] : memref<16x128xf32, #tpu.memory_space<vmem>>, vector<2x128xf32>
    tpu.vector_store %arg17[%c12_61, %c0_62], %235 {strides = array<i32>} : memref<16x128xf32, #tpu.memory_space<vmem>>, vector<2x128xf32>,
    %237 = vector.extract_strided_slice %31 {offsets = [14, 0], sizes = [2, 512], strides = [1, 1]} : vector<16x512xf32> to vector<2x512xf32>
    %cst_63 = arith.constant dense<0.000000e+00> : vector<2x512xf32>
    %238 = tpu.matmul %235, %26, %cst_63 {dimension_numbers = #tpu.dot_dimension_numbers<[1], [0], [0], [1], [0, 0, 1, 1], [], []>} : vector<2x128xf32>, vector<128x512xf32>, vector<2x512xf32> -> vector<2x512xf32>
    %239 = arith.addf %237, %238 : vector<2x512xf32>
    %240 = vector.extract_strided_slice %239 {offsets = [0, 0], sizes = [2, 128], strides = [1, 1]} : vector<2x512xf32> to vector<2x128xf32>
    %241 = arith.negf %240 : vector<2x128xf32>
    %242 = math.exp %241 : vector<2x128xf32>
    %cst_64 = arith.constant 1.000000e+00 : f32
    %243 = vector.broadcast %cst_64 : f32 to vector<2x128xf32>
    %244 = arith.addf %243, %242 : vector<2x128xf32>
    %245 = arith.divf %243, %244 : vector<2x128xf32>
    %246 = vector.extract_strided_slice %239 {offsets = [0, 128], sizes = [2, 128], strides = [1, 1]} : vector<2x512xf32> to vector<2x128xf32>
    %247 = arith.negf %246 : vector<2x128xf32>
    %248 = math.exp %247 : vector<2x128xf32>
    %cst_65 = arith.constant 1.000000e+00 : f32
    %249 = vector.broadcast %cst_65 : f32 to vector<2x128xf32>
    %250 = arith.addf %249, %248 : vector<2x128xf32>
    %251 = arith.divf %249, %250 : vector<2x128xf32>
    %252 = vector.extract_strided_slice %239 {offsets = [0, 256], sizes = [2, 128], strides = [1, 1]} : vector<2x512xf32> to vector<2x128xf32>
    %253 = math.tanh %252 : vector<2x128xf32>
    %254 = vector.extract_strided_slice %239 {offsets = [0, 384], sizes = [2, 128], strides = [1, 1]} : vector<2x512xf32> to vector<2x128xf32>
    %255 = arith.negf %254 : vector<2x128xf32>
    %256 = math.exp %255 : vector<2x128xf32>
    %cst_66 = arith.constant 1.000000e+00 : f32
    %257 = vector.broadcast %cst_66 : f32 to vector<2x128xf32>
    %258 = arith.addf %257, %256 : vector<2x128xf32>
    %259 = arith.divf %257, %258 : vector<2x128xf32>
    %260 = arith.mulf %251, %233 : vector<2x128xf32>
    %261 = arith.mulf %245, %253 : vector<2x128xf32>
    %262 = arith.addf %260, %261 : vector<2x128xf32>
    %263 = math.tanh %262 : vector<2x128xf32>
    %264 = arith.mulf %259, %263 : vector<2x128xf32>
    %c14_67 = arith.constant 14 : index
    %c0_68 = arith.constant 0 : index
    %265 = vector.load %arg17[%c14_67, %c0_68] : memref<16x128xf32, #tpu.memory_space<vmem>>, vector<2x128xf32>
    tpu.vector_store %arg17[%c14_67, %c0_68], %264 {strides = array<i32>} : memref<16x128xf32, #tpu.memory_space<vmem>>, vector<2x128xf32>,
    %c0_69 = arith.constant 0 : index
    %c0_70 = arith.constant 0 : index
    %266 = vector.load %arg4[%c0_69, %c0_70] : memref<128x512xf32, #tpu.memory_space<vmem>>, vector<128x512xf32>
    %c0_71 = arith.constant 0 : index
    %c0_72 = arith.constant 0 : index
    %267 = vector.load %arg5[%c0_71, %c0_72] : memref<128x512xf32, #tpu.memory_space<vmem>>, vector<128x512xf32>
    %c0_73 = arith.constant 0 : index
    %c0_74 = arith.constant 0 : index
    %268 = vector.load %arg6[%c0_73, %c0_74] : memref<1x512xf32, #tpu.memory_space<vmem>>, vector<1x512xf32>
    %c0_75 = arith.constant 0 : index
    %c0_76 = arith.constant 0 : index
    %269 = vector.load %arg17[%c0_75, %c0_76] : memref<16x128xf32, #tpu.memory_space<vmem>>, vector<16x128xf32>
    %cst_77 = arith.constant dense<0.000000e+00> : vector<16x512xf32>
    %270 = tpu.matmul %269, %266, %cst_77 {dimension_numbers = #tpu.dot_dimension_numbers<[1], [0], [0], [1], [0, 0, 1, 1], [], []>} : vector<16x128xf32>, vector<128x512xf32>, vector<16x512xf32> -> vector<16x512xf32>
    %271 = vector.broadcast %268 : vector<1x512xf32> to vector<16x512xf32>
    %272 = arith.addf %270, %271 : vector<16x512xf32>
    %cst_78 = arith.constant 0.000000e+00 : f32
    %273 = vector.broadcast %cst_78 : f32 to vector<2x128xf32>
    %cst_79 = arith.constant 0.000000e+00 : f32
    %274 = vector.broadcast %cst_79 : f32 to vector<2x128xf32>
    %275 = vector.extract_strided_slice %272 {offsets = [0, 0], sizes = [2, 512], strides = [1, 1]} : vector<16x512xf32> to vector<2x512xf32>
    %cst_80 = arith.constant dense<0.000000e+00> : vector<2x512xf32>
    %276 = tpu.matmul %273, %267, %cst_80 {dimension_numbers = #tpu.dot_dimension_numbers<[1], [0], [0], [1], [0, 0, 1, 1], [], []>} : vector<2x128xf32>, vector<128x512xf32>, vector<2x512xf32> -> vector<2x512xf32>
    %277 = arith.addf %275, %276 : vector<2x512xf32>
    %278 = vector.extract_strided_slice %277 {offsets = [0, 0], sizes = [2, 128], strides = [1, 1]} : vector<2x512xf32> to vector<2x128xf32>
    %279 = arith.negf %278 : vector<2x128xf32>
    %280 = math.exp %279 : vector<2x128xf32>
    %cst_81 = arith.constant 1.000000e+00 : f32
    %281 = vector.broadcast %cst_81 : f32 to vector<2x128xf32>
    %282 = arith.addf %281, %280 : vector<2x128xf32>
    %283 = arith.divf %281, %282 : vector<2x128xf32>
    %284 = vector.extract_strided_slice %277 {offsets = [0, 128], sizes = [2, 128], strides = [1, 1]} : vector<2x512xf32> to vector<2x128xf32>
    %285 = arith.negf %284 : vector<2x128xf32>
    %286 = math.exp %285 : vector<2x128xf32>
    %cst_82 = arith.constant 1.000000e+00 : f32
    %287 = vector.broadcast %cst_82 : f32 to vector<2x128xf32>
    %288 = arith.addf %287, %286 : vector<2x128xf32>
    %289 = arith.divf %287, %288 : vector<2x128xf32>
    %290 = vector.extract_strided_slice %277 {offsets = [0, 256], sizes = [2, 128], strides = [1, 1]} : vector<2x512xf32> to vector<2x128xf32>
    %291 = math.tanh %290 : vector<2x128xf32>
    %292 = vector.extract_strided_slice %277 {offsets = [0, 384], sizes = [2, 128], strides = [1, 1]} : vector<2x512xf32> to vector<2x128xf32>
    %293 = arith.negf %292 : vector<2x128xf32>
    %294 = math.exp %293 : vector<2x128xf32>
    %cst_83 = arith.constant 1.000000e+00 : f32
    %295 = vector.broadcast %cst_83 : f32 to vector<2x128xf32>
    %296 = arith.addf %295, %294 : vector<2x128xf32>
    %297 = arith.divf %295, %296 : vector<2x128xf32>
    %298 = arith.mulf %289, %274 : vector<2x128xf32>
    %299 = arith.mulf %283, %291 : vector<2x128xf32>
    %300 = arith.addf %298, %299 : vector<2x128xf32>
    %301 = math.tanh %300 : vector<2x128xf32>
    %302 = arith.mulf %297, %301 : vector<2x128xf32>
    %c0_84 = arith.constant 0 : index
    %c0_85 = arith.constant 0 : index
    %303 = vector.load %arg17[%c0_84, %c0_85] : memref<16x128xf32, #tpu.memory_space<vmem>>, vector<2x128xf32>
    tpu.vector_store %arg17[%c0_84, %c0_85], %302 {strides = array<i32>} : memref<16x128xf32, #tpu.memory_space<vmem>>, vector<2x128xf32>,
    %304 = vector.extract_strided_slice %272 {offsets = [2, 0], sizes = [2, 512], strides = [1, 1]} : vector<16x512xf32> to vector<2x512xf32>
    %cst_86 = arith.constant dense<0.000000e+00> : vector<2x512xf32>
    %305 = tpu.matmul %302, %267, %cst_86 {dimension_numbers = #tpu.dot_dimension_numbers<[1], [0], [0], [1], [0, 0, 1, 1], [], []>} : vector<2x128xf32>, vector<128x512xf32>, vector<2x512xf32> -> vector<2x512xf32>
    %306 = arith.addf %304, %305 : vector<2x512xf32>
    %307 = vector.extract_strided_slice %306 {offsets = [0, 0], sizes = [2, 128], strides = [1, 1]} : vector<2x512xf32> to vector<2x128xf32>
    %308 = arith.negf %307 : vector<2x128xf32>
    %309 = math.exp %308 : vector<2x128xf32>
    %cst_87 = arith.constant 1.000000e+00 : f32
    %310 = vector.broadcast %cst_87 : f32 to vector<2x128xf32>
    %311 = arith.addf %310, %309 : vector<2x128xf32>
    %312 = arith.divf %310, %311 : vector<2x128xf32>
    %313 = vector.extract_strided_slice %306 {offsets = [0, 128], sizes = [2, 128], strides = [1, 1]} : vector<2x512xf32> to vector<2x128xf32>
    %314 = arith.negf %313 : vector<2x128xf32>
    %315 = math.exp %314 : vector<2x128xf32>
    %cst_88 = arith.constant 1.000000e+00 : f32
    %316 = vector.broadcast %cst_88 : f32 to vector<2x128xf32>
    %317 = arith.addf %316, %315 : vector<2x128xf32>
    %318 = arith.divf %316, %317 : vector<2x128xf32>
    %319 = vector.extract_strided_slice %306 {offsets = [0, 256], sizes = [2, 128], strides = [1, 1]} : vector<2x512xf32> to vector<2x128xf32>
    %320 = math.tanh %319 : vector<2x128xf32>
    %321 = vector.extract_strided_slice %306 {offsets = [0, 384], sizes = [2, 128], strides = [1, 1]} : vector<2x512xf32> to vector<2x128xf32>
    %322 = arith.negf %321 : vector<2x128xf32>
    %323 = math.exp %322 : vector<2x128xf32>
    %cst_89 = arith.constant 1.000000e+00 : f32
    %324 = vector.broadcast %cst_89 : f32 to vector<2x128xf32>
    %325 = arith.addf %324, %323 : vector<2x128xf32>
    %326 = arith.divf %324, %325 : vector<2x128xf32>
    %327 = arith.mulf %318, %300 : vector<2x128xf32>
    %328 = arith.mulf %312, %320 : vector<2x128xf32>
    %329 = arith.addf %327, %328 : vector<2x128xf32>
    %330 = math.tanh %329 : vector<2x128xf32>
    %331 = arith.mulf %326, %330 : vector<2x128xf32>
    %c2_90 = arith.constant 2 : index
    %c0_91 = arith.constant 0 : index
    %332 = vector.load %arg17[%c2_90, %c0_91] : memref<16x128xf32, #tpu.memory_space<vmem>>, vector<2x128xf32>
    tpu.vector_store %arg17[%c2_90, %c0_91], %331 {strides = array<i32>} : memref<16x128xf32, #tpu.memory_space<vmem>>, vector<2x128xf32>,
    %333 = vector.extract_strided_slice %272 {offsets = [4, 0], sizes = [2, 512], strides = [1, 1]} : vector<16x512xf32> to vector<2x512xf32>
    %cst_92 = arith.constant dense<0.000000e+00> : vector<2x512xf32>
    %334 = tpu.matmul %331, %267, %cst_92 {dimension_numbers = #tpu.dot_dimension_numbers<[1], [0], [0], [1], [0, 0, 1, 1], [], []>} : vector<2x128xf32>, vector<128x512xf32>, vector<2x512xf32> -> vector<2x512xf32>
    %335 = arith.addf %333, %334 : vector<2x512xf32>
    %336 = vector.extract_strided_slice %335 {offsets = [0, 0], sizes = [2, 128], strides = [1, 1]} : vector<2x512xf32> to vector<2x128xf32>
    %337 = arith.negf %336 : vector<2x128xf32>
    %338 = math.exp %337 : vector<2x128xf32>
    %cst_93 = arith.constant 1.000000e+00 : f32
    %339 = vector.broadcast %cst_93 : f32 to vector<2x128xf32>
    %340 = arith.addf %339, %338 : vector<2x128xf32>
    %341 = arith.divf %339, %340 : vector<2x128xf32>
    %342 = vector.extract_strided_slice %335 {offsets = [0, 128], sizes = [2, 128], strides = [1, 1]} : vector<2x512xf32> to vector<2x128xf32>
    %343 = arith.negf %342 : vector<2x128xf32>
    %344 = math.exp %343 : vector<2x128xf32>
    %cst_94 = arith.constant 1.000000e+00 : f32
    %345 = vector.broadcast %cst_94 : f32 to vector<2x128xf32>
    %346 = arith.addf %345, %344 : vector<2x128xf32>
    %347 = arith.divf %345, %346 : vector<2x128xf32>
    %348 = vector.extract_strided_slice %335 {offsets = [0, 256], sizes = [2, 128], strides = [1, 1]} : vector<2x512xf32> to vector<2x128xf32>
    %349 = math.tanh %348 : vector<2x128xf32>
    %350 = vector.extract_strided_slice %335 {offsets = [0, 384], sizes = [2, 128], strides = [1, 1]} : vector<2x512xf32> to vector<2x128xf32>
    %351 = arith.negf %350 : vector<2x128xf32>
    %352 = math.exp %351 : vector<2x128xf32>
    %cst_95 = arith.constant 1.000000e+00 : f32
    %353 = vector.broadcast %cst_95 : f32 to vector<2x128xf32>
    %354 = arith.addf %353, %352 : vector<2x128xf32>
    %355 = arith.divf %353, %354 : vector<2x128xf32>
    %356 = arith.mulf %347, %329 : vector<2x128xf32>
    %357 = arith.mulf %341, %349 : vector<2x128xf32>
    %358 = arith.addf %356, %357 : vector<2x128xf32>
    %359 = math.tanh %358 : vector<2x128xf32>
    %360 = arith.mulf %355, %359 : vector<2x128xf32>
    %c4_96 = arith.constant 4 : index
    %c0_97 = arith.constant 0 : index
    %361 = vector.load %arg17[%c4_96, %c0_97] : memref<16x128xf32, #tpu.memory_space<vmem>>, vector<2x128xf32>
    tpu.vector_store %arg17[%c4_96, %c0_97], %360 {strides = array<i32>} : memref<16x128xf32, #tpu.memory_space<vmem>>, vector<2x128xf32>,
    %362 = vector.extract_strided_slice %272 {offsets = [6, 0], sizes = [2, 512], strides = [1, 1]} : vector<16x512xf32> to vector<2x512xf32>
    %cst_98 = arith.constant dense<0.000000e+00> : vector<2x512xf32>
    %363 = tpu.matmul %360, %267, %cst_98 {dimension_numbers = #tpu.dot_dimension_numbers<[1], [0], [0], [1], [0, 0, 1, 1], [], []>} : vector<2x128xf32>, vector<128x512xf32>, vector<2x512xf32> -> vector<2x512xf32>
    %364 = arith.addf %362, %363 : vector<2x512xf32>
    %365 = vector.extract_strided_slice %364 {offsets = [0, 0], sizes = [2, 128], strides = [1, 1]} : vector<2x512xf32> to vector<2x128xf32>
    %366 = arith.negf %365 : vector<2x128xf32>
    %367 = math.exp %366 : vector<2x128xf32>
    %cst_99 = arith.constant 1.000000e+00 : f32
    %368 = vector.broadcast %cst_99 : f32 to vector<2x128xf32>
    %369 = arith.addf %368, %367 : vector<2x128xf32>
    %370 = arith.divf %368, %369 : vector<2x128xf32>
    %371 = vector.extract_strided_slice %364 {offsets = [0, 128], sizes = [2, 128], strides = [1, 1]} : vector<2x512xf32> to vector<2x128xf32>
    %372 = arith.negf %371 : vector<2x128xf32>
    %373 = math.exp %372 : vector<2x128xf32>
    %cst_100 = arith.constant 1.000000e+00 : f32
    %374 = vector.broadcast %cst_100 : f32 to vector<2x128xf32>
    %375 = arith.addf %374, %373 : vector<2x128xf32>
    %376 = arith.divf %374, %375 : vector<2x128xf32>
    %377 = vector.extract_strided_slice %364 {offsets = [0, 256], sizes = [2, 128], strides = [1, 1]} : vector<2x512xf32> to vector<2x128xf32>
    %378 = math.tanh %377 : vector<2x128xf32>
    %379 = vector.extract_strided_slice %364 {offsets = [0, 384], sizes = [2, 128], strides = [1, 1]} : vector<2x512xf32> to vector<2x128xf32>
    %380 = arith.negf %379 : vector<2x128xf32>
    %381 = math.exp %380 : vector<2x128xf32>
    %cst_101 = arith.constant 1.000000e+00 : f32
    %382 = vector.broadcast %cst_101 : f32 to vector<2x128xf32>
    %383 = arith.addf %382, %381 : vector<2x128xf32>
    %384 = arith.divf %382, %383 : vector<2x128xf32>
    %385 = arith.mulf %376, %358 : vector<2x128xf32>
    %386 = arith.mulf %370, %378 : vector<2x128xf32>
    %387 = arith.addf %385, %386 : vector<2x128xf32>
    %388 = math.tanh %387 : vector<2x128xf32>
    %389 = arith.mulf %384, %388 : vector<2x128xf32>
    %c6_102 = arith.constant 6 : index
    %c0_103 = arith.constant 0 : index
    %390 = vector.load %arg17[%c6_102, %c0_103] : memref<16x128xf32, #tpu.memory_space<vmem>>, vector<2x128xf32>
    tpu.vector_store %arg17[%c6_102, %c0_103], %389 {strides = array<i32>} : memref<16x128xf32, #tpu.memory_space<vmem>>, vector<2x128xf32>,
    %391 = vector.extract_strided_slice %272 {offsets = [8, 0], sizes = [2, 512], strides = [1, 1]} : vector<16x512xf32> to vector<2x512xf32>
    %cst_104 = arith.constant dense<0.000000e+00> : vector<2x512xf32>
    %392 = tpu.matmul %389, %267, %cst_104 {dimension_numbers = #tpu.dot_dimension_numbers<[1], [0], [0], [1], [0, 0, 1, 1], [], []>} : vector<2x128xf32>, vector<128x512xf32>, vector<2x512xf32> -> vector<2x512xf32>
    %393 = arith.addf %391, %392 : vector<2x512xf32>
    %394 = vector.extract_strided_slice %393 {offsets = [0, 0], sizes = [2, 128], strides = [1, 1]} : vector<2x512xf32> to vector<2x128xf32>
    %395 = arith.negf %394 : vector<2x128xf32>
    %396 = math.exp %395 : vector<2x128xf32>
    %cst_105 = arith.constant 1.000000e+00 : f32
    %397 = vector.broadcast %cst_105 : f32 to vector<2x128xf32>
    %398 = arith.addf %397, %396 : vector<2x128xf32>
    %399 = arith.divf %397, %398 : vector<2x128xf32>
    %400 = vector.extract_strided_slice %393 {offsets = [0, 128], sizes = [2, 128], strides = [1, 1]} : vector<2x512xf32> to vector<2x128xf32>
    %401 = arith.negf %400 : vector<2x128xf32>
    %402 = math.exp %401 : vector<2x128xf32>
    %cst_106 = arith.constant 1.000000e+00 : f32
    %403 = vector.broadcast %cst_106 : f32 to vector<2x128xf32>
    %404 = arith.addf %403, %402 : vector<2x128xf32>
    %405 = arith.divf %403, %404 : vector<2x128xf32>
    %406 = vector.extract_strided_slice %393 {offsets = [0, 256], sizes = [2, 128], strides = [1, 1]} : vector<2x512xf32> to vector<2x128xf32>
    %407 = math.tanh %406 : vector<2x128xf32>
    %408 = vector.extract_strided_slice %393 {offsets = [0, 384], sizes = [2, 128], strides = [1, 1]} : vector<2x512xf32> to vector<2x128xf32>
    %409 = arith.negf %408 : vector<2x128xf32>
    %410 = math.exp %409 : vector<2x128xf32>
    %cst_107 = arith.constant 1.000000e+00 : f32
    %411 = vector.broadcast %cst_107 : f32 to vector<2x128xf32>
    %412 = arith.addf %411, %410 : vector<2x128xf32>
    %413 = arith.divf %411, %412 : vector<2x128xf32>
    %414 = arith.mulf %405, %387 : vector<2x128xf32>
    %415 = arith.mulf %399, %407 : vector<2x128xf32>
    %416 = arith.addf %414, %415 : vector<2x128xf32>
    %417 = math.tanh %416 : vector<2x128xf32>
    %418 = arith.mulf %413, %417 : vector<2x128xf32>
    %c8_108 = arith.constant 8 : index
    %c0_109 = arith.constant 0 : index
    %419 = vector.load %arg17[%c8_108, %c0_109] : memref<16x128xf32, #tpu.memory_space<vmem>>, vector<2x128xf32>
    tpu.vector_store %arg17[%c8_108, %c0_109], %418 {strides = array<i32>} : memref<16x128xf32, #tpu.memory_space<vmem>>, vector<2x128xf32>,
    %420 = vector.extract_strided_slice %272 {offsets = [10, 0], sizes = [2, 512], strides = [1, 1]} : vector<16x512xf32> to vector<2x512xf32>
    %cst_110 = arith.constant dense<0.000000e+00> : vector<2x512xf32>
    %421 = tpu.matmul %418, %267, %cst_110 {dimension_numbers = #tpu.dot_dimension_numbers<[1], [0], [0], [1], [0, 0, 1, 1], [], []>} : vector<2x128xf32>, vector<128x512xf32>, vector<2x512xf32> -> vector<2x512xf32>
    %422 = arith.addf %420, %421 : vector<2x512xf32>
    %423 = vector.extract_strided_slice %422 {offsets = [0, 0], sizes = [2, 128], strides = [1, 1]} : vector<2x512xf32> to vector<2x128xf32>
    %424 = arith.negf %423 : vector<2x128xf32>
    %425 = math.exp %424 : vector<2x128xf32>
    %cst_111 = arith.constant 1.000000e+00 : f32
    %426 = vector.broadcast %cst_111 : f32 to vector<2x128xf32>
    %427 = arith.addf %426, %425 : vector<2x128xf32>
    %428 = arith.divf %426, %427 : vector<2x128xf32>
    %429 = vector.extract_strided_slice %422 {offsets = [0, 128], sizes = [2, 128], strides = [1, 1]} : vector<2x512xf32> to vector<2x128xf32>
    %430 = arith.negf %429 : vector<2x128xf32>
    %431 = math.exp %430 : vector<2x128xf32>
    %cst_112 = arith.constant 1.000000e+00 : f32
    %432 = vector.broadcast %cst_112 : f32 to vector<2x128xf32>
    %433 = arith.addf %432, %431 : vector<2x128xf32>
    %434 = arith.divf %432, %433 : vector<2x128xf32>
    %435 = vector.extract_strided_slice %422 {offsets = [0, 256], sizes = [2, 128], strides = [1, 1]} : vector<2x512xf32> to vector<2x128xf32>
    %436 = math.tanh %435 : vector<2x128xf32>
    %437 = vector.extract_strided_slice %422 {offsets = [0, 384], sizes = [2, 128], strides = [1, 1]} : vector<2x512xf32> to vector<2x128xf32>
    %438 = arith.negf %437 : vector<2x128xf32>
    %439 = math.exp %438 : vector<2x128xf32>
    %cst_113 = arith.constant 1.000000e+00 : f32
    %440 = vector.broadcast %cst_113 : f32 to vector<2x128xf32>
    %441 = arith.addf %440, %439 : vector<2x128xf32>
    %442 = arith.divf %440, %441 : vector<2x128xf32>
    %443 = arith.mulf %434, %416 : vector<2x128xf32>
    %444 = arith.mulf %428, %436 : vector<2x128xf32>
    %445 = arith.addf %443, %444 : vector<2x128xf32>
    %446 = math.tanh %445 : vector<2x128xf32>
    %447 = arith.mulf %442, %446 : vector<2x128xf32>
    %c10_114 = arith.constant 10 : index
    %c0_115 = arith.constant 0 : index
    %448 = vector.load %arg17[%c10_114, %c0_115] : memref<16x128xf32, #tpu.memory_space<vmem>>, vector<2x128xf32>
    tpu.vector_store %arg17[%c10_114, %c0_115], %447 {strides = array<i32>} : memref<16x128xf32, #tpu.memory_space<vmem>>, vector<2x128xf32>,
    %449 = vector.extract_strided_slice %272 {offsets = [12, 0], sizes = [2, 512], strides = [1, 1]} : vector<16x512xf32> to vector<2x512xf32>
    %cst_116 = arith.constant dense<0.000000e+00> : vector<2x512xf32>
    %450 = tpu.matmul %447, %267, %cst_116 {dimension_numbers = #tpu.dot_dimension_numbers<[1], [0], [0], [1], [0, 0, 1, 1], [], []>} : vector<2x128xf32>, vector<128x512xf32>, vector<2x512xf32> -> vector<2x512xf32>
    %451 = arith.addf %449, %450 : vector<2x512xf32>
    %452 = vector.extract_strided_slice %451 {offsets = [0, 0], sizes = [2, 128], strides = [1, 1]} : vector<2x512xf32> to vector<2x128xf32>
    %453 = arith.negf %452 : vector<2x128xf32>
    %454 = math.exp %453 : vector<2x128xf32>
    %cst_117 = arith.constant 1.000000e+00 : f32
    %455 = vector.broadcast %cst_117 : f32 to vector<2x128xf32>
    %456 = arith.addf %455, %454 : vector<2x128xf32>
    %457 = arith.divf %455, %456 : vector<2x128xf32>
    %458 = vector.extract_strided_slice %451 {offsets = [0, 128], sizes = [2, 128], strides = [1, 1]} : vector<2x512xf32> to vector<2x128xf32>
    %459 = arith.negf %458 : vector<2x128xf32>
    %460 = math.exp %459 : vector<2x128xf32>
    %cst_118 = arith.constant 1.000000e+00 : f32
    %461 = vector.broadcast %cst_118 : f32 to vector<2x128xf32>
    %462 = arith.addf %461, %460 : vector<2x128xf32>
    %463 = arith.divf %461, %462 : vector<2x128xf32>
    %464 = vector.extract_strided_slice %451 {offsets = [0, 256], sizes = [2, 128], strides = [1, 1]} : vector<2x512xf32> to vector<2x128xf32>
    %465 = math.tanh %464 : vector<2x128xf32>
    %466 = vector.extract_strided_slice %451 {offsets = [0, 384], sizes = [2, 128], strides = [1, 1]} : vector<2x512xf32> to vector<2x128xf32>
    %467 = arith.negf %466 : vector<2x128xf32>
    %468 = math.exp %467 : vector<2x128xf32>
    %cst_119 = arith.constant 1.000000e+00 : f32
    %469 = vector.broadcast %cst_119 : f32 to vector<2x128xf32>
    %470 = arith.addf %469, %468 : vector<2x128xf32>
    %471 = arith.divf %469, %470 : vector<2x128xf32>
    %472 = arith.mulf %463, %445 : vector<2x128xf32>
    %473 = arith.mulf %457, %465 : vector<2x128xf32>
    %474 = arith.addf %472, %473 : vector<2x128xf32>
    %475 = math.tanh %474 : vector<2x128xf32>
    %476 = arith.mulf %471, %475 : vector<2x128xf32>
    %c12_120 = arith.constant 12 : index
    %c0_121 = arith.constant 0 : index
    %477 = vector.load %arg17[%c12_120, %c0_121] : memref<16x128xf32, #tpu.memory_space<vmem>>, vector<2x128xf32>
    tpu.vector_store %arg17[%c12_120, %c0_121], %476 {strides = array<i32>} : memref<16x128xf32, #tpu.memory_space<vmem>>, vector<2x128xf32>,
    %478 = vector.extract_strided_slice %272 {offsets = [14, 0], sizes = [2, 512], strides = [1, 1]} : vector<16x512xf32> to vector<2x512xf32>
    %cst_122 = arith.constant dense<0.000000e+00> : vector<2x512xf32>
    %479 = tpu.matmul %476, %267, %cst_122 {dimension_numbers = #tpu.dot_dimension_numbers<[1], [0], [0], [1], [0, 0, 1, 1], [], []>} : vector<2x128xf32>, vector<128x512xf32>, vector<2x512xf32> -> vector<2x512xf32>
    %480 = arith.addf %478, %479 : vector<2x512xf32>
    %481 = vector.extract_strided_slice %480 {offsets = [0, 0], sizes = [2, 128], strides = [1, 1]} : vector<2x512xf32> to vector<2x128xf32>
    %482 = arith.negf %481 : vector<2x128xf32>
    %483 = math.exp %482 : vector<2x128xf32>
    %cst_123 = arith.constant 1.000000e+00 : f32
    %484 = vector.broadcast %cst_123 : f32 to vector<2x128xf32>
    %485 = arith.addf %484, %483 : vector<2x128xf32>
    %486 = arith.divf %484, %485 : vector<2x128xf32>
    %487 = vector.extract_strided_slice %480 {offsets = [0, 128], sizes = [2, 128], strides = [1, 1]} : vector<2x512xf32> to vector<2x128xf32>
    %488 = arith.negf %487 : vector<2x128xf32>
    %489 = math.exp %488 : vector<2x128xf32>
    %cst_124 = arith.constant 1.000000e+00 : f32
    %490 = vector.broadcast %cst_124 : f32 to vector<2x128xf32>
    %491 = arith.addf %490, %489 : vector<2x128xf32>
    %492 = arith.divf %490, %491 : vector<2x128xf32>
    %493 = vector.extract_strided_slice %480 {offsets = [0, 256], sizes = [2, 128], strides = [1, 1]} : vector<2x512xf32> to vector<2x128xf32>
    %494 = math.tanh %493 : vector<2x128xf32>
    %495 = vector.extract_strided_slice %480 {offsets = [0, 384], sizes = [2, 128], strides = [1, 1]} : vector<2x512xf32> to vector<2x128xf32>
    %496 = arith.negf %495 : vector<2x128xf32>
    %497 = math.exp %496 : vector<2x128xf32>
    %cst_125 = arith.constant 1.000000e+00 : f32
    %498 = vector.broadcast %cst_125 : f32 to vector<2x128xf32>
    %499 = arith.addf %498, %497 : vector<2x128xf32>
    %500 = arith.divf %498, %499 : vector<2x128xf32>
    %501 = arith.mulf %492, %474 : vector<2x128xf32>
    %502 = arith.mulf %486, %494 : vector<2x128xf32>
    %503 = arith.addf %501, %502 : vector<2x128xf32>
    %504 = math.tanh %503 : vector<2x128xf32>
    %505 = arith.mulf %500, %504 : vector<2x128xf32>
    %c14_126 = arith.constant 14 : index
    %c0_127 = arith.constant 0 : index
    %506 = vector.load %arg17[%c14_126, %c0_127] : memref<16x128xf32, #tpu.memory_space<vmem>>, vector<2x128xf32>
    tpu.vector_store %arg17[%c14_126, %c0_127], %505 {strides = array<i32>} : memref<16x128xf32, #tpu.memory_space<vmem>>, vector<2x128xf32>,
    %c0_128 = arith.constant 0 : index
    %c0_129 = arith.constant 0 : index
    %507 = vector.load %arg7[%c0_128, %c0_129] : memref<128x512xf32, #tpu.memory_space<vmem>>, vector<128x512xf32>
    %c0_130 = arith.constant 0 : index
    %c0_131 = arith.constant 0 : index
    %508 = vector.load %arg8[%c0_130, %c0_131] : memref<128x512xf32, #tpu.memory_space<vmem>>, vector<128x512xf32>
    %c0_132 = arith.constant 0 : index
    %c0_133 = arith.constant 0 : index
    %509 = vector.load %arg9[%c0_132, %c0_133] : memref<1x512xf32, #tpu.memory_space<vmem>>, vector<1x512xf32>
    %c0_134 = arith.constant 0 : index
    %c0_135 = arith.constant 0 : index
    %510 = vector.load %arg17[%c0_134, %c0_135] : memref<16x128xf32, #tpu.memory_space<vmem>>, vector<16x128xf32>
    %cst_136 = arith.constant dense<0.000000e+00> : vector<16x512xf32>
    %511 = tpu.matmul %510, %507, %cst_136 {dimension_numbers = #tpu.dot_dimension_numbers<[1], [0], [0], [1], [0, 0, 1, 1], [], []>} : vector<16x128xf32>, vector<128x512xf32>, vector<16x512xf32> -> vector<16x512xf32>
    %512 = vector.broadcast %509 : vector<1x512xf32> to vector<16x512xf32>
    %513 = arith.addf %511, %512 : vector<16x512xf32>
    %cst_137 = arith.constant 0.000000e+00 : f32
    %514 = vector.broadcast %cst_137 : f32 to vector<2x128xf32>
    %cst_138 = arith.constant 0.000000e+00 : f32
    %515 = vector.broadcast %cst_138 : f32 to vector<2x128xf32>
    %516 = vector.extract_strided_slice %513 {offsets = [0, 0], sizes = [2, 512], strides = [1, 1]} : vector<16x512xf32> to vector<2x512xf32>
    %cst_139 = arith.constant dense<0.000000e+00> : vector<2x512xf32>
    %517 = tpu.matmul %514, %508, %cst_139 {dimension_numbers = #tpu.dot_dimension_numbers<[1], [0], [0], [1], [0, 0, 1, 1], [], []>} : vector<2x128xf32>, vector<128x512xf32>, vector<2x512xf32> -> vector<2x512xf32>
    %518 = arith.addf %516, %517 : vector<2x512xf32>
    %519 = vector.extract_strided_slice %518 {offsets = [0, 0], sizes = [2, 128], strides = [1, 1]} : vector<2x512xf32> to vector<2x128xf32>
    %520 = arith.negf %519 : vector<2x128xf32>
    %521 = math.exp %520 : vector<2x128xf32>
    %cst_140 = arith.constant 1.000000e+00 : f32
    %522 = vector.broadcast %cst_140 : f32 to vector<2x128xf32>
    %523 = arith.addf %522, %521 : vector<2x128xf32>
    %524 = arith.divf %522, %523 : vector<2x128xf32>
    %525 = vector.extract_strided_slice %518 {offsets = [0, 128], sizes = [2, 128], strides = [1, 1]} : vector<2x512xf32> to vector<2x128xf32>
    %526 = arith.negf %525 : vector<2x128xf32>
    %527 = math.exp %526 : vector<2x128xf32>
    %cst_141 = arith.constant 1.000000e+00 : f32
    %528 = vector.broadcast %cst_141 : f32 to vector<2x128xf32>
    %529 = arith.addf %528, %527 : vector<2x128xf32>
    %530 = arith.divf %528, %529 : vector<2x128xf32>
    %531 = vector.extract_strided_slice %518 {offsets = [0, 256], sizes = [2, 128], strides = [1, 1]} : vector<2x512xf32> to vector<2x128xf32>
    %532 = math.tanh %531 : vector<2x128xf32>
    %533 = vector.extract_strided_slice %518 {offsets = [0, 384], sizes = [2, 128], strides = [1, 1]} : vector<2x512xf32> to vector<2x128xf32>
    %534 = arith.negf %533 : vector<2x128xf32>
    %535 = math.exp %534 : vector<2x128xf32>
    %cst_142 = arith.constant 1.000000e+00 : f32
    %536 = vector.broadcast %cst_142 : f32 to vector<2x128xf32>
    %537 = arith.addf %536, %535 : vector<2x128xf32>
    %538 = arith.divf %536, %537 : vector<2x128xf32>
    %539 = arith.mulf %530, %515 : vector<2x128xf32>
    %540 = arith.mulf %524, %532 : vector<2x128xf32>
    %541 = arith.addf %539, %540 : vector<2x128xf32>
    %542 = math.tanh %541 : vector<2x128xf32>
    %543 = arith.mulf %538, %542 : vector<2x128xf32>
    %544 = vector.extract_strided_slice %513 {offsets = [2, 0], sizes = [2, 512], strides = [1, 1]} : vector<16x512xf32> to vector<2x512xf32>
    %cst_143 = arith.constant dense<0.000000e+00> : vector<2x512xf32>
    %545 = tpu.matmul %543, %508, %cst_143 {dimension_numbers = #tpu.dot_dimension_numbers<[1], [0], [0], [1], [0, 0, 1, 1], [], []>} : vector<2x128xf32>, vector<128x512xf32>, vector<2x512xf32> -> vector<2x512xf32>
    %546 = arith.addf %544, %545 : vector<2x512xf32>
    %547 = vector.extract_strided_slice %546 {offsets = [0, 0], sizes = [2, 128], strides = [1, 1]} : vector<2x512xf32> to vector<2x128xf32>
    %548 = arith.negf %547 : vector<2x128xf32>
    %549 = math.exp %548 : vector<2x128xf32>
    %cst_144 = arith.constant 1.000000e+00 : f32
    %550 = vector.broadcast %cst_144 : f32 to vector<2x128xf32>
    %551 = arith.addf %550, %549 : vector<2x128xf32>
    %552 = arith.divf %550, %551 : vector<2x128xf32>
    %553 = vector.extract_strided_slice %546 {offsets = [0, 128], sizes = [2, 128], strides = [1, 1]} : vector<2x512xf32> to vector<2x128xf32>
    %554 = arith.negf %553 : vector<2x128xf32>
    %555 = math.exp %554 : vector<2x128xf32>
    %cst_145 = arith.constant 1.000000e+00 : f32
    %556 = vector.broadcast %cst_145 : f32 to vector<2x128xf32>
    %557 = arith.addf %556, %555 : vector<2x128xf32>
    %558 = arith.divf %556, %557 : vector<2x128xf32>
    %559 = vector.extract_strided_slice %546 {offsets = [0, 256], sizes = [2, 128], strides = [1, 1]} : vector<2x512xf32> to vector<2x128xf32>
    %560 = math.tanh %559 : vector<2x128xf32>
    %561 = vector.extract_strided_slice %546 {offsets = [0, 384], sizes = [2, 128], strides = [1, 1]} : vector<2x512xf32> to vector<2x128xf32>
    %562 = arith.negf %561 : vector<2x128xf32>
    %563 = math.exp %562 : vector<2x128xf32>
    %cst_146 = arith.constant 1.000000e+00 : f32
    %564 = vector.broadcast %cst_146 : f32 to vector<2x128xf32>
    %565 = arith.addf %564, %563 : vector<2x128xf32>
    %566 = arith.divf %564, %565 : vector<2x128xf32>
    %567 = arith.mulf %558, %541 : vector<2x128xf32>
    %568 = arith.mulf %552, %560 : vector<2x128xf32>
    %569 = arith.addf %567, %568 : vector<2x128xf32>
    %570 = math.tanh %569 : vector<2x128xf32>
    %571 = arith.mulf %566, %570 : vector<2x128xf32>
    %572 = vector.extract_strided_slice %513 {offsets = [4, 0], sizes = [2, 512], strides = [1, 1]} : vector<16x512xf32> to vector<2x512xf32>
    %cst_147 = arith.constant dense<0.000000e+00> : vector<2x512xf32>
    %573 = tpu.matmul %571, %508, %cst_147 {dimension_numbers = #tpu.dot_dimension_numbers<[1], [0], [0], [1], [0, 0, 1, 1], [], []>} : vector<2x128xf32>, vector<128x512xf32>, vector<2x512xf32> -> vector<2x512xf32>
    %574 = arith.addf %572, %573 : vector<2x512xf32>
    %575 = vector.extract_strided_slice %574 {offsets = [0, 0], sizes = [2, 128], strides = [1, 1]} : vector<2x512xf32> to vector<2x128xf32>
    %576 = arith.negf %575 : vector<2x128xf32>
    %577 = math.exp %576 : vector<2x128xf32>
    %cst_148 = arith.constant 1.000000e+00 : f32
    %578 = vector.broadcast %cst_148 : f32 to vector<2x128xf32>
    %579 = arith.addf %578, %577 : vector<2x128xf32>
    %580 = arith.divf %578, %579 : vector<2x128xf32>
    %581 = vector.extract_strided_slice %574 {offsets = [0, 128], sizes = [2, 128], strides = [1, 1]} : vector<2x512xf32> to vector<2x128xf32>
    %582 = arith.negf %581 : vector<2x128xf32>
    %583 = math.exp %582 : vector<2x128xf32>
    %cst_149 = arith.constant 1.000000e+00 : f32
    %584 = vector.broadcast %cst_149 : f32 to vector<2x128xf32>
    %585 = arith.addf %584, %583 : vector<2x128xf32>
    %586 = arith.divf %584, %585 : vector<2x128xf32>
    %587 = vector.extract_strided_slice %574 {offsets = [0, 256], sizes = [2, 128], strides = [1, 1]} : vector<2x512xf32> to vector<2x128xf32>
    %588 = math.tanh %587 : vector<2x128xf32>
    %589 = vector.extract_strided_slice %574 {offsets = [0, 384], sizes = [2, 128], strides = [1, 1]} : vector<2x512xf32> to vector<2x128xf32>
    %590 = arith.negf %589 : vector<2x128xf32>
    %591 = math.exp %590 : vector<2x128xf32>
    %cst_150 = arith.constant 1.000000e+00 : f32
    %592 = vector.broadcast %cst_150 : f32 to vector<2x128xf32>
    %593 = arith.addf %592, %591 : vector<2x128xf32>
    %594 = arith.divf %592, %593 : vector<2x128xf32>
    %595 = arith.mulf %586, %569 : vector<2x128xf32>
    %596 = arith.mulf %580, %588 : vector<2x128xf32>
    %597 = arith.addf %595, %596 : vector<2x128xf32>
    %598 = math.tanh %597 : vector<2x128xf32>
    %599 = arith.mulf %594, %598 : vector<2x128xf32>
    %600 = vector.extract_strided_slice %513 {offsets = [6, 0], sizes = [2, 512], strides = [1, 1]} : vector<16x512xf32> to vector<2x512xf32>
    %cst_151 = arith.constant dense<0.000000e+00> : vector<2x512xf32>
    %601 = tpu.matmul %599, %508, %cst_151 {dimension_numbers = #tpu.dot_dimension_numbers<[1], [0], [0], [1], [0, 0, 1, 1], [], []>} : vector<2x128xf32>, vector<128x512xf32>, vector<2x512xf32> -> vector<2x512xf32>
    %602 = arith.addf %600, %601 : vector<2x512xf32>
    %603 = vector.extract_strided_slice %602 {offsets = [0, 0], sizes = [2, 128], strides = [1, 1]} : vector<2x512xf32> to vector<2x128xf32>
    %604 = arith.negf %603 : vector<2x128xf32>
    %605 = math.exp %604 : vector<2x128xf32>
    %cst_152 = arith.constant 1.000000e+00 : f32
    %606 = vector.broadcast %cst_152 : f32 to vector<2x128xf32>
    %607 = arith.addf %606, %605 : vector<2x128xf32>
    %608 = arith.divf %606, %607 : vector<2x128xf32>
    %609 = vector.extract_strided_slice %602 {offsets = [0, 128], sizes = [2, 128], strides = [1, 1]} : vector<2x512xf32> to vector<2x128xf32>
    %610 = arith.negf %609 : vector<2x128xf32>
    %611 = math.exp %610 : vector<2x128xf32>
    %cst_153 = arith.constant 1.000000e+00 : f32
    %612 = vector.broadcast %cst_153 : f32 to vector<2x128xf32>
    %613 = arith.addf %612, %611 : vector<2x128xf32>
    %614 = arith.divf %612, %613 : vector<2x128xf32>
    %615 = vector.extract_strided_slice %602 {offsets = [0, 256], sizes = [2, 128], strides = [1, 1]} : vector<2x512xf32> to vector<2x128xf32>
    %616 = math.tanh %615 : vector<2x128xf32>
    %617 = vector.extract_strided_slice %602 {offsets = [0, 384], sizes = [2, 128], strides = [1, 1]} : vector<2x512xf32> to vector<2x128xf32>
    %618 = arith.negf %617 : vector<2x128xf32>
    %619 = math.exp %618 : vector<2x128xf32>
    %cst_154 = arith.constant 1.000000e+00 : f32
    %620 = vector.broadcast %cst_154 : f32 to vector<2x128xf32>
    %621 = arith.addf %620, %619 : vector<2x128xf32>
    %622 = arith.divf %620, %621 : vector<2x128xf32>
    %623 = arith.mulf %614, %597 : vector<2x128xf32>
    %624 = arith.mulf %608, %616 : vector<2x128xf32>
    %625 = arith.addf %623, %624 : vector<2x128xf32>
    %626 = math.tanh %625 : vector<2x128xf32>
    %627 = arith.mulf %622, %626 : vector<2x128xf32>
    %628 = vector.extract_strided_slice %513 {offsets = [8, 0], sizes = [2, 512], strides = [1, 1]} : vector<16x512xf32> to vector<2x512xf32>
    %cst_155 = arith.constant dense<0.000000e+00> : vector<2x512xf32>
    %629 = tpu.matmul %627, %508, %cst_155 {dimension_numbers = #tpu.dot_dimension_numbers<[1], [0], [0], [1], [0, 0, 1, 1], [], []>} : vector<2x128xf32>, vector<128x512xf32>, vector<2x512xf32> -> vector<2x512xf32>
    %630 = arith.addf %628, %629 : vector<2x512xf32>
    %631 = vector.extract_strided_slice %630 {offsets = [0, 0], sizes = [2, 128], strides = [1, 1]} : vector<2x512xf32> to vector<2x128xf32>
    %632 = arith.negf %631 : vector<2x128xf32>
    %633 = math.exp %632 : vector<2x128xf32>
    %cst_156 = arith.constant 1.000000e+00 : f32
    %634 = vector.broadcast %cst_156 : f32 to vector<2x128xf32>
    %635 = arith.addf %634, %633 : vector<2x128xf32>
    %636 = arith.divf %634, %635 : vector<2x128xf32>
    %637 = vector.extract_strided_slice %630 {offsets = [0, 128], sizes = [2, 128], strides = [1, 1]} : vector<2x512xf32> to vector<2x128xf32>
    %638 = arith.negf %637 : vector<2x128xf32>
    %639 = math.exp %638 : vector<2x128xf32>
    %cst_157 = arith.constant 1.000000e+00 : f32
    %640 = vector.broadcast %cst_157 : f32 to vector<2x128xf32>
    %641 = arith.addf %640, %639 : vector<2x128xf32>
    %642 = arith.divf %640, %641 : vector<2x128xf32>
    %643 = vector.extract_strided_slice %630 {offsets = [0, 256], sizes = [2, 128], strides = [1, 1]} : vector<2x512xf32> to vector<2x128xf32>
    %644 = math.tanh %643 : vector<2x128xf32>
    %645 = vector.extract_strided_slice %630 {offsets = [0, 384], sizes = [2, 128], strides = [1, 1]} : vector<2x512xf32> to vector<2x128xf32>
    %646 = arith.negf %645 : vector<2x128xf32>
    %647 = math.exp %646 : vector<2x128xf32>
    %cst_158 = arith.constant 1.000000e+00 : f32
    %648 = vector.broadcast %cst_158 : f32 to vector<2x128xf32>
    %649 = arith.addf %648, %647 : vector<2x128xf32>
    %650 = arith.divf %648, %649 : vector<2x128xf32>
    %651 = arith.mulf %642, %625 : vector<2x128xf32>
    %652 = arith.mulf %636, %644 : vector<2x128xf32>
    %653 = arith.addf %651, %652 : vector<2x128xf32>
    %654 = math.tanh %653 : vector<2x128xf32>
    %655 = arith.mulf %650, %654 : vector<2x128xf32>
    %656 = vector.extract_strided_slice %513 {offsets = [10, 0], sizes = [2, 512], strides = [1, 1]} : vector<16x512xf32> to vector<2x512xf32>
    %cst_159 = arith.constant dense<0.000000e+00> : vector<2x512xf32>
    %657 = tpu.matmul %655, %508, %cst_159 {dimension_numbers = #tpu.dot_dimension_numbers<[1], [0], [0], [1], [0, 0, 1, 1], [], []>} : vector<2x128xf32>, vector<128x512xf32>, vector<2x512xf32> -> vector<2x512xf32>
    %658 = arith.addf %656, %657 : vector<2x512xf32>
    %659 = vector.extract_strided_slice %658 {offsets = [0, 0], sizes = [2, 128], strides = [1, 1]} : vector<2x512xf32> to vector<2x128xf32>
    %660 = arith.negf %659 : vector<2x128xf32>
    %661 = math.exp %660 : vector<2x128xf32>
    %cst_160 = arith.constant 1.000000e+00 : f32
    %662 = vector.broadcast %cst_160 : f32 to vector<2x128xf32>
    %663 = arith.addf %662, %661 : vector<2x128xf32>
    %664 = arith.divf %662, %663 : vector<2x128xf32>
    %665 = vector.extract_strided_slice %658 {offsets = [0, 128], sizes = [2, 128], strides = [1, 1]} : vector<2x512xf32> to vector<2x128xf32>
    %666 = arith.negf %665 : vector<2x128xf32>
    %667 = math.exp %666 : vector<2x128xf32>
    %cst_161 = arith.constant 1.000000e+00 : f32
    %668 = vector.broadcast %cst_161 : f32 to vector<2x128xf32>
    %669 = arith.addf %668, %667 : vector<2x128xf32>
    %670 = arith.divf %668, %669 : vector<2x128xf32>
    %671 = vector.extract_strided_slice %658 {offsets = [0, 256], sizes = [2, 128], strides = [1, 1]} : vector<2x512xf32> to vector<2x128xf32>
    %672 = math.tanh %671 : vector<2x128xf32>
    %673 = vector.extract_strided_slice %658 {offsets = [0, 384], sizes = [2, 128], strides = [1, 1]} : vector<2x512xf32> to vector<2x128xf32>
    %674 = arith.negf %673 : vector<2x128xf32>
    %675 = math.exp %674 : vector<2x128xf32>
    %cst_162 = arith.constant 1.000000e+00 : f32
    %676 = vector.broadcast %cst_162 : f32 to vector<2x128xf32>
    %677 = arith.addf %676, %675 : vector<2x128xf32>
    %678 = arith.divf %676, %677 : vector<2x128xf32>
    %679 = arith.mulf %670, %653 : vector<2x128xf32>
    %680 = arith.mulf %664, %672 : vector<2x128xf32>
    %681 = arith.addf %679, %680 : vector<2x128xf32>
    %682 = math.tanh %681 : vector<2x128xf32>
    %683 = arith.mulf %678, %682 : vector<2x128xf32>
    %684 = vector.extract_strided_slice %513 {offsets = [12, 0], sizes = [2, 512], strides = [1, 1]} : vector<16x512xf32> to vector<2x512xf32>
    %cst_163 = arith.constant dense<0.000000e+00> : vector<2x512xf32>
    %685 = tpu.matmul %683, %508, %cst_163 {dimension_numbers = #tpu.dot_dimension_numbers<[1], [0], [0], [1], [0, 0, 1, 1], [], []>} : vector<2x128xf32>, vector<128x512xf32>, vector<2x512xf32> -> vector<2x512xf32>
    %686 = arith.addf %684, %685 : vector<2x512xf32>
    %687 = vector.extract_strided_slice %686 {offsets = [0, 0], sizes = [2, 128], strides = [1, 1]} : vector<2x512xf32> to vector<2x128xf32>
    %688 = arith.negf %687 : vector<2x128xf32>
    %689 = math.exp %688 : vector<2x128xf32>
    %cst_164 = arith.constant 1.000000e+00 : f32
    %690 = vector.broadcast %cst_164 : f32 to vector<2x128xf32>
    %691 = arith.addf %690, %689 : vector<2x128xf32>
    %692 = arith.divf %690, %691 : vector<2x128xf32>
    %693 = vector.extract_strided_slice %686 {offsets = [0, 128], sizes = [2, 128], strides = [1, 1]} : vector<2x512xf32> to vector<2x128xf32>
    %694 = arith.negf %693 : vector<2x128xf32>
    %695 = math.exp %694 : vector<2x128xf32>
    %cst_165 = arith.constant 1.000000e+00 : f32
    %696 = vector.broadcast %cst_165 : f32 to vector<2x128xf32>
    %697 = arith.addf %696, %695 : vector<2x128xf32>
    %698 = arith.divf %696, %697 : vector<2x128xf32>
    %699 = vector.extract_strided_slice %686 {offsets = [0, 256], sizes = [2, 128], strides = [1, 1]} : vector<2x512xf32> to vector<2x128xf32>
    %700 = math.tanh %699 : vector<2x128xf32>
    %701 = vector.extract_strided_slice %686 {offsets = [0, 384], sizes = [2, 128], strides = [1, 1]} : vector<2x512xf32> to vector<2x128xf32>
    %702 = arith.negf %701 : vector<2x128xf32>
    %703 = math.exp %702 : vector<2x128xf32>
    %cst_166 = arith.constant 1.000000e+00 : f32
    %704 = vector.broadcast %cst_166 : f32 to vector<2x128xf32>
    %705 = arith.addf %704, %703 : vector<2x128xf32>
    %706 = arith.divf %704, %705 : vector<2x128xf32>
    %707 = arith.mulf %698, %681 : vector<2x128xf32>
    %708 = arith.mulf %692, %700 : vector<2x128xf32>
    %709 = arith.addf %707, %708 : vector<2x128xf32>
    %710 = math.tanh %709 : vector<2x128xf32>
    %711 = arith.mulf %706, %710 : vector<2x128xf32>
    %712 = vector.extract_strided_slice %513 {offsets = [14, 0], sizes = [2, 512], strides = [1, 1]} : vector<16x512xf32> to vector<2x512xf32>
    %cst_167 = arith.constant dense<0.000000e+00> : vector<2x512xf32>
    %713 = tpu.matmul %711, %508, %cst_167 {dimension_numbers = #tpu.dot_dimension_numbers<[1], [0], [0], [1], [0, 0, 1, 1], [], []>} : vector<2x128xf32>, vector<128x512xf32>, vector<2x512xf32> -> vector<2x512xf32>
    %714 = arith.addf %712, %713 : vector<2x512xf32>
    %715 = vector.extract_strided_slice %714 {offsets = [0, 0], sizes = [2, 128], strides = [1, 1]} : vector<2x512xf32> to vector<2x128xf32>
    %716 = arith.negf %715 : vector<2x128xf32>
    %717 = math.exp %716 : vector<2x128xf32>
    %cst_168 = arith.constant 1.000000e+00 : f32
    %718 = vector.broadcast %cst_168 : f32 to vector<2x128xf32>
    %719 = arith.addf %718, %717 : vector<2x128xf32>
    %720 = arith.divf %718, %719 : vector<2x128xf32>
    %721 = vector.extract_strided_slice %714 {offsets = [0, 128], sizes = [2, 128], strides = [1, 1]} : vector<2x512xf32> to vector<2x128xf32>
    %722 = arith.negf %721 : vector<2x128xf32>
    %723 = math.exp %722 : vector<2x128xf32>
    %cst_169 = arith.constant 1.000000e+00 : f32
    %724 = vector.broadcast %cst_169 : f32 to vector<2x128xf32>
    %725 = arith.addf %724, %723 : vector<2x128xf32>
    %726 = arith.divf %724, %725 : vector<2x128xf32>
    %727 = vector.extract_strided_slice %714 {offsets = [0, 256], sizes = [2, 128], strides = [1, 1]} : vector<2x512xf32> to vector<2x128xf32>
    %728 = math.tanh %727 : vector<2x128xf32>
    %729 = vector.extract_strided_slice %714 {offsets = [0, 384], sizes = [2, 128], strides = [1, 1]} : vector<2x512xf32> to vector<2x128xf32>
    %730 = arith.negf %729 : vector<2x128xf32>
    %731 = math.exp %730 : vector<2x128xf32>
    %cst_170 = arith.constant 1.000000e+00 : f32
    %732 = vector.broadcast %cst_170 : f32 to vector<2x128xf32>
    %733 = arith.addf %732, %731 : vector<2x128xf32>
    %734 = arith.divf %732, %733 : vector<2x128xf32>
    %735 = arith.mulf %726, %709 : vector<2x128xf32>
    %736 = arith.mulf %720, %728 : vector<2x128xf32>
    %737 = arith.addf %735, %736 : vector<2x128xf32>
    %738 = math.tanh %737 : vector<2x128xf32>
    %739 = arith.mulf %734, %738 : vector<2x128xf32>
    %c0_171 = arith.constant 0 : index
    %c0_172 = arith.constant 0 : index
    %740 = vector.load %arg10[%c0_171, %c0_172] : memref<128x128xf32, #tpu.memory_space<vmem>>, vector<128x128xf32>
    %cst_173 = arith.constant dense<0.000000e+00> : vector<2x128xf32>
    %741 = tpu.matmul %739, %740, %cst_173 {dimension_numbers = #tpu.dot_dimension_numbers<[1], [0], [0], [1], [0, 0, 1, 1], [], []>} : vector<2x128xf32>, vector<128x128xf32>, vector<2x128xf32> -> vector<2x128xf32>
    %c0_174 = arith.constant 0 : index
    %c0_175 = arith.constant 0 : index
    %742 = vector.load %arg11[%c0_174, %c0_175] : memref<1x128xf32, #tpu.memory_space<vmem>>, vector<1x128xf32>
    %743 = vector.broadcast %742 : vector<1x128xf32> to vector<2x128xf32>
    %744 = arith.addf %741, %743 : vector<2x128xf32>
    %745 = arith.mulf %744, %744 : vector<2x128xf32>
    %cst_176 = arith.constant dense<0.000000e+00> : vector<2xf32>
    %746 = vector.multi_reduction <add>, %745, %cst_176 [1] : vector<2x128xf32> to vector<2xf32>
    %747 = vector.shape_cast %746 : vector<2xf32> to vector<2x1xf32>
    %cst_177 = arith.constant 9.99999996E-13 : f32
    %748 = vector.broadcast %cst_177 : f32 to vector<2x1xf32>
    %749 = arith.addf %747, %748 : vector<2x1xf32>
    %750 = math.rsqrt %749 : vector<2x1xf32>
    %751 = vector.broadcast %750 : vector<2x1xf32> to vector<2x128xf32>
    %752 = arith.mulf %744, %751 : vector<2x128xf32>
    %c0_178 = arith.constant 0 : index
    %c0_179 = arith.constant 0 : index
    %753 = vector.load %arg15[%c0_178, %c0_179] : memref<2x128xf32, #tpu.memory_space<vmem>>, vector<2x128xf32>
    tpu.vector_store %arg15[%c0_178, %c0_179], %752 {strides = array<i32>} : memref<2x128xf32, #tpu.memory_space<vmem>>, vector<2x128xf32>,
    %c0_180 = arith.constant 0 : index
    %c0_181 = arith.constant 0 : index
    %754 = vector.load %arg12[%c0_180, %c0_181] : memref<128x128xf32, #tpu.memory_space<vmem>>, vector<128x128xf32>
    %cst_182 = arith.constant dense<0.000000e+00> : vector<2x128xf32>
    %755 = tpu.matmul %744, %754, %cst_182 {dimension_numbers = #tpu.dot_dimension_numbers<[1], [0], [0], [1], [0, 0, 1, 1], [], []>} : vector<2x128xf32>, vector<128x128xf32>, vector<2x128xf32> -> vector<2x128xf32>
    %c0_183 = arith.constant 0 : index
    %c0_184 = arith.constant 0 : index
    %756 = vector.load %arg13[%c0_183, %c0_184] : memref<1x128xf32, #tpu.memory_space<vmem>>, vector<1x128xf32>
    %757 = vector.broadcast %756 : vector<1x128xf32> to vector<2x128xf32>
    %758 = arith.addf %755, %757 : vector<2x128xf32>
    %c0_185 = arith.constant 0 : index
    %c0_186 = arith.constant 0 : index
    %759 = vector.load %arg14[%c0_185, %c0_186] : memref<2x128xf32, #tpu.memory_space<vmem>>, vector<2x128xf32>
    tpu.vector_store %arg14[%c0_185, %c0_186], %758 {strides = array<i32>} : memref<2x128xf32, #tpu.memory_space<vmem>>, vector<2x128xf32>,
    return
  }
}

</mosaic_0001>

<bundles_post_ra>
// kernel: lstm_dv_forward.1
= control target key start
LH: loop header
LB: loop body
LE: loop exit
PB: predicated region body
PF: predicated region fallthrough
CT: control target
= control target key end

     0   :  { %21 = vsyncpa [#allocation5], 0  ;;  %s9002_s0 = inlined_call_operand.hbm [shape: f32[2,8,80], index: 0, kind: input, shape index: {}]   ;;  %s9003_s1 = inlined_call_operand.hbm [shape: f32[80,512], index: 1, kind: input, shape index: {}]   ;;  %s9004_s2 = inlined_call_operand.hbm [shape: f32[128,512], index: 2, kind: input, shape index: {}]   ;;  %s9005_s3 = inlined_call_operand.hbm [shape: f32[1,512], index: 3, kind: input, shape index: {}]   ;;  %s9006_s4 = inlined_call_operand.hbm [shape: f32[128,512], index: 4, kind: input, shape index: {}]   ;;  %s9007_s5 = inlined_call_operand.hbm [shape: f32[128,512], index: 5, kind: input, shape index: {}]   ;;  %s9008_s6 = inlined_call_operand.vmem [shape: f32[1,512], index: 6, kind: input, shape index: {}]   ;;  %s9009_s7 = inlined_call_operand.hbm [shape: f32[128,512], index: 7, kind: input, shape index: {}]   ;;  %s9010_s8 = inlined_call_operand.hbm [shape: f32[128,512], index: 8, kind: input, shape index: {}]   ;;  %s9011_s9 = inlined_call_operand.vmem [shape: f32[1,512], index: 9, kind: input, shape index: {}]   ;;  %s9012_s10 = inlined_call_operand.hbm [shape: f32[128,128], index: 10, kind: input, shape index: {}]   ;;  %s9013_s11 = inlined_call_operand.hbm [shape: f32[1,128], index: 11, kind: input, shape index: {}]   ;;  %s9014_s12 = inlined_call_operand.hbm [shape: f32[128,128], index: 12, kind: input, shape index: {}]   ;;  %s9015_s13 = inlined_call_operand.hbm [shape: f32[1,128], index: 13, kind: input, shape index: {}]   ;;  %s9016_s14 = inlined_call_operand.hbm [shape: f32[2,128], index: 14, kind: output, shape index: {0}]   ;;  %s9017_s15 = inlined_call_operand.hbm [shape: f32[2,128], index: 15, kind: output, shape index: {1}]  }
   0x1   :  { %22 = vsyncpa [#allocation8], 0 }
   0x2   :  { %23 = vsyncpa [#allocation11], 0 }
   0x3   :  { %24 = vsyncpa [#allocation14], 0 }
   0x4   :  { %25 = vsyncpa [#allocation17], 0 }
   0x5   :  { %26 = vsyncpa [#allocation20], 0 }
   0x6   :  { %27 = vsyncpa [#allocation23], 0 }
   0x7   :  { %28 = vsyncpa [#allocation6], 0  ;;  %s47_s20 = sshll.u32 %s9003_s1, 4  ;;  %s48_s20 = int_to_ptr.hbm [resolvable:$true] %s47_s20 }
   0x8   :  { %29 = vsyncpa [#allocation26], 0  ;;  %s5999_s21 = smov [#allocation7]   ;;  %s74_s25 = sshll.u32 %s9005_s3, 4  ;;  %s75_s25 = int_to_ptr.hbm [resolvable:$true] %s74_s25 }
   0x9   :  { %s49_s22 = sshll.u32 %s5999_s21, 4  ;;  %s6000_s26 = smov 512   ;;  %s50_s22 = int_to_ptr.vmem [resolvable:$true] %s49_s22 }
   0xa   :  { %s6001_s27 = smov 32   ;;  %s6002_s28 = smov [#allocation10]  }
   0xb   :  { %55 = dma.hbm_to_vmem [thread:$0]  %s48_s20, 5120, %s50_s22, [#allocation8], %s6000_s26, %s6000_s26, %s6001_s27  }
   0xc   :  { %s76_s29 = sshll.u32 %s6002_s28, 4  ;;  %s97_s16 = sshll.u32 %s9007_s5, 4  ;;  %s77_s29 = int_to_ptr.vmem [resolvable:$true] %s76_s29  ;;  %s98_s16 = int_to_ptr.hbm [resolvable:$true] %s97_s16 }
   0xd   :  { %79 = dma.hbm_to_vmem [thread:$0]  %s75_s25, 64, %s77_s29, [#allocation11]  }
   0xe   :  { %s125_s3 = sshll.u32 %s9010_s8, 4  ;;  %s6003_s19 = smov [#allocation13]   ;;  %s126_s3 = int_to_ptr.hbm [resolvable:$true] %s125_s3 }
   0xf   :  { %s99_s21 = sshll.u32 %s6003_s19, 4  ;;  %s6004_s20 = smov [#allocation16]   ;;  %s100_s21 = int_to_ptr.vmem [resolvable:$true] %s99_s21 }
  0x10   :  { %105 = dma.hbm_to_vmem [thread:$0]  %s98_s16, 8192, %s100_s21, [#allocation14], %s6000_s26, %s6000_s26, %s6001_s27  }
  0x11   :  { %s127_s22 = sshll.u32 %s6004_s20, 4  ;;  %s154_s5 = sshll.u32 %s9013_s11, 4  ;;  %s128_s22 = int_to_ptr.vmem [resolvable:$true] %s127_s22  ;;  %s155_s5 = int_to_ptr.hbm [resolvable:$true] %s154_s5 }
  0x12   :  { %133 = dma.hbm_to_vmem [thread:$0]  %s126_s3, 8192, %s128_s22, [#allocation17], %s6000_s26, %s6000_s26, %s6001_s27  }
  0x13   :  { %s34_s28 = sshll.u32 %s9002_s0, 4  ;;  %s6005_s29 = smov [#allocation19]   ;;  %s35_s28 = int_to_ptr.hbm [resolvable:$true] %s34_s28 }
  0x14   :  { %s156_s30 = sshll.u32 %s6005_s29, 4  ;;  %s6006_s1 = smov [#allocation4]   ;;  %s157_s30 = int_to_ptr.vmem [resolvable:$true] %s156_s30 }
  0x15   :  { %159 = dma.hbm_to_vmem [thread:$0]  %s155_s5, 16, %s157_s30, [#allocation20]  }
  0x16   :  { %s36_s16 = sshll.u32 %s6006_s1, 4  ;;  %s6007_s17 = smov 128   ;;  %s37_s16 = int_to_ptr.vmem [resolvable:$true] %s36_s16 }
  0x17   :  { %s6008_s11 = smov 8   ;;  %s60_s19 = sshll.u32 %s9004_s2, 4  ;;  %s61_s19 = int_to_ptr.hbm [resolvable:$true] %s60_s19 }
  0x18   :  { %42 = dma.hbm_to_vmem [thread:$0]  %s35_s28, 256, %s37_s16, [#allocation5], %s6007_s17, %s6007_s17, %s6008_s11  }
  0x19   :  { %s6009_s0 = smov [#allocation9]   ;;  %s84_s23 = sshll.u32 %s9006_s4, 4  ;;  %s85_s23 = int_to_ptr.hbm [resolvable:$true] %s84_s23 }
  0x1a   :  { %s62_s21 = sshll.u32 %s6009_s0, 4  ;;  %s6010_s24 = smov [#allocation12]   ;;  %s63_s21 = int_to_ptr.vmem [resolvable:$true] %s62_s21 }
  0x1b   :  { %68 = dma.hbm_to_vmem [thread:$0]  %s61_s19, 8192, %s63_s21, [#allocation8], %s6000_s26, %s6000_s26, %s6001_s27  }
  0x1c   :  { %s86_s5 = sshll.u32 %s6010_s24, 4  ;;  %s112_s28 = sshll.u32 %s9009_s7, 4  ;;  %s87_s5 = int_to_ptr.vmem [resolvable:$true] %s86_s5  ;;  %s113_s28 = int_to_ptr.hbm [resolvable:$true] %s112_s28 }
  0x1d   :  { %92 = dma.hbm_to_vmem [thread:$0]  %s85_s23, 8192, %s87_s5, [#allocation11], %s6000_s26, %s6000_s26, %s6001_s27  }
  0x1e   :  { %s140_s4 = sshll.u32 %s9012_s10, 4  ;;  %s6011_s30 = smov [#allocation15]   ;;  %s141_s4 = int_to_ptr.hbm [resolvable:$true] %s140_s4 }
  0x1f   :  { %s114_s1 = sshll.u32 %s6011_s30, 4  ;;  %s6012_s16 = smov [#allocation18]   ;;  %s115_s1 = int_to_ptr.vmem [resolvable:$true] %s114_s1 }
  0x20   :  { %120 = dma.hbm_to_vmem [thread:$0]  %s113_s28, 8192, %s115_s1, [#allocation14], %s6000_s26, %s6000_s26, %s6001_s27  }
  0x21   :  { %s142_s7 = sshll.u32 %s6012_s16, 4  ;;  %s164_s19 = sshll.u32 %s9014_s12, 4  ;;  %s143_s7 = int_to_ptr.vmem [resolvable:$true] %s142_s7  ;;  %s165_s19 = int_to_ptr.hbm [resolvable:$true] %s164_s19 }
  0x22   :  { %148 = dma.hbm_to_vmem [thread:$0]  %s141_s4, 2048, %s143_s7, [#allocation17], %s6007_s17, %s6007_s17, %s6008_s11  }
  0x23   :  { %s178_s21 = sshll.u32 %s9015_s13, 4  ;;  %s6013_s20 = smov [#allocation21]   ;;  %s179_s21 = int_to_ptr.hbm [resolvable:$true] %s178_s21 }
  0x24   :  { %s166_s22 = sshll.u32 %s6013_s20, 4  ;;  %s6014_s26 = smov [#allocation22]   ;;  %s167_s22 = int_to_ptr.vmem [resolvable:$true] %s166_s22 }
  0x25   :  { %172 = dma.hbm_to_vmem [thread:$0]  %s165_s19, 2048, %s167_s22, [#allocation20], %s6007_s17, %s6007_s17, %s6008_s11  }
  0x26   :  { %s180_s12 = sshll.u32 %s6014_s26, 4  ;;  %s181_s12 = int_to_ptr.vmem [resolvable:$true] %s180_s12 }
  0x27   :  { %183 = dma.hbm_to_vmem [thread:$0]  %s179_s21, 16, %s181_s12, [#allocation23]  }
  0x28   :  { %5981 = dma.done.wait [#allocation5], 256  }
  0x29   :  { %5982 = vsyncadd [#allocation5], 4294967040 }
  0x2a   :  { %5983 = dma.done.wait [#allocation8], 13312  }
  0x2b   :  { %5984 = vsyncadd [#allocation8], 4294953984 }
  0x2c   :  { %5985 = dma.done.wait [#allocation11], 8256  }
  0x2d   :  { %5986 = vsyncadd [#allocation11], 4294959040 }
  0x2e   :  { %5987 = dma.done.wait [#allocation14], 16384  }
  0x2f   :  { %5988 = vsyncadd [#allocation14], 4294950912 }
  0x30   :  { %5989 = dma.done.wait [#allocation17], 10240  }
  0x31   :  { %5990 = vsyncadd [#allocation17], 4294957056 }
  0x32   :  { %5991 = dma.done.wait [#allocation20], 2064  }
  0x33   :  { %5992 = vsyncadd [#allocation20], 4294965232 }
  0x34   :  { %5993 = dma.done.wait [#allocation23], 16  }
  0x35   :  { %5994 = vsyncadd [#allocation23], 4294967280  ;;  %v314_v0 = vld [vmem:[#allocation7 + $0x120] sm:$0xff]  ;;  %v315_v1 = vld [vmem:[#allocation7 + $0x128] sm:$0xff]  ;;  %vm274_vm0 = vcmask 654343   ;;  %vm237_vm1 = vcmask 1041409  }
  0x36   :  { %v6161_v2 = vld [vmem:[#allocation9 + $0x1e8] sm:$0xff]  ;;  %407 = vmatpush.msra.mxu2 %v314_v0  ;;  %430 = vmatpush.msra.mxu3 %v315_v1  ;;  %v310_v3 = vld [vmem:[#allocation7 + $0x100] sm:$0xff]  ;;  %vm240_vm2 = vcmask 648192   ;;  %v232_v34 = vld [vmem:[#allocation4] sm:$0xff]  ;;  %vm242_vm3 = vcmask 1042434   ;;  %vm247_vm4 = vcmask 1043459  }
  0x37   :  { %v311_v4 = vld [vmem:[#allocation7 + $0x108] sm:$0xff]  ;;  %513 = vmatpush.msra.mxu1 %v6161_v2  ;;  %v306_v6 = vld [vmem:[#allocation7 + $0xe0] sm:$0xff]  ;;  %v233_v35 = vld [vmem:[#allocation4 + $0x8] sm:$0xff]  ;;  %vm276_vm5 = vcmask 647168   ;;  %vm252_vm6 = vcmask 1044484   ;;  %vm245_vm7 = vcmask 649217  }
  0x38   :  { %v6163_v5 = vld [vmem:[#allocation9 + $0x1c8] sm:$0xff]  ;;  %408 = vmatpush.msra.mxu2 %v310_v3  ;;  %431 = vmatpush.msra.mxu3 %v311_v4  ;;  %v302_v9 = vld [vmem:[#allocation7 + $0xc0] sm:$0xff]  ;;  %v236_v38 = vrot.slane %v233_v35, 7  ;;  %275 = vst.msk [vmem:[#allocation2 + $0x7] sm:$0x80] %vm274_vm0, %v232_v34  ;;  %v316_v39 = vld [vmem:[#allocation7 + $0x130] sm:$0xff] }
  0x39   :  { %v307_v7 = vld [vmem:[#allocation7 + $0xe8] sm:$0xff]  ;;  %514 = vmatpush.msra.mxu1 %v6163_v5  ;;  %v6171_v12 = vld [vmem:[#allocation9 + $0x1e0] sm:$0xff]  ;;  %v317_v40 = vld [vmem:[#allocation7 + $0x138] sm:$0xff]  ;;  %vm250_vm8 = vcmask 650242   ;;  %vm257_vm9 = vcmask 1045509   ;;  %vm262_vm10 = vcmask 1046534  }
  0x3a   :  { %v6166_v8 = vld [vmem:[#allocation9 + $0x1a8] sm:$0xff]  ;;  %409 = vmatpush.msra.mxu2 %v306_v6  ;;  %432 = vmatpush.msra.mxu3 %v307_v7  ;;  %v298_v13 = vld [vmem:[#allocation7 + $0xa0] sm:$0xff]  ;;  %v238_v42 = vsel %vm237_vm1, %v236_v38, %v232_v34  ;;  %v243_v43 = vsel %vm242_vm3, %v236_v38, %v232_v34  ;;  %v248_v44 = vsel %vm247_vm4, %v236_v38, %v232_v34  ;;  %v312_v46 = vld [vmem:[#allocation7 + $0x110] sm:$0xff]  ;;  %vm255_vm11 = vcmask 651267   ;;  %s4934_s5 = sshll.u32 %s9016_s14, 4  ;;  %s6017_s8 = smov [#allocation25]   ;;  %s4935_s5 = int_to_ptr.hbm [resolvable:$true] %s4934_s5 }
  0x3b   :  { %v303_v10 = vld [vmem:[#allocation7 + $0xc8] sm:$0xff]  ;;  %515 = vmatpush.msra.mxu1 %v6166_v8  ;;  %493 = vmatpush.msra.mxu0 %v6171_v12  ;;  %v6177_v16 = vld [vmem:[#allocation9 + $0x1c0] sm:$0xff]  ;;  %277 = vst.msk [vmem:[#allocation2 + $0xf] sm:$0x1] %vm276_vm5, %v236_v38  ;;  %v313_v47 = vld [vmem:[#allocation7 + $0x118] sm:$0xff]  ;;  %v253_v48 = vsel %vm252_vm6, %v236_v38, %v232_v34  ;;  %vm267_vm12 = vcmask 1047559   ;;  %v258_v51 = vsel %vm257_vm9, %v236_v38, %v232_v34 }
  0x3c   :  { %v6169_v11 = vld [vmem:[#allocation9 + $0x188] sm:$0xff]  ;;  %410 = vmatpush.msra.mxu2 %v302_v9  ;;  %433 = vmatpush.msra.mxu3 %v303_v10  ;;  %v294_v17 = vld [vmem:[#allocation7 + $0x80] sm:$0xff]  ;;  %241 = vst.msk [vmem:[#allocation2] sm:$0x3] %vm240_vm2, %v238_v42  ;;  %vm260_vm13 = vcmask 652292   ;;  %v308_v52 = vld [vmem:[#allocation7 + $0xf0] sm:$0xff]  ;;  %v263_v54 = vsel %vm262_vm10, %v236_v38, %v232_v34  ;;  %v268_v57 = vsel %vm267_vm12, %v236_v38, %v232_v34 }
  0x3d   :  { %v299_v14 = vld [vmem:[#allocation7 + $0xa8] sm:$0xff]  ;;  %516 = vmatpush.msra.mxu1 %v6169_v11  ;;  %494 = vmatpush.msra.mxu0 %v6177_v16  ;;  %v6181_v19 = vld [vmem:[#allocation9 + $0x1a0] sm:$0xff]  ;;  %246 = vst.msk [vmem:[#allocation2 + $0x1] sm:$0x6] %vm245_vm7, %v243_v43  ;;  %v309_v53 = vld [vmem:[#allocation7 + $0xf8] sm:$0xff]  ;;  %vm265_vm14 = vcmask 653317  }
  0x3e   :  { %v6175_v15 = vld [vmem:[#allocation9 + $0x168] sm:$0xff]  ;;  %411 = vmatpush.msra.mxu2 %v298_v13  ;;  %434 = vmatpush.msra.mxu3 %v299_v14  ;;  %v6185_v21 = vld [vmem:[#allocation9 + $0x180] sm:$0xff]  ;;  %251 = vst.msk [vmem:[#allocation2 + $0x2] sm:$0xc] %vm250_vm8, %v248_v44  ;;  %vm270_vm15 = vcmask 654342   ;;  %v304_v58 = vld [vmem:[#allocation7 + $0xd0] sm:$0xff] }
  0x3f   :  { %v295_v18 = vld [vmem:[#allocation7 + $0x88] sm:$0xff]  ;;  %517 = vmatpush.msra.mxu1 %v6175_v15  ;;  %v290_v22 = vld [vmem:[#allocation7 + $0x60] sm:$0xff]  ;;  %495 = vmatpush.msra.mxu0 %v6181_v19  ;;  %256 = vst.msk [vmem:[#allocation2 + $0x3] sm:$0x18] %vm255_vm11, %v253_v48  ;;  %v305_v59 = vld [vmem:[#allocation7 + $0xd8] sm:$0xff]  ;;  %vm394_vm0 = vcmask 654336  }
  0x40   :  { %v6183_v20 = vld [vmem:[#allocation9 + $0x148] sm:$0xff]  ;;  %412 = vmatpush.msra.mxu2 %v294_v17  ;;  %435 = vmatpush.msra.mxu3 %v295_v18  ;;  %v6191_v25 = vld [vmem:[#allocation9 + $0x160] sm:$0xff]  ;;  %261 = vst.msk [vmem:[#allocation2 + $0x4] sm:$0x30] %vm260_vm13, %v258_v51  ;;  %v300_v62 = vld [vmem:[#allocation7 + $0xb0] sm:$0xff]  ;;  %s4943_s25 = sshll.u32 %s6017_s8, 4  ;;  %s4944_s25 = int_to_ptr.vmem [resolvable:$true] %s4943_s25 }
  0x41   :  { %v291_v23 = vld [vmem:[#allocation7 + $0x68] sm:$0xff]  ;;  %518 = vmatpush.msra.mxu1 %v6183_v20  ;;  %v286_v26 = vld [vmem:[#allocation7 + $0x40] sm:$0xff]  ;;  %496 = vmatpush.msra.mxu0 %v6185_v21  ;;  %266 = vst.msk [vmem:[#allocation2 + $0x5] sm:$0x60] %vm265_vm14, %v263_v54  ;;  %v301_v63 = vld [vmem:[#allocation7 + $0xb8] sm:$0xff]  ;;  %s4945_s14 = sshll.u32 %s9017_s15, 4  ;;  %s4946_s14 = int_to_ptr.hbm [resolvable:$true] %s4945_s14 }
  0x42   :  { %v6189_v24 = vld [vmem:[#allocation9 + $0x128] sm:$0xff]  ;;  %413 = vmatpush.msra.mxu2 %v290_v22  ;;  %436 = vmatpush.msra.mxu3 %v291_v23  ;;  %v6197_v29 = vld [vmem:[#allocation9 + $0x140] sm:$0xff]  ;;  %271 = vst.msk [vmem:[#allocation2 + $0x6] sm:$0xc0] %vm270_vm15, %v268_v57  ;;  %v296_v3 = vld [vmem:[#allocation7 + $0x90] sm:$0xff] }
  0x43   :  { %v287_v27 = vld [vmem:[#allocation7 + $0x48] sm:$0xff]  ;;  %519 = vmatpush.msra.mxu1 %v6189_v24  ;;  %v282_v30 = vld [vmem:[#allocation7 + $0x20] sm:$0xff]  ;;  %497 = vmatpush.msra.mxu0 %v6191_v25  ;;  %v297_v4 = vld [vmem:[#allocation7 + $0x98] sm:$0xff] }
  0x44   :  { %v6195_v28 = vld [vmem:[#allocation9 + $0x108] sm:$0xff]  ;;  %414 = vmatpush.msra.mxu2 %v286_v26  ;;  %437 = vmatpush.msra.mxu3 %v287_v27  ;;  %v6203_v33 = vld [vmem:[#allocation9 + $0x120] sm:$0xff]  ;;  %v292_v9 = vld [vmem:[#allocation7 + $0x70] sm:$0xff]  ;;  %v9018_v26 = vmov 0.0  }
  0x45   :  { %v283_v31 = vld [vmem:[#allocation7 + $0x28] sm:$0xff]  ;;  %520 = vmatpush.msra.mxu1 %v6195_v28  ;;  %v278_v36 = vld [vmem:[#allocation7] sm:$0xff]  ;;  %498 = vmatpush.msra.mxu0 %v6197_v29  ;;  %v293_v13 = vld [vmem:[#allocation7 + $0x78] sm:$0xff] }
  0x46   :  { %v6200_v32 = vld [vmem:[#allocation9 + $0xe8] sm:$0xff]  ;;  %415 = vmatpush.msra.mxu2 %v282_v30  ;;  %438 = vmatpush.msra.mxu3 %v283_v31  ;;  %v6215_v45 = vld [vmem:[#allocation9 + $0x100] sm:$0xff]  ;;  %v6254_v7 = vld [vmem:[#allocation2] sm:$0xff] }
  0x47   :  { %v279_v37 = vld [vmem:[#allocation7 + $0x8] sm:$0xff]  ;;  %521 = vmatpush.msra.mxu1 %v6200_v32  ;;  %499 = vmatpush.msra.mxu0 %v6203_v33  ;;  %v6223_v50 = vld [vmem:[#allocation9 + $0xe0] sm:$0xff]  ;;  %v288_v17 = vld [vmem:[#allocation7 + $0x50] sm:$0xff] }
  0x48   :  { %v6209_v41 = vld [vmem:[#allocation9 + $0xc8] sm:$0xff]  ;;  %416 = vmatpush.msra.mxu2 %v278_v36  ;;  %439 = vmatpush.msra.mxu3 %v279_v37  ;;  %v6233_v56 = vld [vmem:[#allocation9 + $0xc0] sm:$0xff]  ;;  %v289_v18 = vld [vmem:[#allocation7 + $0x58] sm:$0xff] }
  0x49   :  { %v6220_v49 = vld [vmem:[#allocation9 + $0xa8] sm:$0xff]  ;;  %522 = vmatpush.msra.mxu1 %v6209_v41  ;;  %500 = vmatpush.msra.mxu0 %v6215_v45  ;;  %9438 = vst [vmem:[#allocation38_spill] sm:$0xff] %v6233_v56  ;;  %v6241_v61 = vld [vmem:[#allocation9 + $0xa0] sm:$0xff]  ;;  %v284_v22 = vld [vmem:[#allocation7 + $0x30] sm:$0xff] }
  0x4a   :  { %453 = vmatpush.msrb.mxu2 %v316_v39  ;;  %476 = vmatpush.msrb.mxu3 %v317_v40  ;;  %9436 = vst [vmem:[#allocation36_spill] sm:$0xff] %v6220_v49  ;;  %v6230_v55 = vld [vmem:[#allocation9 + $0x88] sm:$0xff]  ;;  %v6248_v1 = vld [vmem:[#allocation9 + $0x80] sm:$0xff]  ;;  %v285_v27 = vld [vmem:[#allocation7 + $0x38] sm:$0xff] }
  0x4b   :  { %9437 = vst [vmem:[#allocation37_spill] sm:$0xff] %v6230_v55  ;;  %523 = vmatpush.msra.mxu1 %v6220_v49  ;;  %501 = vmatpush.msra.mxu0 %v6223_v50  ;;  %v6239_v60 = vld [vmem:[#allocation9 + $0x68] sm:$0xff]  ;;  %v6258_v10 = vld [vmem:[#allocation9 + $0x60] sm:$0xff]  ;;  %v280_v30 = vld [vmem:[#allocation7 + $0x10] sm:$0xff] }
  0x4c   :  { %454 = vmatpush.msrb.mxu2 %v312_v46  ;;  %477 = vmatpush.msrb.mxu3 %v313_v47  ;;  %9439 = vst [vmem:[#allocation39_spill] sm:$0xff] %v6239_v60  ;;  %v6246_v0 = vld [vmem:[#allocation9 + $0x48] sm:$0xff]  ;;  %v6267_v23 = vld [vmem:[#allocation9 + $0x40] sm:$0xff]  ;;  %v281_v34 = vld [vmem:[#allocation7 + $0x18] sm:$0xff] }
  0x4d   :  { %524 = vmatpush.msra.mxu1 %v6230_v55  ;;  %502 = vmatpush.msra.mxu0 %v6233_v56  ;;  %9440 = vst [vmem:[#allocation40_spill] sm:$0xff] %v6246_v0  ;;  %v6252_v6 = vld [vmem:[#allocation9 + $0x28] sm:$0xff]  ;;  %v6272_v31 = vld [vmem:[#allocation9 + $0x20] sm:$0xff]  ;;  %v6275_v35 = vld [vmem:[#allocation9 + $0x1f0] sm:$0xff] }
  0x4e   :  { %455 = vmatpush.msrb.mxu2 %v308_v52  ;;  %478 = vmatpush.msrb.mxu3 %v309_v53  ;;  %9441 = vst [vmem:[#allocation41_spill] sm:$0xff] %v6248_v1  ;;  %v6262_v14 = vld [vmem:[#allocation9 + $0x8] sm:$0xff]  ;;  %v6277_v36 = vld [vmem:[#allocation9 + $0x1f8] sm:$0xff]  ;;  %v6279_v37 = vld [vmem:[#allocation9] sm:$0xff] }
  0x4f   :  { %525 = vmatpush.msra.mxu1 %v6239_v60  ;;  %503 = vmatpush.msra.mxu0 %v6241_v61  ;;  %9442 = vst [vmem:[#allocation42_spill] sm:$0xff] %v6252_v6  ;;  %v6283_v38 = vld [vmem:[#allocation9 + $0x1d0] sm:$0xff]  ;;  %v6286_v39 = vld [vmem:[#allocation9 + $0x1d8] sm:$0xff] }
  0x50   :  { %456 = vmatpush.msrb.mxu2 %v304_v58  ;;  %479 = vmatpush.msrb.mxu3 %v305_v59  ;;  %9443 = vst [vmem:[#allocation43_spill] sm:$0xff] %v6258_v10  ;;  %v6290_v40 = vld [vmem:[#allocation9 + $0x1b0] sm:$0xff]  ;;  %v384_v42 = vld [vmem:[#allocation2 + $0x8] sm:$0xff] }
  0x51   :  { %526 = vmatpush.msra.mxu1 %v6246_v0  ;;  %504 = vmatpush.msra.mxu0 %v6248_v1  ;;  %9444 = vst [vmem:[#allocation44_spill] sm:$0xff] %v6262_v14  ;;  %v6294_v43 = vld [vmem:[#allocation9 + $0x1b8] sm:$0xff]  ;;  %v6297_v44 = vld [vmem:[#allocation9 + $0x190] sm:$0xff] }
  0x52   :  { %457 = vmatpush.msrb.mxu2 %v300_v62  ;;  %480 = vmatpush.msrb.mxu3 %v301_v63  ;;  %9445 = vst [vmem:[#allocation45_spill] sm:$0xff] %v6267_v23  ;;  %v6301_v46 = vld [vmem:[#allocation9 + $0x198] sm:$0xff]  ;;  %v6306_v47 = vld [vmem:[#allocation9 + $0x170] sm:$0xff] }
  0x53   :  { %4968 = vmatmul.msk.f32.vlgmr.msra.gmra.mxu3 %vm394_vm0, %v6254_v7  ;;  %527 = vmatpush.msra.mxu1 %v6252_v6  ;;  %9446 = vst [vmem:[#allocation46_spill] sm:$0xff] %v6272_v31  ;;  %v6309_v48 = vld [vmem:[#allocation9 + $0x178] sm:$0xff]  ;;  %v6313_v51 = vld [vmem:[#allocation9 + $0x150] sm:$0xff] }
  0x54   :  { %458 = vmatpush.msrb.mxu2 %v296_v3  ;;  %481 = vmatpush.msrb.mxu3 %v297_v4  ;;  %9447 = vst [vmem:[#allocation47_spill] sm:$0xff] %v6279_v37  ;;  %v6317_v52 = vld [vmem:[#allocation9 + $0x158] sm:$0xff]  ;;  %v6321_v53 = vld [vmem:[#allocation9 + $0x130] sm:$0xff] }
  0x55   :  { %505 = vmatpush.msra.mxu0 %v6258_v10  ;;  %528 = vmatpush.msra.mxu1 %v6262_v14  ;;  %v6325_v54 = vld [vmem:[#allocation9 + $0x138] sm:$0xff]  ;;  %v6329_v57 = vld [vmem:[#allocation9 + $0x110] sm:$0xff] }
  0x56   :  { %459 = vmatpush.msrb.mxu2 %v292_v9  ;;  %482 = vmatpush.msrb.mxu3 %v293_v13  ;;  %v6333_v58 = vld [vmem:[#allocation9 + $0x118] sm:$0xff]  ;;  %v6340_v59 = vld [vmem:[#allocation9 + $0xf0] sm:$0xff] }
  0x57   :  { %529 = vmatmul.f32.vlgmr.msra.gmra.mxu1 %v9018_v26  ;;  %4966 = vmatmul.msk.f32.vlgmr.msra.gmra.mxu2 %vm394_vm0, %v6254_v7  ;;  %v6343_v62 = vld [vmem:[#allocation9 + $0xf8] sm:$0xff]  ;;  %v6347_v63 = vld [vmem:[#allocation9 + $0xd0] sm:$0xff] }
  0x58   :  { %460 = vmatpush.msrb.mxu2 %v288_v17  ;;  %483 = vmatpush.msrb.mxu3 %v289_v18  ;;  %v6351_v3 = vld [vmem:[#allocation9 + $0xd8] sm:$0xff]  ;;  %v6355_v4 = vld [vmem:[#allocation9 + $0xb0] sm:$0xff] }
  0x59   :  { %506 = vmatpush.msra.mxu0 %v6267_v23  ;;  %661 = vmatpush.msrb.mxu1 %v6161_v2  ;;  %9448 = vst [vmem:[#allocation48_spill] sm:$0xff] %v6355_v4  ;;  %v6363_v9 = vld [vmem:[#allocation9 + $0x90] sm:$0xff]  ;;  %v6367_v13 = vld [vmem:[#allocation9 + $0x98] sm:$0xff] }
  0x5a   :  { %461 = vmatpush.msrb.mxu2 %v284_v22  ;;  %484 = vmatpush.msrb.mxu3 %v285_v27  ;;  %9450 = vst [vmem:[#allocation50_spill] sm:$0xff] %v6363_v9  ;;  %v6372_v17 = vld [vmem:[#allocation9 + $0x70] sm:$0xff]  ;;  %v6375_v18 = vld [vmem:[#allocation9 + $0x78] sm:$0xff] }
  0x5b   :  { %507 = vmatpush.msra.mxu0 %v6272_v31  ;;  %4969 = vmatmul.msk.f32.gmra.mxu3 %vm394_vm0, %v384_v42  ;;  %9451 = vst [vmem:[#allocation51_spill] sm:$0xff] %v6367_v13  ;;  %v6379_v22 = vld [vmem:[#allocation9 + $0x50] sm:$0xff]  ;;  %v6383_v27 = vld [vmem:[#allocation9 + $0x58] sm:$0xff] }
  0x5c   :  { %462 = vmatpush.msrb.mxu2 %v280_v30  ;;  %485 = vmatpush.msrb.mxu3 %v281_v34  ;;  %9452 = vst [vmem:[#allocation52_spill] sm:$0xff] %v6372_v17  ;;  %v6387_v30 = vld [vmem:[#allocation9 + $0x30] sm:$0xff]  ;;  %v6391_v34 = vld [vmem:[#allocation9 + $0x38] sm:$0xff] }
  0x5d   :  { %508 = vmatpush.msra.mxu0 %v6279_v37  ;;  %662 = vmatpush.msrb.mxu1 %v6163_v5  ;;  %9453 = vst [vmem:[#allocation53_spill] sm:$0xff] %v6375_v18 }
  0x5e   :  { %533 = vmatpush.msra.mxu2 %v6275_v35  ;;  %553 = vmatpush.msra.mxu3 %v6277_v36  ;;  %9454 = vst [vmem:[#allocation54_spill] sm:$0xff] %v6379_v22 }
  0x5f   :  { %509 = vmatmul.f32.vlgmr.msra.gmra.mxu0 %v9018_v26  ;;  %4967 = vmatmul.msk.f32.gmra.mxu2 %vm394_vm0, %v384_v42  ;;  %9455 = vst [vmem:[#allocation55_spill] sm:$0xff] %v6383_v27  ;;  %v6399_v26 = vld [vmem:[#allocation9 + $0x18] sm:$0xff] }
  0x60   :  { %534 = vmatpush.msra.mxu2 %v6283_v38  ;;  %554 = vmatpush.msra.mxu3 %v6286_v39  ;;  %9456 = vst [vmem:[#allocation56_spill] sm:$0xff] %v6387_v30 }
  0x61   :  { %641 = vmatpush.msrb.mxu0 %v6171_v12  ;;  %663 = vmatpush.msrb.mxu1 %v6166_v8  ;;  %9457 = vst [vmem:[#allocation57_spill] sm:$0xff] %v6391_v34 }
  0x62   :  { %535 = vmatpush.msra.mxu2 %v6290_v40  ;;  %555 = vmatpush.msra.mxu3 %v6294_v43  ;;  %9459 = vst [vmem:[#allocation59_spill] sm:$0xff] %v6399_v26 }
  0x63   :  { %642 = vmatpush.msrb.mxu0 %v6177_v16  ;;  %664 = vmatpush.msrb.mxu1 %v6169_v11 }
  0x64   :  { %536 = vmatpush.msra.mxu2 %v6297_v44  ;;  %556 = vmatpush.msra.mxu3 %v6301_v46 }
  0x65   :  { %643 = vmatpush.msrb.mxu0 %v6181_v19  ;;  %4972 = vmatmul.msk.f32.vlgmr.msrb.gmra.mxu3 %vm394_vm0, %v6254_v7 }
  0x66   :  { %537 = vmatpush.msra.mxu2 %v6306_v47  ;;  %557 = vmatpush.msra.mxu3 %v6309_v48 }
  0x67   :  { %644 = vmatpush.msrb.mxu0 %v6185_v21  ;;  %4970 = vmatmul.msk.f32.vlgmr.msrb.gmra.mxu2 %vm394_vm0, %v6254_v7  ;;  %v6359_v7 = vld [vmem:[#allocation9 + $0xb8] sm:$0xff] }
  0x68   :  { %538 = vmatpush.msra.mxu2 %v6313_v51  ;;  %558 = vmatpush.msra.mxu3 %v6317_v52  ;;  %9449 = vst [vmem:[#allocation49_spill] sm:$0xff] %v6359_v7 }
  0x69   :  { %645 = vmatpush.msrb.mxu0 %v6191_v25  ;;  %665 = vmatpush.msrb.mxu1 %v6175_v15 }
  0x6a   :  { %539 = vmatpush.msra.mxu2 %v6321_v53  ;;  %559 = vmatpush.msra.mxu3 %v6325_v54 }
  0x6b   :  { %646 = vmatpush.msrb.mxu0 %v6197_v29  ;;  %666 = vmatpush.msrb.mxu1 %v6183_v20 }
  0x6c   :  { %540 = vmatpush.msra.mxu2 %v6329_v57  ;;  %560 = vmatpush.msra.mxu3 %v6333_v58 }
  0x6d   :  { %647 = vmatpush.msrb.mxu0 %v6203_v33  ;;  %667 = vmatpush.msrb.mxu1 %v6189_v24 }
  0x6e   :  { %541 = vmatpush.msra.mxu2 %v6340_v59  ;;  %561 = vmatpush.msra.mxu3 %v6343_v62 }
  0x6f   :  { %4973 = vmatmul.msk.f32.gmra.mxu3 %vm394_vm0, %v384_v42  ;;  %4971 = vmatmul.msk.f32.gmra.mxu2 %vm394_vm0, %v384_v42  ;;  %v6395_v42 = vld [vmem:[#allocation9 + $0x10] sm:$0xff] }
  0x70   :  { %542 = vmatpush.msra.mxu2 %v6347_v63  ;;  %562 = vmatpush.msra.mxu3 %v6351_v3  ;;  %9458 = vst [vmem:[#allocation58_spill] sm:$0xff] %v6395_v42 }
  0x71   :  { %648 = vmatpush.msrb.mxu0 %v6215_v45  ;;  %668 = vmatpush.msrb.mxu1 %v6195_v28 }
  0x72   :  { %543 = vmatpush.msra.mxu2 %v6355_v4  ;;  %563 = vmatpush.msra.mxu3 %v6359_v7 }
  0x73   :  { %649 = vmatpush.msrb.mxu0 %v6223_v50  ;;  %669 = vmatpush.msrb.mxu1 %v6200_v32 }
  0x74   :  { %544 = vmatpush.msra.mxu2 %v6363_v9  ;;  %564 = vmatpush.msra.mxu3 %v6367_v13 }
  0x75   :  { %650 = vmatpush.msrb.mxu0 %v6233_v56  ;;  %670 = vmatpush.msrb.mxu1 %v6209_v41  ;;  %v9460_v56 = vmov 0.0  }
  0x76   :  { %545 = vmatpush.msra.mxu2 %v6372_v17  ;;  %565 = vmatpush.msra.mxu3 %v6375_v18 }
  0x77   :  { %651 = vmatpush.msrb.mxu0 %v6241_v61  ;;  %671 = vmatpush.msrb.mxu1 %v6220_v49 }
  0x78   :  { %546 = vmatpush.msra.mxu2 %v6379_v22  ;;  %566 = vmatpush.msra.mxu3 %v6383_v27 }
  0x79   :  { %652 = vmatpush.msrb.mxu0 %v6248_v1  ;;  %672 = vmatpush.msrb.mxu1 %v6230_v55 }
  0x7a   :  { %547 = vmatpush.msra.mxu2 %v6387_v30  ;;  %567 = vmatpush.msra.mxu3 %v6391_v34 }
  0x7b   :  { %653 = vmatpush.msrb.mxu0 %v6258_v10  ;;  %673 = vmatpush.msrb.mxu1 %v6239_v60 }
  0x7c   :  { %548 = vmatpush.msra.mxu2 %v6395_v42  ;;  %568 = vmatpush.msra.mxu3 %v6399_v26 }
  0x7d   :  { %549 = vmatmul.f32.vlgmr.msra.gmra.mxu2 %v9460_v56  ;;  %569 = vmatmul.f32.vlgmr.msra.gmra.mxu3 %v9460_v56  ;;  %v9461_v56 = vld [vmem:[#allocation38_spill] sm:$0xff] }
  0x7e   :  { %681 = vmatpush.msrb.mxu2 %v6275_v35  ;;  %701 = vmatpush.msrb.mxu3 %v6277_v36 }
  0x7f   :  { %654 = vmatpush.msrb.mxu0 %v6267_v23  ;;  %674 = vmatpush.msrb.mxu1 %v6246_v0 }
  0x80   :  { %682 = vmatpush.msrb.mxu2 %v6283_v38  ;;  %702 = vmatpush.msrb.mxu3 %v6286_v39 }
  0x81   :  { %655 = vmatpush.msrb.mxu0 %v6272_v31  ;;  %675 = vmatpush.msrb.mxu1 %v6252_v6 }
  0x82   :  { %683 = vmatpush.msrb.mxu2 %v6290_v40  ;;  %703 = vmatpush.msrb.mxu3 %v6294_v43 }
  0x83   :  { %656 = vmatpush.msrb.mxu0 %v6279_v37  ;;  %676 = vmatpush.msrb.mxu1 %v6262_v14 }
  0x84   :  { %684 = vmatpush.msrb.mxu2 %v6297_v44  ;;  %704 = vmatpush.msrb.mxu3 %v6301_v46 }
  0x85   :  { %807 = vmatpush.msra.mxu0 %v6171_v12  ;;  %827 = vmatpush.msra.mxu1 %v6161_v2 }
  0x86   :  { %685 = vmatpush.msrb.mxu2 %v6306_v47  ;;  %705 = vmatpush.msrb.mxu3 %v6309_v48 }
  0x87   :  { %808 = vmatpush.msra.mxu0 %v6177_v16  ;;  %828 = vmatpush.msra.mxu1 %v6163_v5 }
  0x88   :  { %686 = vmatpush.msrb.mxu2 %v6313_v51  ;;  %706 = vmatpush.msrb.mxu3 %v6317_v52 }
  0x89   :  { %809 = vmatpush.msra.mxu0 %v6181_v19  ;;  %829 = vmatpush.msra.mxu1 %v6166_v8 }
  0x8a   :  { %687 = vmatpush.msrb.mxu2 %v6321_v53  ;;  %707 = vmatpush.msrb.mxu3 %v6325_v54 }
  0x8b   :  { %810 = vmatpush.msra.mxu0 %v6185_v21  ;;  %830 = vmatpush.msra.mxu1 %v6169_v11 }
  0x8c   :  { %688 = vmatpush.msrb.mxu2 %v6329_v57  ;;  %708 = vmatpush.msrb.mxu3 %v6333_v58 }
  0x8d   :  { %811 = vmatpush.msra.mxu0 %v6191_v25  ;;  %831 = vmatpush.msra.mxu1 %v6175_v15 }
  0x8e   :  { %689 = vmatpush.msrb.mxu2 %v6340_v59  ;;  %709 = vmatpush.msrb.mxu3 %v6343_v62 }
  0x8f   :  { %812 = vmatpush.msra.mxu0 %v6197_v29  ;;  %832 = vmatpush.msra.mxu1 %v6183_v20 }
  0x90   :  { %690 = vmatpush.msrb.mxu2 %v6347_v63  ;;  %710 = vmatpush.msrb.mxu3 %v6351_v3 }
  0x91   :  { %813 = vmatpush.msra.mxu0 %v6203_v33  ;;  %833 = vmatpush.msra.mxu1 %v6189_v24 }
  0x92   :  { %691 = vmatpush.msrb.mxu2 %v6355_v4  ;;  %711 = vmatpush.msrb.mxu3 %v6359_v7 }
  0x93   :  { %814 = vmatpush.msra.mxu0 %v6215_v45  ;;  %834 = vmatpush.msra.mxu1 %v6195_v28 }
  0x94   :  { %692 = vmatpush.msrb.mxu2 %v6363_v9  ;;  %712 = vmatpush.msrb.mxu3 %v6367_v13 }
  0x95   :  { %815 = vmatpush.msra.mxu0 %v6223_v50  ;;  %835 = vmatpush.msra.mxu1 %v6200_v32 }
  0x96   :  { %693 = vmatpush.msrb.mxu2 %v6372_v17  ;;  %713 = vmatpush.msrb.mxu3 %v6375_v18 }
  0x97   :  { %816 = vmatpush.msra.mxu0 %v9461_v56  ;;  %836 = vmatpush.msra.mxu1 %v6209_v41 }
  0x98   :  { %694 = vmatpush.msrb.mxu2 %v6379_v22  ;;  %714 = vmatpush.msrb.mxu3 %v6383_v27 }
  0x99   :  { %817 = vmatpush.msra.mxu0 %v6241_v61  ;;  %837 = vmatpush.msra.mxu1 %v6220_v49 }
  0x9a   :  { %695 = vmatpush.msrb.mxu2 %v6387_v30  ;;  %715 = vmatpush.msrb.mxu3 %v6391_v34 }
  0x9b   :  { %818 = vmatpush.msra.mxu0 %v6248_v1  ;;  %838 = vmatpush.msra.mxu1 %v6230_v55 }
  0x9c   :  { %696 = vmatpush.msrb.mxu2 %v6395_v42  ;;  %716 = vmatpush.msrb.mxu3 %v6399_v26 }
  0x9d   :  { %819 = vmatpush.msra.mxu0 %v6258_v10  ;;  %839 = vmatpush.msra.mxu1 %v6239_v60 }
  0x9e   :  { %847 = vmatpush.msra.mxu2 %v6275_v35  ;;  %867 = vmatpush.msra.mxu3 %v6277_v36 }
  0x9f   :  { %820 = vmatpush.msra.mxu0 %v6267_v23  ;;  %840 = vmatpush.msra.mxu1 %v6246_v0 }
  0xa0   :  { %848 = vmatpush.msra.mxu2 %v6283_v38  ;;  %868 = vmatpush.msra.mxu3 %v6286_v39 }
  0xa1   :  { %821 = vmatpush.msra.mxu0 %v6272_v31  ;;  %841 = vmatpush.msra.mxu1 %v6252_v6 }
  0xa2   :  { %849 = vmatpush.msra.mxu2 %v6290_v40  ;;  %869 = vmatpush.msra.mxu3 %v6294_v43 }
  0xa3   :  { %822 = vmatpush.msra.mxu0 %v6279_v37  ;;  %842 = vmatpush.msra.mxu1 %v6262_v14  ;;  %v6514_v14 = vld [vmem:[#allocation10] sm:$0xf] }
  0xa4   :  { %850 = vmatpush.msra.mxu2 %v6297_v44  ;;  %870 = vmatpush.msra.mxu3 %v6301_v46  ;;  %9462 = vst [vmem:[#allocation38_spill] sm:$0xff] %v6514_v14  ;;  %v9046_v37 = vperm.slane %v6514_v14, 1 }
  0xa6   :  { %851 = vmatpush.msra.mxu2 %v6306_v47  ;;  %871 = vmatpush.msra.mxu3 %v6309_v48 }
  0xa8   :  { %852 = vmatpush.msra.mxu2 %v6313_v51  ;;  %872 = vmatpush.msra.mxu3 %v6317_v52 }
  0xaa   :  { %853 = vmatpush.msra.mxu2 %v6321_v53  ;;  %873 = vmatpush.msra.mxu3 %v6325_v54 }
  0xac   :  { %854 = vmatpush.msra.mxu2 %v6329_v57  ;;  %874 = vmatpush.msra.mxu3 %v6333_v58 }
  0xae   :  { %855 = vmatpush.msra.mxu2 %v6340_v59  ;;  %875 = vmatpush.msra.mxu3 %v6343_v62 }
  0xb0   :  { %856 = vmatpush.msra.mxu2 %v6347_v63  ;;  %876 = vmatpush.msra.mxu3 %v6351_v3 }
  0xb2   :  { %857 = vmatpush.msra.mxu2 %v6355_v4  ;;  %877 = vmatpush.msra.mxu3 %v6359_v7 }
  0xb4   :  { %858 = vmatpush.msra.mxu2 %v6363_v9  ;;  %878 = vmatpush.msra.mxu3 %v6367_v13 }
  0xb6   :  { %859 = vmatpush.msra.mxu2 %v6372_v17  ;;  %879 = vmatpush.msra.mxu3 %v6375_v18 }
  0xb8   :  { %860 = vmatpush.msra.mxu2 %v6379_v22  ;;  %880 = vmatpush.msra.mxu3 %v6383_v27  ;;  %v9053_v22 = vperm.slane %v6514_v14, 0 }
  0xba   :  { %861 = vmatpush.msra.mxu2 %v6387_v30  ;;  %881 = vmatpush.msra.mxu3 %v6391_v34 }
  0xbc   :  { %862 = vmatpush.msra.mxu2 %v6395_v42  ;;  %882 = vmatpush.msra.mxu3 %v6399_v26 }
  0xd4   :  { %v530_v27 = vpop.f32.mrf.mxu1 }
  0xd6   :  { %v441_v6 = vpop.f32.mrf.mxu3 }
  0xd7   :  { %v6519_v31 = vadd.f32 %v441_v6, %v9046_v37 }
  0xd9   :  { %9463 = vst [vmem:[#allocation60_spill] sm:$0xff] %v6519_v31  ;;  %v574_v34 = vadd.f32 %v530_v27, %v6519_v31 }
  0xda   :  { %v418_v0 = vpop.f32.mrf.mxu2 }
  0xdb   :  { %v6525_v42 = vadd.f32 %v418_v0, %v9053_v22  ;;  %v4975_v23 = vmul.f32 -1.442695, %v574_v34  ;;  %v9064_v34 = vperm.slane %v6514_v14, 3 }
  0xdc   :  { %v510_v30 = vpop.f32.mrf.mxu0 }
  0xdd   :  { %9464 = vst [vmem:[#allocation61_spill] sm:$0xff] %v6525_v42  ;;  %v573_v26 = vadd.f32 %v510_v30, %v6525_v42  ;;  %5067 = vpow2.f32 %v4975_v23 }
  0xde   :  { %v6528_v17 = vpop.f32.mrf.mxu3 }
  0xdf   :  { %v4974_v18 = vmul.f32 -1.442695, %v573_v26  ;;  %9465 = vst [vmem:[#allocation62_spill] sm:$0xff] %v6528_v17 }
  0xe1   :  { %5069 = vpow2.f32 %v4974_v18  ;;  %v9067_v18 = vperm.slane %v6514_v14, 2 }
  0xe2   :  { %v6530_v6 = vpop.f32.mrf.mxu2 }
  0xe3   :  { %9466 = vst [vmem:[#allocation63_spill] sm:$0xff] %v6530_v6  ;;  %v5068_v37 = vpop.eup %5067 }
  0xe4   :  { %v599_v9 = vadd.f32 1.0, %v5068_v37 }
  0xe6   :  { %5071 = vrcp.f32 %v599_v9  ;;  %vm605_vm1 = vweird.f32 %v599_v9 }
  0xe7   :  { %v5070_v60 = vpop.eup %5069 }
  0xe8   :  { %v487_v10 = vpop.f32.mrf.mxu3  ;;  %v580_v27 = vadd.f32 1.0, %v5070_v60 }
  0xe9   :  { %v6540_v6 = vadd.f32 %v487_v10, %v9064_v34  ;;  %v611_v10 = vand.u32 2147483648, %v599_v9 }
  0xea   :  { %v464_v13 = vpop.f32.mrf.mxu2  ;;  %5073 = vrcp.f32 %v580_v27  ;;  %vm586_vm3 = vweird.f32 %v580_v27  ;;  %v590_v14 = vand.u32 2147483647, %v580_v27 }
  0xeb   :  { %9469 = vst [vmem:[#allocation66_spill] sm:$0xff] %v6540_v6 }
  0xec   :  { %v5072_v30 = vpop.eup %5071  ;;  %vm591_vm8 = vcmp.eq.f32.partialorder %v590_v14, 8.507059e+37 }
  0xed   :  { %v601_v23 = vmul.f32 %v5072_v30, %v599_v9  ;;  %vm606_vm2 = vweird.f32 %v5072_v30 }
  0xee   :  { %vm607_vm5 = vmor %vm605_vm1, %vm606_vm2 }
  0xef   :  { %v602_v37 = vsub.f32 1.0, %v601_v23  ;;  %v609_v23 = vand.u32 2147483647, %v599_v9 }
  0xf0   :  { %v5074_v26 = vpop.eup %5073 }
  0xf1   :  { %v582_v17 = vmul.f32 %v5074_v26, %v580_v27  ;;  %v603_v7 = vmul.f32 %v5072_v30, %v602_v37  ;;  %vm587_vm4 = vweird.f32 %v5074_v26  ;;  %vm610_vm7 = vcmp.eq.f32.partialorder %v609_v23, 8.507059e+37  ;;  %v9493_v23 = vld [vmem:[#allocation59_spill] sm:$0xff] }
  0xf2   :  { %v6532_v0 = vpop.f32.mrf.mxu2  ;;  %v6534_v22 = vpop.f32.mrf.mxu3  ;;  %vm588_vm6 = vmor %vm586_vm3, %vm587_vm4 }
  0xf3   :  { %9467 = vst [vmem:[#allocation64_spill] sm:$0xff] %v6532_v0  ;;  %v583_v60 = vsub.f32 1.0, %v582_v17  ;;  %v6544_v0 = vadd.f32 %v464_v13, %v9067_v18  ;;  %v592_v17 = vand.u32 2147483648, %v580_v27  ;;  %v604_v13 = vadd.f32 %v5072_v30, %v603_v7 }
  0xf4   :  { %9468 = vst [vmem:[#allocation65_spill] sm:$0xff] %v6534_v22  ;;  %v612_v18 = vor.u32 1.1754944e-38, %v611_v10 }
  0xf5   :  { %9470 = vst [vmem:[#allocation67_spill] sm:$0xff] %v6544_v0  ;;  %v584_v4 = vmul.f32 %v5074_v26, %v583_v60  ;;  %v608_v37 = vsel %vm607_vm5, %v5072_v30, %v604_v13 }
  0xf7   :  { %v585_v34 = vadd.f32 %v5074_v26, %v584_v4 }
 0x100   :  { %v550_v31 = vpop.f32.mrf.mxu2  ;;  %v570_v42 = vpop.f32.mrf.mxu3 }
 0x101   :  { %v576_v22 = vadd.f32 %v570_v42, %v6540_v6  ;;  %v575_v55 = vadd.f32 %v550_v31, %v6544_v0  ;;  %v593_v31 = vor.u32 1.1754944e-38, %v592_v17  ;;  %v613_v6 = vsel %vm610_vm7, %v612_v18, %v608_v37  ;;  %v9494_v37 = vld [vmem:[#allocation61_spill] sm:$0xff] }
 0x102   :  { %v635_v9 = vmul.f32 0.0, %v613_v6 }
 0x103   :  { %v4976_v1 = vmul.f32 -1.442695, %v576_v22  ;;  %v589_v22 = vsel %vm588_vm6, %v5074_v26, %v585_v34 }
 0x104   :  { %v594_v0 = vsel %vm591_vm8, %v593_v31, %v589_v22 }
 0x105   :  { %5075 = vpow2.f32 %v4976_v1 }
 0x106   :  { %5077 = vtanh.f32 %v575_v55 }
 0x10b   :  { %v5076_v42 = vpop.eup %5075 }
 0x10c   :  { %v619_v60 = vadd.f32 1.0, %v5076_v42  ;;  %v5078_v1 = vpop.eup %5077 }
 0x10d   :  { %v636_v49 = vmul.f32 %v5078_v1, %v594_v0  ;;  %v9495_v1 = vld [vmem:[#allocation60_spill] sm:$0xff] }
 0x10e   :  { %5079 = vrcp.f32 %v619_v60  ;;  %v631_v10 = vand.u32 2147483648, %v619_v60  ;;  %v629_v26 = vand.u32 2147483647, %v619_v60  ;;  %vm625_vm10 = vweird.f32 %v619_v60 }
 0x10f   :  { %v6548_v4 = vadd.f32 %v636_v49, %v635_v9  ;;  %v9489_v49 = vld [vmem:[#allocation57_spill] sm:$0xff] }
 0x110   :  { %v632_v30 = vor.u32 1.1754944e-38, %v631_v10  ;;  %vm630_vm12 = vcmp.eq.f32.partialorder %v629_v26, 8.507059e+37 }
 0x111   :  { %5081 = vtanh.f32 %v6548_v4 }
 0x114   :  { %v5080_v55 = vpop.eup %5079 }
 0x115   :  { %v621_v7 = vmul.f32 %v5080_v55, %v619_v60  ;;  %vm626_vm9 = vweird.f32 %v5080_v55 }
 0x116   :  { %vm627_vm11 = vmor %vm625_vm10, %vm626_vm9 }
 0x117   :  { %v622_v27 = vsub.f32 1.0, %v621_v7  ;;  %v5082_v18 = vpop.eup %5081 }
 0x119   :  { %v623_v17 = vmul.f32 %v5080_v55, %v622_v27 }
 0x11b   :  { %v624_v14 = vadd.f32 %v5080_v55, %v623_v17  ;;  %v9496_v17 = vld [vmem:[#allocation66_spill] sm:$0xff] }
 0x11d   :  { %v628_v34 = vsel %vm627_vm11, %v5080_v55, %v624_v14 }
 0x11e   :  { %v633_v0 = vsel %vm630_vm12, %v632_v30, %v628_v34 }
 0x11f   :  { %v639_v6 = vmul.f32 %v5082_v18, %v633_v0 }
 0x121   :  { %640 = vst [vmem:[#allocation3] sm:$0x3] %v639_v6  ;;  %657 = vmatmul.f32.vlgmr.msrb.gmra.mxu0 %v639_v6  ;;  %677 = vmatmul.f32.vlgmr.msrb.gmra.mxu1 %v639_v6 }
 0x122   :  { %697 = vmatmul.f32.vlgmr.msrb.gmra.mxu2 %v639_v6  ;;  %717 = vmatmul.f32.vlgmr.msrb.gmra.mxu3 %v639_v6 }
 0x123   :  { %973 = vmatpush.msrb.mxu0 %v6171_v12  ;;  %993 = vmatpush.msrb.mxu1 %v6161_v2  ;;  %v9471_v2 = vld [vmem:[#allocation36_spill] sm:$0xff]  ;;  %v9475_v12 = vld [vmem:[#allocation37_spill] sm:$0xff] }
 0x124   :  { %1013 = vmatpush.msrb.mxu2 %v6275_v35  ;;  %1033 = vmatpush.msrb.mxu3 %v6277_v36 }
 0x125   :  { %974 = vmatpush.msrb.mxu0 %v6177_v16  ;;  %994 = vmatpush.msrb.mxu1 %v6163_v5  ;;  %v9472_v5 = vld [vmem:[#allocation48_spill] sm:$0xff]  ;;  %v9477_v16 = vld [vmem:[#allocation51_spill] sm:$0xff] }
 0x126   :  { %1014 = vmatpush.msrb.mxu2 %v6283_v38  ;;  %1034 = vmatpush.msrb.mxu3 %v6286_v39 }
 0x127   :  { %975 = vmatpush.msrb.mxu0 %v6181_v19  ;;  %995 = vmatpush.msrb.mxu1 %v6166_v8  ;;  %v9473_v8 = vld [vmem:[#allocation49_spill] sm:$0xff]  ;;  %v9478_v19 = vld [vmem:[#allocation43_spill] sm:$0xff] }
 0x128   :  { %1015 = vmatpush.msrb.mxu2 %v6290_v40  ;;  %1035 = vmatpush.msrb.mxu3 %v6294_v43 }
 0x129   :  { %976 = vmatpush.msrb.mxu0 %v6185_v21  ;;  %996 = vmatpush.msrb.mxu1 %v6169_v11  ;;  %v9474_v11 = vld [vmem:[#allocation41_spill] sm:$0xff]  ;;  %v9480_v21 = vld [vmem:[#allocation52_spill] sm:$0xff] }
 0x12a   :  { %1016 = vmatpush.msrb.mxu2 %v6297_v44  ;;  %1036 = vmatpush.msrb.mxu3 %v6301_v46 }
 0x12b   :  { %977 = vmatpush.msrb.mxu0 %v6191_v25  ;;  %997 = vmatpush.msrb.mxu1 %v6175_v15  ;;  %v9476_v15 = vld [vmem:[#allocation50_spill] sm:$0xff]  ;;  %v9482_v25 = vld [vmem:[#allocation45_spill] sm:$0xff] }
 0x12c   :  { %1017 = vmatpush.msrb.mxu2 %v6306_v47  ;;  %1037 = vmatpush.msrb.mxu3 %v6309_v48 }
 0x12d   :  { %978 = vmatpush.msrb.mxu0 %v6197_v29  ;;  %998 = vmatpush.msrb.mxu1 %v6183_v20  ;;  %v9479_v20 = vld [vmem:[#allocation39_spill] sm:$0xff]  ;;  %v9484_v29 = vld [vmem:[#allocation54_spill] sm:$0xff] }
 0x12e   :  { %1018 = vmatpush.msrb.mxu2 %v6313_v51  ;;  %1038 = vmatpush.msrb.mxu3 %v6317_v52 }
 0x12f   :  { %979 = vmatpush.msrb.mxu0 %v6203_v33  ;;  %999 = vmatpush.msrb.mxu1 %v6189_v24  ;;  %v9481_v24 = vld [vmem:[#allocation53_spill] sm:$0xff]  ;;  %v9486_v33 = vld [vmem:[#allocation46_spill] sm:$0xff] }
 0x130   :  { %1019 = vmatpush.msrb.mxu2 %v6321_v53  ;;  %1039 = vmatpush.msrb.mxu3 %v6325_v54 }
 0x131   :  { %980 = vmatpush.msrb.mxu0 %v6215_v45  ;;  %1000 = vmatpush.msrb.mxu1 %v6195_v28  ;;  %v9483_v28 = vld [vmem:[#allocation40_spill] sm:$0xff] }
 0x132   :  { %1020 = vmatpush.msrb.mxu2 %v6329_v57  ;;  %1040 = vmatpush.msrb.mxu3 %v6333_v58  ;;  %v9488_v45 = vld [vmem:[#allocation56_spill] sm:$0xff] }
 0x133   :  { %981 = vmatpush.msrb.mxu0 %v6223_v50  ;;  %1001 = vmatpush.msrb.mxu1 %v6200_v32  ;;  %v9485_v32 = vld [vmem:[#allocation55_spill] sm:$0xff] }
 0x134   :  { %1021 = vmatpush.msrb.mxu2 %v6340_v59  ;;  %1041 = vmatpush.msrb.mxu3 %v6343_v62  ;;  %v9490_v50 = vld [vmem:[#allocation47_spill] sm:$0xff] }
 0x135   :  { %982 = vmatpush.msrb.mxu0 %v9461_v56  ;;  %1002 = vmatpush.msrb.mxu1 %v6209_v41  ;;  %v9487_v41 = vld [vmem:[#allocation42_spill] sm:$0xff]  ;;  %v9491_v56 = vld [vmem:[#allocation44_spill] sm:$0xff] }
 0x136   :  { %1022 = vmatpush.msrb.mxu2 %v6347_v63  ;;  %1042 = vmatpush.msrb.mxu3 %v6351_v3 }
 0x137   :  { %983 = vmatpush.msrb.mxu0 %v6241_v61  ;;  %1003 = vmatpush.msrb.mxu1 %v9471_v2  ;;  %v9492_v61 = vld [vmem:[#allocation58_spill] sm:$0xff] }
 0x138   :  { %1023 = vmatpush.msrb.mxu2 %v9472_v5  ;;  %1043 = vmatpush.msrb.mxu3 %v9473_v8 }
 0x139   :  { %984 = vmatpush.msrb.mxu0 %v9474_v11  ;;  %1004 = vmatpush.msrb.mxu1 %v9475_v12 }
 0x13a   :  { %1024 = vmatpush.msrb.mxu2 %v9476_v15  ;;  %1044 = vmatpush.msrb.mxu3 %v9477_v16 }
 0x13b   :  { %985 = vmatpush.msrb.mxu0 %v9478_v19  ;;  %1005 = vmatpush.msrb.mxu1 %v9479_v20  ;;  %v9497_v20 = vld [vmem:[#allocation67_spill] sm:$0xff] }
 0x13c   :  { %1025 = vmatpush.msrb.mxu2 %v9480_v21  ;;  %1045 = vmatpush.msrb.mxu3 %v9481_v24 }
 0x13d   :  { %986 = vmatpush.msrb.mxu0 %v9482_v25  ;;  %1006 = vmatpush.msrb.mxu1 %v9483_v28 }
 0x13e   :  { %1026 = vmatpush.msrb.mxu2 %v9484_v29  ;;  %1046 = vmatpush.msrb.mxu3 %v9485_v32 }
 0x13f   :  { %987 = vmatpush.msrb.mxu0 %v9486_v33  ;;  %1007 = vmatpush.msrb.mxu1 %v9487_v41 }
 0x140   :  { %1027 = vmatpush.msrb.mxu2 %v9488_v45  ;;  %1047 = vmatpush.msrb.mxu3 %v9489_v49 }
 0x141   :  { %988 = vmatpush.msrb.mxu0 %v9490_v50  ;;  %1008 = vmatpush.msrb.mxu1 %v9491_v56 }
 0x142   :  { %1028 = vmatpush.msrb.mxu2 %v9492_v61  ;;  %1048 = vmatpush.msrb.mxu3 %v9493_v23 }
 0x19e   :  { %v658_v13 = vpop.f32.mrf.mxu0  ;;  %v678_v42 = vpop.f32.mrf.mxu1 }
 0x19f   :  { %v725_v31 = vrot.slane %v658_v13, 6  ;;  %v726_v22 = vrot.slane %v678_v42, 6 }
 0x1a1   :  { %v733_v60 = vadd.f32 %v725_v31, %v9494_v37  ;;  %v734_v9 = vadd.f32 %v726_v22, %v9495_v1 }
 0x1a3   :  { %v4977_v55 = vmul.f32 -1.442695, %v733_v60  ;;  %v4978_v7 = vmul.f32 -1.442695, %v734_v9 }
 0x1a5   :  { %5083 = vpow2.f32 %v4977_v55  ;;  %v718_v27 = vpop.f32.mrf.mxu3  ;;  %v698_v6 = vpop.f32.mrf.mxu2 }
 0x1a6   :  { %5085 = vpow2.f32 %v4978_v7  ;;  %v728_v10 = vrot.slane %v718_v27, 6  ;;  %v727_v2 = vrot.slane %v698_v6, 6 }
 0x1a8   :  { %v736_v26 = vadd.f32 %v728_v10, %v9496_v17  ;;  %v735_v25 = vadd.f32 %v727_v2, %v9497_v20 }
 0x1aa   :  { %v4979_v14 = vmul.f32 -1.442695, %v736_v26 }
 0x1ab   :  { %v5084_v30 = vpop.eup %5083 }
 0x1ac   :  { %v5086_v34 = vpop.eup %5085  ;;  %v740_v18 = vadd.f32 1.0, %v5084_v30  ;;  %5087 = vpow2.f32 %v4979_v14  ;;  %v796_v30 = vrot.slane %v6548_v4, 6 }
 0x1ad   :  { %v759_v0 = vadd.f32 1.0, %v5086_v34 }
 0x1ae   :  { %5089 = vrcp.f32 %v740_v18  ;;  %v752_v42 = vand.u32 2147483648, %v740_v18  ;;  %v750_v60 = vand.u32 2147483647, %v740_v18  ;;  %vm746_vm15 = vweird.f32 %v740_v18 }
 0x1af   :  { %5091 = vrcp.f32 %v759_v0  ;;  %v771_v31 = vand.u32 2147483648, %v759_v0  ;;  %v769_v55 = vand.u32 2147483647, %v759_v0  ;;  %vm765_vm0 = vweird.f32 %v759_v0 }
 0x1b0   :  { %v753_v10 = vor.u32 1.1754944e-38, %v752_v42  ;;  %vm751_vm3 = vcmp.eq.f32.partialorder %v750_v60, 8.507059e+37 }
 0x1b1   :  { %v772_v34 = vor.u32 1.1754944e-38, %v771_v31  ;;  %vm770_vm4 = vcmp.eq.f32.partialorder %v769_v55, 8.507059e+37 }
 0x1b2   :  { %v5088_v11 = vpop.eup %5087 }
 0x1b3   :  { %v779_v12 = vadd.f32 1.0, %v5088_v11 }
 0x1b4   :  { %v5090_v19 = vpop.eup %5089 }
 0x1b5   :  { %v5092_v28 = vpop.eup %5091  ;;  %v742_v33 = vmul.f32 %v5090_v19, %v740_v18  ;;  %5093 = vrcp.f32 %v779_v12  ;;  %vm747_vm13 = vweird.f32 %v5090_v19  ;;  %v791_v4 = vand.u32 2147483648, %v779_v12 }
 0x1b6   :  { %v761_v41 = vmul.f32 %v5092_v28, %v759_v0  ;;  %5095 = vtanh.f32 %v735_v25  ;;  %vm766_vm14 = vweird.f32 %v5092_v28  ;;  %vm748_vm1 = vmor %vm746_vm15, %vm747_vm13  ;;  %vm785_vm6 = vweird.f32 %v779_v12 }
 0x1b7   :  { %v743_v56 = vsub.f32 1.0, %v742_v33  ;;  %vm767_vm2 = vmor %vm765_vm0, %vm766_vm14  ;;  %v789_v31 = vand.u32 2147483647, %v779_v12 }
 0x1b8   :  { %v762_v13 = vsub.f32 1.0, %v761_v41 }
 0x1b9   :  { %v744_v22 = vmul.f32 %v5090_v19, %v743_v56  ;;  %vm790_vm8 = vcmp.eq.f32.partialorder %v789_v31, 8.507059e+37 }
 0x1ba   :  { %v763_v9 = vmul.f32 %v5092_v28, %v762_v13 }
 0x1bb   :  { %v5094_v7 = vpop.eup %5093  ;;  %v745_v27 = vadd.f32 %v5090_v19, %v744_v22  ;;  %v792_v22 = vor.u32 1.1754944e-38, %v791_v4 }
 0x1bc   :  { %v764_v26 = vadd.f32 %v5092_v28, %v763_v9  ;;  %v781_v14 = vmul.f32 %v5094_v7, %v779_v12  ;;  %v5096_v2 = vpop.eup %5095  ;;  %vm786_vm5 = vweird.f32 %v5094_v7  ;;  %v6631_v12 = vld [vmem:[#allocation9 + $0x1c0] sm:$0xff] }
 0x1bd   :  { %v749_v6 = vsel %vm748_vm1, %v5090_v19, %v745_v27  ;;  %vm787_vm7 = vmor %vm785_vm6, %vm786_vm5  ;;  %v6623_v27 = vld [vmem:[#allocation9 + $0x1e0] sm:$0xff] }
 0x1be   :  { %v754_v11 = vsel %vm751_vm3, %v753_v10, %v749_v6  ;;  %v768_v25 = vsel %vm767_vm2, %v5092_v28, %v764_v26  ;;  %v782_v33 = vsub.f32 1.0, %v781_v14  ;;  %v6626_v10 = vld [vmem:[#allocation9 + $0x1e8] sm:$0xff]  ;;  %v6639_v26 = vld [vmem:[#allocation9 + $0x1a0] sm:$0xff] }
 0x1bf   :  { %v773_v41 = vsel %vm770_vm4, %v772_v34, %v768_v25  ;;  %v799_v56 = vmul.f32 %v5096_v2, %v754_v11  ;;  %v6642_v14 = vld [vmem:[#allocation9 + $0x1a8] sm:$0xff] }
 0x1c0   :  { %v798_v13 = vmul.f32 %v796_v30, %v773_v41  ;;  %v783_v18 = vmul.f32 %v5094_v7, %v782_v33 }
 0x1c2   :  { %v6620_v0 = vadd.f32 %v799_v56, %v798_v13  ;;  %v784_v42 = vadd.f32 %v5094_v7, %v783_v18 }
 0x1c4   :  { %5097 = vtanh.f32 %v6620_v0  ;;  %v788_v19 = vsel %vm787_vm7, %v5094_v7, %v784_v42  ;;  %v6634_v7 = vld [vmem:[#allocation9 + $0x1c8] sm:$0xff] }
 0x1c5   :  { %v793_v60 = vsel %vm790_vm8, %v792_v22, %v788_v19 }
 0x1ca   :  { %v5098_v28 = vpop.eup %5097 }
 0x1cb   :  { %v802_v9 = vmul.f32 %v5098_v28, %v793_v60 }
 0x1cd   :  { %803 = vst [vmem:[#allocation3] sm:$0xc] %v802_v9  ;;  %v805_v55 = vrot.slane %v802_v9, 2 }
 0x1cf   :  { %823 = vmatmul.f32.vlgmr.msra.gmra.mxu0 %v805_v55  ;;  %843 = vmatmul.f32.vlgmr.msra.gmra.mxu1 %v805_v55 }
 0x1d0   :  { %863 = vmatmul.f32.vlgmr.msra.gmra.mxu2 %v805_v55  ;;  %883 = vmatmul.f32.vlgmr.msra.gmra.mxu3 %v805_v55 }
 0x1d1   :  { %1139 = vmatpush.msra.mxu0 %v6623_v27  ;;  %1159 = vmatpush.msra.mxu1 %v6626_v10 }
 0x1d2   :  { %1179 = vmatpush.msra.mxu2 %v6275_v35  ;;  %1199 = vmatpush.msra.mxu3 %v6277_v36  ;;  %v6647_v35 = vld [vmem:[#allocation9 + $0x180] sm:$0xff]  ;;  %v6650_v36 = vld [vmem:[#allocation9 + $0x188] sm:$0xff] }
 0x1d3   :  { %1140 = vmatpush.msra.mxu0 %v6631_v12  ;;  %1160 = vmatpush.msra.mxu1 %v6634_v7 }
 0x1d4   :  { %1180 = vmatpush.msra.mxu2 %v6283_v38  ;;  %1200 = vmatpush.msra.mxu3 %v6286_v39  ;;  %v6655_v38 = vld [vmem:[#allocation9 + $0x160] sm:$0xff]  ;;  %v6658_v39 = vld [vmem:[#allocation9 + $0x168] sm:$0xff] }
 0x1d5   :  { %1141 = vmatpush.msra.mxu0 %v6639_v26  ;;  %1161 = vmatpush.msra.mxu1 %v6642_v14 }
 0x1d6   :  { %1181 = vmatpush.msra.mxu2 %v6290_v40  ;;  %1201 = vmatpush.msra.mxu3 %v6294_v43  ;;  %v6663_v40 = vld [vmem:[#allocation9 + $0x140] sm:$0xff]  ;;  %v6666_v43 = vld [vmem:[#allocation9 + $0x148] sm:$0xff] }
 0x1d7   :  { %1142 = vmatpush.msra.mxu0 %v6647_v35  ;;  %1162 = vmatpush.msra.mxu1 %v6650_v36 }
 0x1d8   :  { %1182 = vmatpush.msra.mxu2 %v6297_v44  ;;  %1202 = vmatpush.msra.mxu3 %v6301_v46  ;;  %v6671_v44 = vld [vmem:[#allocation9 + $0x120] sm:$0xff]  ;;  %v6674_v46 = vld [vmem:[#allocation9 + $0x128] sm:$0xff] }
 0x1d9   :  { %1143 = vmatpush.msra.mxu0 %v6655_v38  ;;  %1163 = vmatpush.msra.mxu1 %v6658_v39 }
 0x1da   :  { %1183 = vmatpush.msra.mxu2 %v6306_v47  ;;  %1203 = vmatpush.msra.mxu3 %v6309_v48  ;;  %v6679_v47 = vld [vmem:[#allocation9 + $0x100] sm:$0xff]  ;;  %v6682_v48 = vld [vmem:[#allocation9 + $0x108] sm:$0xff] }
 0x1db   :  { %1144 = vmatpush.msra.mxu0 %v6663_v40  ;;  %1164 = vmatpush.msra.mxu1 %v6666_v43 }
 0x1dc   :  { %1184 = vmatpush.msra.mxu2 %v6313_v51  ;;  %1204 = vmatpush.msra.mxu3 %v6317_v52  ;;  %v6687_v51 = vld [vmem:[#allocation9 + $0xe0] sm:$0xff]  ;;  %v6690_v52 = vld [vmem:[#allocation9 + $0xe8] sm:$0xff] }
 0x1dd   :  { %1145 = vmatpush.msra.mxu0 %v6671_v44  ;;  %1165 = vmatpush.msra.mxu1 %v6674_v46 }
 0x1de   :  { %1185 = vmatpush.msra.mxu2 %v6321_v53  ;;  %1205 = vmatpush.msra.mxu3 %v6325_v54  ;;  %v6695_v53 = vld [vmem:[#allocation9 + $0xc0] sm:$0xff]  ;;  %v6698_v54 = vld [vmem:[#allocation9 + $0xc8] sm:$0xff] }
 0x1df   :  { %1146 = vmatpush.msra.mxu0 %v6679_v47  ;;  %1166 = vmatpush.msra.mxu1 %v6682_v48 }
 0x1e0   :  { %1186 = vmatpush.msra.mxu2 %v6329_v57  ;;  %1206 = vmatpush.msra.mxu3 %v6333_v58  ;;  %v6703_v57 = vld [vmem:[#allocation9 + $0xa0] sm:$0xff]  ;;  %v6706_v58 = vld [vmem:[#allocation9 + $0xa8] sm:$0xff] }
 0x1e1   :  { %1147 = vmatpush.msra.mxu0 %v6687_v51  ;;  %1167 = vmatpush.msra.mxu1 %v6690_v52  ;;  %9498 = vst [vmem:[#allocation36_spill] sm:$0xff] %v6703_v57 }
 0x1e2   :  { %1187 = vmatpush.msra.mxu2 %v6340_v59  ;;  %1207 = vmatpush.msra.mxu3 %v6343_v62  ;;  %9499 = vst [vmem:[#allocation48_spill] sm:$0xff] %v6706_v58  ;;  %v6711_v59 = vld [vmem:[#allocation9 + $0x80] sm:$0xff]  ;;  %v6714_v62 = vld [vmem:[#allocation9 + $0x88] sm:$0xff] }
 0x1e3   :  { %1148 = vmatpush.msra.mxu0 %v6695_v53  ;;  %1168 = vmatpush.msra.mxu1 %v6698_v54  ;;  %9500 = vst [vmem:[#allocation49_spill] sm:$0xff] %v6711_v59 }
 0x1e4   :  { %1188 = vmatpush.msra.mxu2 %v6347_v63  ;;  %1208 = vmatpush.msra.mxu3 %v6351_v3  ;;  %9501 = vst [vmem:[#allocation41_spill] sm:$0xff] %v6714_v62  ;;  %v6719_v63 = vld [vmem:[#allocation9 + $0x60] sm:$0xff]  ;;  %v6722_v3 = vld [vmem:[#allocation9 + $0x68] sm:$0xff] }
 0x1e5   :  { %1149 = vmatpush.msra.mxu0 %v6703_v57  ;;  %1169 = vmatpush.msra.mxu1 %v6706_v58  ;;  %9502 = vst [vmem:[#allocation37_spill] sm:$0xff] %v6719_v63 }
 0x1e6   :  { %1189 = vmatpush.msra.mxu2 %v9472_v5  ;;  %1209 = vmatpush.msra.mxu3 %v9473_v8  ;;  %9503 = vst [vmem:[#allocation50_spill] sm:$0xff] %v6722_v3  ;;  %v6727_v5 = vld [vmem:[#allocation9 + $0x40] sm:$0xff]  ;;  %v6730_v8 = vld [vmem:[#allocation9 + $0x48] sm:$0xff] }
 0x1e7   :  { %1150 = vmatpush.msra.mxu0 %v6711_v59  ;;  %1170 = vmatpush.msra.mxu1 %v6714_v62  ;;  %9504 = vst [vmem:[#allocation51_spill] sm:$0xff] %v6727_v5 }
 0x1e8   :  { %1190 = vmatpush.msra.mxu2 %v9476_v15  ;;  %1210 = vmatpush.msra.mxu3 %v9477_v16  ;;  %9505 = vst [vmem:[#allocation43_spill] sm:$0xff] %v6730_v8  ;;  %v6735_v15 = vld [vmem:[#allocation9 + $0x20] sm:$0xff]  ;;  %v6738_v16 = vld [vmem:[#allocation9 + $0x28] sm:$0xff] }
 0x1e9   :  { %1151 = vmatpush.msra.mxu0 %v6719_v63  ;;  %1171 = vmatpush.msra.mxu1 %v6722_v3  ;;  %9506 = vst [vmem:[#allocation39_spill] sm:$0xff] %v6735_v15 }
 0x1ea   :  { %1191 = vmatpush.msra.mxu2 %v9480_v21  ;;  %1211 = vmatpush.msra.mxu3 %v9481_v24  ;;  %9507 = vst [vmem:[#allocation52_spill] sm:$0xff] %v6738_v16  ;;  %v6744_v21 = vld [vmem:[#allocation9 + $0x8] sm:$0xff] }
 0x1eb   :  { %1152 = vmatpush.msra.mxu0 %v6727_v5  ;;  %1172 = vmatpush.msra.mxu1 %v6730_v8  ;;  %9508 = vst [vmem:[#allocation53_spill] sm:$0xff] %v6744_v21 }
 0x1ec   :  { %1192 = vmatpush.msra.mxu2 %v9484_v29  ;;  %1212 = vmatpush.msra.mxu3 %v9485_v32 }
 0x1ed   :  { %1153 = vmatpush.msra.mxu0 %v6735_v15  ;;  %1173 = vmatpush.msra.mxu1 %v6738_v16 }
 0x1ee   :  { %1193 = vmatpush.msra.mxu2 %v9488_v45  ;;  %1213 = vmatpush.msra.mxu3 %v9489_v49 }
 0x1ef   :  { %1154 = vmatpush.msra.mxu0 %v9490_v50  ;;  %1174 = vmatpush.msra.mxu1 %v6744_v21 }
 0x1f0   :  { %1194 = vmatpush.msra.mxu2 %v9492_v61  ;;  %1214 = vmatpush.msra.mxu3 %v9493_v23 }
 0x24c   :  { %v824_v24 = vpop.f32.mrf.mxu0  ;;  %v844_v29 = vpop.f32.mrf.mxu1 }
 0x24d   :  { %v891_v32 = vrot.slane %v824_v24, 4  ;;  %v892_v30 = vrot.slane %v844_v29, 4 }
 0x24f   :  { %v899_v34 = vadd.f32 %v891_v32, %v9494_v37  ;;  %v900_v45 = vadd.f32 %v892_v30, %v9495_v1 }
 0x251   :  { %v4980_v6 = vmul.f32 -1.442695, %v899_v34  ;;  %v4981_v49 = vmul.f32 -1.442695, %v900_v45 }
 0x253   :  { %5099 = vpow2.f32 %v4980_v6  ;;  %v884_v50 = vpop.f32.mrf.mxu3  ;;  %v864_v56 = vpop.f32.mrf.mxu2 }
 0x254   :  { %5101 = vpow2.f32 %v4981_v49  ;;  %v894_v2 = vrot.slane %v884_v50, 4  ;;  %v893_v13 = vrot.slane %v864_v56, 4 }
 0x256   :  { %v902_v11 = vadd.f32 %v894_v2, %v9496_v17  ;;  %v901_v31 = vadd.f32 %v893_v13, %v9497_v20 }
 0x258   :  { %v4982_v25 = vmul.f32 -1.442695, %v902_v11  ;;  %v962_v11 = vrot.slane %v6620_v0, 6 }
 0x259   :  { %v5100_v61 = vpop.eup %5099 }
 0x25a   :  { %v5102_v33 = vpop.eup %5101  ;;  %v906_v23 = vadd.f32 1.0, %v5100_v61  ;;  %5103 = vpow2.f32 %v4982_v25 }
 0x25b   :  { %v925_v41 = vadd.f32 1.0, %v5102_v33 }
 0x25c   :  { %5105 = vrcp.f32 %v906_v23  ;;  %v918_v55 = vand.u32 2147483648, %v906_v23  ;;  %v916_v32 = vand.u32 2147483647, %v906_v23  ;;  %vm912_vm11 = vweird.f32 %v906_v23 }
 0x25d   :  { %5107 = vrcp.f32 %v925_v41  ;;  %v937_v24 = vand.u32 2147483648, %v925_v41  ;;  %v935_v34 = vand.u32 2147483647, %v925_v41  ;;  %vm931_vm12 = vweird.f32 %v925_v41 }
 0x25e   :  { %v919_v49 = vor.u32 1.1754944e-38, %v918_v55  ;;  %vm917_vm15 = vcmp.eq.f32.partialorder %v916_v32, 8.507059e+37 }
 0x25f   :  { %v938_v25 = vor.u32 1.1754944e-38, %v937_v24  ;;  %vm936_vm0 = vcmp.eq.f32.partialorder %v935_v34, 8.507059e+37  ;;  %v6767_v34 = vld [vmem:[#allocation9 + $0x1d0] sm:$0xff] }
 0x260   :  { %v5104_v18 = vpop.eup %5103 }
 0x261   :  { %v945_v42 = vadd.f32 1.0, %v5104_v18 }
 0x262   :  { %v5106_v4 = vpop.eup %5105 }
 0x263   :  { %v5108_v19 = vpop.eup %5107  ;;  %v908_v22 = vmul.f32 %v5106_v4, %v906_v23  ;;  %5109 = vrcp.f32 %v945_v42  ;;  %vm913_vm9 = vweird.f32 %v5106_v4  ;;  %v957_v0 = vand.u32 2147483648, %v945_v42 }
 0x264   :  { %v927_v28 = vmul.f32 %v5108_v19, %v925_v41  ;;  %5111 = vtanh.f32 %v901_v31  ;;  %vm932_vm10 = vweird.f32 %v5108_v19  ;;  %vm914_vm13 = vmor %vm912_vm11, %vm913_vm9  ;;  %vm951_vm2 = vweird.f32 %v945_v42 }
 0x265   :  { %v909_v60 = vsub.f32 1.0, %v908_v22  ;;  %vm933_vm14 = vmor %vm931_vm12, %vm932_vm10  ;;  %v958_v55 = vor.u32 1.1754944e-38, %v957_v0  ;;  %v6839_v0 = vld [vmem:[#allocation9 + $0xb0] sm:$0xff] }
 0x266   :  { %v928_v9 = vsub.f32 1.0, %v927_v28  ;;  %9511 = vst [vmem:[#allocation54_spill] sm:$0xff] %v6839_v0 }
 0x267   :  { %v910_v29 = vmul.f32 %v5106_v4, %v909_v60 }
 0x268   :  { %v929_v30 = vmul.f32 %v5108_v19, %v928_v9  ;;  %v955_v9 = vand.u32 2147483647, %v945_v42 }
 0x269   :  { %v5110_v45 = vpop.eup %5109  ;;  %v911_v6 = vadd.f32 %v5106_v4, %v910_v29 }
 0x26a   :  { %v930_v50 = vadd.f32 %v5108_v19, %v929_v30  ;;  %v947_v2 = vmul.f32 %v5110_v45, %v945_v42  ;;  %v5112_v33 = vpop.eup %5111  ;;  %vm952_vm1 = vweird.f32 %v5110_v45  ;;  %vm956_vm4 = vcmp.eq.f32.partialorder %v955_v9, 8.507059e+37  ;;  %v6759_v30 = vld [vmem:[#allocation9 + $0x1f0] sm:$0xff]  ;;  %v6762_v42 = vld [vmem:[#allocation9 + $0x1f8] sm:$0xff] }
 0x26b   :  { %v915_v61 = vsel %vm914_vm13, %v5106_v4, %v911_v6  ;;  %vm953_vm3 = vmor %vm951_vm2, %vm952_vm1  ;;  %v6775_v6 = vld [vmem:[#allocation9 + $0x1b0] sm:$0xff]  ;;  %v6842_v9 = vld [vmem:[#allocation9 + $0xb8] sm:$0xff] }
 0x26c   :  { %v920_v56 = vsel %vm917_vm15, %v919_v49, %v915_v61  ;;  %v934_v13 = vsel %vm933_vm14, %v5108_v19, %v930_v50  ;;  %v948_v18 = vsub.f32 1.0, %v947_v2  ;;  %v6778_v49 = vld [vmem:[#allocation9 + $0x1b8] sm:$0xff]  ;;  %v6783_v50 = vld [vmem:[#allocation9 + $0x190] sm:$0xff]  ;;  %9512 = vst [vmem:[#allocation55_spill] sm:$0xff] %v6842_v9 }
 0x26d   :  { %v939_v31 = vsel %vm936_vm0, %v938_v25, %v934_v13  ;;  %v965_v22 = vmul.f32 %v5112_v33, %v920_v56  ;;  %v6786_v2 = vld [vmem:[#allocation9 + $0x198] sm:$0xff]  ;;  %v6799_v61 = vld [vmem:[#allocation9 + $0x150] sm:$0xff] }
 0x26e   :  { %v964_v28 = vmul.f32 %v962_v11, %v939_v31  ;;  %v949_v23 = vmul.f32 %v5110_v45, %v948_v18  ;;  %v6791_v11 = vld [vmem:[#allocation9 + $0x170] sm:$0xff]  ;;  %v6794_v25 = vld [vmem:[#allocation9 + $0x178] sm:$0xff] }
 0x26f   :  { %v6802_v33 = vld [vmem:[#allocation9 + $0x158] sm:$0xff]  ;;  %v6807_v56 = vld [vmem:[#allocation9 + $0x130] sm:$0xff] }
 0x270   :  { %v6754_v41 = vadd.f32 %v965_v22, %v964_v28  ;;  %v950_v60 = vadd.f32 %v5110_v45, %v949_v23  ;;  %v6810_v13 = vld [vmem:[#allocation9 + $0x138] sm:$0xff]  ;;  %v6815_v18 = vld [vmem:[#allocation9 + $0x110] sm:$0xff] }
 0x271   :  { %v6818_v31 = vld [vmem:[#allocation9 + $0x118] sm:$0xff]  ;;  %v6823_v22 = vld [vmem:[#allocation9 + $0xf0] sm:$0xff] }
 0x272   :  { %5113 = vtanh.f32 %v6754_v41  ;;  %v954_v4 = vsel %vm953_vm3, %v5110_v45, %v950_v60  ;;  %v6770_v45 = vld [vmem:[#allocation9 + $0x1d8] sm:$0xff]  ;;  %v6831_v23 = vld [vmem:[#allocation9 + $0xd0] sm:$0xff] }
 0x273   :  { %v959_v24 = vsel %vm956_vm4, %v958_v55, %v954_v4  ;;  %v6826_v28 = vld [vmem:[#allocation9 + $0xf8] sm:$0xff]  ;;  %9509 = vst [vmem:[#allocation45_spill] sm:$0xff] %v6831_v23  ;;  %v6847_v4 = vld [vmem:[#allocation9 + $0x90] sm:$0xff] }
 0x274   :  { %v6834_v60 = vld [vmem:[#allocation9 + $0xd8] sm:$0xff]  ;;  %9513 = vst [vmem:[#allocation46_spill] sm:$0xff] %v6847_v4 }
 0x275   :  { %9510 = vst [vmem:[#allocation40_spill] sm:$0xff] %v6834_v60  ;;  %v6850_v55 = vld [vmem:[#allocation9 + $0x98] sm:$0xff] }
 0x276   :  { %9514 = vst [vmem:[#allocation42_spill] sm:$0xff] %v6850_v55 }
 0x278   :  { %v5114_v19 = vpop.eup %5113 }
 0x279   :  { %v968_v29 = vmul.f32 %v5114_v19, %v959_v24  ;;  %v6855_v19 = vld [vmem:[#allocation9 + $0x70] sm:$0xff]  ;;  %v6858_v24 = vld [vmem:[#allocation9 + $0x78] sm:$0xff] }
 0x27a   :  { %9515 = vst [vmem:[#allocation56_spill] sm:$0xff] %v6855_v19 }
 0x27b   :  { %969 = vst [vmem:[#allocation3] sm:$0x30] %v968_v29  ;;  %v971_v32 = vrot.slane %v968_v29, 4  ;;  %v6863_v29 = vld [vmem:[#allocation9 + $0x50] sm:$0xff] }
 0x27c   :  { %9516 = vst [vmem:[#allocation57_spill] sm:$0xff] %v6858_v24 }
 0x27d   :  { %989 = vmatmul.f32.vlgmr.msrb.gmra.mxu0 %v971_v32  ;;  %1009 = vmatmul.f32.vlgmr.msrb.gmra.mxu1 %v971_v32  ;;  %9517 = vst [vmem:[#allocation47_spill] sm:$0xff] %v6863_v29 }
 0x27e   :  { %1029 = vmatmul.f32.vlgmr.msrb.gmra.mxu2 %v971_v32  ;;  %1049 = vmatmul.f32.vlgmr.msrb.gmra.mxu3 %v971_v32  ;;  %v6866_v32 = vld [vmem:[#allocation9 + $0x58] sm:$0xff] }
 0x27f   :  { %1290 = vmatpush.msrb.mxu0 %v6623_v27  ;;  %1310 = vmatpush.msrb.mxu1 %v6626_v10  ;;  %9518 = vst [vmem:[#allocation44_spill] sm:$0xff] %v6866_v32 }
 0x280   :  { %1330 = vmatpush.msrb.mxu2 %v6759_v30  ;;  %1350 = vmatpush.msrb.mxu3 %v6762_v42 }
 0x281   :  { %1291 = vmatpush.msrb.mxu0 %v6631_v12  ;;  %1311 = vmatpush.msrb.mxu1 %v6634_v7 }
 0x282   :  { %1331 = vmatpush.msrb.mxu2 %v6767_v34  ;;  %1351 = vmatpush.msrb.mxu3 %v6770_v45 }
 0x283   :  { %1292 = vmatpush.msrb.mxu0 %v6639_v26  ;;  %1312 = vmatpush.msrb.mxu1 %v6642_v14 }
 0x284   :  { %1332 = vmatpush.msrb.mxu2 %v6775_v6  ;;  %1352 = vmatpush.msrb.mxu3 %v6778_v49 }
 0x285   :  { %1293 = vmatpush.msrb.mxu0 %v6647_v35  ;;  %1313 = vmatpush.msrb.mxu1 %v6650_v36 }
 0x286   :  { %1333 = vmatpush.msrb.mxu2 %v6783_v50  ;;  %1353 = vmatpush.msrb.mxu3 %v6786_v2 }
 0x287   :  { %1294 = vmatpush.msrb.mxu0 %v6655_v38  ;;  %1314 = vmatpush.msrb.mxu1 %v6658_v39 }
 0x288   :  { %1334 = vmatpush.msrb.mxu2 %v6791_v11  ;;  %1354 = vmatpush.msrb.mxu3 %v6794_v25 }
 0x289   :  { %1295 = vmatpush.msrb.mxu0 %v6663_v40  ;;  %1315 = vmatpush.msrb.mxu1 %v6666_v43 }
 0x28a   :  { %1335 = vmatpush.msrb.mxu2 %v6799_v61  ;;  %1355 = vmatpush.msrb.mxu3 %v6802_v33 }
 0x28b   :  { %1296 = vmatpush.msrb.mxu0 %v6671_v44  ;;  %1316 = vmatpush.msrb.mxu1 %v6674_v46 }
 0x28c   :  { %1336 = vmatpush.msrb.mxu2 %v6807_v56  ;;  %1356 = vmatpush.msrb.mxu3 %v6810_v13 }
 0x28d   :  { %1297 = vmatpush.msrb.mxu0 %v6679_v47  ;;  %1317 = vmatpush.msrb.mxu1 %v6682_v48 }
 0x28e   :  { %1337 = vmatpush.msrb.mxu2 %v6815_v18  ;;  %1357 = vmatpush.msrb.mxu3 %v6818_v31 }
 0x28f   :  { %1298 = vmatpush.msrb.mxu0 %v6687_v51  ;;  %1318 = vmatpush.msrb.mxu1 %v6690_v52 }
 0x290   :  { %1338 = vmatpush.msrb.mxu2 %v6823_v22  ;;  %1358 = vmatpush.msrb.mxu3 %v6826_v28 }
 0x291   :  { %1299 = vmatpush.msrb.mxu0 %v6695_v53  ;;  %1319 = vmatpush.msrb.mxu1 %v6698_v54 }
 0x292   :  { %1339 = vmatpush.msrb.mxu2 %v6831_v23  ;;  %1359 = vmatpush.msrb.mxu3 %v6834_v60 }
 0x293   :  { %1300 = vmatpush.msrb.mxu0 %v6703_v57  ;;  %1320 = vmatpush.msrb.mxu1 %v6706_v58 }
 0x294   :  { %1340 = vmatpush.msrb.mxu2 %v6839_v0  ;;  %1360 = vmatpush.msrb.mxu3 %v6842_v9 }
 0x295   :  { %1301 = vmatpush.msrb.mxu0 %v6711_v59  ;;  %1321 = vmatpush.msrb.mxu1 %v6714_v62 }
 0x296   :  { %1341 = vmatpush.msrb.mxu2 %v6847_v4  ;;  %1361 = vmatpush.msrb.mxu3 %v6850_v55 }
 0x297   :  { %1302 = vmatpush.msrb.mxu0 %v6719_v63  ;;  %1322 = vmatpush.msrb.mxu1 %v6722_v3 }
 0x298   :  { %1342 = vmatpush.msrb.mxu2 %v6855_v19  ;;  %1362 = vmatpush.msrb.mxu3 %v6858_v24  ;;  %v6871_v19 = vld [vmem:[#allocation9 + $0x30] sm:$0xff]  ;;  %v6874_v24 = vld [vmem:[#allocation9 + $0x38] sm:$0xff] }
 0x299   :  { %1303 = vmatpush.msrb.mxu0 %v6727_v5  ;;  %1323 = vmatpush.msrb.mxu1 %v6730_v8  ;;  %9519 = vst [vmem:[#allocation58_spill] sm:$0xff] %v6871_v19  ;;  %v6877_v8 = vld [vmem:[#allocation9] sm:$0xff] }
 0x29a   :  { %1343 = vmatpush.msrb.mxu2 %v6863_v29  ;;  %1363 = vmatpush.msrb.mxu3 %v6866_v32  ;;  %9520 = vst [vmem:[#allocation59_spill] sm:$0xff] %v6874_v24  ;;  %v6881_v29 = vld [vmem:[#allocation9 + $0x10] sm:$0xff] }
 0x29b   :  { %1304 = vmatpush.msrb.mxu0 %v6735_v15  ;;  %1324 = vmatpush.msrb.mxu1 %v6738_v16  ;;  %9521 = vst [vmem:[#allocation61_spill] sm:$0xff] %v6877_v8  ;;  %v6884_v15 = vld [vmem:[#allocation9 + $0x18] sm:$0xff] }
 0x29c   :  { %1344 = vmatpush.msrb.mxu2 %v6871_v19  ;;  %1364 = vmatpush.msrb.mxu3 %v6874_v24  ;;  %9522 = vst [vmem:[#allocation60_spill] sm:$0xff] %v6881_v29 }
 0x29d   :  { %1305 = vmatpush.msrb.mxu0 %v6877_v8  ;;  %1325 = vmatpush.msrb.mxu1 %v6744_v21  ;;  %9523 = vst [vmem:[#allocation66_spill] sm:$0xff] %v6884_v15 }
 0x29e   :  { %1345 = vmatpush.msrb.mxu2 %v6881_v29  ;;  %1365 = vmatpush.msrb.mxu3 %v6884_v15 }
 0x2fa   :  { %v990_v16 = vpop.f32.mrf.mxu0  ;;  %v1010_v19 = vpop.f32.mrf.mxu1 }
 0x2fb   :  { %v1057_v32 = vrot.slane %v990_v16, 2  ;;  %v1058_v5 = vrot.slane %v1010_v19, 2 }
 0x2fd   :  { %v1065_v24 = vadd.f32 %v1057_v32, %v9494_v37  ;;  %v1066_v3 = vadd.f32 %v1058_v5, %v9495_v1 }
 0x2ff   :  { %v4983_v63 = vmul.f32 -1.442695, %v1065_v24  ;;  %v4984_v8 = vmul.f32 -1.442695, %v1066_v3 }
 0x301   :  { %5115 = vpow2.f32 %v4983_v63  ;;  %v1050_v21 = vpop.f32.mrf.mxu3  ;;  %v1030_v16 = vpop.f32.mrf.mxu2 }
 0x302   :  { %5117 = vpow2.f32 %v4984_v8  ;;  %v1060_v55 = vrot.slane %v1050_v21, 2  ;;  %v1059_v37 = vrot.slane %v1030_v16, 2 }
 0x304   :  { %v1068_v29 = vadd.f32 %v1060_v55, %v9496_v17  ;;  %v1067_v63 = vadd.f32 %v1059_v37, %v9497_v20 }
 0x306   :  { %v4985_v4 = vmul.f32 -1.442695, %v1068_v29 }
 0x307   :  { %v5116_v62 = vpop.eup %5115 }
 0x308   :  { %v5118_v59 = vpop.eup %5117  ;;  %v1072_v15 = vadd.f32 1.0, %v5116_v62  ;;  %5119 = vpow2.f32 %v4985_v4 }
 0x309   :  { %v1091_v9 = vadd.f32 1.0, %v5118_v59 }
 0x30a   :  { %5121 = vrcp.f32 %v1072_v15  ;;  %v1084_v24 = vand.u32 2147483648, %v1072_v15  ;;  %v1082_v59 = vand.u32 2147483647, %v1072_v15  ;;  %vm1078_vm7 = vweird.f32 %v1072_v15 }
 0x30b   :  { %5123 = vrcp.f32 %v1091_v9  ;;  %v1103_v62 = vand.u32 2147483648, %v1091_v9  ;;  %v1101_v32 = vand.u32 2147483647, %v1091_v9  ;;  %vm1097_vm8 = vweird.f32 %v1091_v9 }
 0x30c   :  { %v1085_v20 = vor.u32 1.1754944e-38, %v1084_v24  ;;  %vm1083_vm11 = vcmp.eq.f32.partialorder %v1082_v59, 8.507059e+37 }
 0x30d   :  { %vm1102_vm12 = vcmp.eq.f32.partialorder %v1101_v32, 8.507059e+37  ;;  %v9528_v32 = vld [vmem:[#allocation54_spill] sm:$0xff] }
 0x30e   :  { %v5120_v19 = vpop.eup %5119 }
 0x30f   :  { %v1111_v1 = vadd.f32 1.0, %v5120_v19 }
 0x310   :  { %v5122_v5 = vpop.eup %5121 }
 0x311   :  { %v5124_v3 = vpop.eup %5123  ;;  %v1074_v8 = vmul.f32 %v5122_v5, %v1072_v15  ;;  %5125 = vrcp.f32 %v1111_v1  ;;  %vm1079_vm5 = vweird.f32 %v5122_v5  ;;  %vm1117_vm14 = vweird.f32 %v1111_v1 }
 0x312   :  { %v1093_v21 = vmul.f32 %v5124_v3, %v1091_v9  ;;  %5127 = vtanh.f32 %v1067_v63  ;;  %vm1098_vm6 = vweird.f32 %v5124_v3  ;;  %vm1080_vm9 = vmor %vm1078_vm7, %vm1079_vm5 }
 0x313   :  { %v1075_v17 = vsub.f32 1.0, %v1074_v8  ;;  %v1128_v8 = vrot.slane %v6754_v41, 6  ;;  %vm1099_vm10 = vmor %vm1097_vm8, %vm1098_vm6  ;;  %v1123_v41 = vand.u32 2147483648, %v1111_v1 }
 0x314   :  { %v1094_v55 = vsub.f32 1.0, %v1093_v21  ;;  %v1104_v21 = vor.u32 1.1754944e-38, %v1103_v62  ;;  %v1121_v62 = vand.u32 2147483647, %v1111_v1 }
 0x315   :  { %v1076_v4 = vmul.f32 %v5122_v5, %v1075_v17  ;;  %v1124_v59 = vor.u32 1.1754944e-38, %v1123_v41  ;;  %v9541_v41 = vld [vmem:[#allocation44_spill] sm:$0xff] }
 0x316   :  { %v1095_v29 = vmul.f32 %v5124_v3, %v1094_v55  ;;  %vm1122_vm0 = vcmp.eq.f32.partialorder %v1121_v62, 8.507059e+37  ;;  %v9542_v62 = vld [vmem:[#allocation39_spill] sm:$0xff] }
 0x317   :  { %v5126_v16 = vpop.eup %5125  ;;  %v1077_v19 = vadd.f32 %v5122_v5, %v1076_v4 }
 0x318   :  { %v1096_v37 = vadd.f32 %v5124_v3, %v1095_v29  ;;  %v1113_v0 = vmul.f32 %v5126_v16, %v1111_v1  ;;  %v5128_v17 = vpop.eup %5127  ;;  %vm1118_vm13 = vweird.f32 %v5126_v16  ;;  %v9527_v1 = vld [vmem:[#allocation48_spill] sm:$0xff] }
 0x319   :  { %v1081_v63 = vsel %vm1080_vm9, %v5122_v5, %v1077_v19  ;;  %vm1119_vm15 = vmor %vm1117_vm14, %vm1118_vm13  ;;  %v9530_v19 = vld [vmem:[#allocation49_spill] sm:$0xff] }
 0x31a   :  { %v1086_v58 = vsel %vm1083_vm11, %v1085_v20, %v1081_v63  ;;  %v1100_v57 = vsel %vm1099_vm10, %v5124_v3, %v1096_v37  ;;  %v1114_v55 = vsub.f32 1.0, %v1113_v0  ;;  %v9531_v20 = vld [vmem:[#allocation41_spill] sm:$0xff]  ;;  %v9532_v37 = vld [vmem:[#allocation46_spill] sm:$0xff] }
 0x31b   :  { %v1105_v60 = vsel %vm1102_vm12, %v1104_v21, %v1100_v57  ;;  %v1131_v23 = vmul.f32 %v5128_v17, %v1086_v58  ;;  %v9524_v58 = vld [vmem:[#allocation45_spill] sm:$0xff]  ;;  %v9535_v63 = vld [vmem:[#allocation50_spill] sm:$0xff]  ;;  %v9536_v17 = vld [vmem:[#allocation56_spill] sm:$0xff] }
 0x31c   :  { %v1130_v4 = vmul.f32 %v1128_v8, %v1105_v60  ;;  %v1115_v15 = vmul.f32 %v5126_v16, %v1114_v55  ;;  %v9526_v60 = vld [vmem:[#allocation36_spill] sm:$0xff]  ;;  %v9533_v8 = vld [vmem:[#allocation42_spill] sm:$0xff]  ;;  %v9534_v21 = vld [vmem:[#allocation37_spill] sm:$0xff] }
 0x31d   :  { %v9537_v55 = vld [vmem:[#allocation57_spill] sm:$0xff] }
 0x31e   :  { %v6892_v9 = vadd.f32 %v1131_v23, %v1130_v4  ;;  %v1116_v24 = vadd.f32 %v5126_v16, %v1115_v15  ;;  %v9525_v23 = vld [vmem:[#allocation40_spill] sm:$0xff]  ;;  %v9538_v4 = vld [vmem:[#allocation51_spill] sm:$0xff] }
 0x31f   :  { %v9539_v15 = vld [vmem:[#allocation43_spill] sm:$0xff] }
 0x320   :  { %5129 = vtanh.f32 %v6892_v9  ;;  %v1120_v5 = vsel %vm1119_vm15, %v5126_v16, %v1116_v24  ;;  %v9529_v16 = vld [vmem:[#allocation55_spill] sm:$0xff] }
 0x321   :  { %v1125_v29 = vsel %vm1122_vm0, %v1124_v59, %v1120_v5  ;;  %v9540_v24 = vld [vmem:[#allocation47_spill] sm:$0xff]  ;;  %v9543_v5 = vld [vmem:[#allocation52_spill] sm:$0xff]  ;;  %v9544_v59 = vld [vmem:[#allocation58_spill] sm:$0xff] }
 0x326   :  { %v5130_v3 = vpop.eup %5129 }
 0x327   :  { %v1134_v0 = vmul.f32 %v5130_v3, %v1125_v29  ;;  %v9545_v3 = vld [vmem:[#allocation59_spill] sm:$0xff]  ;;  %v9546_v29 = vld [vmem:[#allocation61_spill] sm:$0xff] }
 0x329   :  { %1135 = vst [vmem:[#allocation3] sm:$0xc0] %v1134_v0  ;;  %v1137_v57 = vrot.slane %v1134_v0, 6  ;;  %v9547_v0 = vld [vmem:[#allocation53_spill] sm:$0xff] }
 0x32b   :  { %1155 = vmatmul.f32.vlgmr.msra.gmra.mxu0 %v1137_v57  ;;  %1175 = vmatmul.f32.vlgmr.msra.gmra.mxu1 %v1137_v57 }
 0x32c   :  { %1195 = vmatmul.f32.vlgmr.msra.gmra.mxu2 %v1137_v57  ;;  %1215 = vmatmul.f32.vlgmr.msra.gmra.mxu3 %v1137_v57  ;;  %v9548_v57 = vld [vmem:[#allocation60_spill] sm:$0xff] }
 0x32d   :  { %1456 = vmatpush.msra.mxu0 %v6623_v27  ;;  %1476 = vmatpush.msra.mxu1 %v6626_v10 }
 0x32e   :  { %1496 = vmatpush.msra.mxu2 %v6759_v30  ;;  %1516 = vmatpush.msra.mxu3 %v6762_v42 }
 0x32f   :  { %1457 = vmatpush.msra.mxu0 %v6631_v12  ;;  %1477 = vmatpush.msra.mxu1 %v6634_v7 }
 0x330   :  { %1497 = vmatpush.msra.mxu2 %v6767_v34  ;;  %1517 = vmatpush.msra.mxu3 %v6770_v45 }
 0x331   :  { %1458 = vmatpush.msra.mxu0 %v6639_v26  ;;  %1478 = vmatpush.msra.mxu1 %v6642_v14 }
 0x332   :  { %1498 = vmatpush.msra.mxu2 %v6775_v6  ;;  %1518 = vmatpush.msra.mxu3 %v6778_v49 }
 0x333   :  { %1459 = vmatpush.msra.mxu0 %v6647_v35  ;;  %1479 = vmatpush.msra.mxu1 %v6650_v36 }
 0x334   :  { %1499 = vmatpush.msra.mxu2 %v6783_v50  ;;  %1519 = vmatpush.msra.mxu3 %v6786_v2 }
 0x335   :  { %1460 = vmatpush.msra.mxu0 %v6655_v38  ;;  %1480 = vmatpush.msra.mxu1 %v6658_v39 }
 0x336   :  { %1500 = vmatpush.msra.mxu2 %v6791_v11  ;;  %1520 = vmatpush.msra.mxu3 %v6794_v25 }
 0x337   :  { %1461 = vmatpush.msra.mxu0 %v6663_v40  ;;  %1481 = vmatpush.msra.mxu1 %v6666_v43 }
 0x338   :  { %1501 = vmatpush.msra.mxu2 %v6799_v61  ;;  %1521 = vmatpush.msra.mxu3 %v6802_v33 }
 0x339   :  { %1462 = vmatpush.msra.mxu0 %v6671_v44  ;;  %1482 = vmatpush.msra.mxu1 %v6674_v46 }
 0x33a   :  { %1502 = vmatpush.msra.mxu2 %v6807_v56  ;;  %1522 = vmatpush.msra.mxu3 %v6810_v13 }
 0x33b   :  { %1463 = vmatpush.msra.mxu0 %v6679_v47  ;;  %1483 = vmatpush.msra.mxu1 %v6682_v48 }
 0x33c   :  { %1503 = vmatpush.msra.mxu2 %v6815_v18  ;;  %1523 = vmatpush.msra.mxu3 %v6818_v31 }
 0x33d   :  { %1464 = vmatpush.msra.mxu0 %v6687_v51  ;;  %1484 = vmatpush.msra.mxu1 %v6690_v52 }
 0x33e   :  { %1504 = vmatpush.msra.mxu2 %v6823_v22  ;;  %1524 = vmatpush.msra.mxu3 %v6826_v28 }
 0x33f   :  { %1465 = vmatpush.msra.mxu0 %v6695_v53  ;;  %1485 = vmatpush.msra.mxu1 %v6698_v54 }
 0x340   :  { %1505 = vmatpush.msra.mxu2 %v9524_v58  ;;  %1525 = vmatpush.msra.mxu3 %v9525_v23 }
 0x341   :  { %1466 = vmatpush.msra.mxu0 %v9526_v60  ;;  %1486 = vmatpush.msra.mxu1 %v9527_v1 }
 0x342   :  { %1506 = vmatpush.msra.mxu2 %v9528_v32  ;;  %1526 = vmatpush.msra.mxu3 %v9529_v16 }
 0x343   :  { %1467 = vmatpush.msra.mxu0 %v9530_v19  ;;  %1487 = vmatpush.msra.mxu1 %v9531_v20 }
 0x344   :  { %1507 = vmatpush.msra.mxu2 %v9532_v37  ;;  %1527 = vmatpush.msra.mxu3 %v9533_v8 }
 0x345   :  { %1468 = vmatpush.msra.mxu0 %v9534_v21  ;;  %1488 = vmatpush.msra.mxu1 %v9535_v63  ;;  %v9558_v21 = vld [vmem:[#allocation65_spill] sm:$0xff] }
 0x346   :  { %1508 = vmatpush.msra.mxu2 %v9536_v17  ;;  %1528 = vmatpush.msra.mxu3 %v9537_v55  ;;  %v9552_v55 = vld [vmem:[#allocation63_spill] sm:$0xff] }
 0x347   :  { %1469 = vmatpush.msra.mxu0 %v9538_v4  ;;  %1489 = vmatpush.msra.mxu1 %v9539_v15  ;;  %v9549_v4 = vld [vmem:[#allocation66_spill] sm:$0xff] }
 0x348   :  { %1509 = vmatpush.msra.mxu2 %v9540_v24  ;;  %1529 = vmatpush.msra.mxu3 %v9541_v41  ;;  %v9550_v15 = vld [vmem:[#allocation38_spill] sm:$0xff] }
 0x349   :  { %1470 = vmatpush.msra.mxu0 %v9542_v62  ;;  %1490 = vmatpush.msra.mxu1 %v9543_v5  ;;  %v9551_v24 = vperm.slane %v9550_v15, 0  ;;  %v9554_v62 = vperm.slane %v9550_v15, 1  ;;  %v9555_v5 = vld [vmem:[#allocation62_spill] sm:$0xff] }
 0x34a   :  { %1510 = vmatpush.msra.mxu2 %v9544_v59  ;;  %1530 = vmatpush.msra.mxu3 %v9545_v3 }
 0x34b   :  { %1471 = vmatpush.msra.mxu0 %v9546_v29  ;;  %1491 = vmatpush.msra.mxu1 %v9547_v0  ;;  %v6962_v41 = vadd.f32 %v9552_v55, %v9551_v24  ;;  %v6967_v17 = vadd.f32 %v9555_v5, %v9554_v62 }
 0x34c   :  { %1511 = vmatpush.msra.mxu2 %v9548_v57  ;;  %1531 = vmatpush.msra.mxu3 %v9549_v4  ;;  %v9557_v4 = vperm.slane %v9550_v15, 3 }
 0x34d   :  { %9553 = vst [vmem:[#allocation67_spill] sm:$0xff] %v6962_v41 }
 0x34e   :  { %9556 = vst [vmem:[#allocation38_spill] sm:$0xff] %v6967_v17  ;;  %v6974_v8 = vadd.f32 %v9558_v21, %v9557_v4 }
 0x350   :  { %9559 = vst [vmem:[#allocation63_spill] sm:$0xff] %v6974_v8 }
 0x3a8   :  { %v1156_v59 = vpop.f32.mrf.mxu0  ;;  %v1176_v3 = vpop.f32.mrf.mxu1 }
 0x3a9   :  { %v1219_v29 = vadd.f32 %v1156_v59, %v6962_v41  ;;  %v1220_v0 = vadd.f32 %v1176_v3, %v6967_v17 }
 0x3ab   :  { %v4986_v63 = vmul.f32 -1.442695, %v1219_v29  ;;  %v4987_v57 = vmul.f32 -1.442695, %v1220_v0  ;;  %v9561_v0 = vld [vmem:[#allocation64_spill] sm:$0xff] }
 0x3ad   :  { %5131 = vpow2.f32 %v4986_v63  ;;  %v9560_v63 = vperm.slane %v9550_v15, 2 }
 0x3ae   :  { %5133 = vpow2.f32 %v4987_v57 }
 0x3af   :  { %v1216_v55 = vpop.f32.mrf.mxu3  ;;  %v1196_v3 = vpop.f32.mrf.mxu2  ;;  %v6980_v17 = vadd.f32 %v9561_v0, %v9560_v63 }
 0x3b0   :  { %v1222_v24 = vadd.f32 %v1216_v55, %v6974_v8 }
 0x3b1   :  { %9562 = vst [vmem:[#allocation62_spill] sm:$0xff] %v6980_v17  ;;  %v1221_v57 = vadd.f32 %v1196_v3, %v6980_v17 }
 0x3b2   :  { %v4988_v62 = vmul.f32 -1.442695, %v1222_v24 }
 0x3b3   :  { %v5132_v5 = vpop.eup %5131 }
 0x3b4   :  { %v5134_v37 = vpop.eup %5133  ;;  %v1226_v20 = vadd.f32 1.0, %v5132_v5  ;;  %5135 = vpow2.f32 %v4988_v62 }
 0x3b5   :  { %v1245_v59 = vadd.f32 1.0, %v5134_v37 }
 0x3b6   :  { %5137 = vrcp.f32 %v1226_v20  ;;  %v1238_v37 = vand.u32 2147483648, %v1226_v20  ;;  %v1236_v16 = vand.u32 2147483647, %v1226_v20  ;;  %vm1232_vm3 = vweird.f32 %v1226_v20 }
 0x3b7   :  { %5139 = vrcp.f32 %v1245_v59  ;;  %v1257_v41 = vand.u32 2147483648, %v1245_v59  ;;  %v1255_v63 = vand.u32 2147483647, %v1245_v59  ;;  %vm1251_vm4 = vweird.f32 %v1245_v59 }
 0x3b8   :  { %v1239_v3 = vor.u32 1.1754944e-38, %v1238_v37  ;;  %vm1237_vm6 = vcmp.eq.f32.partialorder %v1236_v16, 8.507059e+37 }
 0x3b9   :  { %vm1256_vm8 = vcmp.eq.f32.partialorder %v1255_v63, 8.507059e+37 }
 0x3ba   :  { %v5136_v29 = vpop.eup %5135 }
 0x3bb   :  { %v1265_v21 = vadd.f32 1.0, %v5136_v29 }
 0x3bc   :  { %v5138_v4 = vpop.eup %5137 }
 0x3bd   :  { %v5140_v55 = vpop.eup %5139  ;;  %v1228_v24 = vmul.f32 %v5138_v4, %v1226_v20  ;;  %5141 = vrcp.f32 %v1265_v21  ;;  %vm1233_vm1 = vweird.f32 %v5138_v4  ;;  %v1277_v16 = vand.u32 2147483648, %v1265_v21 }
 0x3be   :  { %v1247_v8 = vmul.f32 %v5140_v55, %v1245_v59  ;;  %5143 = vtanh.f32 %v1221_v57  ;;  %vm1252_vm2 = vweird.f32 %v5140_v55  ;;  %vm1234_vm5 = vmor %vm1232_vm3, %vm1233_vm1  ;;  %v1282_v57 = vrot.slane %v6892_v9, 6 }
 0x3bf   :  { %v1229_v5 = vsub.f32 1.0, %v1228_v24  ;;  %vm1253_vm7 = vmor %vm1251_vm4, %vm1252_vm2  ;;  %vm1271_vm10 = vweird.f32 %v1265_v21 }
 0x3c0   :  { %v1248_v62 = vsub.f32 1.0, %v1247_v8  ;;  %v1258_v8 = vor.u32 1.1754944e-38, %v1257_v41  ;;  %v1275_v41 = vand.u32 2147483647, %v1265_v21 }
 0x3c1   :  { %v1230_v19 = vmul.f32 %v5138_v4, %v1229_v5 }
 0x3c2   :  { %v1249_v15 = vmul.f32 %v5140_v55, %v1248_v62  ;;  %vm1276_vm12 = vcmp.eq.f32.partialorder %v1275_v41, 8.507059e+37 }
 0x3c3   :  { %v5142_v0 = vpop.eup %5141  ;;  %v1231_v29 = vadd.f32 %v5138_v4, %v1230_v19 }
 0x3c4   :  { %v1250_v17 = vadd.f32 %v5140_v55, %v1249_v15  ;;  %v1267_v32 = vmul.f32 %v5142_v0, %v1265_v21  ;;  %v5144_v24 = vpop.eup %5143  ;;  %vm1272_vm9 = vweird.f32 %v5142_v0 }
 0x3c5   :  { %v1235_v1 = vsel %vm1234_vm5, %v5138_v4, %v1231_v29  ;;  %vm1273_vm11 = vmor %vm1271_vm10, %vm1272_vm9  ;;  %v1278_v4 = vor.u32 1.1754944e-38, %v1277_v16 }
 0x3c6   :  { %v1240_v5 = vsel %vm1237_vm6, %v1239_v3, %v1235_v1  ;;  %v1254_v60 = vsel %vm1253_vm7, %v5140_v55, %v1250_v17  ;;  %v1268_v62 = vsub.f32 1.0, %v1267_v32 }
 0x3c7   :  { %v1259_v23 = vsel %vm1256_vm8, %v1258_v8, %v1254_v60  ;;  %v1285_v58 = vmul.f32 %v5144_v24, %v1240_v5  ;;  %v9592_v24 = vld [vmem:[#allocation62_spill] sm:$0xff] }
 0x3c8   :  { %v1284_v19 = vmul.f32 %v1282_v57, %v1259_v23  ;;  %v1269_v20 = vmul.f32 %v5142_v0, %v1268_v62 }
 0x3ca   :  { %v6984_v59 = vadd.f32 %v1285_v58, %v1284_v19  ;;  %v1270_v37 = vadd.f32 %v5142_v0, %v1269_v20  ;;  %v9591_v58 = vld [vmem:[#allocation63_spill] sm:$0xff] }
 0x3cc   :  { %5145 = vtanh.f32 %v6984_v59  ;;  %v1274_v9 = vsel %vm1273_vm11, %v5142_v0, %v1270_v37 }
 0x3cd   :  { %v1279_v17 = vsel %vm1276_vm12, %v1278_v4, %v1274_v9 }
 0x3d2   :  { %v5146_v1 = vpop.eup %5145 }
 0x3d3   :  { %v1288_v32 = vmul.f32 %v5146_v1, %v1279_v17 }
 0x3d5   :  { %1289 = vst [vmem:[#allocation3 + $0x8] sm:$0x3] %v1288_v32  ;;  %1306 = vmatmul.f32.vlgmr.msrb.gmra.mxu0 %v1288_v32  ;;  %1326 = vmatmul.f32.vlgmr.msrb.gmra.mxu1 %v1288_v32 }
 0x3d6   :  { %1346 = vmatmul.f32.vlgmr.msrb.gmra.mxu2 %v1288_v32  ;;  %1366 = vmatmul.f32.vlgmr.msrb.gmra.mxu3 %v1288_v32 }
 0x3d7   :  { %1622 = vmatpush.msrb.mxu0 %v6623_v27  ;;  %1642 = vmatpush.msrb.mxu1 %v6626_v10  ;;  %v9563_v27 = vld [vmem:[#allocation45_spill] sm:$0xff]  ;;  %v9564_v10 = vld [vmem:[#allocation40_spill] sm:$0xff] }
 0x3d8   :  { %1662 = vmatpush.msrb.mxu2 %v6759_v30  ;;  %1682 = vmatpush.msrb.mxu3 %v6762_v42  ;;  %v9583_v30 = vld [vmem:[#allocation58_spill] sm:$0xff]  ;;  %v9584_v42 = vld [vmem:[#allocation59_spill] sm:$0xff] }
 0x3d9   :  { %1623 = vmatpush.msrb.mxu0 %v6631_v12  ;;  %1643 = vmatpush.msrb.mxu1 %v6634_v7  ;;  %v9565_v12 = vld [vmem:[#allocation36_spill] sm:$0xff] }
 0x3da   :  { %1663 = vmatpush.msrb.mxu2 %v6767_v34  ;;  %1683 = vmatpush.msrb.mxu3 %v6770_v45  ;;  %v9566_v7 = vld [vmem:[#allocation48_spill] sm:$0xff]  ;;  %v9585_v34 = vld [vmem:[#allocation61_spill] sm:$0xff] }
 0x3db   :  { %1624 = vmatpush.msrb.mxu0 %v6639_v26  ;;  %1644 = vmatpush.msrb.mxu1 %v6642_v14  ;;  %v9567_v26 = vld [vmem:[#allocation54_spill] sm:$0xff]  ;;  %v9568_v14 = vld [vmem:[#allocation55_spill] sm:$0xff]  ;;  %v9586_v45 = vld [vmem:[#allocation53_spill] sm:$0xff] }
 0x3dc   :  { %1664 = vmatpush.msrb.mxu2 %v6775_v6  ;;  %1684 = vmatpush.msrb.mxu3 %v6778_v49  ;;  %v9587_v6 = vld [vmem:[#allocation60_spill] sm:$0xff]  ;;  %v9588_v49 = vld [vmem:[#allocation66_spill] sm:$0xff] }
 0x3dd   :  { %1625 = vmatpush.msrb.mxu0 %v6647_v35  ;;  %1645 = vmatpush.msrb.mxu1 %v6650_v36  ;;  %v9569_v35 = vld [vmem:[#allocation49_spill] sm:$0xff] }
 0x3de   :  { %1665 = vmatpush.msrb.mxu2 %v6783_v50  ;;  %1685 = vmatpush.msrb.mxu3 %v6786_v2  ;;  %v9570_v36 = vld [vmem:[#allocation41_spill] sm:$0xff] }
 0x3df   :  { %1626 = vmatpush.msrb.mxu0 %v6655_v38  ;;  %1646 = vmatpush.msrb.mxu1 %v6658_v39  ;;  %v9571_v38 = vld [vmem:[#allocation46_spill] sm:$0xff] }
 0x3e0   :  { %1666 = vmatpush.msrb.mxu2 %v6791_v11  ;;  %1686 = vmatpush.msrb.mxu3 %v6794_v25  ;;  %v9572_v39 = vld [vmem:[#allocation42_spill] sm:$0xff] }
 0x3e1   :  { %1627 = vmatpush.msrb.mxu0 %v6663_v40  ;;  %1647 = vmatpush.msrb.mxu1 %v6666_v43  ;;  %v9573_v40 = vld [vmem:[#allocation37_spill] sm:$0xff]  ;;  %v9574_v43 = vld [vmem:[#allocation50_spill] sm:$0xff] }
 0x3e2   :  { %1667 = vmatpush.msrb.mxu2 %v6799_v61  ;;  %1687 = vmatpush.msrb.mxu3 %v6802_v33  ;;  %v9589_v61 = vld [vmem:[#allocation67_spill] sm:$0xff] }
 0x3e3   :  { %1628 = vmatpush.msrb.mxu0 %v6671_v44  ;;  %1648 = vmatpush.msrb.mxu1 %v6674_v46  ;;  %v9575_v44 = vld [vmem:[#allocation56_spill] sm:$0xff]  ;;  %v9576_v46 = vld [vmem:[#allocation57_spill] sm:$0xff] }
 0x3e4   :  { %1668 = vmatpush.msrb.mxu2 %v6807_v56  ;;  %1688 = vmatpush.msrb.mxu3 %v6810_v13  ;;  %v9590_v56 = vld [vmem:[#allocation38_spill] sm:$0xff] }
 0x3e5   :  { %1629 = vmatpush.msrb.mxu0 %v6679_v47  ;;  %1649 = vmatpush.msrb.mxu1 %v6682_v48  ;;  %v9577_v47 = vld [vmem:[#allocation51_spill] sm:$0xff] }
 0x3e6   :  { %1669 = vmatpush.msrb.mxu2 %v6815_v18  ;;  %1689 = vmatpush.msrb.mxu3 %v6818_v31  ;;  %v9578_v48 = vld [vmem:[#allocation43_spill] sm:$0xff] }
 0x3e7   :  { %1630 = vmatpush.msrb.mxu0 %v6687_v51  ;;  %1650 = vmatpush.msrb.mxu1 %v6690_v52  ;;  %v9579_v51 = vld [vmem:[#allocation47_spill] sm:$0xff]  ;;  %v9580_v52 = vld [vmem:[#allocation44_spill] sm:$0xff] }
 0x3e8   :  { %1670 = vmatpush.msrb.mxu2 %v6823_v22  ;;  %1690 = vmatpush.msrb.mxu3 %v6826_v28 }
 0x3e9   :  { %1631 = vmatpush.msrb.mxu0 %v6695_v53  ;;  %1651 = vmatpush.msrb.mxu1 %v6698_v54  ;;  %v9581_v53 = vld [vmem:[#allocation39_spill] sm:$0xff]  ;;  %v9582_v54 = vld [vmem:[#allocation52_spill] sm:$0xff] }
 0x3ea   :  { %1671 = vmatpush.msrb.mxu2 %v9563_v27  ;;  %1691 = vmatpush.msrb.mxu3 %v9564_v10 }
 0x3eb   :  { %1632 = vmatpush.msrb.mxu0 %v9565_v12  ;;  %1652 = vmatpush.msrb.mxu1 %v9566_v7 }
 0x3ec   :  { %1672 = vmatpush.msrb.mxu2 %v9567_v26  ;;  %1692 = vmatpush.msrb.mxu3 %v9568_v14  ;;  %v1445_v14 = vrot.slane %v6984_v59, 6 }
 0x3ed   :  { %1633 = vmatpush.msrb.mxu0 %v9569_v35  ;;  %1653 = vmatpush.msrb.mxu1 %v9570_v36 }
 0x3ee   :  { %1673 = vmatpush.msrb.mxu2 %v9571_v38  ;;  %1693 = vmatpush.msrb.mxu3 %v9572_v39 }
 0x3ef   :  { %1634 = vmatpush.msrb.mxu0 %v9573_v40  ;;  %1654 = vmatpush.msrb.mxu1 %v9574_v43 }
 0x3f0   :  { %1674 = vmatpush.msrb.mxu2 %v9575_v44  ;;  %1694 = vmatpush.msrb.mxu3 %v9576_v46 }
 0x3f1   :  { %1635 = vmatpush.msrb.mxu0 %v9577_v47  ;;  %1655 = vmatpush.msrb.mxu1 %v9578_v48 }
 0x3f2   :  { %1675 = vmatpush.msrb.mxu2 %v9579_v51  ;;  %1695 = vmatpush.msrb.mxu3 %v9580_v52 }
 0x3f3   :  { %1636 = vmatpush.msrb.mxu0 %v9581_v53  ;;  %1656 = vmatpush.msrb.mxu1 %v9582_v54 }
 0x3f4   :  { %1676 = vmatpush.msrb.mxu2 %v9583_v30  ;;  %1696 = vmatpush.msrb.mxu3 %v9584_v42 }
 0x3f5   :  { %1637 = vmatpush.msrb.mxu0 %v9585_v34  ;;  %1657 = vmatpush.msrb.mxu1 %v9586_v45 }
 0x3f6   :  { %1677 = vmatpush.msrb.mxu2 %v9587_v6  ;;  %1697 = vmatpush.msrb.mxu3 %v9588_v49  ;;  %v1845_v49 = vld [vmem:[#allocation12 + $0x1e0] sm:$0xff] }
 0x452   :  { %v1307_v50 = vpop.f32.mrf.mxu0  ;;  %v1327_v2 = vpop.f32.mrf.mxu1 }
 0x453   :  { %v1374_v11 = vrot.slane %v1307_v50, 6  ;;  %v1375_v25 = vrot.slane %v1327_v2, 6  ;;  %v1846_v50 = vld [vmem:[#allocation12 + $0x1e8] sm:$0xff]  ;;  %v1847_v2 = vld [vmem:[#allocation12 + $0x1f0] sm:$0xff] }
 0x455   :  { %v1382_v33 = vadd.f32 %v1374_v11, %v9589_v61  ;;  %v1383_v13 = vadd.f32 %v1375_v25, %v9590_v56  ;;  %v1848_v11 = vld [vmem:[#allocation12 + $0x1f8] sm:$0xff]  ;;  %v1841_v25 = vld [vmem:[#allocation12 + $0x1c0] sm:$0xff] }
 0x457   :  { %v4989_v18 = vmul.f32 -1.442695, %v1382_v33  ;;  %v4990_v31 = vmul.f32 -1.442695, %v1383_v13  ;;  %v1842_v33 = vld [vmem:[#allocation12 + $0x1c8] sm:$0xff]  ;;  %v1843_v13 = vld [vmem:[#allocation12 + $0x1d0] sm:$0xff] }
 0x459   :  { %5147 = vpow2.f32 %v4989_v18  ;;  %v1367_v22 = vpop.f32.mrf.mxu3  ;;  %v1347_v0 = vpop.f32.mrf.mxu2  ;;  %v1844_v18 = vld [vmem:[#allocation12 + $0x1d8] sm:$0xff] }
 0x45a   :  { %5149 = vpow2.f32 %v4990_v31  ;;  %v1377_v28 = vrot.slane %v1367_v22, 6  ;;  %v1376_v29 = vrot.slane %v1347_v0, 6  ;;  %v1837_v31 = vld [vmem:[#allocation12 + $0x1a0] sm:$0xff]  ;;  %v1838_v22 = vld [vmem:[#allocation12 + $0x1a8] sm:$0xff]  ;;  %v1836_v0 = vld [vmem:[#allocation12 + $0x198] sm:$0xff] }
 0x45c   :  { %v1385_v23 = vadd.f32 %v1377_v28, %v9591_v58  ;;  %v1384_v5 = vadd.f32 %v1376_v29, %v9592_v24  ;;  %v1839_v28 = vld [vmem:[#allocation12 + $0x1b0] sm:$0xff] }
 0x45e   :  { %v4991_v60 = vmul.f32 -1.442695, %v1385_v23  ;;  %v1840_v23 = vld [vmem:[#allocation12 + $0x1b8] sm:$0xff] }
 0x45f   :  { %v5148_v21 = vpop.eup %5147 }
 0x460   :  { %v5150_v55 = vpop.eup %5149  ;;  %v1389_v15 = vadd.f32 1.0, %v5148_v21  ;;  %5151 = vpow2.f32 %v4991_v60  ;;  %v1833_v60 = vld [vmem:[#allocation12 + $0x180] sm:$0xff]  ;;  %v1834_v21 = vld [vmem:[#allocation12 + $0x188] sm:$0xff] }
 0x461   :  { %v1408_v63 = vadd.f32 1.0, %v5150_v55  ;;  %v1835_v55 = vld [vmem:[#allocation12 + $0x190] sm:$0xff] }
 0x462   :  { %5153 = vrcp.f32 %v1389_v15  ;;  %v1401_v41 = vand.u32 2147483648, %v1389_v15  ;;  %v1399_v1 = vand.u32 2147483647, %v1389_v15  ;;  %vm1395_vm15 = vweird.f32 %v1389_v15 }
 0x463   :  { %5155 = vrcp.f32 %v1408_v63  ;;  %v1420_v9 = vand.u32 2147483648, %v1408_v63  ;;  %v1418_v32 = vand.u32 2147483647, %v1408_v63  ;;  %vm1414_vm0 = vweird.f32 %v1408_v63 }
 0x464   :  { %v1402_v12 = vor.u32 1.1754944e-38, %v1401_v41  ;;  %vm1400_vm3 = vcmp.eq.f32.partialorder %v1399_v1, 8.507059e+37  ;;  %v1827_v41 = vld [vmem:[#allocation12 + $0x150] sm:$0xff] }
 0x465   :  { %v1421_v35 = vor.u32 1.1754944e-38, %v1420_v9  ;;  %vm1419_vm4 = vcmp.eq.f32.partialorder %v1418_v32, 8.507059e+37  ;;  %v1828_v9 = vld [vmem:[#allocation12 + $0x158] sm:$0xff]  ;;  %v1822_v32 = vld [vmem:[#allocation12 + $0x128] sm:$0xff] }
 0x466   :  { %v5152_v3 = vpop.eup %5151 }
 0x467   :  { %v1428_v8 = vadd.f32 1.0, %v5152_v3 }
 0x468   :  { %v5154_v57 = vpop.eup %5153 }
 0x469   :  { %v5156_v62 = vpop.eup %5155  ;;  %v1391_v19 = vmul.f32 %v5154_v57, %v1389_v15  ;;  %5157 = vrcp.f32 %v1428_v8  ;;  %vm1396_vm13 = vweird.f32 %v5154_v57  ;;  %v1440_v59 = vand.u32 2147483648, %v1428_v8 }
 0x46a   :  { %v1410_v20 = vmul.f32 %v5156_v62, %v1408_v63  ;;  %5159 = vtanh.f32 %v1384_v5  ;;  %vm1415_vm14 = vweird.f32 %v5156_v62  ;;  %vm1397_vm1 = vmor %vm1395_vm15, %vm1396_vm13  ;;  %vm1434_vm6 = vweird.f32 %v1428_v8  ;;  %v1831_v5 = vld [vmem:[#allocation12 + $0x170] sm:$0xff] }
 0x46b   :  { %v1392_v37 = vsub.f32 1.0, %v1391_v19  ;;  %vm1416_vm2 = vmor %vm1414_vm0, %vm1415_vm14  ;;  %v1438_v53 = vand.u32 2147483647, %v1428_v8  ;;  %v1441_v30 = vor.u32 1.1754944e-38, %v1440_v59  ;;  %v1805_v59 = vld [vmem:[#allocation12 + $0xa0] sm:$0xff] }
 0x46c   :  { %v1411_v16 = vsub.f32 1.0, %v1410_v20 }
 0x46d   :  { %v1393_v4 = vmul.f32 %v5154_v57, %v1392_v37  ;;  %vm1439_vm8 = vcmp.eq.f32.partialorder %v1438_v53, 8.507059e+37  ;;  %v1825_v37 = vld [vmem:[#allocation12 + $0x140] sm:$0xff]  ;;  %v1806_v53 = vld [vmem:[#allocation12 + $0xa8] sm:$0xff] }
 0x46e   :  { %v1412_v17 = vmul.f32 %v5156_v62, %v1411_v16  ;;  %v1826_v16 = vld [vmem:[#allocation12 + $0x148] sm:$0xff] }
 0x46f   :  { %v5158_v27 = vpop.eup %5157  ;;  %v1394_v10 = vadd.f32 %v5154_v57, %v1393_v4 }
 0x470   :  { %v1413_v7 = vadd.f32 %v5156_v62, %v1412_v17  ;;  %v1430_v26 = vmul.f32 %v5158_v27, %v1428_v8  ;;  %v5160_v38 = vpop.eup %5159  ;;  %vm1435_vm5 = vweird.f32 %v5158_v27  ;;  %v1829_v8 = vld [vmem:[#allocation12 + $0x160] sm:$0xff] }
 0x471   :  { %v1398_v36 = vsel %vm1397_vm1, %v5154_v57, %v1394_v10  ;;  %vm1436_vm7 = vmor %vm1434_vm6, %vm1435_vm5  ;;  %v1830_v57 = vld [vmem:[#allocation12 + $0x168] sm:$0xff]  ;;  %v1821_v17 = vld [vmem:[#allocation12 + $0x120] sm:$0xff] }
 0x472   :  { %v1403_v39 = vsel %vm1400_vm3, %v1402_v12, %v1398_v36  ;;  %v1417_v40 = vsel %vm1416_vm2, %v5156_v62, %v1413_v7  ;;  %v1431_v43 = vsub.f32 1.0, %v1430_v26  ;;  %v1832_v62 = vld [vmem:[#allocation12 + $0x178] sm:$0xff]  ;;  %v1817_v12 = vld [vmem:[#allocation12 + $0x100] sm:$0xff]  ;;  %v1818_v26 = vld [vmem:[#allocation12 + $0x108] sm:$0xff] }
 0x473   :  { %v1422_v44 = vsel %vm1419_vm4, %v1421_v35, %v1417_v40  ;;  %v1448_v46 = vmul.f32 %v5160_v38, %v1403_v39  ;;  %v1824_v10 = vld [vmem:[#allocation12 + $0x138] sm:$0xff]  ;;  %v1813_v38 = vld [vmem:[#allocation12 + $0xe0] sm:$0xff]  ;;  %v1814_v39 = vld [vmem:[#allocation12 + $0xe8] sm:$0xff] }
 0x474   :  { %v1447_v47 = vmul.f32 %v1445_v14, %v1422_v44  ;;  %v1432_v48 = vmul.f32 %v5158_v27, %v1431_v43  ;;  %v1819_v14 = vld [vmem:[#allocation12 + $0x110] sm:$0xff]  ;;  %v1820_v35 = vld [vmem:[#allocation12 + $0x118] sm:$0xff]  ;;  %v1809_v44 = vld [vmem:[#allocation12 + $0xc0] sm:$0xff] }
 0x475   :  { %v1815_v40 = vld [vmem:[#allocation12 + $0xf0] sm:$0xff]  ;;  %v1816_v43 = vld [vmem:[#allocation12 + $0xf8] sm:$0xff] }
 0x476   :  { %v7056_v51 = vadd.f32 %v1448_v46, %v1447_v47  ;;  %v1433_v52 = vadd.f32 %v5158_v27, %v1432_v48  ;;  %v1810_v46 = vld [vmem:[#allocation12 + $0xc8] sm:$0xff]  ;;  %v1811_v48 = vld [vmem:[#allocation12 + $0xd0] sm:$0xff] }
 0x478   :  { %5161 = vtanh.f32 %v7056_v51  ;;  %v1437_v54 = vsel %vm1436_vm7, %v5158_v27, %v1433_v52  ;;  %v1823_v27 = vld [vmem:[#allocation12 + $0x130] sm:$0xff]  ;;  %v1812_v52 = vld [vmem:[#allocation12 + $0xd8] sm:$0xff] }
 0x479   :  { %v1442_v34 = vsel %vm1439_vm8, %v1441_v30, %v1437_v54  ;;  %v1807_v30 = vld [vmem:[#allocation12 + $0xb0] sm:$0xff] }
 0x47e   :  { %v5162_v42 = vpop.eup %5161 }
 0x47f   :  { %v1451_v45 = vmul.f32 %v5162_v42, %v1442_v34  ;;  %v1808_v42 = vld [vmem:[#allocation12 + $0xb8] sm:$0xff] }
 0x481   :  { %1452 = vst [vmem:[#allocation3 + $0x8] sm:$0xc] %v1451_v45  ;;  %v1454_v6 = vrot.slane %v1451_v45, 2  ;;  %v1801_v45 = vld [vmem:[#allocation12 + $0x80] sm:$0xff] }
 0x483   :  { %1472 = vmatmul.f32.vlgmr.msra.gmra.mxu0 %v1454_v6  ;;  %1492 = vmatmul.f32.vlgmr.msra.gmra.mxu1 %v1454_v6 }
 0x484   :  { %1512 = vmatmul.f32.vlgmr.msra.gmra.mxu2 %v1454_v6  ;;  %1532 = vmatmul.f32.vlgmr.msra.gmra.mxu3 %v1454_v6  ;;  %v1802_v6 = vld [vmem:[#allocation12 + $0x88] sm:$0xff] }
 0x485   :  { %1925 = vmatpush.msra.mxu0 %v1845_v49  ;;  %1948 = vmatpush.msra.mxu1 %v1846_v50 }
 0x486   :  { %1971 = vmatpush.msra.mxu2 %v1847_v2  ;;  %1994 = vmatpush.msra.mxu3 %v1848_v11  ;;  %v1803_v2 = vld [vmem:[#allocation12 + $0x90] sm:$0xff]  ;;  %v1804_v11 = vld [vmem:[#allocation12 + $0x98] sm:$0xff] }
 0x487   :  { %1926 = vmatpush.msra.mxu0 %v1841_v25  ;;  %1949 = vmatpush.msra.mxu1 %v1842_v33 }
 0x488   :  { %1972 = vmatpush.msra.mxu2 %v1843_v13  ;;  %1995 = vmatpush.msra.mxu3 %v1844_v18  ;;  %v1797_v18 = vld [vmem:[#allocation12 + $0x60] sm:$0xff] }
 0x489   :  { %1927 = vmatpush.msra.mxu0 %v1837_v31  ;;  %1950 = vmatpush.msra.mxu1 %v1838_v22  ;;  %v1798_v31 = vld [vmem:[#allocation12 + $0x68] sm:$0xff]  ;;  %v1799_v22 = vld [vmem:[#allocation12 + $0x70] sm:$0xff] }
 0x48a   :  { %1973 = vmatpush.msra.mxu2 %v1839_v28  ;;  %1996 = vmatpush.msra.mxu3 %v1840_v23  ;;  %v1800_v28 = vld [vmem:[#allocation12 + $0x78] sm:$0xff]  ;;  %v1793_v23 = vld [vmem:[#allocation12 + $0x40] sm:$0xff] }
 0x48b   :  { %1928 = vmatpush.msra.mxu0 %v1833_v60  ;;  %1951 = vmatpush.msra.mxu1 %v1834_v21  ;;  %v1794_v60 = vld [vmem:[#allocation12 + $0x48] sm:$0xff] }
 0x48c   :  { %1974 = vmatpush.msra.mxu2 %v1835_v55  ;;  %1997 = vmatpush.msra.mxu3 %v1836_v0  ;;  %v1795_v55 = vld [vmem:[#allocation12 + $0x50] sm:$0xff] }
 0x48d   :  { %1929 = vmatpush.msra.mxu0 %v1829_v8  ;;  %1952 = vmatpush.msra.mxu1 %v1830_v57  ;;  %v1792_v8 = vld [vmem:[#allocation12 + $0x38] sm:$0xff] }
 0x48e   :  { %1975 = vmatpush.msra.mxu2 %v1831_v5  ;;  %1998 = vmatpush.msra.mxu3 %v1832_v62  ;;  %v1785_v62 = vld [vmem:[#allocation12] sm:$0xff] }
 0x48f   :  { %1930 = vmatpush.msra.mxu0 %v1825_v37  ;;  %1953 = vmatpush.msra.mxu1 %v1826_v16  ;;  %v1787_v16 = vld [vmem:[#allocation12 + $0x10] sm:$0xff] }
 0x490   :  { %1976 = vmatpush.msra.mxu2 %v1827_v41  ;;  %1999 = vmatpush.msra.mxu3 %v1828_v9  ;;  %v1788_v41 = vld [vmem:[#allocation12 + $0x18] sm:$0xff] }
 0x491   :  { %1931 = vmatpush.msra.mxu0 %v1821_v17  ;;  %1954 = vmatpush.msra.mxu1 %v1822_v32 }
 0x492   :  { %1977 = vmatpush.msra.mxu2 %v1823_v27  ;;  %2000 = vmatpush.msra.mxu3 %v1824_v10 }
 0x493   :  { %1932 = vmatpush.msra.mxu0 %v1817_v12  ;;  %1955 = vmatpush.msra.mxu1 %v1818_v26 }
 0x494   :  { %1978 = vmatpush.msra.mxu2 %v1819_v14  ;;  %2001 = vmatpush.msra.mxu3 %v1820_v35 }
 0x495   :  { %1933 = vmatpush.msra.mxu0 %v1813_v38  ;;  %1956 = vmatpush.msra.mxu1 %v1814_v39  ;;  %v1611_v39 = vrot.slane %v7056_v51, 6 }
 0x496   :  { %1979 = vmatpush.msra.mxu2 %v1815_v40  ;;  %2002 = vmatpush.msra.mxu3 %v1816_v43 }
 0x497   :  { %1934 = vmatpush.msra.mxu0 %v1809_v44  ;;  %1957 = vmatpush.msra.mxu1 %v1810_v46 }
 0x498   :  { %1980 = vmatpush.msra.mxu2 %v1811_v48  ;;  %2003 = vmatpush.msra.mxu3 %v1812_v52 }
 0x499   :  { %1935 = vmatpush.msra.mxu0 %v1805_v59  ;;  %1958 = vmatpush.msra.mxu1 %v1806_v53 }
 0x49a   :  { %1981 = vmatpush.msra.mxu2 %v1807_v30  ;;  %2004 = vmatpush.msra.mxu3 %v1808_v42 }
 0x49b   :  { %1936 = vmatpush.msra.mxu0 %v1801_v45  ;;  %1959 = vmatpush.msra.mxu1 %v1802_v6 }
 0x49c   :  { %1982 = vmatpush.msra.mxu2 %v1803_v2  ;;  %2005 = vmatpush.msra.mxu3 %v1804_v11 }
 0x49d   :  { %1937 = vmatpush.msra.mxu0 %v1797_v18  ;;  %1960 = vmatpush.msra.mxu1 %v1798_v31 }
 0x49e   :  { %1983 = vmatpush.msra.mxu2 %v1799_v22  ;;  %2006 = vmatpush.msra.mxu3 %v1800_v28  ;;  %v7088_v22 = vld [vmem:[#allocation13 + $0x1e0] sm:$0xff]  ;;  %v7090_v28 = vld [vmem:[#allocation13 + $0x1e8] sm:$0xff] }
 0x49f   :  { %1938 = vmatpush.msra.mxu0 %v1793_v23  ;;  %1961 = vmatpush.msra.mxu1 %v1794_v60  ;;  %v7092_v23 = vld [vmem:[#allocation13 + $0x1f0] sm:$0xff]  ;;  %v7096_v60 = vld [vmem:[#allocation13 + $0x1f8] sm:$0xff] }
 0x4a0   :  { %1984 = vmatpush.msra.mxu2 %v1795_v55 }
 0x500   :  { %v1473_v15 = vpop.f32.mrf.mxu0  ;;  %v1493_v63 = vpop.f32.mrf.mxu1 }
 0x501   :  { %v1540_v29 = vrot.slane %v1473_v15, 4  ;;  %v1541_v3 = vrot.slane %v1493_v63, 4  ;;  %v1796_v15 = vld [vmem:[#allocation12 + $0x58] sm:$0xff]  ;;  %v1789_v63 = vld [vmem:[#allocation12 + $0x20] sm:$0xff] }
 0x502   :  { %2007 = vmatpush.msra.mxu3 %v1796_v15  ;;  %1939 = vmatpush.msra.mxu0 %v1789_v63  ;;  %v7102_v15 = vld [vmem:[#allocation13 + $0x1c0] sm:$0xff]  ;;  %v7104_v63 = vld [vmem:[#allocation13 + $0x1c8] sm:$0xff] }
 0x503   :  { %v1548_v19 = vadd.f32 %v1540_v29, %v9589_v61  ;;  %v1549_v20 = vadd.f32 %v1541_v3, %v9590_v56  ;;  %v1790_v29 = vld [vmem:[#allocation12 + $0x28] sm:$0xff]  ;;  %v1791_v3 = vld [vmem:[#allocation12 + $0x30] sm:$0xff] }
 0x504   :  { %1962 = vmatpush.msra.mxu1 %v1790_v29  ;;  %1985 = vmatpush.msra.mxu2 %v1791_v3  ;;  %v7110_v29 = vld [vmem:[#allocation13 + $0x1d8] sm:$0xff] }
 0x505   :  { %v4992_v4 = vmul.f32 -1.442695, %v1548_v19  ;;  %v4993_v1 = vmul.f32 -1.442695, %v1549_v20  ;;  %v1786_v19 = vld [vmem:[#allocation12 + $0x8] sm:$0xff]  ;;  %2008 = vmatpush.msra.mxu3 %v1792_v8  ;;  %1940 = vmatpush.msra.mxu0 %v1785_v62 }
 0x506   :  { %1963 = vmatpush.msra.mxu1 %v1786_v19  ;;  %1986 = vmatpush.msra.mxu2 %v1787_v16  ;;  %v7116_v8 = vld [vmem:[#allocation13 + $0x1a8] sm:$0xff]  ;;  %v7126_v19 = vld [vmem:[#allocation13 + $0x180] sm:$0xff] }
 0x507   :  { %5163 = vpow2.f32 %v4992_v4  ;;  %v1533_v7 = vpop.f32.mrf.mxu3  ;;  %v1513_v33 = vpop.f32.mrf.mxu2  ;;  %2009 = vmatpush.msra.mxu3 %v1788_v41  ;;  %v7134_v41 = vld [vmem:[#allocation13 + $0x198] sm:$0xff] }
 0x508   :  { %5165 = vpow2.f32 %v4993_v1  ;;  %v1543_v36 = vrot.slane %v1533_v7, 4  ;;  %v1542_v13 = vrot.slane %v1513_v33, 4 }
 0x50a   :  { %v1551_v47 = vadd.f32 %v1543_v36, %v9591_v58  ;;  %v1550_v5 = vadd.f32 %v1542_v13, %v9592_v24 }
 0x50c   :  { %v4994_v54 = vmul.f32 -1.442695, %v1551_v47 }
 0x50d   :  { %v5164_v34 = vpop.eup %5163 }
 0x50e   :  { %v5166_v49 = vpop.eup %5165  ;;  %v7062_v50 = vadd.f32 1.0, %v5164_v34  ;;  %5167 = vpow2.f32 %v4994_v54 }
 0x50f   :  { %v7064_v25 = vadd.f32 1.0, %v5166_v49 }
 0x510   :  { %5169 = vrcp.f32 %v7062_v50  ;;  %v1567_v17 = vand.u32 2147483648, %v7062_v50  ;;  %v1565_v10 = vand.u32 2147483647, %v7062_v50  ;;  %vm1561_vm11 = vweird.f32 %v7062_v50 }
 0x511   :  { %5171 = vrcp.f32 %v7064_v25  ;;  %v1586_v32 = vand.u32 2147483648, %v7064_v25  ;;  %v1584_v7 = vand.u32 2147483647, %v7064_v25  ;;  %vm1580_vm12 = vweird.f32 %v7064_v25 }
 0x512   :  { %v1568_v35 = vor.u32 1.1754944e-38, %v1567_v17  ;;  %vm1566_vm15 = vcmp.eq.f32.partialorder %v1565_v10, 8.507059e+37  ;;  %v7153_v10 = vld [vmem:[#allocation13 + $0x148] sm:$0xff] }
 0x513   :  { %v1587_v40 = vor.u32 1.1754944e-38, %v1586_v32  ;;  %vm1585_vm0 = vcmp.eq.f32.partialorder %v1584_v7, 8.507059e+37  ;;  %v7147_v32 = vld [vmem:[#allocation13 + $0x178] sm:$0xff] }
 0x514   :  { %v5168_v21 = vpop.eup %5167 }
 0x515   :  { %v7068_v0 = vadd.f32 1.0, %v5168_v21 }
 0x516   :  { %v5170_v57 = vpop.eup %5169 }
 0x517   :  { %v5172_v20 = vpop.eup %5171  ;;  %v1557_v37 = vmul.f32 %v5170_v57, %v7062_v50  ;;  %5173 = vrcp.f32 %v7068_v0  ;;  %vm1562_vm9 = vweird.f32 %v5170_v57  ;;  %v1606_v51 = vand.u32 2147483648, %v7068_v0 }
 0x518   :  { %v1576_v9 = vmul.f32 %v5172_v20, %v7064_v25  ;;  %5175 = vtanh.f32 %v1550_v5  ;;  %vm1581_vm10 = vweird.f32 %v5172_v20  ;;  %vm1563_vm13 = vmor %vm1561_vm11, %vm1562_vm9  ;;  %vm1600_vm2 = vweird.f32 %v7068_v0  ;;  %v1914_v25 = vld [vmem:[#allocation3] sm:$0xff] }
 0x519   :  { %v1558_v4 = vsub.f32 1.0, %v1557_v37  ;;  %vm1582_vm14 = vmor %vm1580_vm12, %vm1581_vm10  ;;  %v1604_v34 = vand.u32 2147483647, %v7068_v0  ;;  %v1607_v6 = vor.u32 1.1754944e-38, %v1606_v51  ;;  %v7122_v5 = vld [vmem:[#allocation13 + $0x1b8] sm:$0xff]  ;;  %v7130_v37 = vld [vmem:[#allocation13 + $0x190] sm:$0xff] }
 0x51a   :  { %v1577_v1 = vsub.f32 1.0, %v1576_v9  ;;  %v7138_v9 = vld [vmem:[#allocation13 + $0x160] sm:$0xff] }
 0x51b   :  { %v1559_v27 = vmul.f32 %v5170_v57, %v1558_v4  ;;  %vm1605_vm4 = vcmp.eq.f32.partialorder %v1604_v34, 8.507059e+37  ;;  %v7140_v4 = vld [vmem:[#allocation13 + $0x168] sm:$0xff]  ;;  %v7201_v51 = vld [vmem:[#allocation13 + $0xc0] sm:$0xff] }
 0x51c   :  { %v1578_v12 = vmul.f32 %v5172_v20, %v1577_v1  ;;  %v7142_v1 = vld [vmem:[#allocation13 + $0x170] sm:$0xff] }
 0x51d   :  { %v5174_v26 = vpop.eup %5173  ;;  %v1560_v14 = vadd.f32 %v5170_v57, %v1559_v27  ;;  %v7151_v27 = vld [vmem:[#allocation13 + $0x140] sm:$0xff] }
 0x51e   :  { %v1579_v36 = vadd.f32 %v5172_v20, %v1578_v12  ;;  %v1596_v38 = vmul.f32 %v5174_v26, %v7068_v0  ;;  %v5176_v44 = vpop.eup %5175  ;;  %vm1601_vm1 = vweird.f32 %v5174_v26  ;;  %v7106_v0 = vld [vmem:[#allocation13 + $0x1d0] sm:$0xff] }
 0x51f   :  { %v1564_v43 = vsel %vm1563_vm13, %v5170_v57, %v1560_v14  ;;  %vm1602_vm3 = vmor %vm1600_vm2, %vm1601_vm1  ;;  %v7120_v57 = vld [vmem:[#allocation13 + $0x1b0] sm:$0xff]  ;;  %v7163_v14 = vld [vmem:[#allocation13 + $0x120] sm:$0xff] }
 0x520   :  { %v1569_v46 = vsel %vm1566_vm15, %v1568_v35, %v1564_v43  ;;  %v1583_v47 = vsel %vm1582_vm14, %v5172_v20, %v1579_v36  ;;  %v1597_v48 = vsub.f32 1.0, %v1596_v38  ;;  %v7128_v20 = vld [vmem:[#allocation13 + $0x188] sm:$0xff]  ;;  %v7155_v12 = vld [vmem:[#allocation13 + $0x150] sm:$0xff] }
 0x521   :  { %v1588_v52 = vsel %vm1585_vm0, %v1587_v40, %v1583_v47  ;;  %v1614_v59 = vmul.f32 %v5176_v44, %v1569_v46  ;;  %v7165_v35 = vld [vmem:[#allocation13 + $0x128] sm:$0xff]  ;;  %v7167_v36 = vld [vmem:[#allocation13 + $0x130] sm:$0xff]  ;;  %v7173_v40 = vld [vmem:[#allocation13 + $0x138] sm:$0xff] }
 0x522   :  { %v1613_v53 = vmul.f32 %v1611_v39, %v1588_v52  ;;  %v1598_v54 = vmul.f32 %v5174_v26, %v1597_v48  ;;  %v7179_v46 = vld [vmem:[#allocation13 + $0x100] sm:$0xff]  ;;  %v7181_v47 = vld [vmem:[#allocation13 + $0x108] sm:$0xff]  ;;  %v7183_v48 = vld [vmem:[#allocation13 + $0x110] sm:$0xff] }
 0x523   :  { %v7188_v52 = vld [vmem:[#allocation13 + $0x118] sm:$0xff] }
 0x524   :  { %v7082_v30 = vadd.f32 %v1614_v59, %v1613_v53  ;;  %v1599_v42 = vadd.f32 %v5174_v26, %v1598_v54  ;;  %v7190_v59 = vld [vmem:[#allocation13 + $0xe0] sm:$0xff]  ;;  %v7192_v53 = vld [vmem:[#allocation13 + $0xe8] sm:$0xff]  ;;  %v7197_v54 = vld [vmem:[#allocation13 + $0xf0] sm:$0xff] }
 0x526   :  { %5177 = vtanh.f32 %v7082_v30  ;;  %v1603_v45 = vsel %vm1602_vm3, %v5174_v26, %v1599_v42  ;;  %v7199_v42 = vld [vmem:[#allocation13 + $0xf8] sm:$0xff] }
 0x527   :  { %v1608_v50 = vsel %vm1605_vm4, %v1607_v6, %v1603_v45  ;;  %v7205_v45 = vld [vmem:[#allocation13 + $0xc8] sm:$0xff]  ;;  %v7207_v6 = vld [vmem:[#allocation13 + $0xd0] sm:$0xff] }
 0x528   :  { %9593 = vst [vmem:[#allocation65_spill] sm:$0xff] %v7207_v6 }
 0x52c   :  { %v5178_v49 = vpop.eup %5177 }
 0x52d   :  { %v1617_v2 = vmul.f32 %v5178_v49, %v1608_v50  ;;  %v7209_v49 = vld [vmem:[#allocation13 + $0xd8] sm:$0xff]  ;;  %v7213_v50 = vld [vmem:[#allocation13 + $0xa0] sm:$0xff] }
 0x52e   :  { %9594 = vst [vmem:[#allocation64_spill] sm:$0xff] %v7209_v49 }
 0x52f   :  { %1618 = vst [vmem:[#allocation3 + $0x8] sm:$0x30] %v1617_v2  ;;  %v1620_v11 = vrot.slane %v1617_v2, 4  ;;  %v7215_v2 = vld [vmem:[#allocation13 + $0xa8] sm:$0xff] }
 0x530   :  { %9595 = vst [vmem:[#allocation45_spill] sm:$0xff] %v7213_v50 }
 0x531   :  { %1638 = vmatmul.f32.vlgmr.msrb.gmra.mxu0 %v1620_v11  ;;  %1658 = vmatmul.f32.vlgmr.msrb.gmra.mxu1 %v1620_v11  ;;  %9596 = vst [vmem:[#allocation40_spill] sm:$0xff] %v7215_v2 }
 0x532   :  { %1678 = vmatmul.f32.vlgmr.msrb.gmra.mxu2 %v1620_v11  ;;  %1698 = vmatmul.f32.vlgmr.msrb.gmra.mxu3 %v1620_v11 }
 0x533   :  { %2017 = vmatpush.msrb.mxu0 %v7088_v22  ;;  %2037 = vmatpush.msrb.mxu1 %v7090_v28 }
 0x534   :  { %2057 = vmatpush.msrb.mxu2 %v7092_v23  ;;  %2077 = vmatpush.msrb.mxu3 %v7096_v60 }
 0x535   :  { %2018 = vmatpush.msrb.mxu0 %v7102_v15  ;;  %2038 = vmatpush.msrb.mxu1 %v7104_v63 }
 0x536   :  { %2058 = vmatpush.msrb.mxu2 %v7106_v0  ;;  %2078 = vmatpush.msrb.mxu3 %v7110_v29 }
 0x537   :  { %2039 = vmatpush.msrb.mxu1 %v7116_v8 }
 0x538   :  { %2059 = vmatpush.msrb.mxu2 %v7120_v57  ;;  %2079 = vmatpush.msrb.mxu3 %v7122_v5 }
 0x539   :  { %1941 = vmatmul.f32.vlgmr.msra.gmra.mxu0 %v1914_v25  ;;  %1964 = vmatmul.f32.vlgmr.msra.gmra.mxu1 %v1914_v25 }
 0x53a   :  { %1987 = vmatmul.f32.vlgmr.msra.gmra.mxu2 %v1914_v25  ;;  %2010 = vmatmul.f32.vlgmr.msra.gmra.mxu3 %v1914_v25  ;;  %v7219_v25 = vld [vmem:[#allocation13 + $0xb0] sm:$0xff] }
 0x53b   :  { %2040 = vmatpush.msrb.mxu1 %v7128_v20  ;;  %2060 = vmatpush.msrb.mxu2 %v7130_v37  ;;  %9597 = vst [vmem:[#allocation36_spill] sm:$0xff] %v7219_v25 }
 0x53c   :  { %2080 = vmatpush.msrb.mxu3 %v7134_v41 }
 0x53d   :  { %2041 = vmatpush.msrb.mxu1 %v7140_v4  ;;  %2061 = vmatpush.msrb.mxu2 %v7142_v1 }
 0x53e   :  { %2081 = vmatpush.msrb.mxu3 %v7147_v32 }
 0x53f   :  { %2042 = vmatpush.msrb.mxu1 %v7153_v10  ;;  %2062 = vmatpush.msrb.mxu2 %v7155_v12 }
 0x541   :  { %2043 = vmatpush.msrb.mxu1 %v7165_v35  ;;  %2063 = vmatpush.msrb.mxu2 %v7167_v36 }
 0x543   :  { %2044 = vmatpush.msrb.mxu1 %v7181_v47  ;;  %2064 = vmatpush.msrb.mxu2 %v7183_v48 }
 0x545   :  { %2045 = vmatpush.msrb.mxu1 %v7192_v53  ;;  %2065 = vmatpush.msrb.mxu2 %v7197_v54 }
 0x547   :  { %2046 = vmatpush.msrb.mxu1 %v7205_v45  ;;  %2066 = vmatpush.msrb.mxu2 %v7207_v6 }
 0x549   :  { %2047 = vmatpush.msrb.mxu1 %v7215_v2  ;;  %2067 = vmatpush.msrb.mxu2 %v7219_v25  ;;  %v7287_v25 = vld [vmem:[#allocation13 + $0x30] sm:$0xff] }
 0x54a   :  { %9613 = vst [vmem:[#allocation39_spill] sm:$0xff] %v7287_v25 }
 0x5ae   :  { %v1639_v33 = vpop.f32.mrf.mxu0  ;;  %v1659_v13 = vpop.f32.mrf.mxu1 }
 0x5af   :  { %v1706_v18 = vrot.slane %v1639_v33, 2  ;;  %v1707_v31 = vrot.slane %v1659_v13, 2  ;;  %v7221_v33 = vld [vmem:[#allocation13 + $0xb8] sm:$0xff] }
 0x5b0   :  { %9598 = vst [vmem:[#allocation48_spill] sm:$0xff] %v7221_v33 }
 0x5b1   :  { %v1714_v21 = vadd.f32 %v1706_v18, %v9589_v61  ;;  %v1715_v55 = vadd.f32 %v1707_v31, %v9590_v56  ;;  %v7114_v56 = vld [vmem:[#allocation13 + $0x1a0] sm:$0xff]  ;;  %v7229_v31 = vld [vmem:[#allocation13 + $0x88] sm:$0xff] }
 0x5b2   :  { %2019 = vmatpush.msrb.mxu0 %v7114_v56  ;;  %v7227_v18 = vld [vmem:[#allocation13 + $0x80] sm:$0xff]  ;;  %9600 = vst [vmem:[#allocation55_spill] sm:$0xff] %v7229_v31  ;;  %2048 = vmatpush.msrb.mxu1 %v7229_v31 }
 0x5b3   :  { %v4995_v3 = vmul.f32 -1.442695, %v1714_v21  ;;  %v4996_v61 = vmul.f32 -1.442695, %v1715_v55  ;;  %9599 = vst [vmem:[#allocation54_spill] sm:$0xff] %v7227_v18  ;;  %v7264_v31 = vld [vmem:[#allocation13 + $0x40] sm:$0xff] }
 0x5b4   :  { %2020 = vmatpush.msrb.mxu0 %v7126_v19  ;;  %9607 = vst [vmem:[#allocation56_spill] sm:$0xff] %v7264_v31 }
 0x5b5   :  { %5179 = vpow2.f32 %v4995_v3  ;;  %v1699_v62 = vpop.f32.mrf.mxu3  ;;  %v1679_v44 = vpop.f32.mrf.mxu2  ;;  %v7236_v3 = vld [vmem:[#allocation13 + $0x90] sm:$0xff] }
 0x5b6   :  { %5181 = vpow2.f32 %v4996_v61  ;;  %v1709_v16 = vrot.slane %v1699_v62, 2  ;;  %2021 = vmatpush.msrb.mxu0 %v7138_v9  ;;  %v1708_v34 = vrot.slane %v1679_v44, 2  ;;  %9601 = vst [vmem:[#allocation49_spill] sm:$0xff] %v7236_v3  ;;  %v7238_v61 = vld [vmem:[#allocation13 + $0x98] sm:$0xff]  ;;  %2068 = vmatpush.msrb.mxu2 %v7236_v3 }
 0x5b7   :  { %9602 = vst [vmem:[#allocation41_spill] sm:$0xff] %v7238_v61  ;;  %v7259_v44 = vld [vmem:[#allocation13 + $0x78] sm:$0xff] }
 0x5b8   :  { %v1717_v17 = vadd.f32 %v1709_v16, %v9591_v58  ;;  %2022 = vmatpush.msrb.mxu0 %v7151_v27  ;;  %v7159_v58 = vld [vmem:[#allocation13 + $0x158] sm:$0xff]  ;;  %v1716_v55 = vadd.f32 %v1708_v34, %v9592_v24  ;;  %9606 = vst [vmem:[#allocation50_spill] sm:$0xff] %v7259_v44 }
 0x5b9   :  { %2082 = vmatpush.msrb.mxu3 %v7159_v58 }
 0x5ba   :  { %v4997_v7 = vmul.f32 -1.442695, %v1717_v17  ;;  %2023 = vmatpush.msrb.mxu0 %v7163_v14  ;;  %v7251_v17 = vld [vmem:[#allocation13 + $0x60] sm:$0xff] }
 0x5bb   :  { %v5180_v26 = vpop.eup %5179  ;;  %2083 = vmatpush.msrb.mxu3 %v7173_v40  ;;  %9603 = vst [vmem:[#allocation46_spill] sm:$0xff] %v7251_v17 }
 0x5bc   :  { %v5182_v38 = vpop.eup %5181  ;;  %v7169_v39 = vadd.f32 1.0, %v5180_v26  ;;  %5183 = vpow2.f32 %v4997_v7  ;;  %2024 = vmatpush.msrb.mxu0 %v7179_v46  ;;  %v7253_v7 = vld [vmem:[#allocation13 + $0x68] sm:$0xff] }
 0x5bd   :  { %v7175_v43 = vadd.f32 1.0, %v5182_v38  ;;  %2084 = vmatpush.msrb.mxu3 %v7188_v52  ;;  %9604 = vst [vmem:[#allocation42_spill] sm:$0xff] %v7253_v7  ;;  %v7257_v38 = vld [vmem:[#allocation13 + $0x70] sm:$0xff]  ;;  %2049 = vmatpush.msrb.mxu1 %v7253_v7  ;;  %v7278_v7 = vld [vmem:[#allocation13 + $0x20] sm:$0xff] }
 0x5be   :  { %5185 = vrcp.f32 %v7169_v39  ;;  %2025 = vmatpush.msrb.mxu0 %v7190_v59  ;;  %9605 = vst [vmem:[#allocation37_spill] sm:$0xff] %v7257_v38  ;;  %2069 = vmatpush.msrb.mxu2 %v7257_v38  ;;  %v7289_v38 = vld [vmem:[#allocation13 + $0x38] sm:$0xff]  ;;  %vm1727_vm7 = vweird.f32 %v7169_v39 }
 0x5bf   :  { %5187 = vrcp.f32 %v7175_v43  ;;  %2085 = vmatpush.msrb.mxu3 %v7199_v42  ;;  %9611 = vst [vmem:[#allocation47_spill] sm:$0xff] %v7278_v7  ;;  %vm1746_vm8 = vweird.f32 %v7175_v43 }
 0x5c0   :  { %2026 = vmatpush.msrb.mxu0 %v7201_v51  ;;  %9614 = vst [vmem:[#allocation52_spill] sm:$0xff] %v7289_v38 }
 0x5c1   :  { %2086 = vmatpush.msrb.mxu3 %v7209_v49 }
 0x5c2   :  { %v5184_v11 = vpop.eup %5183  ;;  %2027 = vmatpush.msrb.mxu0 %v7213_v50  ;;  %v7299_v50 = vld [vmem:[#allocation13 + $0x8] sm:$0xff] }
 0x5c3   :  { %v7223_v13 = vadd.f32 1.0, %v5184_v11  ;;  %2087 = vmatpush.msrb.mxu3 %v7221_v33  ;;  %v1733_v11 = vand.u32 2147483648, %v7169_v39  ;;  %9616 = vst [vmem:[#allocation59_spill] sm:$0xff] %v7299_v50 }
 0x5c4   :  { %v7231_v21 = vpop.eup %5185  ;;  %2028 = vmatpush.msrb.mxu0 %v7227_v18  ;;  %v7266_v18 = vld [vmem:[#allocation13 + $0x48] sm:$0xff] }
 0x5c5   :  { %v7240_v62 = vpop.eup %5187  ;;  %v1723_v16 = vmul.f32 %v7231_v21, %v7169_v39  ;;  %5189 = vrcp.f32 %v7223_v13  ;;  %2088 = vmatpush.msrb.mxu3 %v7238_v61  ;;  %9608 = vst [vmem:[#allocation57_spill] sm:$0xff] %v7266_v18  ;;  %v1752_v61 = vand.u32 2147483648, %v7175_v43  ;;  %vm1728_vm5 = vweird.f32 %v7231_v21  ;;  %2050 = vmatpush.msrb.mxu1 %v7266_v18 }
 0x5c6   :  { %v1742_v24 = vmul.f32 %v7240_v62, %v7175_v43  ;;  %5191 = vtanh.f32 %v1716_v55  ;;  %2029 = vmatpush.msrb.mxu0 %v7251_v17  ;;  %v7276_v55 = vld [vmem:[#allocation13 + $0x58] sm:$0xff]  ;;  %v7280_v17 = vld [vmem:[#allocation13 + $0x28] sm:$0xff]  ;;  %vm1747_vm6 = vweird.f32 %v7240_v62  ;;  %vm7304_vm9 = vmor %vm1727_vm7, %vm1728_vm5  ;;  %vm1766_vm14 = vweird.f32 %v7223_v13 }
 0x5c7   :  { %v1724_v26 = vsub.f32 1.0, %v1723_v16  ;;  %v7268_v16 = vld [vmem:[#allocation13 + $0x50] sm:$0xff]  ;;  %2089 = vmatpush.msrb.mxu3 %v7259_v44  ;;  %9610 = vst [vmem:[#allocation43_spill] sm:$0xff] %v7276_v55  ;;  %2051 = vmatpush.msrb.mxu1 %v7280_v17  ;;  %vm1748_vm10 = vmor %vm1746_vm8, %vm1747_vm6  ;;  %v1753_v49 = vor.u32 1.1754944e-38, %v1752_v61 }
 0x5c8   :  { %v1743_v34 = vsub.f32 1.0, %v1742_v24  ;;  %9609 = vst [vmem:[#allocation51_spill] sm:$0xff] %v7268_v16  ;;  %v1731_v24 = vand.u32 2147483647, %v7169_v39  ;;  %2030 = vmatpush.msrb.mxu0 %v7264_v31  ;;  %2070 = vmatpush.msrb.mxu2 %v7268_v16  ;;  %v1734_v31 = vor.u32 1.1754944e-38, %v1733_v11  ;;  %v7315_v16 = vld [vmem:[#allocation13 + $0x18] sm:$0xff] }
 0x5c9   :  { %v1725_v3 = vmul.f32 %v7231_v21, %v1724_v26  ;;  %9612 = vst [vmem:[#allocation44_spill] sm:$0xff] %v7280_v17  ;;  %v1750_v26 = vand.u32 2147483647, %v7175_v43  ;;  %2090 = vmatpush.msrb.mxu3 %v7276_v55  ;;  %v7313_v55 = vld [vmem:[#allocation13 + $0x10] sm:$0xff]  ;;  %v1777_v43 = vrot.slane %v7082_v30, 6  ;;  %2052 = vmatpush.msrb.mxu1 %v7299_v50 }
 0x5ca   :  { %v1744_v33 = vmul.f32 %v7240_v62, %v1743_v34  ;;  %v7297_v34 = vld [vmem:[#allocation13] sm:$0xff]  ;;  %2031 = vmatpush.msrb.mxu0 %v7278_v7  ;;  %9619 = vst [vmem:[#allocation61_spill] sm:$0xff] %v7313_v55  ;;  %vm1732_vm11 = vcmp.eq.f32.partialorder %v1731_v24, 8.507059e+37  ;;  %2071 = vmatpush.msrb.mxu2 %v7287_v25  ;;  %v9621_v24 = vld [vmem:[#allocation65_spill] sm:$0xff] }
 0x5cb   :  { %v7291_v44 = vpop.eup %5189  ;;  %v1726_v2 = vadd.f32 %v7231_v21, %v1725_v3  ;;  %9615 = vst [vmem:[#allocation58_spill] sm:$0xff] %v7297_v34  ;;  %2091 = vmatpush.msrb.mxu3 %v7289_v38  ;;  %vm1751_vm12 = vcmp.eq.f32.partialorder %v1750_v26, 8.507059e+37  ;;  %2185 = vmatpush.msra.mxu1 %v7090_v28  ;;  %v9622_v26 = vld [vmem:[#allocation64_spill] sm:$0xff] }
 0x5cc   :  { %v1745_v3 = vadd.f32 %v7240_v62, %v1744_v33  ;;  %v1762_v39 = vmul.f32 %v7291_v44, %v7223_v13  ;;  %9620 = vst [vmem:[#allocation53_spill] sm:$0xff] %v7315_v16  ;;  %v5192_v11 = vpop.eup %5191  ;;  %2032 = vmatpush.msrb.mxu0 %v7297_v34  ;;  %2072 = vmatpush.msrb.mxu2 %v7313_v55  ;;  %vm1767_vm13 = vweird.f32 %v7291_v44 }
 0x5cd   :  { %v1730_v33 = vsel %vm7304_vm9, %v7231_v21, %v1726_v2  ;;  %2092 = vmatpush.msrb.mxu3 %v7315_v16  ;;  %2186 = vmatpush.msra.mxu1 %v7104_v63  ;;  %v1770_v21 = vand.u32 2147483647, %v7223_v13  ;;  %vm1768_vm15 = vmor %vm1766_vm14, %vm1767_vm13 }
 0x5ce   :  { %v1735_v17 = vsel %vm1732_vm11, %v1734_v31, %v1730_v33  ;;  %v1749_v7 = vsel %vm1748_vm10, %v7240_v62, %v1745_v3  ;;  %v1763_v6 = vsub.f32 1.0, %v1762_v39  ;;  %2165 = vmatpush.msra.mxu0 %v7088_v22  ;;  %2205 = vmatpush.msra.mxu2 %v7092_v23  ;;  %v9623_v39 = vld [vmem:[#allocation45_spill] sm:$0xff]  ;;  %v9625_v33 = vld [vmem:[#allocation36_spill] sm:$0xff] }
 0x5cf   :  { %v1754_v30 = vsel %vm1751_vm12, %v1753_v49, %v1749_v7  ;;  %v1780_v61 = vmul.f32 %v5192_v11, %v1735_v17  ;;  %2225 = vmatpush.msra.mxu3 %v7096_v60  ;;  %2187 = vmatpush.msra.mxu1 %v7116_v8  ;;  %vm1771_vm0 = vcmp.eq.f32.partialorder %v1770_v21, 8.507059e+37  ;;  %v9626_v11 = vld [vmem:[#allocation48_spill] sm:$0xff]  ;;  %v9634_v21 = vld [vmem:[#allocation50_spill] sm:$0xff] }
 0x5d0   :  { %v1779_v2 = vmul.f32 %v1777_v43, %v1754_v30  ;;  %v1764_v18 = vmul.f32 %v7291_v44, %v1763_v6  ;;  %2166 = vmatpush.msra.mxu0 %v7102_v15  ;;  %2206 = vmatpush.msra.mxu2 %v7106_v0  ;;  %v1772_v6 = vand.u32 2147483648, %v7223_v13  ;;  %v9624_v43 = vld [vmem:[#allocation40_spill] sm:$0xff]  ;;  %v9627_v30 = vld [vmem:[#allocation54_spill] sm:$0xff] }
 0x5d1   :  { %2226 = vmatpush.msra.mxu3 %v7110_v29  ;;  %2188 = vmatpush.msra.mxu1 %v7128_v20 }
 0x5d2   :  { %v1781_v31 = vadd.f32 %v1780_v61, %v1779_v2  ;;  %v1765_v49 = vadd.f32 %v7291_v44, %v1764_v18  ;;  %2167 = vmatpush.msra.mxu0 %v7114_v56  ;;  %2207 = vmatpush.msra.mxu2 %v7120_v57  ;;  %v1773_v17 = vor.u32 1.1754944e-38, %v1772_v6  ;;  %v9628_v61 = vld [vmem:[#allocation55_spill] sm:$0xff]  ;;  %v9629_v2 = vld [vmem:[#allocation49_spill] sm:$0xff] }
 0x5d3   :  { %2227 = vmatpush.msra.mxu3 %v7122_v5  ;;  %2189 = vmatpush.msra.mxu1 %v7140_v4  ;;  %v9630_v18 = vld [vmem:[#allocation41_spill] sm:$0xff] }
 0x5d4   :  { %5193 = vtanh.f32 %v1781_v31  ;;  %2168 = vmatpush.msra.mxu0 %v7126_v19  ;;  %v1769_v62 = vsel %vm1768_vm15, %v7291_v44, %v1765_v49  ;;  %2208 = vmatpush.msra.mxu2 %v7130_v37  ;;  %v9631_v31 = vld [vmem:[#allocation46_spill] sm:$0xff]  ;;  %v9633_v6 = vld [vmem:[#allocation37_spill] sm:$0xff] }
 0x5d5   :  { %2228 = vmatpush.msra.mxu3 %v7134_v41  ;;  %v1774_v7 = vsel %vm1771_vm0, %v1773_v17, %v1769_v62  ;;  %2190 = vmatpush.msra.mxu1 %v7153_v10  ;;  %v9632_v49 = vld [vmem:[#allocation42_spill] sm:$0xff]  ;;  %v9635_v62 = vld [vmem:[#allocation56_spill] sm:$0xff]  ;;  %v9636_v17 = vld [vmem:[#allocation57_spill] sm:$0xff] }
 0x5d6   :  { %2169 = vmatpush.msra.mxu0 %v7138_v9  ;;  %2209 = vmatpush.msra.mxu2 %v7142_v1 }
 0x5d7   :  { %2229 = vmatpush.msra.mxu3 %v7147_v32  ;;  %2191 = vmatpush.msra.mxu1 %v7165_v35 }
 0x5d8   :  { %2170 = vmatpush.msra.mxu0 %v7151_v27  ;;  %2210 = vmatpush.msra.mxu2 %v7155_v12 }
 0x5d9   :  { %2230 = vmatpush.msra.mxu3 %v7159_v58  ;;  %2192 = vmatpush.msra.mxu1 %v7181_v47 }
 0x5da   :  { %v5194_v13 = vpop.eup %5193  ;;  %2171 = vmatpush.msra.mxu0 %v7163_v14  ;;  %2211 = vmatpush.msra.mxu2 %v7167_v36 }
 0x5db   :  { %v1783_v44 = vmul.f32 %v5194_v13, %v1774_v7  ;;  %2231 = vmatpush.msra.mxu3 %v7173_v40  ;;  %2193 = vmatpush.msra.mxu1 %v7192_v53  ;;  %v9637_v13 = vmov 0.0   ;;  %v9638_v7 = vld [vmem:[#allocation51_spill] sm:$0xff] }
 0x5dc   :  { %2172 = vmatpush.msra.mxu0 %v7179_v46  ;;  %2212 = vmatpush.msra.mxu2 %v7183_v48 }
 0x5dd   :  { %1784 = vst [vmem:[#allocation3 + $0x8] sm:$0xc0] %v1783_v44  ;;  %2232 = vmatpush.msra.mxu3 %v7188_v52  ;;  %2194 = vmatpush.msra.mxu1 %v7205_v45  ;;  %v9639_v44 = vld [vmem:[#allocation43_spill] sm:$0xff] }
 0x5de   :  { %2173 = vmatpush.msra.mxu0 %v7190_v59  ;;  %2213 = vmatpush.msra.mxu2 %v7197_v54 }
 0x5df   :  { %2233 = vmatpush.msra.mxu3 %v7199_v42  ;;  %2195 = vmatpush.msra.mxu1 %v9624_v43 }
 0x5e0   :  { %2174 = vmatpush.msra.mxu0 %v7201_v51  ;;  %2214 = vmatpush.msra.mxu2 %v9621_v24 }
 0x5e1   :  { %2234 = vmatpush.msra.mxu3 %v9622_v26  ;;  %2196 = vmatpush.msra.mxu1 %v9628_v61 }
 0x5e2   :  { %2175 = vmatpush.msra.mxu0 %v9623_v39  ;;  %2215 = vmatpush.msra.mxu2 %v9625_v33 }
 0x5e3   :  { %2235 = vmatpush.msra.mxu3 %v9626_v11  ;;  %2197 = vmatpush.msra.mxu1 %v9632_v49 }
 0x5e4   :  { %v1915_v3 = vld [vmem:[#allocation3 + $0x8] sm:$0xff]  ;;  %2176 = vmatpush.msra.mxu0 %v9627_v30  ;;  %2216 = vmatpush.msra.mxu2 %v9629_v2 }
 0x5e5   :  { %1944 = vmatmul.f32.gmra.mxu0 %v1915_v3  ;;  %1967 = vmatmul.f32.gmra.mxu1 %v1915_v3 }
 0x5e6   :  { %1990 = vmatmul.f32.gmra.mxu2 %v1915_v3  ;;  %2013 = vmatmul.f32.gmra.mxu3 %v1915_v3  ;;  %v9640_v3 = vld [vmem:[#allocation47_spill] sm:$0xff] }
 0x5e7   :  { %2236 = vmatpush.msra.mxu3 %v9630_v18  ;;  %2177 = vmatpush.msra.mxu0 %v9631_v31 }
 0x5e8   :  { %2217 = vmatpush.msra.mxu2 %v9633_v6  ;;  %2198 = vmatpush.msra.mxu1 %v9636_v17  ;;  %v9641_v6 = vld [vmem:[#allocation44_spill] sm:$0xff] }
 0x5e9   :  { %2237 = vmatpush.msra.mxu3 %v9634_v21  ;;  %2178 = vmatpush.msra.mxu0 %v9635_v62 }
 0x5ea   :  { %2218 = vmatpush.msra.mxu2 %v9638_v7  ;;  %2199 = vmatpush.msra.mxu1 %v9641_v6 }
 0x5eb   :  { %2238 = vmatpush.msra.mxu3 %v9639_v44  ;;  %2179 = vmatpush.msra.mxu0 %v9640_v3 }
 0x5ec   :  { %2219 = vmatpush.msra.mxu2 %v7287_v25  ;;  %2200 = vmatpush.msra.mxu1 %v7299_v50 }
 0x5ed   :  { %2033 = vmatmul.f32.vlgmr.msrb.gmra.mxu0 %v9637_v13  ;;  %2053 = vmatmul.f32.vlgmr.msrb.gmra.mxu1 %v9637_v13 }
 0x5ee   :  { %2073 = vmatmul.f32.vlgmr.msrb.gmra.mxu2 %v9637_v13  ;;  %2093 = vmatmul.f32.vlgmr.msrb.gmra.mxu3 %v9637_v13  ;;  %v9642_v13 = vld [vmem:[#allocation37_spill] sm:$0xff] }
 0x5ef   :  { %2239 = vmatpush.msra.mxu3 %v7289_v38  ;;  %2180 = vmatpush.msra.mxu0 %v7297_v34 }
 0x5f0   :  { %2220 = vmatpush.msra.mxu2 %v7313_v55  ;;  %2351 = vmatpush.msrb.mxu1 %v7090_v28 }
 0x5f1   :  { %2240 = vmatpush.msra.mxu3 %v7315_v16  ;;  %2331 = vmatpush.msrb.mxu0 %v7088_v22 }
 0x5f2   :  { %2371 = vmatpush.msrb.mxu2 %v7092_v23  ;;  %2352 = vmatpush.msrb.mxu1 %v7104_v63 }
 0x5f3   :  { %2391 = vmatpush.msrb.mxu3 %v7096_v60  ;;  %2332 = vmatpush.msrb.mxu0 %v7102_v15 }
 0x5f4   :  { %2372 = vmatpush.msrb.mxu2 %v7106_v0  ;;  %2353 = vmatpush.msrb.mxu1 %v7116_v8 }
 0x5f5   :  { %2392 = vmatpush.msrb.mxu3 %v7110_v29  ;;  %2333 = vmatpush.msrb.mxu0 %v7114_v56 }
 0x5f6   :  { %2373 = vmatpush.msrb.mxu2 %v7120_v57  ;;  %2354 = vmatpush.msrb.mxu1 %v7128_v20 }
 0x5f7   :  { %2393 = vmatpush.msrb.mxu3 %v7122_v5  ;;  %2334 = vmatpush.msrb.mxu0 %v7126_v19 }
 0x5f8   :  { %2374 = vmatpush.msrb.mxu2 %v7130_v37  ;;  %2355 = vmatpush.msrb.mxu1 %v7140_v4 }
 0x5f9   :  { %2394 = vmatpush.msrb.mxu3 %v7134_v41  ;;  %2335 = vmatpush.msrb.mxu0 %v7138_v9 }
 0x5fa   :  { %2375 = vmatpush.msrb.mxu2 %v7142_v1  ;;  %2356 = vmatpush.msrb.mxu1 %v7153_v10 }
 0x5fb   :  { %2395 = vmatpush.msrb.mxu3 %v7147_v32  ;;  %2336 = vmatpush.msrb.mxu0 %v7151_v27 }
 0x5fc   :  { %2376 = vmatpush.msrb.mxu2 %v7155_v12  ;;  %2357 = vmatpush.msrb.mxu1 %v7165_v35 }
 0x5fd   :  { %2396 = vmatpush.msrb.mxu3 %v7159_v58  ;;  %2337 = vmatpush.msrb.mxu0 %v7163_v14 }
 0x5fe   :  { %2377 = vmatpush.msrb.mxu2 %v7167_v36  ;;  %2358 = vmatpush.msrb.mxu1 %v7181_v47 }
 0x5ff   :  { %2397 = vmatpush.msrb.mxu3 %v7173_v40  ;;  %2338 = vmatpush.msrb.mxu0 %v7179_v46 }
 0x600   :  { %2378 = vmatpush.msrb.mxu2 %v7183_v48  ;;  %2359 = vmatpush.msrb.mxu1 %v7192_v53 }
 0x601   :  { %2398 = vmatpush.msrb.mxu3 %v7188_v52  ;;  %2339 = vmatpush.msrb.mxu0 %v7190_v59 }
 0x602   :  { %2379 = vmatpush.msrb.mxu2 %v7197_v54  ;;  %2360 = vmatpush.msrb.mxu1 %v7205_v45 }
 0x603   :  { %2399 = vmatpush.msrb.mxu3 %v7199_v42  ;;  %2340 = vmatpush.msrb.mxu0 %v7201_v51 }
 0x604   :  { %2380 = vmatpush.msrb.mxu2 %v9621_v24  ;;  %2361 = vmatpush.msrb.mxu1 %v9624_v43 }
 0x605   :  { %2400 = vmatpush.msrb.mxu3 %v9622_v26  ;;  %2341 = vmatpush.msrb.mxu0 %v9623_v39 }
 0x606   :  { %2381 = vmatpush.msrb.mxu2 %v9625_v33  ;;  %2362 = vmatpush.msrb.mxu1 %v9628_v61 }
 0x607   :  { %2401 = vmatpush.msrb.mxu3 %v9626_v11  ;;  %2342 = vmatpush.msrb.mxu0 %v9627_v30 }
 0x608   :  { %2382 = vmatpush.msrb.mxu2 %v9629_v2  ;;  %2363 = vmatpush.msrb.mxu1 %v9632_v49 }
 0x609   :  { %2402 = vmatpush.msrb.mxu3 %v9630_v18  ;;  %2343 = vmatpush.msrb.mxu0 %v9631_v31 }
 0x60a   :  { %2383 = vmatpush.msrb.mxu2 %v9642_v13  ;;  %2364 = vmatpush.msrb.mxu1 %v9636_v17  ;;  %v1942_v17 = vpop.f32.mrf.mxu0 }
 0x60b   :  { %2403 = vmatpush.msrb.mxu3 %v9634_v21  ;;  %2344 = vmatpush.msrb.mxu0 %v9635_v62  ;;  %v2011_v62 = vpop.f32.mrf.mxu3 }
 0x60c   :  { %2384 = vmatpush.msrb.mxu2 %v9638_v7  ;;  %2365 = vmatpush.msrb.mxu1 %v9641_v6  ;;  %v1965_v7 = vpop.f32.mrf.mxu1 }
 0x60d   :  { %2404 = vmatpush.msrb.mxu3 %v9639_v44  ;;  %2345 = vmatpush.msrb.mxu0 %v9640_v3  ;;  %v7472_v3 = vld [vmem:[%s9008_s6] sm:$0xf] }
 0x60e   :  { %2385 = vmatpush.msrb.mxu2 %v7287_v25  ;;  %2366 = vmatpush.msrb.mxu1 %v7299_v50  ;;  %9643 = vst [vmem:[#allocation60_spill] sm:$0xff] %v7472_v3  ;;  %v9196_v50 = vperm.slane %v7472_v3, 1  ;;  %v9201_v49 = vperm.slane %v7472_v3, 3 }
 0x60f   :  { %2405 = vmatpush.msrb.mxu3 %v7289_v38  ;;  %2346 = vmatpush.msrb.mxu0 %v7297_v34  ;;  %v9197_v34 = vperm.slane %v7472_v3, 0  ;;  %v1988_v38 = vpop.f32.mrf.mxu2 }
 0x610   :  { %2386 = vmatpush.msrb.mxu2 %v7313_v55 }
 0x611   :  { %2406 = vmatpush.msrb.mxu3 %v7315_v16  ;;  %v7482_v55 = vadd.f32 %v1942_v17, %v9197_v34  ;;  %v7486_v16 = vadd.f32 %v1965_v7, %v9196_v50  ;;  %v7495_v17 = vadd.f32 %v2011_v62, %v9201_v49 }
 0x613   :  { %9646 = vst [vmem:[#allocation38_spill] sm:$0xff] %v7482_v55 }
 0x614   :  { %9647 = vst [vmem:[#allocation63_spill] sm:$0xff] %v7486_v16 }
 0x615   :  { %9649 = vst [vmem:[#allocation68_spill] sm:$0xff] %v7495_v17 }
 0x662   :  { %v7474_v6 = vpop.f32.mrf.mxu0  ;;  %v7476_v25 = vpop.f32.mrf.mxu1 }
 0x663   :  { %9644 = vst [vmem:[#allocation66_spill] sm:$0xff] %v7474_v6 }
 0x664   :  { %9645 = vst [vmem:[#allocation67_spill] sm:$0xff] %v7476_v25 }
 0x669   :  { %v7488_v44 = vpop.f32.mrf.mxu3  ;;  %v7497_v7 = vpop.f32.mrf.mxu2 }
 0x66a   :  { %9648 = vst [vmem:[#allocation62_spill] sm:$0xff] %v7488_v44  ;;  %v2034_v21 = vpop.f32.mrf.mxu0  ;;  %v2054_v13 = vpop.f32.mrf.mxu1 }
 0x66b   :  { %v2097_v6 = vadd.f32 %v2034_v21, %v7482_v55  ;;  %v2098_v25 = vadd.f32 %v2054_v13, %v7486_v16  ;;  %9650 = vst [vmem:[#allocation69_spill] sm:$0xff] %v7497_v7 }
 0x66d   :  { %v4998_v31 = vmul.f32 -1.442695, %v2097_v6  ;;  %v4999_v18 = vmul.f32 -1.442695, %v2098_v25  ;;  %v9209_v6 = vperm.slane %v7472_v3, 2 }
 0x66f   :  { %5195 = vpow2.f32 %v4998_v31 }
 0x670   :  { %5197 = vpow2.f32 %v4999_v18  ;;  %v7503_v18 = vadd.f32 %v1988_v38, %v9209_v6 }
 0x671   :  { %v2094_v50 = vpop.f32.mrf.mxu3  ;;  %v2074_v25 = vpop.f32.mrf.mxu2 }
 0x672   :  { %v2100_v34 = vadd.f32 %v2094_v50, %v7495_v17  ;;  %9651 = vst [vmem:[#allocation70_spill] sm:$0xff] %v7503_v18  ;;  %v2099_v50 = vadd.f32 %v2074_v25, %v7503_v18 }
 0x674   :  { %v5000_v44 = vmul.f32 -1.442695, %v2100_v34 }
 0x675   :  { %v5196_v2 = vpop.eup %5195 }
 0x676   :  { %v5198_v21 = vpop.eup %5197  ;;  %v2104_v55 = vadd.f32 1.0, %v5196_v2  ;;  %5199 = vpow2.f32 %v5000_v44 }
 0x677   :  { %v2123_v13 = vadd.f32 1.0, %v5198_v21 }
 0x678   :  { %5201 = vrcp.f32 %v2104_v55  ;;  %v2116_v17 = vand.u32 2147483648, %v2104_v55  ;;  %v2114_v30 = vand.u32 2147483647, %v2104_v55  ;;  %vm2110_vm3 = vweird.f32 %v2104_v55 }
 0x679   :  { %5203 = vrcp.f32 %v2123_v13  ;;  %v2135_v16 = vand.u32 2147483648, %v2123_v13  ;;  %v2133_v38 = vand.u32 2147483647, %v2123_v13  ;;  %vm2129_vm4 = vweird.f32 %v2123_v13 }
 0x67a   :  { %v2117_v25 = vor.u32 1.1754944e-38, %v2116_v17  ;;  %vm2115_vm6 = vcmp.eq.f32.partialorder %v2114_v30, 8.507059e+37 }
 0x67b   :  { %v2136_v33 = vor.u32 1.1754944e-38, %v2135_v16  ;;  %vm2134_vm8 = vcmp.eq.f32.partialorder %v2133_v38, 8.507059e+37 }
 0x67c   :  { %v5200_v31 = vpop.eup %5199 }
 0x67d   :  { %v2143_v62 = vadd.f32 1.0, %v5200_v31 }
 0x67e   :  { %v5202_v49 = vpop.eup %5201 }
 0x67f   :  { %v5204_v34 = vpop.eup %5203  ;;  %v2106_v7 = vmul.f32 %v5202_v49, %v2104_v55  ;;  %5205 = vrcp.f32 %v2143_v62  ;;  %vm2111_vm1 = vweird.f32 %v5202_v49  ;;  %vm2149_vm10 = vweird.f32 %v2143_v62 }
 0x680   :  { %v2125_v2 = vmul.f32 %v5204_v34, %v2123_v13  ;;  %5207 = vtanh.f32 %v2099_v50  ;;  %vm2130_vm2 = vweird.f32 %v5204_v34  ;;  %vm2112_vm5 = vmor %vm2110_vm3, %vm2111_vm1  ;;  %v2153_v16 = vand.u32 2147483647, %v2143_v62 }
 0x681   :  { %v2107_v44 = vsub.f32 1.0, %v2106_v7  ;;  %vm2131_vm7 = vmor %vm2129_vm4, %vm2130_vm2 }
 0x682   :  { %v2126_v21 = vsub.f32 1.0, %v2125_v2  ;;  %vm2154_vm12 = vcmp.eq.f32.partialorder %v2153_v16, 8.507059e+37 }
 0x683   :  { %v2108_v61 = vmul.f32 %v5202_v49, %v2107_v44 }
 0x684   :  { %v2127_v11 = vmul.f32 %v5204_v34, %v2126_v21 }
 0x685   :  { %v5206_v6 = vpop.eup %5205  ;;  %v2109_v31 = vadd.f32 %v5202_v49, %v2108_v61 }
 0x686   :  { %v2128_v3 = vadd.f32 %v5204_v34, %v2127_v11  ;;  %v2145_v18 = vmul.f32 %v5206_v6, %v2143_v62  ;;  %v5208_v50 = vpop.eup %5207  ;;  %vm2150_vm9 = vweird.f32 %v5206_v6  ;;  %v2155_v11 = vand.u32 2147483648, %v2143_v62 }
 0x687   :  { %v2113_v7 = vsel %vm2112_vm5, %v5202_v49, %v2109_v31  ;;  %vm2151_vm11 = vmor %vm2149_vm10, %vm2150_vm9 }
 0x688   :  { %v2118_v2 = vsel %vm2115_vm6, %v2117_v25, %v2113_v7  ;;  %v2132_v44 = vsel %vm2131_vm7, %v5204_v34, %v2128_v3  ;;  %v2146_v43 = vsub.f32 1.0, %v2145_v18  ;;  %v2156_v49 = vor.u32 1.1754944e-38, %v2155_v11  ;;  %v9681_v7 = vld [vmem:[#allocation70_spill] sm:$0xff] }
 0x689   :  { %v2137_v21 = vsel %vm2134_vm8, %v2136_v33, %v2132_v44  ;;  %v2160_v39 = vmul.f32 %v5208_v50, %v2118_v2 }
 0x68a   :  { %v2159_v26 = vmul.f32 0.0, %v2137_v21  ;;  %v2147_v24 = vmul.f32 %v5206_v6, %v2146_v43 }
 0x68c   :  { %v7506_v61 = vadd.f32 %v2160_v39, %v2159_v26  ;;  %v2148_v55 = vadd.f32 %v5206_v6, %v2147_v24  ;;  %v9680_v24 = vld [vmem:[#allocation68_spill] sm:$0xff] }
 0x68e   :  { %5209 = vtanh.f32 %v7506_v61  ;;  %v2152_v30 = vsel %vm2151_vm11, %v5206_v6, %v2148_v55 }
 0x68f   :  { %v2157_v17 = vsel %vm2154_vm12, %v2156_v49, %v2152_v30 }
 0x694   :  { %v5210_v3 = vpop.eup %5209 }
 0x695   :  { %v2163_v13 = vmul.f32 %v5210_v3, %v2157_v17 }
 0x697   :  { %2164 = vst [vmem:[#allocation3] sm:$0x3] %v2163_v13  ;;  %2181 = vmatmul.f32.vlgmr.msra.gmra.mxu0 %v2163_v13  ;;  %2201 = vmatmul.f32.vlgmr.msra.gmra.mxu1 %v2163_v13 }
 0x698   :  { %2221 = vmatmul.f32.vlgmr.msra.gmra.mxu2 %v2163_v13  ;;  %2241 = vmatmul.f32.vlgmr.msra.gmra.mxu3 %v2163_v13 }
 0x699   :  { %2497 = vmatpush.msra.mxu0 %v7088_v22  ;;  %2517 = vmatpush.msra.mxu1 %v7090_v28  ;;  %v9652_v22 = vld [vmem:[#allocation65_spill] sm:$0xff]  ;;  %v9653_v28 = vld [vmem:[#allocation64_spill] sm:$0xff] }
 0x69a   :  { %2537 = vmatpush.msra.mxu2 %v7092_v23  ;;  %2557 = vmatpush.msra.mxu3 %v7096_v60  ;;  %v9654_v23 = vld [vmem:[#allocation45_spill] sm:$0xff]  ;;  %v9655_v60 = vld [vmem:[#allocation40_spill] sm:$0xff] }
 0x69b   :  { %2498 = vmatpush.msra.mxu0 %v7102_v15  ;;  %2518 = vmatpush.msra.mxu1 %v7104_v63  ;;  %v9656_v15 = vld [vmem:[#allocation36_spill] sm:$0xff] }
 0x69c   :  { %2538 = vmatpush.msra.mxu2 %v7106_v0  ;;  %2558 = vmatpush.msra.mxu3 %v7110_v29  ;;  %v9657_v63 = vld [vmem:[#allocation48_spill] sm:$0xff]  ;;  %v9658_v0 = vld [vmem:[#allocation54_spill] sm:$0xff]  ;;  %v9659_v29 = vld [vmem:[#allocation55_spill] sm:$0xff] }
 0x69d   :  { %2499 = vmatpush.msra.mxu0 %v7114_v56  ;;  %2519 = vmatpush.msra.mxu1 %v7116_v8  ;;  %v9660_v56 = vld [vmem:[#allocation49_spill] sm:$0xff] }
 0x69e   :  { %2539 = vmatpush.msra.mxu2 %v7120_v57  ;;  %2559 = vmatpush.msra.mxu3 %v7122_v5  ;;  %v9661_v8 = vld [vmem:[#allocation41_spill] sm:$0xff]  ;;  %v9662_v57 = vld [vmem:[#allocation46_spill] sm:$0xff] }
 0x69f   :  { %2500 = vmatpush.msra.mxu0 %v7126_v19  ;;  %2520 = vmatpush.msra.mxu1 %v7128_v20  ;;  %v9663_v5 = vld [vmem:[#allocation42_spill] sm:$0xff]  ;;  %v9664_v19 = vld [vmem:[#allocation37_spill] sm:$0xff] }
 0x6a0   :  { %2540 = vmatpush.msra.mxu2 %v7130_v37  ;;  %2560 = vmatpush.msra.mxu3 %v7134_v41  ;;  %v9665_v20 = vld [vmem:[#allocation50_spill] sm:$0xff]  ;;  %v9666_v37 = vld [vmem:[#allocation56_spill] sm:$0xff]  ;;  %v9667_v41 = vld [vmem:[#allocation57_spill] sm:$0xff] }
 0x6a1   :  { %2501 = vmatpush.msra.mxu0 %v7138_v9  ;;  %2521 = vmatpush.msra.mxu1 %v7140_v4  ;;  %v9668_v9 = vld [vmem:[#allocation51_spill] sm:$0xff] }
 0x6a2   :  { %2541 = vmatpush.msra.mxu2 %v7142_v1  ;;  %2561 = vmatpush.msra.mxu3 %v7147_v32  ;;  %v9669_v4 = vld [vmem:[#allocation43_spill] sm:$0xff]  ;;  %v9671_v32 = vld [vmem:[#allocation44_spill] sm:$0xff] }
 0x6a3   :  { %2502 = vmatpush.msra.mxu0 %v7151_v27  ;;  %2522 = vmatpush.msra.mxu1 %v7153_v10  ;;  %v9670_v1 = vld [vmem:[#allocation47_spill] sm:$0xff]  ;;  %v9673_v10 = vld [vmem:[#allocation52_spill] sm:$0xff] }
 0x6a4   :  { %2542 = vmatpush.msra.mxu2 %v7155_v12  ;;  %2562 = vmatpush.msra.mxu3 %v7159_v58  ;;  %v9672_v27 = vld [vmem:[#allocation39_spill] sm:$0xff]  ;;  %v9674_v12 = vld [vmem:[#allocation58_spill] sm:$0xff] }
 0x6a5   :  { %2503 = vmatpush.msra.mxu0 %v7163_v14  ;;  %2523 = vmatpush.msra.mxu1 %v7165_v35  ;;  %v9675_v58 = vld [vmem:[#allocation59_spill] sm:$0xff]  ;;  %v9676_v14 = vld [vmem:[#allocation61_spill] sm:$0xff] }
 0x6a6   :  { %2543 = vmatpush.msra.mxu2 %v7167_v36  ;;  %2563 = vmatpush.msra.mxu3 %v7173_v40  ;;  %v9677_v35 = vld [vmem:[#allocation53_spill] sm:$0xff] }
 0x6a7   :  { %2504 = vmatpush.msra.mxu0 %v7179_v46  ;;  %2524 = vmatpush.msra.mxu1 %v7181_v47 }
 0x6a8   :  { %2544 = vmatpush.msra.mxu2 %v7183_v48  ;;  %2564 = vmatpush.msra.mxu3 %v7188_v52  ;;  %v9678_v48 = vld [vmem:[#allocation38_spill] sm:$0xff] }
 0x6a9   :  { %2505 = vmatpush.msra.mxu0 %v7190_v59  ;;  %2525 = vmatpush.msra.mxu1 %v7192_v53  ;;  %v9679_v59 = vld [vmem:[#allocation63_spill] sm:$0xff] }
 0x6aa   :  { %2545 = vmatpush.msra.mxu2 %v7197_v54  ;;  %2565 = vmatpush.msra.mxu3 %v7199_v42 }
 0x6ab   :  { %2506 = vmatpush.msra.mxu0 %v7201_v51  ;;  %2526 = vmatpush.msra.mxu1 %v7205_v45 }
 0x6ac   :  { %2546 = vmatpush.msra.mxu2 %v9652_v22  ;;  %2566 = vmatpush.msra.mxu3 %v9653_v28 }
 0x6ad   :  { %2507 = vmatpush.msra.mxu0 %v9654_v23  ;;  %2527 = vmatpush.msra.mxu1 %v9655_v60 }
 0x6ae   :  { %2547 = vmatpush.msra.mxu2 %v9656_v15  ;;  %2567 = vmatpush.msra.mxu3 %v9657_v63  ;;  %v2320_v63 = vrot.slane %v7506_v61, 6 }
 0x6af   :  { %2508 = vmatpush.msra.mxu0 %v9658_v0  ;;  %2528 = vmatpush.msra.mxu1 %v9659_v29 }
 0x6b0   :  { %2548 = vmatpush.msra.mxu2 %v9660_v56  ;;  %2568 = vmatpush.msra.mxu3 %v9661_v8 }
 0x6b1   :  { %2509 = vmatpush.msra.mxu0 %v9662_v57  ;;  %2529 = vmatpush.msra.mxu1 %v9663_v5 }
 0x6b2   :  { %2549 = vmatpush.msra.mxu2 %v9664_v19  ;;  %2569 = vmatpush.msra.mxu3 %v9665_v20 }
 0x6b3   :  { %2510 = vmatpush.msra.mxu0 %v9666_v37  ;;  %2530 = vmatpush.msra.mxu1 %v9667_v41 }
 0x6b4   :  { %2550 = vmatpush.msra.mxu2 %v9668_v9  ;;  %2570 = vmatpush.msra.mxu3 %v9669_v4 }
 0x6b5   :  { %2511 = vmatpush.msra.mxu0 %v9670_v1  ;;  %2531 = vmatpush.msra.mxu1 %v9671_v32 }
 0x6b6   :  { %2551 = vmatpush.msra.mxu2 %v9672_v27  ;;  %2571 = vmatpush.msra.mxu3 %v9673_v10 }
 0x6b7   :  { %2512 = vmatpush.msra.mxu0 %v9674_v12  ;;  %2532 = vmatpush.msra.mxu1 %v9675_v58 }
 0x6b8   :  { %2552 = vmatpush.msra.mxu2 %v9676_v14  ;;  %2572 = vmatpush.msra.mxu3 %v9677_v35 }
 0x714   :  { %v2182_v36 = vpop.f32.mrf.mxu0  ;;  %v2202_v40 = vpop.f32.mrf.mxu1 }
 0x715   :  { %v2249_v46 = vrot.slane %v2182_v36, 6  ;;  %v2250_v47 = vrot.slane %v2202_v40, 6 }
 0x717   :  { %v2257_v52 = vadd.f32 %v2249_v46, %v9678_v48  ;;  %v2258_v53 = vadd.f32 %v2250_v47, %v9679_v59 }
 0x719   :  { %v5001_v54 = vmul.f32 -1.442695, %v2257_v52  ;;  %v5002_v42 = vmul.f32 -1.442695, %v2258_v53 }
 0x71b   :  { %5211 = vpow2.f32 %v5001_v54  ;;  %v2242_v51 = vpop.f32.mrf.mxu3  ;;  %v2222_v62 = vpop.f32.mrf.mxu2 }
 0x71c   :  { %5213 = vpow2.f32 %v5002_v42  ;;  %v2252_v45 = vrot.slane %v2242_v51, 6  ;;  %v2251_v34 = vrot.slane %v2222_v62, 6  ;;  %v7584_v62 = vld [vmem:[#allocation13 + $0x1e8] sm:$0xff] }
 0x71e   :  { %v2260_v26 = vadd.f32 %v2252_v45, %v9680_v24  ;;  %v2259_v50 = vadd.f32 %v2251_v34, %v9681_v7  ;;  %v7587_v34 = vld [vmem:[#allocation13 + $0x1f0] sm:$0xff] }
 0x720   :  { %v5003_v39 = vmul.f32 -1.442695, %v2260_v26 }
 0x721   :  { %v5212_v43 = vpop.eup %5211 }
 0x722   :  { %v5214_v33 = vpop.eup %5213  ;;  %v2264_v6 = vadd.f32 1.0, %v5212_v43  ;;  %5215 = vpow2.f32 %v5003_v39 }
 0x723   :  { %v2283_v18 = vadd.f32 1.0, %v5214_v33 }
 0x724   :  { %5217 = vrcp.f32 %v2264_v6  ;;  %v2276_v16 = vand.u32 2147483648, %v2264_v6  ;;  %v2274_v3 = vand.u32 2147483647, %v2264_v6  ;;  %vm2270_vm15 = vweird.f32 %v2264_v6 }
 0x725   :  { %5219 = vrcp.f32 %v2283_v18  ;;  %v2295_v30 = vand.u32 2147483648, %v2283_v18  ;;  %v2293_v13 = vand.u32 2147483647, %v2283_v18  ;;  %vm2289_vm0 = vweird.f32 %v2283_v18 }
 0x726   :  { %v2277_v23 = vor.u32 1.1754944e-38, %v2276_v16  ;;  %vm2275_vm3 = vcmp.eq.f32.partialorder %v2274_v3, 8.507059e+37  ;;  %v7617_v16 = vld [vmem:[#allocation13 + $0x180] sm:$0xff]  ;;  %v7626_v3 = vld [vmem:[#allocation13 + $0x198] sm:$0xff] }
 0x727   :  { %v2296_v0 = vor.u32 1.1754944e-38, %v2295_v30  ;;  %vm2294_vm4 = vcmp.eq.f32.partialorder %v2293_v13, 8.507059e+37  ;;  %v7620_v30 = vld [vmem:[#allocation13 + $0x188] sm:$0xff] }
 0x728   :  { %v5216_v38 = vpop.eup %5215  ;;  %v7632_v13 = vld [vmem:[#allocation13 + $0x168] sm:$0xff] }
 0x729   :  { %v2303_v31 = vadd.f32 1.0, %v5216_v38  ;;  %v7590_v38 = vld [vmem:[#allocation13 + $0x1f8] sm:$0xff] }
 0x72a   :  { %v5218_v25 = vpop.eup %5217 }
 0x72b   :  { %v5220_v2 = vpop.eup %5219  ;;  %v2266_v44 = vmul.f32 %v5218_v25, %v2264_v6  ;;  %5221 = vrcp.f32 %v2303_v31  ;;  %vm2271_vm13 = vweird.f32 %v5218_v25  ;;  %v2315_v61 = vand.u32 2147483648, %v2303_v31 }
 0x72c   :  { %v2285_v21 = vmul.f32 %v5220_v2, %v2283_v18  ;;  %5223 = vtanh.f32 %v2259_v50  ;;  %vm2290_vm14 = vweird.f32 %v5220_v2  ;;  %vm2272_vm1 = vmor %vm2270_vm15, %vm2271_vm13  ;;  %vm2309_vm6 = vweird.f32 %v2303_v31  ;;  %v7581_v18 = vld [vmem:[#allocation13 + $0x1e0] sm:$0xff]  ;;  %v7599_v50 = vld [vmem:[#allocation13 + $0x1d0] sm:$0xff] }
 0x72d   :  { %v2267_v55 = vsub.f32 1.0, %v2266_v44  ;;  %vm2291_vm2 = vmor %vm2289_vm0, %vm2290_vm14  ;;  %v2313_v51 = vand.u32 2147483647, %v2303_v31  ;;  %v2316_v26 = vor.u32 1.1754944e-38, %v2315_v61  ;;  %v7605_v44 = vld [vmem:[#allocation13 + $0x1a0] sm:$0xff]  ;;  %v7686_v61 = vld [vmem:[#allocation13 + $0xf8] sm:$0xff] }
 0x72e   :  { %v2286_v11 = vsub.f32 1.0, %v2285_v21  ;;  %v7608_v21 = vld [vmem:[#allocation13 + $0x1a8] sm:$0xff] }
 0x72f   :  { %v2268_v49 = vmul.f32 %v5218_v25, %v2267_v55  ;;  %vm2314_vm8 = vcmp.eq.f32.partialorder %v2313_v51, 8.507059e+37  ;;  %v7611_v55 = vld [vmem:[#allocation13 + $0x1b0] sm:$0xff]  ;;  %v7689_v51 = vld [vmem:[#allocation13 + $0xc0] sm:$0xff] }
 0x730   :  { %v2287_v17 = vmul.f32 %v5220_v2, %v2286_v11  ;;  %v7614_v11 = vld [vmem:[#allocation13 + $0x1b8] sm:$0xff] }
 0x731   :  { %v5222_v22 = vpop.eup %5221  ;;  %v2269_v28 = vadd.f32 %v5218_v25, %v2268_v49  ;;  %v7623_v49 = vld [vmem:[#allocation13 + $0x190] sm:$0xff] }
 0x732   :  { %v2288_v60 = vadd.f32 %v5220_v2, %v2287_v17  ;;  %v2305_v15 = vmul.f32 %v5222_v22, %v2303_v31  ;;  %v5224_v56 = vpop.eup %5223  ;;  %vm2310_vm5 = vweird.f32 %v5222_v22  ;;  %v7593_v31 = vld [vmem:[#allocation13 + $0x1c0] sm:$0xff] }
 0x733   :  { %v2273_v29 = vsel %vm2272_vm1, %v5218_v25, %v2269_v28  ;;  %vm2311_vm7 = vmor %vm2309_vm6, %vm2310_vm5  ;;  %v7596_v25 = vld [vmem:[#allocation13 + $0x1c8] sm:$0xff]  ;;  %v7629_v17 = vld [vmem:[#allocation13 + $0x160] sm:$0xff] }
 0x734   :  { %v2278_v8 = vsel %vm2275_vm3, %v2277_v23, %v2273_v29  ;;  %v2292_v36 = vsel %vm2291_vm2, %v5220_v2, %v2288_v60  ;;  %v2306_v40 = vsub.f32 1.0, %v2305_v15  ;;  %v7602_v2 = vld [vmem:[#allocation13 + $0x1d8] sm:$0xff]  ;;  %v7641_v23 = vld [vmem:[#allocation13 + $0x140] sm:$0xff]  ;;  %v7644_v60 = vld [vmem:[#allocation13 + $0x148] sm:$0xff] }
 0x735   :  { %v2297_v46 = vsel %vm2294_vm4, %v2296_v0, %v2292_v36  ;;  %v2323_v47 = vmul.f32 %v5224_v56, %v2278_v8  ;;  %v7638_v28 = vld [vmem:[#allocation13 + $0x178] sm:$0xff]  ;;  %v7647_v15 = vld [vmem:[#allocation13 + $0x150] sm:$0xff]  ;;  %v7653_v0 = vld [vmem:[#allocation13 + $0x120] sm:$0xff] }
 0x736   :  { %v2322_v52 = vmul.f32 %v2320_v63, %v2297_v46  ;;  %v2307_v53 = vmul.f32 %v5222_v22, %v2306_v40  ;;  %v7650_v63 = vld [vmem:[#allocation13 + $0x158] sm:$0xff]  ;;  %v7656_v29 = vld [vmem:[#allocation13 + $0x128] sm:$0xff]  ;;  %v7659_v56 = vld [vmem:[#allocation13 + $0x130] sm:$0xff] }
 0x737   :  { %v7662_v8 = vld [vmem:[#allocation13 + $0x138] sm:$0xff]  ;;  %v7665_v36 = vld [vmem:[#allocation13 + $0x100] sm:$0xff]  ;;  %v7668_v40 = vld [vmem:[#allocation13 + $0x108] sm:$0xff] }
 0x738   :  { %v7578_v54 = vadd.f32 %v2323_v47, %v2322_v52  ;;  %v2308_v42 = vadd.f32 %v5222_v22, %v2307_v53  ;;  %v7671_v46 = vld [vmem:[#allocation13 + $0x110] sm:$0xff]  ;;  %v7674_v47 = vld [vmem:[#allocation13 + $0x118] sm:$0xff]  ;;  %v7677_v52 = vld [vmem:[#allocation13 + $0xe0] sm:$0xff] }
 0x739   :  { %v7680_v53 = vld [vmem:[#allocation13 + $0xe8] sm:$0xff] }
 0x73a   :  { %5225 = vtanh.f32 %v7578_v54  ;;  %v2312_v45 = vsel %vm2311_vm7, %v5222_v22, %v2308_v42  ;;  %v7635_v22 = vld [vmem:[#allocation13 + $0x170] sm:$0xff] }
 0x73b   :  { %v2317_v43 = vsel %vm2314_vm8, %v2316_v26, %v2312_v45  ;;  %v7683_v42 = vld [vmem:[#allocation13 + $0xf0] sm:$0xff]  ;;  %v7692_v45 = vld [vmem:[#allocation13 + $0xc8] sm:$0xff] }
 0x73c   :  { %9682 = vst [vmem:[#allocation65_spill] sm:$0xff] %v7692_v45  ;;  %v7695_v26 = vld [vmem:[#allocation13 + $0xd0] sm:$0xff] }
 0x73d   :  { %9683 = vst [vmem:[#allocation64_spill] sm:$0xff] %v7695_v26 }
 0x740   :  { %v5226_v39 = vpop.eup %5225 }
 0x741   :  { %v2326_v33 = vmul.f32 %v5226_v39, %v2317_v43  ;;  %v7698_v39 = vld [vmem:[#allocation13 + $0xd8] sm:$0xff]  ;;  %v7701_v43 = vld [vmem:[#allocation13 + $0xa0] sm:$0xff] }
 0x742   :  { %9684 = vst [vmem:[#allocation45_spill] sm:$0xff] %v7698_v39 }
 0x743   :  { %2327 = vst [vmem:[#allocation3] sm:$0xc] %v2326_v33  ;;  %v2329_v6 = vrot.slane %v2326_v33, 2  ;;  %v7704_v33 = vld [vmem:[#allocation13 + $0xa8] sm:$0xff] }
 0x744   :  { %9685 = vst [vmem:[#allocation40_spill] sm:$0xff] %v7701_v43 }
 0x745   :  { %2347 = vmatmul.f32.vlgmr.msrb.gmra.mxu0 %v2329_v6  ;;  %2367 = vmatmul.f32.vlgmr.msrb.gmra.mxu1 %v2329_v6  ;;  %9686 = vst [vmem:[#allocation36_spill] sm:$0xff] %v7704_v33 }
 0x746   :  { %2387 = vmatmul.f32.vlgmr.msrb.gmra.mxu2 %v2329_v6  ;;  %2407 = vmatmul.f32.vlgmr.msrb.gmra.mxu3 %v2329_v6  ;;  %v7707_v6 = vld [vmem:[#allocation13 + $0xb0] sm:$0xff] }
 0x747   :  { %2663 = vmatpush.msrb.mxu0 %v7581_v18  ;;  %2683 = vmatpush.msrb.mxu1 %v7584_v62  ;;  %9687 = vst [vmem:[#allocation48_spill] sm:$0xff] %v7707_v6 }
 0x748   :  { %2703 = vmatpush.msrb.mxu2 %v7587_v34  ;;  %2723 = vmatpush.msrb.mxu3 %v7590_v38 }
 0x749   :  { %2664 = vmatpush.msrb.mxu0 %v7593_v31  ;;  %2684 = vmatpush.msrb.mxu1 %v7596_v25 }
 0x74a   :  { %2704 = vmatpush.msrb.mxu2 %v7599_v50  ;;  %2724 = vmatpush.msrb.mxu3 %v7602_v2 }
 0x74b   :  { %2665 = vmatpush.msrb.mxu0 %v7605_v44  ;;  %2685 = vmatpush.msrb.mxu1 %v7608_v21 }
 0x74c   :  { %2705 = vmatpush.msrb.mxu2 %v7611_v55  ;;  %2725 = vmatpush.msrb.mxu3 %v7614_v11 }
 0x74d   :  { %2666 = vmatpush.msrb.mxu0 %v7617_v16  ;;  %2686 = vmatpush.msrb.mxu1 %v7620_v30 }
 0x74e   :  { %2706 = vmatpush.msrb.mxu2 %v7623_v49  ;;  %2726 = vmatpush.msrb.mxu3 %v7626_v3 }
 0x74f   :  { %2667 = vmatpush.msrb.mxu0 %v7629_v17  ;;  %2687 = vmatpush.msrb.mxu1 %v7632_v13 }
 0x750   :  { %2707 = vmatpush.msrb.mxu2 %v7635_v22  ;;  %2727 = vmatpush.msrb.mxu3 %v7638_v28 }
 0x751   :  { %2668 = vmatpush.msrb.mxu0 %v7641_v23  ;;  %2688 = vmatpush.msrb.mxu1 %v7644_v60 }
 0x752   :  { %2708 = vmatpush.msrb.mxu2 %v7647_v15  ;;  %2728 = vmatpush.msrb.mxu3 %v7650_v63 }
 0x753   :  { %2669 = vmatpush.msrb.mxu0 %v7653_v0  ;;  %2689 = vmatpush.msrb.mxu1 %v7656_v29 }
 0x754   :  { %2709 = vmatpush.msrb.mxu2 %v7659_v56  ;;  %2729 = vmatpush.msrb.mxu3 %v7662_v8 }
 0x755   :  { %2670 = vmatpush.msrb.mxu0 %v7665_v36  ;;  %2690 = vmatpush.msrb.mxu1 %v7668_v40 }
 0x756   :  { %2710 = vmatpush.msrb.mxu2 %v7671_v46  ;;  %2730 = vmatpush.msrb.mxu3 %v7674_v47 }
 0x757   :  { %2671 = vmatpush.msrb.mxu0 %v7677_v52  ;;  %2691 = vmatpush.msrb.mxu1 %v7680_v53 }
 0x758   :  { %2711 = vmatpush.msrb.mxu2 %v7683_v42  ;;  %2731 = vmatpush.msrb.mxu3 %v7686_v61 }
 0x759   :  { %2672 = vmatpush.msrb.mxu0 %v7689_v51  ;;  %2692 = vmatpush.msrb.mxu1 %v7692_v45  ;;  %v7710_v45 = vld [vmem:[#allocation13 + $0xb8] sm:$0xff] }
 0x75a   :  { %2712 = vmatpush.msrb.mxu2 %v7695_v26  ;;  %2732 = vmatpush.msrb.mxu3 %v7698_v39  ;;  %9688 = vst [vmem:[#allocation54_spill] sm:$0xff] %v7710_v45  ;;  %v7713_v26 = vld [vmem:[#allocation13 + $0x80] sm:$0xff]  ;;  %v7716_v39 = vld [vmem:[#allocation13 + $0x88] sm:$0xff] }
 0x75b   :  { %2673 = vmatpush.msrb.mxu0 %v7701_v43  ;;  %2693 = vmatpush.msrb.mxu1 %v7704_v33  ;;  %9689 = vst [vmem:[#allocation55_spill] sm:$0xff] %v7713_v26  ;;  %v7719_v43 = vld [vmem:[#allocation13 + $0x90] sm:$0xff]  ;;  %v7722_v33 = vld [vmem:[#allocation13 + $0x98] sm:$0xff] }
 0x75c   :  { %2713 = vmatpush.msrb.mxu2 %v7707_v6  ;;  %2733 = vmatpush.msrb.mxu3 %v7710_v45  ;;  %9690 = vst [vmem:[#allocation49_spill] sm:$0xff] %v7716_v39 }
 0x75d   :  { %2674 = vmatpush.msrb.mxu0 %v7713_v26  ;;  %2694 = vmatpush.msrb.mxu1 %v7716_v39  ;;  %9691 = vst [vmem:[#allocation41_spill] sm:$0xff] %v7719_v43 }
 0x75e   :  { %2714 = vmatpush.msrb.mxu2 %v7719_v43  ;;  %9692 = vst [vmem:[#allocation46_spill] sm:$0xff] %v7722_v33  ;;  %2734 = vmatpush.msrb.mxu3 %v7722_v33 }
 0x75f   :  { %2675 = vmatpush.msrb.mxu0 %v9662_v57  ;;  %2695 = vmatpush.msrb.mxu1 %v9663_v5 }
 0x760   :  { %2715 = vmatpush.msrb.mxu2 %v9664_v19  ;;  %2735 = vmatpush.msrb.mxu3 %v9665_v20 }
 0x761   :  { %2676 = vmatpush.msrb.mxu0 %v9666_v37  ;;  %2696 = vmatpush.msrb.mxu1 %v9667_v41 }
 0x762   :  { %2716 = vmatpush.msrb.mxu2 %v9668_v9  ;;  %2736 = vmatpush.msrb.mxu3 %v9669_v4 }
 0x763   :  { %2677 = vmatpush.msrb.mxu0 %v9670_v1  ;;  %2697 = vmatpush.msrb.mxu1 %v9671_v32 }
 0x764   :  { %2717 = vmatpush.msrb.mxu2 %v9672_v27  ;;  %2737 = vmatpush.msrb.mxu3 %v9673_v10 }
 0x765   :  { %2678 = vmatpush.msrb.mxu0 %v9674_v12  ;;  %2698 = vmatpush.msrb.mxu1 %v9675_v58 }
 0x766   :  { %2718 = vmatpush.msrb.mxu2 %v9676_v14  ;;  %2738 = vmatpush.msrb.mxu3 %v9677_v35 }
 0x7c2   :  { %v2348_v57 = vpop.f32.mrf.mxu0  ;;  %v2368_v5 = vpop.f32.mrf.mxu1 }
 0x7c3   :  { %v2415_v19 = vrot.slane %v2348_v57, 4  ;;  %v2416_v20 = vrot.slane %v2368_v5, 4 }
 0x7c5   :  { %v2423_v37 = vadd.f32 %v2415_v19, %v9678_v48  ;;  %v2424_v41 = vadd.f32 %v2416_v20, %v9679_v59 }
 0x7c7   :  { %v5004_v9 = vmul.f32 -1.442695, %v2423_v37  ;;  %v5005_v4 = vmul.f32 -1.442695, %v2424_v41 }
 0x7c9   :  { %5227 = vpow2.f32 %v5004_v9  ;;  %v2408_v1 = vpop.f32.mrf.mxu3  ;;  %v2388_v57 = vpop.f32.mrf.mxu2 }
 0x7ca   :  { %5229 = vpow2.f32 %v5005_v4  ;;  %v2418_v32 = vrot.slane %v2408_v1, 4  ;;  %v2417_v5 = vrot.slane %v2388_v57, 4 }
 0x7cc   :  { %v2426_v27 = vadd.f32 %v2418_v32, %v9680_v24  ;;  %v2425_v41 = vadd.f32 %v2417_v5, %v9681_v7 }
 0x7ce   :  { %v5006_v10 = vmul.f32 -1.442695, %v2426_v27 }
 0x7cf   :  { %v5228_v12 = vpop.eup %5227 }
 0x7d0   :  { %v5230_v58 = vpop.eup %5229  ;;  %v2430_v14 = vadd.f32 1.0, %v5228_v12  ;;  %5231 = vpow2.f32 %v5006_v10 }
 0x7d1   :  { %v2449_v35 = vadd.f32 1.0, %v5230_v58 }
 0x7d2   :  { %5233 = vrcp.f32 %v2430_v14  ;;  %v2442_v24 = vand.u32 2147483648, %v2430_v14  ;;  %v2440_v58 = vand.u32 2147483647, %v2430_v14  ;;  %vm2436_vm11 = vweird.f32 %v2430_v14 }
 0x7d3   :  { %5235 = vrcp.f32 %v2449_v35  ;;  %v2461_v12 = vand.u32 2147483648, %v2449_v35  ;;  %v2459_v57 = vand.u32 2147483647, %v2449_v35  ;;  %vm2455_vm12 = vweird.f32 %v2449_v35 }
 0x7d4   :  { %v2443_v5 = vor.u32 1.1754944e-38, %v2442_v24  ;;  %vm2441_vm15 = vcmp.eq.f32.partialorder %v2440_v58, 8.507059e+37  ;;  %v9698_v58 = vld [vmem:[#allocation54_spill] sm:$0xff] }
 0x7d5   :  { %vm2460_vm0 = vcmp.eq.f32.partialorder %v2459_v57, 8.507059e+37  ;;  %v9699_v57 = vld [vmem:[#allocation55_spill] sm:$0xff] }
 0x7d6   :  { %v5232_v19 = vpop.eup %5231 }
 0x7d7   :  { %v2469_v20 = vadd.f32 1.0, %v5232_v19 }
 0x7d8   :  { %v5234_v37 = vpop.eup %5233 }
 0x7d9   :  { %v5236_v9 = vpop.eup %5235  ;;  %v2432_v4 = vmul.f32 %v5234_v37, %v2430_v14  ;;  %5237 = vrcp.f32 %v2469_v20  ;;  %vm2437_vm9 = vweird.f32 %v5234_v37  ;;  %vm2475_vm2 = vweird.f32 %v2469_v20 }
 0x7da   :  { %v2451_v1 = vmul.f32 %v5236_v9, %v2449_v35  ;;  %5239 = vtanh.f32 %v2425_v41  ;;  %vm2456_vm10 = vweird.f32 %v5236_v9  ;;  %vm2438_vm13 = vmor %vm2436_vm11, %vm2437_vm9 }
 0x7db   :  { %v2433_v32 = vsub.f32 1.0, %v2432_v4  ;;  %v2486_v4 = vrot.slane %v7578_v54, 6  ;;  %vm2457_vm14 = vmor %vm2455_vm12, %vm2456_vm10  ;;  %v2479_v54 = vand.u32 2147483647, %v2469_v20 }
 0x7dc   :  { %v2452_v27 = vsub.f32 1.0, %v2451_v1  ;;  %v2462_v1 = vor.u32 1.1754944e-38, %v2461_v12 }
 0x7dd   :  { %v2434_v10 = vmul.f32 %v5234_v37, %v2433_v32  ;;  %vm2480_vm4 = vcmp.eq.f32.partialorder %v2479_v54, 8.507059e+37  ;;  %v7821_v54 = vld [vmem:[#allocation13 + $0x20] sm:$0xff] }
 0x7de   :  { %v2453_v59 = vmul.f32 %v5236_v9, %v2452_v27  ;;  %9711 = vst [vmem:[#allocation44_spill] sm:$0xff] %v7821_v54 }
 0x7df   :  { %v5238_v48 = vpop.eup %5237  ;;  %v2435_v19 = vadd.f32 %v5234_v37, %v2434_v10 }
 0x7e0   :  { %v2454_v7 = vadd.f32 %v5236_v9, %v2453_v59  ;;  %v2471_v33 = vmul.f32 %v5238_v48, %v2469_v20  ;;  %v5240_v32 = vpop.eup %5239  ;;  %vm2476_vm1 = vweird.f32 %v5238_v48  ;;  %v2481_v59 = vand.u32 2147483648, %v2469_v20  ;;  %v9697_v20 = vld [vmem:[#allocation36_spill] sm:$0xff] }
 0x7e1   :  { %v2439_v41 = vsel %vm2438_vm13, %v5234_v37, %v2435_v19  ;;  %vm2477_vm3 = vmor %vm2475_vm2, %vm2476_vm1  ;;  %v9700_v19 = vld [vmem:[#allocation49_spill] sm:$0xff] }
 0x7e2   :  { %v2444_v43 = vsel %vm2441_vm15, %v2443_v5, %v2439_v41  ;;  %v2458_v39 = vsel %vm2457_vm14, %v5236_v9, %v2454_v7  ;;  %v2472_v27 = vsub.f32 1.0, %v2471_v33  ;;  %v2482_v12 = vor.u32 1.1754944e-38, %v2481_v59  ;;  %v9701_v5 = vld [vmem:[#allocation41_spill] sm:$0xff]  ;;  %v7800_v41 = vld [vmem:[#allocation13 + $0x68] sm:$0xff]  ;;  %v7818_v59 = vld [vmem:[#allocation13 + $0x58] sm:$0xff] }
 0x7e3   :  { %v2463_v26 = vsel %vm2460_vm0, %v2462_v1, %v2458_v39  ;;  %v2489_v45 = vmul.f32 %v5240_v32, %v2444_v43  ;;  %v9696_v43 = vld [vmem:[#allocation40_spill] sm:$0xff]  ;;  %v7797_v1 = vld [vmem:[#allocation13 + $0x60] sm:$0xff]  ;;  %9704 = vst [vmem:[#allocation37_spill] sm:$0xff] %v7800_v41  ;;  %v7803_v32 = vld [vmem:[#allocation13 + $0x70] sm:$0xff] }
 0x7e4   :  { %v2488_v10 = vmul.f32 %v2486_v4, %v2463_v26  ;;  %v2473_v14 = vmul.f32 %v5238_v48, %v2472_v27  ;;  %v9695_v26 = vld [vmem:[#allocation45_spill] sm:$0xff]  ;;  %v9702_v4 = vld [vmem:[#allocation46_spill] sm:$0xff]  ;;  %9703 = vst [vmem:[#allocation42_spill] sm:$0xff] %v7797_v1 }
 0x7e5   :  { %9705 = vst [vmem:[#allocation50_spill] sm:$0xff] %v7803_v32  ;;  %v7806_v27 = vld [vmem:[#allocation13 + $0x78] sm:$0xff] }
 0x7e6   :  { %v7746_v35 = vadd.f32 %v2489_v45, %v2488_v10  ;;  %v2474_v24 = vadd.f32 %v5238_v48, %v2473_v14  ;;  %v9694_v45 = vld [vmem:[#allocation64_spill] sm:$0xff]  ;;  %9706 = vst [vmem:[#allocation56_spill] sm:$0xff] %v7806_v27  ;;  %v7809_v10 = vld [vmem:[#allocation13 + $0x40] sm:$0xff] }
 0x7e7   :  { %9707 = vst [vmem:[#allocation57_spill] sm:$0xff] %v7809_v10  ;;  %v7812_v14 = vld [vmem:[#allocation13 + $0x48] sm:$0xff] }
 0x7e8   :  { %5241 = vtanh.f32 %v7746_v35  ;;  %v2478_v37 = vsel %vm2477_vm3, %v5238_v48, %v2474_v24  ;;  %v9693_v48 = vld [vmem:[#allocation65_spill] sm:$0xff]  ;;  %9708 = vst [vmem:[#allocation51_spill] sm:$0xff] %v7812_v14 }
 0x7e9   :  { %v2483_v9 = vsel %vm2480_vm4, %v2482_v12, %v2478_v37  ;;  %v7815_v24 = vld [vmem:[#allocation13 + $0x50] sm:$0xff]  ;;  %9710 = vst [vmem:[#allocation47_spill] sm:$0xff] %v7818_v59  ;;  %v7824_v37 = vld [vmem:[#allocation13 + $0x28] sm:$0xff] }
 0x7ea   :  { %9709 = vst [vmem:[#allocation43_spill] sm:$0xff] %v7815_v24  ;;  %v7827_v12 = vld [vmem:[#allocation13 + $0x30] sm:$0xff] }
 0x7eb   :  { %9712 = vst [vmem:[#allocation39_spill] sm:$0xff] %v7824_v37 }
 0x7ec   :  { %9713 = vst [vmem:[#allocation52_spill] sm:$0xff] %v7827_v12 }
 0x7ee   :  { %v5242_v7 = vpop.eup %5241 }
 0x7ef   :  { %v2492_v33 = vmul.f32 %v5242_v7, %v2483_v9  ;;  %v7830_v7 = vld [vmem:[#allocation13 + $0x38] sm:$0xff]  ;;  %v7833_v9 = vld [vmem:[#allocation13] sm:$0xff] }
 0x7f0   :  { %9714 = vst [vmem:[#allocation58_spill] sm:$0xff] %v7830_v7 }
 0x7f1   :  { %2493 = vst [vmem:[#allocation3] sm:$0x30] %v2492_v33  ;;  %v2495_v39 = vrot.slane %v2492_v33, 4  ;;  %v7836_v33 = vld [vmem:[#allocation13 + $0x8] sm:$0xff] }
 0x7f2   :  { %9715 = vst [vmem:[#allocation59_spill] sm:$0xff] %v7833_v9 }
 0x7f3   :  { %2513 = vmatmul.f32.vlgmr.msra.gmra.mxu0 %v2495_v39  ;;  %2533 = vmatmul.f32.vlgmr.msra.gmra.mxu1 %v2495_v39  ;;  %9716 = vst [vmem:[#allocation61_spill] sm:$0xff] %v7836_v33 }
 0x7f4   :  { %2553 = vmatmul.f32.vlgmr.msra.gmra.mxu2 %v2495_v39  ;;  %2573 = vmatmul.f32.vlgmr.msra.gmra.mxu3 %v2495_v39  ;;  %v7839_v39 = vld [vmem:[#allocation13 + $0x10] sm:$0xff] }
 0x7f5   :  { %2814 = vmatpush.msra.mxu0 %v7581_v18  ;;  %2834 = vmatpush.msra.mxu1 %v7584_v62  ;;  %9717 = vst [vmem:[#allocation53_spill] sm:$0xff] %v7839_v39 }
 0x7f6   :  { %2854 = vmatpush.msra.mxu2 %v7587_v34  ;;  %2874 = vmatpush.msra.mxu3 %v7590_v38 }
 0x7f7   :  { %2815 = vmatpush.msra.mxu0 %v7593_v31  ;;  %2835 = vmatpush.msra.mxu1 %v7596_v25 }
 0x7f8   :  { %2855 = vmatpush.msra.mxu2 %v7599_v50  ;;  %2875 = vmatpush.msra.mxu3 %v7602_v2 }
 0x7f9   :  { %2816 = vmatpush.msra.mxu0 %v7605_v44  ;;  %2836 = vmatpush.msra.mxu1 %v7608_v21 }
 0x7fa   :  { %2856 = vmatpush.msra.mxu2 %v7611_v55  ;;  %2876 = vmatpush.msra.mxu3 %v7614_v11 }
 0x7fb   :  { %2817 = vmatpush.msra.mxu0 %v7617_v16  ;;  %2837 = vmatpush.msra.mxu1 %v7620_v30 }
 0x7fc   :  { %2857 = vmatpush.msra.mxu2 %v7623_v49  ;;  %2877 = vmatpush.msra.mxu3 %v7626_v3 }
 0x7fd   :  { %2818 = vmatpush.msra.mxu0 %v7629_v17  ;;  %2838 = vmatpush.msra.mxu1 %v7632_v13 }
 0x7fe   :  { %2858 = vmatpush.msra.mxu2 %v7635_v22  ;;  %2878 = vmatpush.msra.mxu3 %v7638_v28 }
 0x7ff   :  { %2819 = vmatpush.msra.mxu0 %v7641_v23  ;;  %2839 = vmatpush.msra.mxu1 %v7644_v60 }
 0x800   :  { %2859 = vmatpush.msra.mxu2 %v7647_v15  ;;  %2879 = vmatpush.msra.mxu3 %v7650_v63 }
 0x801   :  { %2820 = vmatpush.msra.mxu0 %v7653_v0  ;;  %2840 = vmatpush.msra.mxu1 %v7656_v29 }
 0x802   :  { %2860 = vmatpush.msra.mxu2 %v7659_v56  ;;  %2880 = vmatpush.msra.mxu3 %v7662_v8 }
 0x803   :  { %2821 = vmatpush.msra.mxu0 %v7665_v36  ;;  %2841 = vmatpush.msra.mxu1 %v7668_v40 }
 0x804   :  { %2861 = vmatpush.msra.mxu2 %v7671_v46  ;;  %2881 = vmatpush.msra.mxu3 %v7674_v47 }
 0x805   :  { %2822 = vmatpush.msra.mxu0 %v7677_v52  ;;  %2842 = vmatpush.msra.mxu1 %v7680_v53 }
 0x806   :  { %2862 = vmatpush.msra.mxu2 %v7683_v42  ;;  %2882 = vmatpush.msra.mxu3 %v7686_v61 }
 0x807   :  { %2823 = vmatpush.msra.mxu0 %v7689_v51  ;;  %2843 = vmatpush.msra.mxu1 %v9693_v48 }
 0x808   :  { %2863 = vmatpush.msra.mxu2 %v9694_v45  ;;  %2883 = vmatpush.msra.mxu3 %v9695_v26 }
 0x809   :  { %2824 = vmatpush.msra.mxu0 %v9696_v43  ;;  %2844 = vmatpush.msra.mxu1 %v9697_v20 }
 0x80a   :  { %2864 = vmatpush.msra.mxu2 %v7707_v6  ;;  %2884 = vmatpush.msra.mxu3 %v9698_v58 }
 0x80b   :  { %2825 = vmatpush.msra.mxu0 %v9699_v57  ;;  %2845 = vmatpush.msra.mxu1 %v9700_v19 }
 0x80c   :  { %2865 = vmatpush.msra.mxu2 %v9701_v5  ;;  %2885 = vmatpush.msra.mxu3 %v9702_v4 }
 0x80d   :  { %2826 = vmatpush.msra.mxu0 %v7797_v1  ;;  %2846 = vmatpush.msra.mxu1 %v7800_v41  ;;  %v9721_v1 = vld [vmem:[#allocation68_spill] sm:$0xff] }
 0x80e   :  { %2866 = vmatpush.msra.mxu2 %v7803_v32  ;;  %2886 = vmatpush.msra.mxu3 %v7806_v27 }
 0x80f   :  { %2827 = vmatpush.msra.mxu0 %v7809_v10  ;;  %2847 = vmatpush.msra.mxu1 %v7812_v14  ;;  %v9720_v10 = vld [vmem:[#allocation63_spill] sm:$0xff] }
 0x810   :  { %2867 = vmatpush.msra.mxu2 %v7815_v24  ;;  %2887 = vmatpush.msra.mxu3 %v7818_v59  ;;  %v9719_v24 = vld [vmem:[#allocation38_spill] sm:$0xff] }
 0x811   :  { %2828 = vmatpush.msra.mxu0 %v7821_v54  ;;  %2848 = vmatpush.msra.mxu1 %v7824_v37  ;;  %v7842_v37 = vld [vmem:[#allocation13 + $0x18] sm:$0xff] }
 0x812   :  { %2868 = vmatpush.msra.mxu2 %v7827_v12  ;;  %2888 = vmatpush.msra.mxu3 %v7830_v7  ;;  %9718 = vst [vmem:[#allocation65_spill] sm:$0xff] %v7842_v37 }
 0x813   :  { %2829 = vmatpush.msra.mxu0 %v7833_v9  ;;  %2849 = vmatpush.msra.mxu1 %v7836_v33 }
 0x814   :  { %2869 = vmatpush.msra.mxu2 %v7839_v39  ;;  %2889 = vmatpush.msra.mxu3 %v7842_v37 }
 0x870   :  { %v2514_v12 = vpop.f32.mrf.mxu0  ;;  %v2534_v54 = vpop.f32.mrf.mxu1 }
 0x871   :  { %v2581_v59 = vrot.slane %v2514_v12, 2  ;;  %v2582_v7 = vrot.slane %v2534_v54, 2  ;;  %v9722_v54 = vld [vmem:[#allocation70_spill] sm:$0xff] }
 0x873   :  { %v2589_v14 = vadd.f32 %v2581_v59, %v9719_v24  ;;  %v2590_v9 = vadd.f32 %v2582_v7, %v9720_v10 }
 0x875   :  { %v5007_v27 = vmul.f32 -1.442695, %v2589_v14  ;;  %v5008_v32 = vmul.f32 -1.442695, %v2590_v9 }
 0x877   :  { %5243 = vpow2.f32 %v5007_v27  ;;  %v2574_v33 = vpop.f32.mrf.mxu3  ;;  %v2554_v12 = vpop.f32.mrf.mxu2 }
 0x878   :  { %5245 = vpow2.f32 %v5008_v32  ;;  %v2584_v41 = vrot.slane %v2574_v33, 2  ;;  %v2583_v24 = vrot.slane %v2554_v12, 2 }
 0x87a   :  { %v2592_v39 = vadd.f32 %v2584_v41, %v9721_v1  ;;  %v2591_v27 = vadd.f32 %v2583_v24, %v9722_v54 }
 0x87c   :  { %v5009_v4 = vmul.f32 -1.442695, %v2592_v39 }
 0x87d   :  { %v5244_v5 = vpop.eup %5243 }
 0x87e   :  { %v5246_v19 = vpop.eup %5245  ;;  %v2596_v37 = vadd.f32 1.0, %v5244_v5  ;;  %5247 = vpow2.f32 %v5009_v4 }
 0x87f   :  { %v2615_v57 = vadd.f32 1.0, %v5246_v19 }
 0x880   :  { %5249 = vrcp.f32 %v2596_v37  ;;  %v2608_v33 = vand.u32 2147483648, %v2596_v37  ;;  %v2606_v19 = vand.u32 2147483647, %v2596_v37  ;;  %vm2602_vm7 = vweird.f32 %v2596_v37 }
 0x881   :  { %5251 = vrcp.f32 %v2615_v57  ;;  %v2627_v5 = vand.u32 2147483648, %v2615_v57  ;;  %v2625_v12 = vand.u32 2147483647, %v2615_v57  ;;  %vm2621_vm8 = vweird.f32 %v2615_v57 }
 0x882   :  { %v2609_v24 = vor.u32 1.1754944e-38, %v2608_v33  ;;  %vm2607_vm11 = vcmp.eq.f32.partialorder %v2606_v19, 8.507059e+37 }
 0x883   :  { %vm2626_vm12 = vcmp.eq.f32.partialorder %v2625_v12, 8.507059e+37  ;;  %v9728_v12 = vld [vmem:[#allocation54_spill] sm:$0xff] }
 0x884   :  { %v5248_v59 = vpop.eup %5247 }
 0x885   :  { %v2635_v10 = vadd.f32 1.0, %v5248_v59 }
 0x886   :  { %v5250_v14 = vpop.eup %5249 }
 0x887   :  { %v5252_v7 = vpop.eup %5251  ;;  %v2598_v32 = vmul.f32 %v5250_v14, %v2596_v37  ;;  %5253 = vrcp.f32 %v2635_v10  ;;  %vm2603_vm5 = vweird.f32 %v5250_v14  ;;  %vm2641_vm14 = vweird.f32 %v2635_v10 }
 0x888   :  { %v2617_v9 = vmul.f32 %v5252_v7, %v2615_v57  ;;  %5255 = vtanh.f32 %v2591_v27  ;;  %vm2622_vm6 = vweird.f32 %v5252_v7  ;;  %vm2604_vm9 = vmor %vm2602_vm7, %vm2603_vm5 }
 0x889   :  { %v2599_v1 = vsub.f32 1.0, %v2598_v32  ;;  %v2652_v32 = vrot.slane %v7746_v35, 6  ;;  %vm2623_vm10 = vmor %vm2621_vm8, %vm2622_vm6  ;;  %v2647_v35 = vand.u32 2147483648, %v2635_v10 }
 0x88a   :  { %v2618_v41 = vsub.f32 1.0, %v2617_v9  ;;  %v2628_v9 = vor.u32 1.1754944e-38, %v2627_v5  ;;  %v2645_v5 = vand.u32 2147483647, %v2635_v10 }
 0x88b   :  { %v2600_v4 = vmul.f32 %v5250_v14, %v2599_v1  ;;  %v2648_v19 = vor.u32 1.1754944e-38, %v2647_v35  ;;  %v9740_v35 = vld [vmem:[#allocation47_spill] sm:$0xff] }
 0x88c   :  { %v2619_v39 = vmul.f32 %v5252_v7, %v2618_v41  ;;  %vm2646_vm0 = vcmp.eq.f32.partialorder %v2645_v5, 8.507059e+37  ;;  %v9741_v5 = vld [vmem:[#allocation44_spill] sm:$0xff] }
 0x88d   :  { %v5254_v58 = vpop.eup %5253  ;;  %v2601_v59 = vadd.f32 %v5250_v14, %v2600_v4 }
 0x88e   :  { %v2620_v54 = vadd.f32 %v5252_v7, %v2619_v39  ;;  %v2637_v6 = vmul.f32 %v5254_v58, %v2635_v10  ;;  %v5256_v1 = vpop.eup %5255  ;;  %vm2642_vm13 = vweird.f32 %v5254_v58  ;;  %v9727_v10 = vld [vmem:[#allocation48_spill] sm:$0xff] }
 0x88f   :  { %v2605_v27 = vsel %vm2604_vm9, %v5250_v14, %v2601_v59  ;;  %vm2643_vm15 = vmor %vm2641_vm14, %vm2642_vm13  ;;  %v9729_v59 = vld [vmem:[#allocation55_spill] sm:$0xff] }
 0x890   :  { %v2610_v20 = vsel %vm2607_vm11, %v2609_v24, %v2605_v27  ;;  %v2624_v43 = vsel %vm2623_vm10, %v5252_v7, %v2620_v54  ;;  %v2638_v41 = vsub.f32 1.0, %v2637_v6  ;;  %v9730_v24 = vld [vmem:[#allocation49_spill] sm:$0xff] }
 0x891   :  { %v2629_v26 = vsel %vm2626_vm12, %v2628_v9, %v2624_v43  ;;  %v2655_v45 = vmul.f32 %v5256_v1, %v2610_v20  ;;  %v9725_v20 = vld [vmem:[#allocation40_spill] sm:$0xff]  ;;  %v9731_v54 = vld [vmem:[#allocation41_spill] sm:$0xff]  ;;  %v9733_v9 = vld [vmem:[#allocation42_spill] sm:$0xff] }
 0x892   :  { %v2654_v4 = vmul.f32 %v2652_v32, %v2629_v26  ;;  %v2639_v37 = vmul.f32 %v5254_v58, %v2638_v41  ;;  %v9724_v26 = vld [vmem:[#allocation45_spill] sm:$0xff]  ;;  %v9732_v32 = vld [vmem:[#allocation46_spill] sm:$0xff]  ;;  %v9736_v41 = vld [vmem:[#allocation56_spill] sm:$0xff] }
 0x893   :  { %v9734_v27 = vld [vmem:[#allocation37_spill] sm:$0xff]  ;;  %v9735_v1 = vld [vmem:[#allocation50_spill] sm:$0xff] }
 0x894   :  { %v7850_v57 = vadd.f32 %v2655_v45, %v2654_v4  ;;  %v2640_v33 = vadd.f32 %v5254_v58, %v2639_v37  ;;  %v9723_v45 = vld [vmem:[#allocation64_spill] sm:$0xff]  ;;  %v9737_v4 = vld [vmem:[#allocation57_spill] sm:$0xff]  ;;  %v9738_v37 = vld [vmem:[#allocation51_spill] sm:$0xff] }
 0x896   :  { %5257 = vtanh.f32 %v7850_v57  ;;  %v2644_v14 = vsel %vm2643_vm15, %v5254_v58, %v2640_v33  ;;  %v9726_v58 = vld [vmem:[#allocation36_spill] sm:$0xff]  ;;  %v9739_v33 = vld [vmem:[#allocation43_spill] sm:$0xff] }
 0x897   :  { %v2649_v39 = vsel %vm2646_vm0, %v2648_v19, %v2644_v14  ;;  %v9742_v14 = vld [vmem:[#allocation39_spill] sm:$0xff]  ;;  %v9743_v19 = vld [vmem:[#allocation52_spill] sm:$0xff] }
 0x89c   :  { %v5258_v7 = vpop.eup %5257 }
 0x89d   :  { %v2658_v6 = vmul.f32 %v5258_v7, %v2649_v39  ;;  %v9744_v7 = vld [vmem:[#allocation58_spill] sm:$0xff]  ;;  %v9745_v39 = vld [vmem:[#allocation59_spill] sm:$0xff] }
 0x89f   :  { %2659 = vst [vmem:[#allocation3] sm:$0xc0] %v2658_v6  ;;  %v2661_v43 = vrot.slane %v2658_v6, 6  ;;  %v9746_v6 = vld [vmem:[#allocation61_spill] sm:$0xff] }
 0x8a1   :  { %2679 = vmatmul.f32.vlgmr.msrb.gmra.mxu0 %v2661_v43  ;;  %2699 = vmatmul.f32.vlgmr.msrb.gmra.mxu1 %v2661_v43 }
 0x8a2   :  { %2719 = vmatmul.f32.vlgmr.msrb.gmra.mxu2 %v2661_v43  ;;  %2739 = vmatmul.f32.vlgmr.msrb.gmra.mxu3 %v2661_v43  ;;  %v9747_v43 = vld [vmem:[#allocation53_spill] sm:$0xff] }
 0x8a3   :  { %2980 = vmatpush.msrb.mxu0 %v7581_v18  ;;  %3000 = vmatpush.msrb.mxu1 %v7584_v62 }
 0x8a4   :  { %3020 = vmatpush.msrb.mxu2 %v7587_v34  ;;  %3040 = vmatpush.msrb.mxu3 %v7590_v38 }
 0x8a5   :  { %2981 = vmatpush.msrb.mxu0 %v7593_v31  ;;  %3001 = vmatpush.msrb.mxu1 %v7596_v25 }
 0x8a6   :  { %3021 = vmatpush.msrb.mxu2 %v7599_v50  ;;  %3041 = vmatpush.msrb.mxu3 %v7602_v2 }
 0x8a7   :  { %2982 = vmatpush.msrb.mxu0 %v7605_v44  ;;  %3002 = vmatpush.msrb.mxu1 %v7608_v21 }
 0x8a8   :  { %3022 = vmatpush.msrb.mxu2 %v7611_v55  ;;  %3042 = vmatpush.msrb.mxu3 %v7614_v11 }
 0x8a9   :  { %2983 = vmatpush.msrb.mxu0 %v7617_v16  ;;  %3003 = vmatpush.msrb.mxu1 %v7620_v30 }
 0x8aa   :  { %3023 = vmatpush.msrb.mxu2 %v7623_v49  ;;  %3043 = vmatpush.msrb.mxu3 %v7626_v3 }
 0x8ab   :  { %2984 = vmatpush.msrb.mxu0 %v7629_v17  ;;  %3004 = vmatpush.msrb.mxu1 %v7632_v13 }
 0x8ac   :  { %3024 = vmatpush.msrb.mxu2 %v7635_v22  ;;  %3044 = vmatpush.msrb.mxu3 %v7638_v28 }
 0x8ad   :  { %2985 = vmatpush.msrb.mxu0 %v7641_v23  ;;  %3005 = vmatpush.msrb.mxu1 %v7644_v60 }
 0x8ae   :  { %3025 = vmatpush.msrb.mxu2 %v7647_v15  ;;  %3045 = vmatpush.msrb.mxu3 %v7650_v63 }
 0x8af   :  { %2986 = vmatpush.msrb.mxu0 %v7653_v0  ;;  %3006 = vmatpush.msrb.mxu1 %v7656_v29 }
 0x8b0   :  { %3026 = vmatpush.msrb.mxu2 %v7659_v56  ;;  %3046 = vmatpush.msrb.mxu3 %v7662_v8 }
 0x8b1   :  { %2987 = vmatpush.msrb.mxu0 %v7665_v36  ;;  %3007 = vmatpush.msrb.mxu1 %v7668_v40 }
 0x8b2   :  { %3027 = vmatpush.msrb.mxu2 %v7671_v46  ;;  %3047 = vmatpush.msrb.mxu3 %v7674_v47 }
 0x8b3   :  { %2988 = vmatpush.msrb.mxu0 %v7677_v52  ;;  %3008 = vmatpush.msrb.mxu1 %v7680_v53 }
 0x8b4   :  { %3028 = vmatpush.msrb.mxu2 %v7683_v42  ;;  %3048 = vmatpush.msrb.mxu3 %v7686_v61 }
 0x8b5   :  { %2989 = vmatpush.msrb.mxu0 %v7689_v51  ;;  %3009 = vmatpush.msrb.mxu1 %v9693_v48 }
 0x8b6   :  { %3029 = vmatpush.msrb.mxu2 %v9723_v45  ;;  %3049 = vmatpush.msrb.mxu3 %v9724_v26 }
 0x8b7   :  { %2990 = vmatpush.msrb.mxu0 %v9725_v20  ;;  %3010 = vmatpush.msrb.mxu1 %v9726_v58 }
 0x8b8   :  { %3030 = vmatpush.msrb.mxu2 %v9727_v10  ;;  %3050 = vmatpush.msrb.mxu3 %v9728_v12 }
 0x8b9   :  { %2991 = vmatpush.msrb.mxu0 %v9729_v59  ;;  %3011 = vmatpush.msrb.mxu1 %v9730_v24 }
 0x8ba   :  { %3031 = vmatpush.msrb.mxu2 %v9731_v54  ;;  %3051 = vmatpush.msrb.mxu3 %v9732_v32 }
 0x8bb   :  { %2992 = vmatpush.msrb.mxu0 %v9733_v9  ;;  %3012 = vmatpush.msrb.mxu1 %v9734_v27  ;;  %v9757_v9 = vld [vmem:[#allocation62_spill] sm:$0xff] }
 0x8bc   :  { %3032 = vmatpush.msrb.mxu2 %v9735_v1  ;;  %3052 = vmatpush.msrb.mxu3 %v9736_v41  ;;  %v9751_v41 = vld [vmem:[#allocation66_spill] sm:$0xff] }
 0x8bd   :  { %2993 = vmatpush.msrb.mxu0 %v9737_v4  ;;  %3013 = vmatpush.msrb.mxu1 %v9738_v37  ;;  %v9748_v4 = vld [vmem:[#allocation65_spill] sm:$0xff]  ;;  %v9749_v37 = vld [vmem:[#allocation60_spill] sm:$0xff] }
 0x8be   :  { %3033 = vmatpush.msrb.mxu2 %v9739_v33  ;;  %3053 = vmatpush.msrb.mxu3 %v9740_v35  ;;  %v9750_v33 = vperm.slane %v9749_v37, 0 }
 0x8bf   :  { %2994 = vmatpush.msrb.mxu0 %v9741_v5  ;;  %3014 = vmatpush.msrb.mxu1 %v9742_v14  ;;  %v9753_v5 = vperm.slane %v9749_v37, 1  ;;  %v9754_v14 = vld [vmem:[#allocation67_spill] sm:$0xff] }
 0x8c0   :  { %3034 = vmatpush.msrb.mxu2 %v9743_v19  ;;  %3054 = vmatpush.msrb.mxu3 %v9744_v7  ;;  %v7920_v35 = vadd.f32 %v9751_v41, %v9750_v33 }
 0x8c1   :  { %2995 = vmatpush.msrb.mxu0 %v9745_v39  ;;  %3015 = vmatpush.msrb.mxu1 %v9746_v6  ;;  %v7925_v1 = vadd.f32 %v9754_v14, %v9753_v5 }
 0x8c2   :  { %3035 = vmatpush.msrb.mxu2 %v9747_v43  ;;  %3055 = vmatpush.msrb.mxu3 %v9748_v4  ;;  %9752 = vst [vmem:[#allocation38_spill] sm:$0xff] %v7920_v35  ;;  %v9756_v4 = vperm.slane %v9749_v37, 3 }
 0x8c3   :  { %9755 = vst [vmem:[#allocation63_spill] sm:$0xff] %v7925_v1 }
 0x8c4   :  { %v7932_v32 = vadd.f32 %v9757_v9, %v9756_v4 }
 0x8c6   :  { %9758 = vst [vmem:[#allocation68_spill] sm:$0xff] %v7932_v32 }
 0x91e   :  { %v2680_v19 = vpop.f32.mrf.mxu0  ;;  %v2700_v7 = vpop.f32.mrf.mxu1 }
 0x91f   :  { %v2743_v39 = vadd.f32 %v2680_v19, %v7920_v35  ;;  %v2744_v6 = vadd.f32 %v2700_v7, %v7925_v1 }
 0x921   :  { %v5010_v27 = vmul.f32 -1.442695, %v2743_v39  ;;  %v5011_v43 = vmul.f32 -1.442695, %v2744_v6  ;;  %v9760_v6 = vld [vmem:[#allocation69_spill] sm:$0xff] }
 0x923   :  { %5259 = vpow2.f32 %v5010_v27  ;;  %v9759_v27 = vperm.slane %v9749_v37, 2 }
 0x924   :  { %5261 = vpow2.f32 %v5011_v43 }
 0x925   :  { %v2740_v41 = vpop.f32.mrf.mxu3  ;;  %v2720_v7 = vpop.f32.mrf.mxu2  ;;  %v7938_v1 = vadd.f32 %v9760_v6, %v9759_v27 }
 0x926   :  { %v2746_v33 = vadd.f32 %v2740_v41, %v7932_v32 }
 0x927   :  { %9761 = vst [vmem:[#allocation70_spill] sm:$0xff] %v7938_v1  ;;  %v2745_v43 = vadd.f32 %v2720_v7, %v7938_v1 }
 0x928   :  { %v5012_v5 = vmul.f32 -1.442695, %v2746_v33 }
 0x929   :  { %v5260_v14 = vpop.eup %5259 }
 0x92a   :  { %v5262_v54 = vpop.eup %5261  ;;  %v2750_v24 = vadd.f32 1.0, %v5260_v14  ;;  %5263 = vpow2.f32 %v5012_v5 }
 0x92b   :  { %v2769_v19 = vadd.f32 1.0, %v5262_v54 }
 0x92c   :  { %5265 = vrcp.f32 %v2750_v24  ;;  %v2762_v54 = vand.u32 2147483648, %v2750_v24  ;;  %v2760_v12 = vand.u32 2147483647, %v2750_v24  ;;  %vm2756_vm3 = vweird.f32 %v2750_v24 }
 0x92d   :  { %5267 = vrcp.f32 %v2769_v19  ;;  %v2781_v35 = vand.u32 2147483648, %v2769_v19  ;;  %v2779_v27 = vand.u32 2147483647, %v2769_v19  ;;  %vm2775_vm4 = vweird.f32 %v2769_v19 }
 0x92e   :  { %v2763_v7 = vor.u32 1.1754944e-38, %v2762_v54  ;;  %vm2761_vm7 = vcmp.eq.f32.partialorder %v2760_v12, 8.507059e+37 }
 0x92f   :  { %vm2780_vm8 = vcmp.eq.f32.partialorder %v2779_v27, 8.507059e+37 }
 0x930   :  { %v5264_v39 = vpop.eup %5263 }
 0x931   :  { %v2789_v9 = vadd.f32 1.0, %v5264_v39 }
 0x932   :  { %v5266_v4 = vpop.eup %5265 }
 0x933   :  { %v5268_v41 = vpop.eup %5267  ;;  %v2752_v33 = vmul.f32 %v5266_v4, %v2750_v24  ;;  %5269 = vrcp.f32 %v2789_v9  ;;  %vm2757_vm1 = vweird.f32 %v5266_v4  ;;  %vm2795_vm10 = vweird.f32 %v2789_v9 }
 0x934   :  { %v2771_v32 = vmul.f32 %v5268_v41, %v2769_v19  ;;  %5271 = vtanh.f32 %v2745_v43  ;;  %vm2776_vm2 = vweird.f32 %v5268_v41  ;;  %vm2758_vm5 = vmor %vm2756_vm3, %vm2757_vm1  ;;  %v2806_v43 = vrot.slane %v7850_v57, 6 }
 0x935   :  { %v2753_v14 = vsub.f32 1.0, %v2752_v33  ;;  %vm2777_vm6 = vmor %vm2775_vm4, %vm2776_vm2  ;;  %v2782_v33 = vor.u32 1.1754944e-38, %v2781_v35  ;;  %v2801_v35 = vand.u32 2147483648, %v2789_v9  ;;  %v2799_v12 = vand.u32 2147483647, %v2789_v9 }
 0x936   :  { %v2772_v5 = vsub.f32 1.0, %v2771_v32 }
 0x937   :  { %v2754_v59 = vmul.f32 %v5266_v4, %v2753_v14  ;;  %vm2800_vm12 = vcmp.eq.f32.partialorder %v2799_v12, 8.507059e+37 }
 0x938   :  { %v2773_v37 = vmul.f32 %v5268_v41, %v2772_v5 }
 0x939   :  { %v5270_v6 = vpop.eup %5269  ;;  %v2755_v39 = vadd.f32 %v5266_v4, %v2754_v59 }
 0x93a   :  { %v2774_v1 = vadd.f32 %v5268_v41, %v2773_v37  ;;  %v2791_v10 = vmul.f32 %v5270_v6, %v2789_v9  ;;  %v5272_v14 = vpop.eup %5271  ;;  %vm2796_vm9 = vweird.f32 %v5270_v6 }
 0x93b   :  { %v2759_v32 = vsel %vm2758_vm5, %v5266_v4, %v2755_v39  ;;  %vm2797_vm11 = vmor %vm2795_vm10, %vm2796_vm9  ;;  %v2802_v4 = vor.u32 1.1754944e-38, %v2801_v35 }
 0x93c   :  { %v2764_v58 = vsel %vm2761_vm7, %v2763_v7, %v2759_v32  ;;  %v2778_v20 = vsel %vm2777_vm6, %v5268_v41, %v2774_v1  ;;  %v2792_v5 = vsub.f32 1.0, %v2791_v10 }
 0x93d   :  { %v2783_v26 = vsel %vm2780_vm8, %v2782_v33, %v2778_v20  ;;  %v2809_v45 = vmul.f32 %v5272_v14, %v2764_v58 }
 0x93e   :  { %v2808_v59 = vmul.f32 %v2806_v43, %v2783_v26  ;;  %v2793_v24 = vmul.f32 %v5270_v6, %v2792_v5  ;;  %v9791_v43 = vld [vmem:[#allocation70_spill] sm:$0xff] }
 0x940   :  { %v7942_v19 = vadd.f32 %v2809_v45, %v2808_v59  ;;  %v2794_v54 = vadd.f32 %v5270_v6, %v2793_v24  ;;  %v9790_v45 = vld [vmem:[#allocation68_spill] sm:$0xff] }
 0x942   :  { %5273 = vtanh.f32 %v7942_v19  ;;  %v2798_v57 = vsel %vm2797_vm11, %v5270_v6, %v2794_v54 }
 0x943   :  { %v2803_v41 = vsel %vm2800_vm12, %v2802_v4, %v2798_v57 }
 0x948   :  { %v5274_v1 = vpop.eup %5273 }
 0x949   :  { %v2812_v10 = vmul.f32 %v5274_v1, %v2803_v41 }
 0x94b   :  { %2813 = vst [vmem:[#allocation3 + $0x8] sm:$0x3] %v2812_v10  ;;  %2830 = vmatmul.f32.vlgmr.msra.gmra.mxu0 %v2812_v10  ;;  %2850 = vmatmul.f32.vlgmr.msra.gmra.mxu1 %v2812_v10 }
 0x94c   :  { %2870 = vmatmul.f32.vlgmr.msra.gmra.mxu2 %v2812_v10  ;;  %2890 = vmatmul.f32.vlgmr.msra.gmra.mxu3 %v2812_v10 }
 0x94d   :  { %3146 = vmatpush.msra.mxu0 %v7581_v18  ;;  %3166 = vmatpush.msra.mxu1 %v7584_v62  ;;  %v9762_v18 = vld [vmem:[#allocation64_spill] sm:$0xff]  ;;  %v9763_v62 = vld [vmem:[#allocation45_spill] sm:$0xff] }
 0x94e   :  { %3186 = vmatpush.msra.mxu2 %v7587_v34  ;;  %3206 = vmatpush.msra.mxu3 %v7590_v38  ;;  %v9764_v34 = vld [vmem:[#allocation40_spill] sm:$0xff] }
 0x94f   :  { %3147 = vmatpush.msra.mxu0 %v7593_v31  ;;  %3167 = vmatpush.msra.mxu1 %v7596_v25  ;;  %v9765_v38 = vld [vmem:[#allocation36_spill] sm:$0xff]  ;;  %v9767_v25 = vld [vmem:[#allocation54_spill] sm:$0xff] }
 0x950   :  { %3187 = vmatpush.msra.mxu2 %v7599_v50  ;;  %3207 = vmatpush.msra.mxu3 %v7602_v2  ;;  %v9766_v31 = vld [vmem:[#allocation48_spill] sm:$0xff]  ;;  %v9768_v50 = vld [vmem:[#allocation55_spill] sm:$0xff]  ;;  %v9769_v2 = vld [vmem:[#allocation49_spill] sm:$0xff] }
 0x951   :  { %3148 = vmatpush.msra.mxu0 %v7605_v44  ;;  %3168 = vmatpush.msra.mxu1 %v7608_v21  ;;  %v9770_v44 = vld [vmem:[#allocation41_spill] sm:$0xff]  ;;  %v9771_v21 = vld [vmem:[#allocation46_spill] sm:$0xff] }
 0x952   :  { %3188 = vmatpush.msra.mxu2 %v7611_v55  ;;  %3208 = vmatpush.msra.mxu3 %v7614_v11  ;;  %v9772_v55 = vld [vmem:[#allocation42_spill] sm:$0xff]  ;;  %v9773_v11 = vld [vmem:[#allocation37_spill] sm:$0xff] }
 0x953   :  { %3149 = vmatpush.msra.mxu0 %v7617_v16  ;;  %3169 = vmatpush.msra.mxu1 %v7620_v30  ;;  %v9774_v16 = vld [vmem:[#allocation50_spill] sm:$0xff]  ;;  %v9775_v30 = vld [vmem:[#allocation56_spill] sm:$0xff] }
 0x954   :  { %3189 = vmatpush.msra.mxu2 %v7623_v49  ;;  %3209 = vmatpush.msra.mxu3 %v7626_v3  ;;  %v9776_v49 = vld [vmem:[#allocation57_spill] sm:$0xff]  ;;  %v9777_v3 = vld [vmem:[#allocation51_spill] sm:$0xff] }
 0x955   :  { %3150 = vmatpush.msra.mxu0 %v7629_v17  ;;  %3170 = vmatpush.msra.mxu1 %v7632_v13  ;;  %v9778_v17 = vld [vmem:[#allocation43_spill] sm:$0xff] }
 0x956   :  { %3190 = vmatpush.msra.mxu2 %v7635_v22  ;;  %3210 = vmatpush.msra.mxu3 %v7638_v28  ;;  %v9779_v13 = vld [vmem:[#allocation47_spill] sm:$0xff]  ;;  %v9780_v22 = vld [vmem:[#allocation44_spill] sm:$0xff] }
 0x957   :  { %3151 = vmatpush.msra.mxu0 %v7641_v23  ;;  %3171 = vmatpush.msra.mxu1 %v7644_v60  ;;  %v9781_v28 = vld [vmem:[#allocation39_spill] sm:$0xff]  ;;  %v9782_v23 = vld [vmem:[#allocation52_spill] sm:$0xff]  ;;  %v9783_v60 = vld [vmem:[#allocation58_spill] sm:$0xff] }
 0x958   :  { %3191 = vmatpush.msra.mxu2 %v7647_v15  ;;  %3211 = vmatpush.msra.mxu3 %v7650_v63  ;;  %v9784_v15 = vld [vmem:[#allocation59_spill] sm:$0xff]  ;;  %v9785_v63 = vld [vmem:[#allocation61_spill] sm:$0xff] }
 0x959   :  { %3152 = vmatpush.msra.mxu0 %v7653_v0  ;;  %3172 = vmatpush.msra.mxu1 %v7656_v29  ;;  %v9786_v0 = vld [vmem:[#allocation53_spill] sm:$0xff] }
 0x95a   :  { %3192 = vmatpush.msra.mxu2 %v7659_v56  ;;  %3212 = vmatpush.msra.mxu3 %v7662_v8  ;;  %v9787_v29 = vld [vmem:[#allocation65_spill] sm:$0xff] }
 0x95b   :  { %3153 = vmatpush.msra.mxu0 %v7665_v36  ;;  %3173 = vmatpush.msra.mxu1 %v7668_v40 }
 0x95c   :  { %3193 = vmatpush.msra.mxu2 %v7671_v46  ;;  %3213 = vmatpush.msra.mxu3 %v7674_v47  ;;  %v9788_v46 = vld [vmem:[#allocation38_spill] sm:$0xff] }
 0x95d   :  { %3154 = vmatpush.msra.mxu0 %v7677_v52  ;;  %3174 = vmatpush.msra.mxu1 %v7680_v53  ;;  %v9789_v52 = vld [vmem:[#allocation63_spill] sm:$0xff] }
 0x95e   :  { %3194 = vmatpush.msra.mxu2 %v7683_v42  ;;  %3214 = vmatpush.msra.mxu3 %v7686_v61 }
 0x95f   :  { %3155 = vmatpush.msra.mxu0 %v7689_v51  ;;  %3175 = vmatpush.msra.mxu1 %v9693_v48 }
 0x960   :  { %3195 = vmatpush.msra.mxu2 %v9762_v18  ;;  %3215 = vmatpush.msra.mxu3 %v9763_v62 }
 0x961   :  { %3156 = vmatpush.msra.mxu0 %v9764_v34  ;;  %3176 = vmatpush.msra.mxu1 %v9765_v38 }
 0x962   :  { %3196 = vmatpush.msra.mxu2 %v9766_v31  ;;  %3216 = vmatpush.msra.mxu3 %v9767_v25  ;;  %v2969_v25 = vrot.slane %v7942_v19, 6 }
 0x963   :  { %3157 = vmatpush.msra.mxu0 %v9768_v50  ;;  %3177 = vmatpush.msra.mxu1 %v9769_v2 }
 0x964   :  { %3197 = vmatpush.msra.mxu2 %v9770_v44  ;;  %3217 = vmatpush.msra.mxu3 %v9771_v21 }
 0x965   :  { %3158 = vmatpush.msra.mxu0 %v9772_v55  ;;  %3178 = vmatpush.msra.mxu1 %v9773_v11 }
 0x966   :  { %3198 = vmatpush.msra.mxu2 %v9774_v16  ;;  %3218 = vmatpush.msra.mxu3 %v9775_v30 }
 0x967   :  { %3159 = vmatpush.msra.mxu0 %v9776_v49  ;;  %3179 = vmatpush.msra.mxu1 %v9777_v3 }
 0x968   :  { %3199 = vmatpush.msra.mxu2 %v9778_v17  ;;  %3219 = vmatpush.msra.mxu3 %v9779_v13 }
 0x969   :  { %3160 = vmatpush.msra.mxu0 %v9780_v22  ;;  %3180 = vmatpush.msra.mxu1 %v9781_v28 }
 0x96a   :  { %3200 = vmatpush.msra.mxu2 %v9782_v23  ;;  %3220 = vmatpush.msra.mxu3 %v9783_v60 }
 0x96b   :  { %3161 = vmatpush.msra.mxu0 %v9784_v15  ;;  %3181 = vmatpush.msra.mxu1 %v9785_v63 }
 0x96c   :  { %3201 = vmatpush.msra.mxu2 %v9786_v0  ;;  %3221 = vmatpush.msra.mxu3 %v9787_v29  ;;  %v3369_v29 = vld [vmem:[#allocation15 + $0x1e0] sm:$0xff] }
 0x9c8   :  { %v2831_v56 = vpop.f32.mrf.mxu0  ;;  %v2851_v8 = vpop.f32.mrf.mxu1 }
 0x9c9   :  { %v2898_v36 = vrot.slane %v2831_v56, 6  ;;  %v2899_v40 = vrot.slane %v2851_v8, 6  ;;  %v3370_v56 = vld [vmem:[#allocation15 + $0x1e8] sm:$0xff]  ;;  %v3371_v8 = vld [vmem:[#allocation15 + $0x1f0] sm:$0xff] }
 0x9cb   :  { %v2906_v47 = vadd.f32 %v2898_v36, %v9788_v46  ;;  %v2907_v53 = vadd.f32 %v2899_v40, %v9789_v52  ;;  %v3372_v36 = vld [vmem:[#allocation15 + $0x1f8] sm:$0xff]  ;;  %v3365_v40 = vld [vmem:[#allocation15 + $0x1c0] sm:$0xff] }
 0x9cd   :  { %v5013_v42 = vmul.f32 -1.442695, %v2906_v47  ;;  %v5014_v61 = vmul.f32 -1.442695, %v2907_v53  ;;  %v3366_v47 = vld [vmem:[#allocation15 + $0x1c8] sm:$0xff]  ;;  %v3367_v53 = vld [vmem:[#allocation15 + $0x1d0] sm:$0xff] }
 0x9cf   :  { %5275 = vpow2.f32 %v5013_v42  ;;  %v2891_v51 = vpop.f32.mrf.mxu3  ;;  %v2871_v6 = vpop.f32.mrf.mxu2  ;;  %v3368_v42 = vld [vmem:[#allocation15 + $0x1d8] sm:$0xff] }
 0x9d0   :  { %5277 = vpow2.f32 %v5014_v61  ;;  %v2901_v48 = vrot.slane %v2891_v51, 6  ;;  %v2900_v39 = vrot.slane %v2871_v6, 6  ;;  %v3361_v61 = vld [vmem:[#allocation15 + $0x1a0] sm:$0xff]  ;;  %v3362_v51 = vld [vmem:[#allocation15 + $0x1a8] sm:$0xff]  ;;  %v3360_v6 = vld [vmem:[#allocation15 + $0x198] sm:$0xff] }
 0x9d2   :  { %v2909_v26 = vadd.f32 %v2901_v48, %v9790_v45  ;;  %v2908_v14 = vadd.f32 %v2900_v39, %v9791_v43  ;;  %v3363_v48 = vld [vmem:[#allocation15 + $0x1b0] sm:$0xff] }
 0x9d4   :  { %v5015_v20 = vmul.f32 -1.442695, %v2909_v26  ;;  %v3364_v26 = vld [vmem:[#allocation15 + $0x1b8] sm:$0xff] }
 0x9d5   :  { %v5276_v58 = vpop.eup %5275 }
 0x9d6   :  { %v5278_v9 = vpop.eup %5277  ;;  %v2913_v37 = vadd.f32 1.0, %v5276_v58  ;;  %5279 = vpow2.f32 %v5015_v20  ;;  %v3357_v20 = vld [vmem:[#allocation15 + $0x180] sm:$0xff]  ;;  %v3358_v58 = vld [vmem:[#allocation15 + $0x188] sm:$0xff] }
 0x9d7   :  { %v2932_v27 = vadd.f32 1.0, %v5278_v9  ;;  %v3359_v9 = vld [vmem:[#allocation15 + $0x190] sm:$0xff] }
 0x9d8   :  { %5281 = vrcp.f32 %v2913_v37  ;;  %v2925_v12 = vand.u32 2147483648, %v2913_v37  ;;  %v2923_v1 = vand.u32 2147483647, %v2913_v37  ;;  %vm2919_vm15 = vweird.f32 %v2913_v37 }
 0x9d9   :  { %5283 = vrcp.f32 %v2932_v27  ;;  %v2944_v57 = vand.u32 2147483648, %v2932_v27  ;;  %v2942_v10 = vand.u32 2147483647, %v2932_v27  ;;  %vm2938_vm0 = vweird.f32 %v2932_v27 }
 0x9da   :  { %v2926_v34 = vor.u32 1.1754944e-38, %v2925_v12  ;;  %vm2924_vm3 = vcmp.eq.f32.partialorder %v2923_v1, 8.507059e+37  ;;  %v3351_v12 = vld [vmem:[#allocation15 + $0x150] sm:$0xff] }
 0x9db   :  { %v2945_v50 = vor.u32 1.1754944e-38, %v2944_v57  ;;  %vm2943_vm4 = vcmp.eq.f32.partialorder %v2942_v10, 8.507059e+37  ;;  %v3352_v57 = vld [vmem:[#allocation15 + $0x158] sm:$0xff]  ;;  %v3346_v10 = vld [vmem:[#allocation15 + $0x128] sm:$0xff] }
 0x9dc   :  { %v5280_v7 = vpop.eup %5279 }
 0x9dd   :  { %v2952_v33 = vadd.f32 1.0, %v5280_v7 }
 0x9de   :  { %v5282_v32 = vpop.eup %5281 }
 0x9df   :  { %v5284_v5 = vpop.eup %5283  ;;  %v2915_v59 = vmul.f32 %v5282_v32, %v2913_v37  ;;  %5285 = vrcp.f32 %v2952_v33  ;;  %vm2920_vm13 = vweird.f32 %v5282_v32  ;;  %v2964_v19 = vand.u32 2147483648, %v2952_v33 }
 0x9e0   :  { %v2934_v24 = vmul.f32 %v5284_v5, %v2932_v27  ;;  %5287 = vtanh.f32 %v2908_v14  ;;  %vm2939_vm14 = vweird.f32 %v5284_v5  ;;  %vm2921_vm1 = vmor %vm2919_vm15, %vm2920_vm13  ;;  %vm2958_vm6 = vweird.f32 %v2952_v33  ;;  %v3355_v14 = vld [vmem:[#allocation15 + $0x170] sm:$0xff] }
 0x9e1   :  { %v2916_v54 = vsub.f32 1.0, %v2915_v59  ;;  %vm2940_vm2 = vmor %vm2938_vm0, %vm2939_vm14  ;;  %v2962_v22 = vand.u32 2147483647, %v2952_v33  ;;  %v2965_v23 = vor.u32 1.1754944e-38, %v2964_v19  ;;  %v3329_v19 = vld [vmem:[#allocation15 + $0xa0] sm:$0xff] }
 0x9e2   :  { %v2935_v35 = vsub.f32 1.0, %v2934_v24 }
 0x9e3   :  { %v2917_v4 = vmul.f32 %v5282_v32, %v2916_v54  ;;  %vm2963_vm8 = vcmp.eq.f32.partialorder %v2962_v22, 8.507059e+37  ;;  %v3349_v54 = vld [vmem:[#allocation15 + $0x140] sm:$0xff]  ;;  %v3330_v22 = vld [vmem:[#allocation15 + $0xa8] sm:$0xff] }
 0x9e4   :  { %v2936_v41 = vmul.f32 %v5284_v5, %v2935_v35  ;;  %v3350_v35 = vld [vmem:[#allocation15 + $0x148] sm:$0xff] }
 0x9e5   :  { %v5286_v18 = vpop.eup %5285  ;;  %v2918_v62 = vadd.f32 %v5282_v32, %v2917_v4 }
 0x9e6   :  { %v2937_v38 = vadd.f32 %v5284_v5, %v2936_v41  ;;  %v2954_v31 = vmul.f32 %v5286_v18, %v2952_v33  ;;  %v5288_v44 = vpop.eup %5287  ;;  %vm2959_vm5 = vweird.f32 %v5286_v18  ;;  %v3353_v33 = vld [vmem:[#allocation15 + $0x160] sm:$0xff] }
 0x9e7   :  { %v2922_v2 = vsel %vm2921_vm1, %v5282_v32, %v2918_v62  ;;  %vm2960_vm7 = vmor %vm2958_vm6, %vm2959_vm5  ;;  %v3354_v32 = vld [vmem:[#allocation15 + $0x168] sm:$0xff]  ;;  %v3345_v41 = vld [vmem:[#allocation15 + $0x120] sm:$0xff] }
 0x9e8   :  { %v2927_v21 = vsel %vm2924_vm3, %v2926_v34, %v2922_v2  ;;  %v2941_v55 = vsel %vm2940_vm2, %v5284_v5, %v2937_v38  ;;  %v2955_v11 = vsub.f32 1.0, %v2954_v31  ;;  %v3356_v5 = vld [vmem:[#allocation15 + $0x178] sm:$0xff]  ;;  %v3341_v34 = vld [vmem:[#allocation15 + $0x100] sm:$0xff]  ;;  %v3342_v31 = vld [vmem:[#allocation15 + $0x108] sm:$0xff] }
 0x9e9   :  { %v2946_v16 = vsel %vm2943_vm4, %v2945_v50, %v2941_v55  ;;  %v2972_v30 = vmul.f32 %v5288_v44, %v2927_v21  ;;  %v3348_v62 = vld [vmem:[#allocation15 + $0x138] sm:$0xff]  ;;  %v3337_v44 = vld [vmem:[#allocation15 + $0xe0] sm:$0xff]  ;;  %v3338_v21 = vld [vmem:[#allocation15 + $0xe8] sm:$0xff] }
 0x9ea   :  { %v2971_v49 = vmul.f32 %v2969_v25, %v2946_v16  ;;  %v2956_v3 = vmul.f32 %v5286_v18, %v2955_v11  ;;  %v3343_v25 = vld [vmem:[#allocation15 + $0x110] sm:$0xff]  ;;  %v3344_v50 = vld [vmem:[#allocation15 + $0x118] sm:$0xff]  ;;  %v3333_v16 = vld [vmem:[#allocation15 + $0xc0] sm:$0xff] }
 0x9eb   :  { %v3339_v55 = vld [vmem:[#allocation15 + $0xf0] sm:$0xff]  ;;  %v3340_v11 = vld [vmem:[#allocation15 + $0xf8] sm:$0xff] }
 0x9ec   :  { %v8014_v17 = vadd.f32 %v2972_v30, %v2971_v49  ;;  %v2957_v13 = vadd.f32 %v5286_v18, %v2956_v3  ;;  %v3334_v30 = vld [vmem:[#allocation15 + $0xc8] sm:$0xff]  ;;  %v3335_v3 = vld [vmem:[#allocation15 + $0xd0] sm:$0xff] }
 0x9ee   :  { %5289 = vtanh.f32 %v8014_v17  ;;  %v2961_v28 = vsel %vm2960_vm7, %v5286_v18, %v2957_v13  ;;  %v3347_v18 = vld [vmem:[#allocation15 + $0x130] sm:$0xff]  ;;  %v3336_v13 = vld [vmem:[#allocation15 + $0xd8] sm:$0xff] }
 0x9ef   :  { %v2966_v15 = vsel %vm2963_vm8, %v2965_v23, %v2961_v28  ;;  %v3331_v23 = vld [vmem:[#allocation15 + $0xb0] sm:$0xff] }
 0x9f4   :  { %v5290_v60 = vpop.eup %5289 }
 0x9f5   :  { %v2975_v63 = vmul.f32 %v5290_v60, %v2966_v15  ;;  %v3332_v60 = vld [vmem:[#allocation15 + $0xb8] sm:$0xff] }
 0x9f7   :  { %2976 = vst [vmem:[#allocation3 + $0x8] sm:$0xc] %v2975_v63  ;;  %v2978_v0 = vrot.slane %v2975_v63, 2  ;;  %v3325_v63 = vld [vmem:[#allocation15 + $0x80] sm:$0xff] }
 0x9f9   :  { %2996 = vmatmul.f32.vlgmr.msrb.gmra.mxu0 %v2978_v0  ;;  %3016 = vmatmul.f32.vlgmr.msrb.gmra.mxu1 %v2978_v0 }
 0x9fa   :  { %3036 = vmatmul.f32.vlgmr.msrb.gmra.mxu2 %v2978_v0  ;;  %3056 = vmatmul.f32.vlgmr.msrb.gmra.mxu3 %v2978_v0  ;;  %v3326_v0 = vld [vmem:[#allocation15 + $0x88] sm:$0xff] }
 0x9fb   :  { %3449 = vmatpush.msrb.mxu0 %v3369_v29  ;;  %3472 = vmatpush.msrb.mxu1 %v3370_v56 }
 0x9fc   :  { %3495 = vmatpush.msrb.mxu2 %v3371_v8  ;;  %3518 = vmatpush.msrb.mxu3 %v3372_v36  ;;  %v3327_v8 = vld [vmem:[#allocation15 + $0x90] sm:$0xff]  ;;  %v3328_v36 = vld [vmem:[#allocation15 + $0x98] sm:$0xff] }
 0x9fd   :  { %3450 = vmatpush.msrb.mxu0 %v3365_v40  ;;  %3473 = vmatpush.msrb.mxu1 %v3366_v47 }
 0x9fe   :  { %3496 = vmatpush.msrb.mxu2 %v3367_v53  ;;  %3519 = vmatpush.msrb.mxu3 %v3368_v42  ;;  %v3321_v42 = vld [vmem:[#allocation15 + $0x60] sm:$0xff] }
 0x9ff   :  { %3451 = vmatpush.msrb.mxu0 %v3361_v61  ;;  %3474 = vmatpush.msrb.mxu1 %v3362_v51  ;;  %v3322_v61 = vld [vmem:[#allocation15 + $0x68] sm:$0xff]  ;;  %v3323_v51 = vld [vmem:[#allocation15 + $0x70] sm:$0xff] }
 0xa00   :  { %3497 = vmatpush.msrb.mxu2 %v3363_v48  ;;  %3520 = vmatpush.msrb.mxu3 %v3364_v26  ;;  %v3324_v48 = vld [vmem:[#allocation15 + $0x78] sm:$0xff]  ;;  %v3317_v26 = vld [vmem:[#allocation15 + $0x40] sm:$0xff] }
 0xa01   :  { %3452 = vmatpush.msrb.mxu0 %v3357_v20  ;;  %3475 = vmatpush.msrb.mxu1 %v3358_v58  ;;  %v3318_v20 = vld [vmem:[#allocation15 + $0x48] sm:$0xff] }
 0xa02   :  { %3498 = vmatpush.msrb.mxu2 %v3359_v9  ;;  %3521 = vmatpush.msrb.mxu3 %v3360_v6  ;;  %v3319_v9 = vld [vmem:[#allocation15 + $0x50] sm:$0xff] }
 0xa03   :  { %3453 = vmatpush.msrb.mxu0 %v3353_v33  ;;  %3476 = vmatpush.msrb.mxu1 %v3354_v32  ;;  %v3316_v33 = vld [vmem:[#allocation15 + $0x38] sm:$0xff] }
 0xa04   :  { %3499 = vmatpush.msrb.mxu2 %v3355_v14  ;;  %3522 = vmatpush.msrb.mxu3 %v3356_v5  ;;  %v3309_v5 = vld [vmem:[#allocation15] sm:$0xff] }
 0xa05   :  { %3454 = vmatpush.msrb.mxu0 %v3349_v54  ;;  %3477 = vmatpush.msrb.mxu1 %v3350_v35  ;;  %v3311_v35 = vld [vmem:[#allocation15 + $0x10] sm:$0xff] }
 0xa06   :  { %3500 = vmatpush.msrb.mxu2 %v3351_v12  ;;  %3523 = vmatpush.msrb.mxu3 %v3352_v57  ;;  %v3312_v12 = vld [vmem:[#allocation15 + $0x18] sm:$0xff] }
 0xa07   :  { %3455 = vmatpush.msrb.mxu0 %v3345_v41  ;;  %3478 = vmatpush.msrb.mxu1 %v3346_v10 }
 0xa08   :  { %3501 = vmatpush.msrb.mxu2 %v3347_v18  ;;  %3524 = vmatpush.msrb.mxu3 %v3348_v62 }
 0xa09   :  { %3456 = vmatpush.msrb.mxu0 %v3341_v34  ;;  %3479 = vmatpush.msrb.mxu1 %v3342_v31 }
 0xa0a   :  { %3502 = vmatpush.msrb.mxu2 %v3343_v25  ;;  %3525 = vmatpush.msrb.mxu3 %v3344_v50 }
 0xa0b   :  { %3457 = vmatpush.msrb.mxu0 %v3337_v44  ;;  %3480 = vmatpush.msrb.mxu1 %v3338_v21  ;;  %v3135_v21 = vrot.slane %v8014_v17, 6 }
 0xa0c   :  { %3503 = vmatpush.msrb.mxu2 %v3339_v55  ;;  %3526 = vmatpush.msrb.mxu3 %v3340_v11 }
 0xa0d   :  { %3458 = vmatpush.msrb.mxu0 %v3333_v16  ;;  %3481 = vmatpush.msrb.mxu1 %v3334_v30 }
 0xa0e   :  { %3504 = vmatpush.msrb.mxu2 %v3335_v3  ;;  %3527 = vmatpush.msrb.mxu3 %v3336_v13 }
 0xa0f   :  { %3459 = vmatpush.msrb.mxu0 %v3329_v19  ;;  %3482 = vmatpush.msrb.mxu1 %v3330_v22 }
 0xa10   :  { %3505 = vmatpush.msrb.mxu2 %v3331_v23  ;;  %3528 = vmatpush.msrb.mxu3 %v3332_v60 }
 0xa11   :  { %3460 = vmatpush.msrb.mxu0 %v3325_v63  ;;  %3483 = vmatpush.msrb.mxu1 %v3326_v0 }
 0xa12   :  { %3506 = vmatpush.msrb.mxu2 %v3327_v8  ;;  %3529 = vmatpush.msrb.mxu3 %v3328_v36 }
 0xa13   :  { %3461 = vmatpush.msrb.mxu0 %v3321_v42  ;;  %3484 = vmatpush.msrb.mxu1 %v3322_v61 }
 0xa14   :  { %3507 = vmatpush.msrb.mxu2 %v3323_v51  ;;  %3530 = vmatpush.msrb.mxu3 %v3324_v48  ;;  %v8046_v51 = vld [vmem:[#allocation16 + $0x1e0] sm:$0xff]  ;;  %v8048_v48 = vld [vmem:[#allocation16 + $0x1e8] sm:$0xff] }
 0xa15   :  { %3462 = vmatpush.msrb.mxu0 %v3317_v26  ;;  %3485 = vmatpush.msrb.mxu1 %v3318_v20  ;;  %v8050_v26 = vld [vmem:[#allocation16 + $0x1f0] sm:$0xff]  ;;  %v8054_v20 = vld [vmem:[#allocation16 + $0x1f8] sm:$0xff] }
 0xa16   :  { %3508 = vmatpush.msrb.mxu2 %v3319_v9 }
 0xa76   :  { %v2997_v37 = vpop.f32.mrf.mxu0  ;;  %v3017_v27 = vpop.f32.mrf.mxu1 }
 0xa77   :  { %v3064_v39 = vrot.slane %v2997_v37, 4  ;;  %v3065_v7 = vrot.slane %v3017_v27, 4  ;;  %v3320_v37 = vld [vmem:[#allocation15 + $0x58] sm:$0xff]  ;;  %v3313_v27 = vld [vmem:[#allocation15 + $0x20] sm:$0xff] }
 0xa78   :  { %3531 = vmatpush.msrb.mxu3 %v3320_v37  ;;  %3463 = vmatpush.msrb.mxu0 %v3313_v27  ;;  %v8060_v37 = vld [vmem:[#allocation16 + $0x1c0] sm:$0xff]  ;;  %v8062_v27 = vld [vmem:[#allocation16 + $0x1c8] sm:$0xff] }
 0xa79   :  { %v3072_v59 = vadd.f32 %v3064_v39, %v9788_v46  ;;  %v3073_v24 = vadd.f32 %v3065_v7, %v9789_v52  ;;  %v3314_v39 = vld [vmem:[#allocation15 + $0x28] sm:$0xff]  ;;  %v3315_v7 = vld [vmem:[#allocation15 + $0x30] sm:$0xff] }
 0xa7a   :  { %3486 = vmatpush.msrb.mxu1 %v3314_v39  ;;  %3509 = vmatpush.msrb.mxu2 %v3315_v7  ;;  %v8068_v39 = vld [vmem:[#allocation16 + $0x1d8] sm:$0xff] }
 0xa7b   :  { %v5016_v4 = vmul.f32 -1.442695, %v3072_v59  ;;  %v5017_v1 = vmul.f32 -1.442695, %v3073_v24  ;;  %v3310_v59 = vld [vmem:[#allocation15 + $0x8] sm:$0xff]  ;;  %3532 = vmatpush.msrb.mxu3 %v3316_v33  ;;  %3464 = vmatpush.msrb.mxu0 %v3309_v5 }
 0xa7c   :  { %3487 = vmatpush.msrb.mxu1 %v3310_v59  ;;  %3510 = vmatpush.msrb.mxu2 %v3311_v35  ;;  %v8074_v33 = vld [vmem:[#allocation16 + $0x1a8] sm:$0xff]  ;;  %v8084_v59 = vld [vmem:[#allocation16 + $0x180] sm:$0xff] }
 0xa7d   :  { %5291 = vpow2.f32 %v5016_v4  ;;  %v3057_v38 = vpop.f32.mrf.mxu3  ;;  %v3037_v47 = vpop.f32.mrf.mxu2  ;;  %3533 = vmatpush.msrb.mxu3 %v3312_v12  ;;  %v8092_v12 = vld [vmem:[#allocation16 + $0x198] sm:$0xff] }
 0xa7e   :  { %5293 = vpow2.f32 %v5017_v1  ;;  %v3067_v2 = vrot.slane %v3057_v38, 4  ;;  %v3066_v53 = vrot.slane %v3037_v47, 4 }
 0xa80   :  { %v3075_v49 = vadd.f32 %v3067_v2, %v9790_v45  ;;  %v3074_v14 = vadd.f32 %v3066_v53, %v9791_v43 }
 0xa82   :  { %v5018_v28 = vmul.f32 -1.442695, %v3075_v49 }
 0xa83   :  { %v5292_v15 = vpop.eup %5291 }
 0xa84   :  { %v5294_v29 = vpop.eup %5293  ;;  %v8020_v56 = vadd.f32 1.0, %v5292_v15  ;;  %5295 = vpow2.f32 %v5018_v28 }
 0xa85   :  { %v8022_v40 = vadd.f32 1.0, %v5294_v29 }
 0xa86   :  { %5297 = vrcp.f32 %v8020_v56  ;;  %v3091_v41 = vand.u32 2147483648, %v8020_v56  ;;  %v3089_v62 = vand.u32 2147483647, %v8020_v56  ;;  %vm3085_vm11 = vweird.f32 %v8020_v56 }
 0xa87   :  { %5299 = vrcp.f32 %v8022_v40  ;;  %v3110_v10 = vand.u32 2147483648, %v8022_v40  ;;  %v3108_v38 = vand.u32 2147483647, %v8022_v40  ;;  %vm3104_vm12 = vweird.f32 %v8022_v40 }
 0xa88   :  { %v3092_v50 = vor.u32 1.1754944e-38, %v3091_v41  ;;  %vm3090_vm15 = vcmp.eq.f32.partialorder %v3089_v62, 8.507059e+37  ;;  %v8111_v62 = vld [vmem:[#allocation16 + $0x148] sm:$0xff] }
 0xa89   :  { %v3111_v55 = vor.u32 1.1754944e-38, %v3110_v10  ;;  %vm3109_vm0 = vcmp.eq.f32.partialorder %v3108_v38, 8.507059e+37  ;;  %v8105_v10 = vld [vmem:[#allocation16 + $0x178] sm:$0xff] }
 0xa8a   :  { %v5296_v58 = vpop.eup %5295 }
 0xa8b   :  { %v8026_v6 = vadd.f32 1.0, %v5296_v58 }
 0xa8c   :  { %v5298_v32 = vpop.eup %5297 }
 0xa8d   :  { %v5300_v24 = vpop.eup %5299  ;;  %v3081_v54 = vmul.f32 %v5298_v32, %v8020_v56  ;;  %5301 = vrcp.f32 %v8026_v6  ;;  %vm3086_vm9 = vweird.f32 %v5298_v32  ;;  %v3130_v17 = vand.u32 2147483648, %v8026_v6 }
 0xa8e   :  { %v3100_v57 = vmul.f32 %v5300_v24, %v8022_v40  ;;  %5303 = vtanh.f32 %v3074_v14  ;;  %vm3105_vm10 = vweird.f32 %v5300_v24  ;;  %vm3087_vm13 = vmor %vm3085_vm11, %vm3086_vm9  ;;  %vm3124_vm2 = vweird.f32 %v8026_v6  ;;  %v3438_v40 = vld [vmem:[#allocation3] sm:$0xff] }
 0xa8f   :  { %v3082_v4 = vsub.f32 1.0, %v3081_v54  ;;  %vm3106_vm14 = vmor %vm3104_vm12, %vm3105_vm10  ;;  %v3128_v15 = vand.u32 2147483647, %v8026_v6  ;;  %v3131_v0 = vor.u32 1.1754944e-38, %v3130_v17  ;;  %v8080_v14 = vld [vmem:[#allocation16 + $0x1b8] sm:$0xff]  ;;  %v8088_v54 = vld [vmem:[#allocation16 + $0x190] sm:$0xff] }
 0xa90   :  { %v3101_v1 = vsub.f32 1.0, %v3100_v57  ;;  %v8096_v57 = vld [vmem:[#allocation16 + $0x160] sm:$0xff] }
 0xa91   :  { %v3083_v18 = vmul.f32 %v5298_v32, %v3082_v4  ;;  %vm3129_vm4 = vcmp.eq.f32.partialorder %v3128_v15, 8.507059e+37  ;;  %v8098_v4 = vld [vmem:[#allocation16 + $0x168] sm:$0xff]  ;;  %v8159_v17 = vld [vmem:[#allocation16 + $0xc0] sm:$0xff] }
 0xa92   :  { %v3102_v34 = vmul.f32 %v5300_v24, %v3101_v1  ;;  %v8100_v1 = vld [vmem:[#allocation16 + $0x170] sm:$0xff] }
 0xa93   :  { %v5302_v31 = vpop.eup %5301  ;;  %v3084_v25 = vadd.f32 %v5298_v32, %v3083_v18  ;;  %v8109_v18 = vld [vmem:[#allocation16 + $0x140] sm:$0xff] }
 0xa94   :  { %v3103_v2 = vadd.f32 %v5300_v24, %v3102_v34  ;;  %v3120_v44 = vmul.f32 %v5302_v31, %v8026_v6  ;;  %v5304_v16 = vpop.eup %5303  ;;  %vm3125_vm1 = vweird.f32 %v5302_v31  ;;  %v8064_v6 = vld [vmem:[#allocation16 + $0x1d0] sm:$0xff] }
 0xa95   :  { %v3088_v11 = vsel %vm3087_vm13, %v5298_v32, %v3084_v25  ;;  %vm3126_vm3 = vmor %vm3124_vm2, %vm3125_vm1  ;;  %v8078_v32 = vld [vmem:[#allocation16 + $0x1b0] sm:$0xff]  ;;  %v8121_v25 = vld [vmem:[#allocation16 + $0x120] sm:$0xff] }
 0xa96   :  { %v3093_v30 = vsel %vm3090_vm15, %v3092_v50, %v3088_v11  ;;  %v3107_v49 = vsel %vm3106_vm14, %v5300_v24, %v3103_v2  ;;  %v3121_v3 = vsub.f32 1.0, %v3120_v44  ;;  %v8086_v24 = vld [vmem:[#allocation16 + $0x188] sm:$0xff]  ;;  %v8113_v34 = vld [vmem:[#allocation16 + $0x150] sm:$0xff] }
 0xa97   :  { %v3112_v13 = vsel %vm3109_vm0, %v3111_v55, %v3107_v49  ;;  %v3138_v19 = vmul.f32 %v5304_v16, %v3093_v30  ;;  %v8123_v50 = vld [vmem:[#allocation16 + $0x128] sm:$0xff]  ;;  %v8125_v2 = vld [vmem:[#allocation16 + $0x130] sm:$0xff]  ;;  %v8131_v55 = vld [vmem:[#allocation16 + $0x138] sm:$0xff] }
 0xa98   :  { %v3137_v22 = vmul.f32 %v3135_v21, %v3112_v13  ;;  %v3122_v28 = vmul.f32 %v5302_v31, %v3121_v3  ;;  %v8137_v30 = vld [vmem:[#allocation16 + $0x100] sm:$0xff]  ;;  %v8139_v49 = vld [vmem:[#allocation16 + $0x108] sm:$0xff]  ;;  %v8141_v3 = vld [vmem:[#allocation16 + $0x110] sm:$0xff] }
 0xa99   :  { %v8146_v13 = vld [vmem:[#allocation16 + $0x118] sm:$0xff] }
 0xa9a   :  { %v8040_v23 = vadd.f32 %v3138_v19, %v3137_v22  ;;  %v3123_v60 = vadd.f32 %v5302_v31, %v3122_v28  ;;  %v8148_v19 = vld [vmem:[#allocation16 + $0xe0] sm:$0xff]  ;;  %v8150_v22 = vld [vmem:[#allocation16 + $0xe8] sm:$0xff]  ;;  %v8155_v28 = vld [vmem:[#allocation16 + $0xf0] sm:$0xff] }
 0xa9c   :  { %5305 = vtanh.f32 %v8040_v23  ;;  %v3127_v63 = vsel %vm3126_vm3, %v5302_v31, %v3123_v60  ;;  %v8157_v60 = vld [vmem:[#allocation16 + $0xf8] sm:$0xff] }
 0xa9d   :  { %v3132_v56 = vsel %vm3129_vm4, %v3131_v0, %v3127_v63  ;;  %v8163_v63 = vld [vmem:[#allocation16 + $0xc8] sm:$0xff]  ;;  %v8165_v0 = vld [vmem:[#allocation16 + $0xd0] sm:$0xff] }
 0xa9e   :  { %9792 = vst [vmem:[#allocation60_spill] sm:$0xff] %v8165_v0 }
 0xaa2   :  { %v5306_v29 = vpop.eup %5305 }
 0xaa3   :  { %v3141_v8 = vmul.f32 %v5306_v29, %v3132_v56  ;;  %v8167_v29 = vld [vmem:[#allocation16 + $0xd8] sm:$0xff]  ;;  %v8171_v56 = vld [vmem:[#allocation16 + $0xa0] sm:$0xff] }
 0xaa4   :  { %9793 = vst [vmem:[#allocation66_spill] sm:$0xff] %v8167_v29 }
 0xaa5   :  { %3142 = vst [vmem:[#allocation3 + $0x8] sm:$0x30] %v3141_v8  ;;  %v3144_v36 = vrot.slane %v3141_v8, 4  ;;  %v8173_v8 = vld [vmem:[#allocation16 + $0xa8] sm:$0xff] }
 0xaa6   :  { %9794 = vst [vmem:[#allocation67_spill] sm:$0xff] %v8171_v56 }
 0xaa7   :  { %3162 = vmatmul.f32.vlgmr.msra.gmra.mxu0 %v3144_v36  ;;  %3182 = vmatmul.f32.vlgmr.msra.gmra.mxu1 %v3144_v36  ;;  %9795 = vst [vmem:[#allocation62_spill] sm:$0xff] %v8173_v8 }
 0xaa8   :  { %3202 = vmatmul.f32.vlgmr.msra.gmra.mxu2 %v3144_v36  ;;  %3222 = vmatmul.f32.vlgmr.msra.gmra.mxu3 %v3144_v36 }
 0xaa9   :  { %3541 = vmatpush.msra.mxu0 %v8046_v51  ;;  %3561 = vmatpush.msra.mxu1 %v8048_v48 }
 0xaaa   :  { %3581 = vmatpush.msra.mxu2 %v8050_v26  ;;  %3601 = vmatpush.msra.mxu3 %v8054_v20 }
 0xaab   :  { %3542 = vmatpush.msra.mxu0 %v8060_v37  ;;  %3562 = vmatpush.msra.mxu1 %v8062_v27 }
 0xaac   :  { %3582 = vmatpush.msra.mxu2 %v8064_v6  ;;  %3602 = vmatpush.msra.mxu3 %v8068_v39 }
 0xaad   :  { %3563 = vmatpush.msra.mxu1 %v8074_v33 }
 0xaae   :  { %3583 = vmatpush.msra.mxu2 %v8078_v32  ;;  %3603 = vmatpush.msra.mxu3 %v8080_v14 }
 0xaaf   :  { %3465 = vmatmul.f32.vlgmr.msrb.gmra.mxu0 %v3438_v40  ;;  %3488 = vmatmul.f32.vlgmr.msrb.gmra.mxu1 %v3438_v40 }
 0xab0   :  { %3511 = vmatmul.f32.vlgmr.msrb.gmra.mxu2 %v3438_v40  ;;  %3534 = vmatmul.f32.vlgmr.msrb.gmra.mxu3 %v3438_v40  ;;  %v8177_v40 = vld [vmem:[#allocation16 + $0xb0] sm:$0xff] }
 0xab1   :  { %3564 = vmatpush.msra.mxu1 %v8086_v24  ;;  %3584 = vmatpush.msra.mxu2 %v8088_v54  ;;  %9796 = vst [vmem:[#allocation69_spill] sm:$0xff] %v8177_v40 }
 0xab2   :  { %3604 = vmatpush.msra.mxu3 %v8092_v12 }
 0xab3   :  { %3565 = vmatpush.msra.mxu1 %v8098_v4  ;;  %3585 = vmatpush.msra.mxu2 %v8100_v1 }
 0xab4   :  { %3605 = vmatpush.msra.mxu3 %v8105_v10 }
 0xab5   :  { %3566 = vmatpush.msra.mxu1 %v8111_v62  ;;  %3586 = vmatpush.msra.mxu2 %v8113_v34 }
 0xab7   :  { %3567 = vmatpush.msra.mxu1 %v8123_v50  ;;  %3587 = vmatpush.msra.mxu2 %v8125_v2 }
 0xab9   :  { %3568 = vmatpush.msra.mxu1 %v8139_v49  ;;  %3588 = vmatpush.msra.mxu2 %v8141_v3 }
 0xabb   :  { %3569 = vmatpush.msra.mxu1 %v8150_v22  ;;  %3589 = vmatpush.msra.mxu2 %v8155_v28 }
 0xabd   :  { %3570 = vmatpush.msra.mxu1 %v8163_v63  ;;  %3590 = vmatpush.msra.mxu2 %v8165_v0 }
 0xabf   :  { %3571 = vmatpush.msra.mxu1 %v8173_v8  ;;  %3591 = vmatpush.msra.mxu2 %v8177_v40  ;;  %v8245_v40 = vld [vmem:[#allocation16 + $0x30] sm:$0xff] }
 0xac0   :  { %9812 = vst [vmem:[#allocation51_spill] sm:$0xff] %v8245_v40 }
 0xb24   :  { %v3163_v47 = vpop.f32.mrf.mxu0  ;;  %v3183_v53 = vpop.f32.mrf.mxu1 }
 0xb25   :  { %v3230_v42 = vrot.slane %v3163_v47, 2  ;;  %v3231_v61 = vrot.slane %v3183_v53, 2  ;;  %v8179_v47 = vld [vmem:[#allocation16 + $0xb8] sm:$0xff] }
 0xb26   :  { %9797 = vst [vmem:[#allocation64_spill] sm:$0xff] %v8179_v47 }
 0xb27   :  { %v3238_v58 = vadd.f32 %v3230_v42, %v9788_v46  ;;  %v3239_v9 = vadd.f32 %v3231_v61, %v9789_v52  ;;  %v8072_v52 = vld [vmem:[#allocation16 + $0x1a0] sm:$0xff]  ;;  %v8187_v61 = vld [vmem:[#allocation16 + $0x88] sm:$0xff] }
 0xb28   :  { %3543 = vmatpush.msra.mxu0 %v8072_v52  ;;  %v8185_v42 = vld [vmem:[#allocation16 + $0x80] sm:$0xff]  ;;  %9799 = vst [vmem:[#allocation40_spill] sm:$0xff] %v8187_v61  ;;  %3572 = vmatpush.msra.mxu1 %v8187_v61 }
 0xb29   :  { %v5019_v7 = vmul.f32 -1.442695, %v3238_v58  ;;  %v5020_v46 = vmul.f32 -1.442695, %v3239_v9  ;;  %9798 = vst [vmem:[#allocation45_spill] sm:$0xff] %v8185_v42  ;;  %v8222_v61 = vld [vmem:[#allocation16 + $0x40] sm:$0xff] }
 0xb2a   :  { %3544 = vmatpush.msra.mxu0 %v8084_v59  ;;  %9806 = vst [vmem:[#allocation46_spill] sm:$0xff] %v8222_v61 }
 0xb2b   :  { %5307 = vpow2.f32 %v5019_v7  ;;  %v3223_v5 = vpop.f32.mrf.mxu3  ;;  %v3203_v16 = vpop.f32.mrf.mxu2  ;;  %v8194_v7 = vld [vmem:[#allocation16 + $0x90] sm:$0xff] }
 0xb2c   :  { %5309 = vpow2.f32 %v5020_v46  ;;  %v3233_v35 = vrot.slane %v3223_v5, 2  ;;  %3545 = vmatpush.msra.mxu0 %v8096_v57  ;;  %v3232_v15 = vrot.slane %v3203_v16, 2  ;;  %9800 = vst [vmem:[#allocation36_spill] sm:$0xff] %v8194_v7  ;;  %v8196_v46 = vld [vmem:[#allocation16 + $0x98] sm:$0xff]  ;;  %3592 = vmatpush.msra.mxu2 %v8194_v7 }
 0xb2d   :  { %9801 = vst [vmem:[#allocation48_spill] sm:$0xff] %v8196_v46  ;;  %v8217_v16 = vld [vmem:[#allocation16 + $0x78] sm:$0xff] }
 0xb2e   :  { %v3241_v41 = vadd.f32 %v3233_v35, %v9790_v45  ;;  %3546 = vmatpush.msra.mxu0 %v8109_v18  ;;  %v8117_v45 = vld [vmem:[#allocation16 + $0x158] sm:$0xff]  ;;  %v3240_v9 = vadd.f32 %v3232_v15, %v9791_v43  ;;  %9805 = vst [vmem:[#allocation41_spill] sm:$0xff] %v8217_v16 }
 0xb2f   :  { %3606 = vmatpush.msra.mxu3 %v8117_v45 }
 0xb30   :  { %v5021_v38 = vmul.f32 -1.442695, %v3241_v41  ;;  %3547 = vmatpush.msra.mxu0 %v8121_v25  ;;  %v8209_v41 = vld [vmem:[#allocation16 + $0x60] sm:$0xff] }
 0xb31   :  { %v5308_v31 = vpop.eup %5307  ;;  %3607 = vmatpush.msra.mxu3 %v8131_v55  ;;  %9802 = vst [vmem:[#allocation54_spill] sm:$0xff] %v8209_v41 }
 0xb32   :  { %v5310_v44 = vpop.eup %5309  ;;  %v8127_v21 = vadd.f32 1.0, %v5308_v31  ;;  %5311 = vpow2.f32 %v5021_v38  ;;  %3548 = vmatpush.msra.mxu0 %v8137_v30  ;;  %v8211_v38 = vld [vmem:[#allocation16 + $0x68] sm:$0xff] }
 0xb33   :  { %v8133_v11 = vadd.f32 1.0, %v5310_v44  ;;  %3608 = vmatpush.msra.mxu3 %v8146_v13  ;;  %9803 = vst [vmem:[#allocation55_spill] sm:$0xff] %v8211_v38  ;;  %v8215_v44 = vld [vmem:[#allocation16 + $0x70] sm:$0xff]  ;;  %3573 = vmatpush.msra.mxu1 %v8211_v38  ;;  %v8236_v38 = vld [vmem:[#allocation16 + $0x20] sm:$0xff] }
 0xb34   :  { %5313 = vrcp.f32 %v8127_v21  ;;  %3549 = vmatpush.msra.mxu0 %v8148_v19  ;;  %9804 = vst [vmem:[#allocation49_spill] sm:$0xff] %v8215_v44  ;;  %3593 = vmatpush.msra.mxu2 %v8215_v44  ;;  %v8247_v44 = vld [vmem:[#allocation16 + $0x38] sm:$0xff]  ;;  %vm3251_vm7 = vweird.f32 %v8127_v21 }
 0xb35   :  { %5315 = vrcp.f32 %v8133_v11  ;;  %3609 = vmatpush.msra.mxu3 %v8157_v60  ;;  %9810 = vst [vmem:[#allocation56_spill] sm:$0xff] %v8236_v38  ;;  %vm3270_vm8 = vweird.f32 %v8133_v11 }
 0xb36   :  { %3550 = vmatpush.msra.mxu0 %v8159_v17  ;;  %9813 = vst [vmem:[#allocation43_spill] sm:$0xff] %v8247_v44 }
 0xb37   :  { %3610 = vmatpush.msra.mxu3 %v8167_v29 }
 0xb38   :  { %v5312_v36 = vpop.eup %5311  ;;  %3551 = vmatpush.msra.mxu0 %v8171_v56  ;;  %v8257_v56 = vld [vmem:[#allocation16 + $0x8] sm:$0xff] }
 0xb39   :  { %v8181_v53 = vadd.f32 1.0, %v5312_v36  ;;  %3611 = vmatpush.msra.mxu3 %v8179_v47  ;;  %v3257_v36 = vand.u32 2147483648, %v8127_v21  ;;  %9815 = vst [vmem:[#allocation44_spill] sm:$0xff] %v8257_v56 }
 0xb3a   :  { %v8189_v58 = vpop.eup %5313  ;;  %3552 = vmatpush.msra.mxu0 %v8185_v42  ;;  %v8224_v42 = vld [vmem:[#allocation16 + $0x48] sm:$0xff] }
 0xb3b   :  { %v8198_v5 = vpop.eup %5315  ;;  %v3247_v35 = vmul.f32 %v8189_v58, %v8127_v21  ;;  %5317 = vrcp.f32 %v8181_v53  ;;  %3612 = vmatpush.msra.mxu3 %v8196_v46  ;;  %9807 = vst [vmem:[#allocation42_spill] sm:$0xff] %v8224_v42  ;;  %v3276_v46 = vand.u32 2147483648, %v8133_v11  ;;  %vm3252_vm5 = vweird.f32 %v8189_v58  ;;  %3574 = vmatpush.msra.mxu1 %v8224_v42 }
 0xb3c   :  { %v3266_v43 = vmul.f32 %v8198_v5, %v8133_v11  ;;  %5319 = vtanh.f32 %v3240_v9  ;;  %3553 = vmatpush.msra.mxu0 %v8209_v41  ;;  %v8234_v9 = vld [vmem:[#allocation16 + $0x58] sm:$0xff]  ;;  %v8238_v41 = vld [vmem:[#allocation16 + $0x28] sm:$0xff]  ;;  %vm3271_vm6 = vweird.f32 %v8198_v5  ;;  %vm8262_vm9 = vmor %vm3251_vm7, %vm3252_vm5  ;;  %vm3290_vm14 = vweird.f32 %v8181_v53 }
 0xb3d   :  { %v3248_v31 = vsub.f32 1.0, %v3247_v35  ;;  %v8226_v35 = vld [vmem:[#allocation16 + $0x50] sm:$0xff]  ;;  %3613 = vmatpush.msra.mxu3 %v8217_v16  ;;  %9809 = vst [vmem:[#allocation50_spill] sm:$0xff] %v8234_v9  ;;  %3575 = vmatpush.msra.mxu1 %v8238_v41  ;;  %vm3272_vm10 = vmor %vm3270_vm8, %vm3271_vm6  ;;  %v3277_v29 = vor.u32 1.1754944e-38, %v3276_v46 }
 0xb3e   :  { %v3267_v15 = vsub.f32 1.0, %v3266_v43  ;;  %9808 = vst [vmem:[#allocation37_spill] sm:$0xff] %v8226_v35  ;;  %v3255_v43 = vand.u32 2147483647, %v8127_v21  ;;  %3554 = vmatpush.msra.mxu0 %v8222_v61  ;;  %3594 = vmatpush.msra.mxu2 %v8226_v35  ;;  %v3258_v61 = vor.u32 1.1754944e-38, %v3257_v36  ;;  %v8273_v35 = vld [vmem:[#allocation16 + $0x18] sm:$0xff] }
 0xb3f   :  { %v3249_v7 = vmul.f32 %v8189_v58, %v3248_v31  ;;  %9811 = vst [vmem:[#allocation57_spill] sm:$0xff] %v8238_v41  ;;  %v3274_v31 = vand.u32 2147483647, %v8133_v11  ;;  %3614 = vmatpush.msra.mxu3 %v8234_v9  ;;  %v8271_v9 = vld [vmem:[#allocation16 + $0x10] sm:$0xff]  ;;  %v3301_v11 = vrot.slane %v8040_v23, 6  ;;  %3576 = vmatpush.msra.mxu1 %v8257_v56 }
 0xb40   :  { %v3268_v47 = vmul.f32 %v8198_v5, %v3267_v15  ;;  %v8255_v15 = vld [vmem:[#allocation16] sm:$0xff]  ;;  %3555 = vmatpush.msra.mxu0 %v8236_v38  ;;  %9818 = vst [vmem:[#allocation39_spill] sm:$0xff] %v8271_v9  ;;  %vm3256_vm11 = vcmp.eq.f32.partialorder %v3255_v43, 8.507059e+37  ;;  %3595 = vmatpush.msra.mxu2 %v8245_v40  ;;  %v9820_v43 = vld [vmem:[#allocation60_spill] sm:$0xff] }
 0xb41   :  { %v8249_v16 = vpop.eup %5317  ;;  %v3250_v8 = vadd.f32 %v8189_v58, %v3249_v7  ;;  %9814 = vst [vmem:[#allocation47_spill] sm:$0xff] %v8255_v15  ;;  %3615 = vmatpush.msra.mxu3 %v8247_v44  ;;  %vm3275_vm12 = vcmp.eq.f32.partialorder %v3274_v31, 8.507059e+37  ;;  %3708 = vmatpush.msrb.mxu1 %v8048_v48  ;;  %v9821_v31 = vld [vmem:[#allocation66_spill] sm:$0xff] }
 0xb42   :  { %v3269_v7 = vadd.f32 %v8198_v5, %v3268_v47  ;;  %v3286_v21 = vmul.f32 %v8249_v16, %v8181_v53  ;;  %9819 = vst [vmem:[#allocation52_spill] sm:$0xff] %v8273_v35  ;;  %v5320_v36 = vpop.eup %5319  ;;  %3556 = vmatpush.msra.mxu0 %v8255_v15  ;;  %3596 = vmatpush.msra.mxu2 %v8271_v9  ;;  %vm3291_vm13 = vweird.f32 %v8249_v16 }
 0xb43   :  { %v3254_v47 = vsel %vm8262_vm9, %v8189_v58, %v3250_v8  ;;  %3616 = vmatpush.msra.mxu3 %v8273_v35  ;;  %3709 = vmatpush.msrb.mxu1 %v8062_v27  ;;  %v3294_v58 = vand.u32 2147483647, %v8181_v53  ;;  %vm3292_vm15 = vmor %vm3290_vm14, %vm3291_vm13 }
 0xb44   :  { %v3259_v41 = vsel %vm3256_vm11, %v3258_v61, %v3254_v47  ;;  %v3273_v38 = vsel %vm3272_vm10, %v8198_v5, %v3269_v7  ;;  %v3287_v0 = vsub.f32 1.0, %v3286_v21  ;;  %3688 = vmatpush.msrb.mxu0 %v8046_v51  ;;  %3728 = vmatpush.msrb.mxu2 %v8050_v26  ;;  %v9822_v21 = vld [vmem:[#allocation67_spill] sm:$0xff]  ;;  %v9824_v47 = vld [vmem:[#allocation69_spill] sm:$0xff] }
 0xb45   :  { %v3278_v23 = vsel %vm3275_vm12, %v3277_v29, %v3273_v38  ;;  %v3304_v46 = vmul.f32 %v5320_v36, %v3259_v41  ;;  %3748 = vmatpush.msrb.mxu3 %v8054_v20  ;;  %3710 = vmatpush.msrb.mxu1 %v8074_v33  ;;  %vm3295_vm0 = vcmp.eq.f32.partialorder %v3294_v58, 8.507059e+37  ;;  %v9825_v36 = vld [vmem:[#allocation64_spill] sm:$0xff]  ;;  %v9833_v58 = vld [vmem:[#allocation41_spill] sm:$0xff] }
 0xb46   :  { %v3303_v8 = vmul.f32 %v3301_v11, %v3278_v23  ;;  %v3288_v42 = vmul.f32 %v8249_v16, %v3287_v0  ;;  %3689 = vmatpush.msrb.mxu0 %v8060_v37  ;;  %3729 = vmatpush.msrb.mxu2 %v8064_v6  ;;  %v3296_v0 = vand.u32 2147483648, %v8181_v53  ;;  %v9823_v11 = vld [vmem:[#allocation62_spill] sm:$0xff]  ;;  %v9826_v23 = vld [vmem:[#allocation45_spill] sm:$0xff] }
 0xb47   :  { %3749 = vmatpush.msrb.mxu3 %v8068_v39  ;;  %3711 = vmatpush.msrb.mxu1 %v8086_v24 }
 0xb48   :  { %v3305_v61 = vadd.f32 %v3304_v46, %v3303_v8  ;;  %v3289_v29 = vadd.f32 %v8249_v16, %v3288_v42  ;;  %3690 = vmatpush.msrb.mxu0 %v8072_v52  ;;  %3730 = vmatpush.msrb.mxu2 %v8078_v32  ;;  %v3297_v41 = vor.u32 1.1754944e-38, %v3296_v0  ;;  %v9827_v46 = vld [vmem:[#allocation40_spill] sm:$0xff]  ;;  %v9832_v0 = vld [vmem:[#allocation49_spill] sm:$0xff] }
 0xb49   :  { %3750 = vmatpush.msrb.mxu3 %v8080_v14  ;;  %3712 = vmatpush.msrb.mxu1 %v8098_v4  ;;  %v9828_v8 = vld [vmem:[#allocation36_spill] sm:$0xff] }
 0xb4a   :  { %5321 = vtanh.f32 %v3305_v61  ;;  %3691 = vmatpush.msrb.mxu0 %v8084_v59  ;;  %v3293_v5 = vsel %vm3292_vm15, %v8249_v16, %v3289_v29  ;;  %3731 = vmatpush.msrb.mxu2 %v8088_v54  ;;  %v9829_v42 = vld [vmem:[#allocation48_spill] sm:$0xff]  ;;  %v9830_v61 = vld [vmem:[#allocation54_spill] sm:$0xff]  ;;  %v9831_v29 = vld [vmem:[#allocation55_spill] sm:$0xff] }
 0xb4b   :  { %3751 = vmatpush.msrb.mxu3 %v8092_v12  ;;  %v3298_v38 = vsel %vm3295_vm0, %v3297_v41, %v3293_v5  ;;  %3713 = vmatpush.msrb.mxu1 %v8111_v62  ;;  %v9834_v5 = vld [vmem:[#allocation46_spill] sm:$0xff] }
 0xb4c   :  { %3692 = vmatpush.msrb.mxu0 %v8096_v57  ;;  %3732 = vmatpush.msrb.mxu2 %v8100_v1  ;;  %v9835_v41 = vld [vmem:[#allocation42_spill] sm:$0xff] }
 0xb4d   :  { %3752 = vmatpush.msrb.mxu3 %v8105_v10  ;;  %3714 = vmatpush.msrb.mxu1 %v8123_v50 }
 0xb4e   :  { %3693 = vmatpush.msrb.mxu0 %v8109_v18  ;;  %3733 = vmatpush.msrb.mxu2 %v8113_v34 }
 0xb4f   :  { %3753 = vmatpush.msrb.mxu3 %v8117_v45  ;;  %3715 = vmatpush.msrb.mxu1 %v8139_v49 }
 0xb50   :  { %v5322_v53 = vpop.eup %5321  ;;  %3694 = vmatpush.msrb.mxu0 %v8121_v25  ;;  %3734 = vmatpush.msrb.mxu2 %v8125_v2 }
 0xb51   :  { %v3307_v16 = vmul.f32 %v5322_v53, %v3298_v38  ;;  %3754 = vmatpush.msrb.mxu3 %v8131_v55  ;;  %3716 = vmatpush.msrb.mxu1 %v8150_v22  ;;  %v9836_v53 = vmov 0.0   ;;  %v9837_v38 = vld [vmem:[#allocation37_spill] sm:$0xff] }
 0xb52   :  { %3695 = vmatpush.msrb.mxu0 %v8137_v30  ;;  %3735 = vmatpush.msrb.mxu2 %v8141_v3 }
 0xb53   :  { %3308 = vst [vmem:[#allocation3 + $0x8] sm:$0xc0] %v3307_v16  ;;  %3755 = vmatpush.msrb.mxu3 %v8146_v13  ;;  %3717 = vmatpush.msrb.mxu1 %v8163_v63  ;;  %v9838_v16 = vld [vmem:[#allocation50_spill] sm:$0xff] }
 0xb54   :  { %3696 = vmatpush.msrb.mxu0 %v8148_v19  ;;  %3736 = vmatpush.msrb.mxu2 %v8155_v28 }
 0xb55   :  { %3756 = vmatpush.msrb.mxu3 %v8157_v60  ;;  %3718 = vmatpush.msrb.mxu1 %v9823_v11 }
 0xb56   :  { %3697 = vmatpush.msrb.mxu0 %v8159_v17  ;;  %3737 = vmatpush.msrb.mxu2 %v9820_v43 }
 0xb57   :  { %3757 = vmatpush.msrb.mxu3 %v9821_v31  ;;  %3719 = vmatpush.msrb.mxu1 %v9827_v46 }
 0xb58   :  { %3698 = vmatpush.msrb.mxu0 %v9822_v21  ;;  %3738 = vmatpush.msrb.mxu2 %v9824_v47 }
 0xb59   :  { %3758 = vmatpush.msrb.mxu3 %v9825_v36  ;;  %3720 = vmatpush.msrb.mxu1 %v9831_v29 }
 0xb5a   :  { %v3439_v7 = vld [vmem:[#allocation3 + $0x8] sm:$0xff]  ;;  %3699 = vmatpush.msrb.mxu0 %v9826_v23  ;;  %3739 = vmatpush.msrb.mxu2 %v9828_v8 }
 0xb5b   :  { %3468 = vmatmul.f32.gmra.mxu0 %v3439_v7  ;;  %3491 = vmatmul.f32.gmra.mxu1 %v3439_v7 }
 0xb5c   :  { %3514 = vmatmul.f32.gmra.mxu2 %v3439_v7  ;;  %3537 = vmatmul.f32.gmra.mxu3 %v3439_v7  ;;  %v9839_v7 = vld [vmem:[#allocation56_spill] sm:$0xff] }
 0xb5d   :  { %3759 = vmatpush.msrb.mxu3 %v9829_v42  ;;  %3700 = vmatpush.msrb.mxu0 %v9830_v61 }
 0xb5e   :  { %3740 = vmatpush.msrb.mxu2 %v9832_v0  ;;  %3721 = vmatpush.msrb.mxu1 %v9835_v41  ;;  %v9840_v0 = vld [vmem:[#allocation57_spill] sm:$0xff] }
 0xb5f   :  { %3760 = vmatpush.msrb.mxu3 %v9833_v58  ;;  %3701 = vmatpush.msrb.mxu0 %v9834_v5 }
 0xb60   :  { %3741 = vmatpush.msrb.mxu2 %v9837_v38  ;;  %3722 = vmatpush.msrb.mxu1 %v9840_v0 }
 0xb61   :  { %3761 = vmatpush.msrb.mxu3 %v9838_v16  ;;  %3702 = vmatpush.msrb.mxu0 %v9839_v7 }
 0xb62   :  { %3742 = vmatpush.msrb.mxu2 %v8245_v40  ;;  %3723 = vmatpush.msrb.mxu1 %v8257_v56 }
 0xb63   :  { %3557 = vmatmul.f32.vlgmr.msra.gmra.mxu0 %v9836_v53  ;;  %3577 = vmatmul.f32.vlgmr.msra.gmra.mxu1 %v9836_v53 }
 0xb64   :  { %3597 = vmatmul.f32.vlgmr.msra.gmra.mxu2 %v9836_v53  ;;  %3617 = vmatmul.f32.vlgmr.msra.gmra.mxu3 %v9836_v53  ;;  %v9841_v53 = vld [vmem:[#allocation49_spill] sm:$0xff] }
 0xb65   :  { %3762 = vmatpush.msrb.mxu3 %v8247_v44  ;;  %3703 = vmatpush.msrb.mxu0 %v8255_v15 }
 0xb66   :  { %3743 = vmatpush.msrb.mxu2 %v8271_v9  ;;  %3873 = vmatpush.msra.mxu1 %v8048_v48 }
 0xb67   :  { %3763 = vmatpush.msrb.mxu3 %v8273_v35  ;;  %3853 = vmatpush.msra.mxu0 %v8046_v51 }
 0xb68   :  { %3893 = vmatpush.msra.mxu2 %v8050_v26  ;;  %3874 = vmatpush.msra.mxu1 %v8062_v27 }
 0xb69   :  { %3913 = vmatpush.msra.mxu3 %v8054_v20  ;;  %3854 = vmatpush.msra.mxu0 %v8060_v37 }
 0xb6a   :  { %3894 = vmatpush.msra.mxu2 %v8064_v6  ;;  %3875 = vmatpush.msra.mxu1 %v8074_v33 }
 0xb6b   :  { %3914 = vmatpush.msra.mxu3 %v8068_v39  ;;  %3855 = vmatpush.msra.mxu0 %v8072_v52 }
 0xb6c   :  { %3895 = vmatpush.msra.mxu2 %v8078_v32  ;;  %3876 = vmatpush.msra.mxu1 %v8086_v24 }
 0xb6d   :  { %3915 = vmatpush.msra.mxu3 %v8080_v14  ;;  %3856 = vmatpush.msra.mxu0 %v8084_v59 }
 0xb6e   :  { %3896 = vmatpush.msra.mxu2 %v8088_v54  ;;  %3877 = vmatpush.msra.mxu1 %v8098_v4 }
 0xb6f   :  { %3916 = vmatpush.msra.mxu3 %v8092_v12  ;;  %3857 = vmatpush.msra.mxu0 %v8096_v57 }
 0xb70   :  { %3897 = vmatpush.msra.mxu2 %v8100_v1  ;;  %3878 = vmatpush.msra.mxu1 %v8111_v62 }
 0xb71   :  { %3917 = vmatpush.msra.mxu3 %v8105_v10  ;;  %3858 = vmatpush.msra.mxu0 %v8109_v18 }
 0xb72   :  { %3898 = vmatpush.msra.mxu2 %v8113_v34  ;;  %3879 = vmatpush.msra.mxu1 %v8123_v50 }
 0xb73   :  { %3918 = vmatpush.msra.mxu3 %v8117_v45  ;;  %3859 = vmatpush.msra.mxu0 %v8121_v25 }
 0xb74   :  { %3899 = vmatpush.msra.mxu2 %v8125_v2  ;;  %3880 = vmatpush.msra.mxu1 %v8139_v49 }
 0xb75   :  { %3919 = vmatpush.msra.mxu3 %v8131_v55  ;;  %3860 = vmatpush.msra.mxu0 %v8137_v30 }
 0xb76   :  { %3900 = vmatpush.msra.mxu2 %v8141_v3  ;;  %3881 = vmatpush.msra.mxu1 %v8150_v22 }
 0xb77   :  { %3920 = vmatpush.msra.mxu3 %v8146_v13  ;;  %3861 = vmatpush.msra.mxu0 %v8148_v19 }
 0xb78   :  { %3901 = vmatpush.msra.mxu2 %v8155_v28  ;;  %3882 = vmatpush.msra.mxu1 %v8163_v63 }
 0xb79   :  { %3921 = vmatpush.msra.mxu3 %v8157_v60  ;;  %3862 = vmatpush.msra.mxu0 %v8159_v17 }
 0xb7a   :  { %3902 = vmatpush.msra.mxu2 %v9820_v43  ;;  %3883 = vmatpush.msra.mxu1 %v9823_v11 }
 0xb7b   :  { %3922 = vmatpush.msra.mxu3 %v9821_v31  ;;  %3863 = vmatpush.msra.mxu0 %v9822_v21 }
 0xb7c   :  { %3903 = vmatpush.msra.mxu2 %v9824_v47  ;;  %3884 = vmatpush.msra.mxu1 %v9827_v46 }
 0xb7d   :  { %3923 = vmatpush.msra.mxu3 %v9825_v36  ;;  %3864 = vmatpush.msra.mxu0 %v9826_v23 }
 0xb7e   :  { %3904 = vmatpush.msra.mxu2 %v9828_v8  ;;  %3885 = vmatpush.msra.mxu1 %v9831_v29 }
 0xb7f   :  { %3924 = vmatpush.msra.mxu3 %v9829_v42  ;;  %3865 = vmatpush.msra.mxu0 %v9830_v61 }
 0xb80   :  { %3905 = vmatpush.msra.mxu2 %v9841_v53  ;;  %3886 = vmatpush.msra.mxu1 %v9835_v41  ;;  %v3466_v41 = vpop.f32.mrf.mxu0 }
 0xb81   :  { %3925 = vmatpush.msra.mxu3 %v9833_v58  ;;  %3866 = vmatpush.msra.mxu0 %v9834_v5  ;;  %v3535_v5 = vpop.f32.mrf.mxu3 }
 0xb82   :  { %3906 = vmatpush.msra.mxu2 %v9837_v38  ;;  %3887 = vmatpush.msra.mxu1 %v9840_v0  ;;  %v3489_v38 = vpop.f32.mrf.mxu1 }
 0xb83   :  { %3926 = vmatpush.msra.mxu3 %v9838_v16  ;;  %3867 = vmatpush.msra.mxu0 %v9839_v7  ;;  %v8430_v7 = vld [vmem:[%s9011_s9] sm:$0xf]  ;;  %s6016_s9 = smov [#allocation24]  }
 0xb84   :  { %3907 = vmatpush.msra.mxu2 %v8245_v40  ;;  %3888 = vmatpush.msra.mxu1 %v8257_v56  ;;  %9842 = vst [vmem:[#allocation58_spill] sm:$0xff] %v8430_v7  ;;  %v9347_v56 = vperm.slane %v8430_v7, 1  ;;  %v9352_v29 = vperm.slane %v8430_v7, 3  ;;  %s4932_s11 = sshll.u32 %s6016_s9, 4  ;;  %s4933_s11 = int_to_ptr.vmem [resolvable:$true] %s4932_s11 }
 0xb85   :  { %3927 = vmatpush.msra.mxu3 %v8247_v44  ;;  %3868 = vmatpush.msra.mxu0 %v8255_v15  ;;  %v9348_v15 = vperm.slane %v8430_v7, 0  ;;  %v3512_v44 = vpop.f32.mrf.mxu2 }
 0xb86   :  { %3908 = vmatpush.msra.mxu2 %v8271_v9 }
 0xb87   :  { %3928 = vmatpush.msra.mxu3 %v8273_v35  ;;  %v8440_v9 = vadd.f32 %v3466_v41, %v9348_v15  ;;  %v8444_v35 = vadd.f32 %v3489_v38, %v9347_v56  ;;  %v8453_v41 = vadd.f32 %v3535_v5, %v9352_v29 }
 0xb89   :  { %9845 = vst [vmem:[#allocation53_spill] sm:$0xff] %v8440_v9 }
 0xb8a   :  { %9846 = vst [vmem:[#allocation65_spill] sm:$0xff] %v8444_v35 }
 0xb8b   :  { %9848 = vst [vmem:[#allocation63_spill] sm:$0xff] %v8453_v41 }
 0xbd8   :  { %v8432_v0 = vpop.f32.mrf.mxu0  ;;  %v8434_v40 = vpop.f32.mrf.mxu1 }
 0xbd9   :  { %9843 = vst [vmem:[#allocation59_spill] sm:$0xff] %v8432_v0 }
 0xbda   :  { %9844 = vst [vmem:[#allocation61_spill] sm:$0xff] %v8434_v40 }
 0xbdf   :  { %v8446_v16 = vpop.f32.mrf.mxu3  ;;  %v8455_v38 = vpop.f32.mrf.mxu2 }
 0xbe0   :  { %9847 = vst [vmem:[#allocation38_spill] sm:$0xff] %v8446_v16  ;;  %v3558_v58 = vpop.f32.mrf.mxu0  ;;  %v3578_v53 = vpop.f32.mrf.mxu1 }
 0xbe1   :  { %v3621_v0 = vadd.f32 %v3558_v58, %v8440_v9  ;;  %v3622_v40 = vadd.f32 %v3578_v53, %v8444_v35  ;;  %9849 = vst [vmem:[#allocation68_spill] sm:$0xff] %v8455_v38 }
 0xbe3   :  { %v5022_v61 = vmul.f32 -1.442695, %v3621_v0  ;;  %v5023_v42 = vmul.f32 -1.442695, %v3622_v40  ;;  %v9360_v0 = vperm.slane %v8430_v7, 2 }
 0xbe5   :  { %5323 = vpow2.f32 %v5022_v61 }
 0xbe6   :  { %5325 = vpow2.f32 %v5023_v42  ;;  %v8461_v42 = vadd.f32 %v3512_v44, %v9360_v0 }
 0xbe7   :  { %v3618_v56 = vpop.f32.mrf.mxu3  ;;  %v3598_v40 = vpop.f32.mrf.mxu2 }
 0xbe8   :  { %v3624_v15 = vadd.f32 %v3618_v56, %v8453_v41  ;;  %9850 = vst [vmem:[#allocation70_spill] sm:$0xff] %v8461_v42  ;;  %v3623_v56 = vadd.f32 %v3598_v40, %v8461_v42 }
 0xbea   :  { %v5024_v16 = vmul.f32 -1.442695, %v3624_v15 }
 0xbeb   :  { %v5324_v8 = vpop.eup %5323 }
 0xbec   :  { %v5326_v58 = vpop.eup %5325  ;;  %v3628_v9 = vadd.f32 1.0, %v5324_v8  ;;  %5327 = vpow2.f32 %v5024_v16 }
 0xbed   :  { %v3647_v53 = vadd.f32 1.0, %v5326_v58 }
 0xbee   :  { %5329 = vrcp.f32 %v3628_v9  ;;  %v3640_v41 = vand.u32 2147483648, %v3628_v9  ;;  %v3638_v23 = vand.u32 2147483647, %v3628_v9  ;;  %vm3634_vm3 = vweird.f32 %v3628_v9 }
 0xbef   :  { %5331 = vrcp.f32 %v3647_v53  ;;  %v3659_v35 = vand.u32 2147483648, %v3647_v53  ;;  %v3657_v44 = vand.u32 2147483647, %v3647_v53  ;;  %vm3653_vm4 = vweird.f32 %v3647_v53 }
 0xbf0   :  { %v3641_v40 = vor.u32 1.1754944e-38, %v3640_v41  ;;  %vm3639_vm6 = vcmp.eq.f32.partialorder %v3638_v23, 8.507059e+37 }
 0xbf1   :  { %v3660_v47 = vor.u32 1.1754944e-38, %v3659_v35  ;;  %vm3658_vm8 = vcmp.eq.f32.partialorder %v3657_v44, 8.507059e+37 }
 0xbf2   :  { %v5328_v61 = vpop.eup %5327 }
 0xbf3   :  { %v3667_v5 = vadd.f32 1.0, %v5328_v61 }
 0xbf4   :  { %v5330_v29 = vpop.eup %5329 }
 0xbf5   :  { %v5332_v15 = vpop.eup %5331  ;;  %v3630_v38 = vmul.f32 %v5330_v29, %v3628_v9  ;;  %5333 = vrcp.f32 %v3667_v5  ;;  %vm3635_vm1 = vweird.f32 %v5330_v29  ;;  %vm3673_vm10 = vweird.f32 %v3667_v5 }
 0xbf6   :  { %v3649_v8 = vmul.f32 %v5332_v15, %v3647_v53  ;;  %5335 = vtanh.f32 %v3623_v56  ;;  %vm3654_vm2 = vweird.f32 %v5332_v15  ;;  %vm3636_vm5 = vmor %vm3634_vm3, %vm3635_vm1  ;;  %v3677_v35 = vand.u32 2147483647, %v3667_v5 }
 0xbf7   :  { %v3631_v16 = vsub.f32 1.0, %v3630_v38  ;;  %vm3655_vm7 = vmor %vm3653_vm4, %vm3654_vm2 }
 0xbf8   :  { %v3650_v58 = vsub.f32 1.0, %v3649_v8  ;;  %vm3678_vm12 = vcmp.eq.f32.partialorder %v3677_v35, 8.507059e+37 }
 0xbf9   :  { %v3632_v46 = vmul.f32 %v5330_v29, %v3631_v16 }
 0xbfa   :  { %v3651_v36 = vmul.f32 %v5332_v15, %v3650_v58 }
 0xbfb   :  { %v5334_v0 = vpop.eup %5333  ;;  %v3633_v61 = vadd.f32 %v5330_v29, %v3632_v46 }
 0xbfc   :  { %v3652_v7 = vadd.f32 %v5332_v15, %v3651_v36  ;;  %v3669_v42 = vmul.f32 %v5334_v0, %v3667_v5  ;;  %v5336_v56 = vpop.eup %5335  ;;  %vm3674_vm9 = vweird.f32 %v5334_v0  ;;  %v3679_v36 = vand.u32 2147483648, %v3667_v5 }
 0xbfd   :  { %v3637_v38 = vsel %vm3636_vm5, %v5330_v29, %v3633_v61  ;;  %vm3675_vm11 = vmor %vm3673_vm10, %vm3674_vm9 }
 0xbfe   :  { %v3642_v8 = vsel %vm3639_vm6, %v3641_v40, %v3637_v38  ;;  %v3656_v16 = vsel %vm3655_vm7, %v5332_v15, %v3652_v7  ;;  %v3670_v11 = vsub.f32 1.0, %v3669_v42  ;;  %v3680_v29 = vor.u32 1.1754944e-38, %v3679_v36  ;;  %v9880_v38 = vld [vmem:[#allocation70_spill] sm:$0xff] }
 0xbff   :  { %v3661_v58 = vsel %vm3658_vm8, %v3660_v47, %v3656_v16  ;;  %v3684_v21 = vmul.f32 %v5336_v56, %v3642_v8 }
 0xc00   :  { %v3683_v31 = vmul.f32 0.0, %v3661_v58  ;;  %v3671_v43 = vmul.f32 %v5334_v0, %v3670_v11 }
 0xc02   :  { %v8464_v46 = vadd.f32 %v3684_v21, %v3683_v31  ;;  %v3672_v9 = vadd.f32 %v5334_v0, %v3671_v43  ;;  %v9879_v43 = vld [vmem:[#allocation63_spill] sm:$0xff] }
 0xc04   :  { %5337 = vtanh.f32 %v8464_v46  ;;  %v3676_v23 = vsel %vm3675_vm11, %v5334_v0, %v3672_v9 }
 0xc05   :  { %v3681_v41 = vsel %vm3678_vm12, %v3680_v29, %v3676_v23 }
 0xc0a   :  { %v5338_v7 = vpop.eup %5337 }
 0xc0b   :  { %v3687_v53 = vmul.f32 %v5338_v7, %v3681_v41 }
 0xc0d   :  { %3704 = vmatmul.f32.vlgmr.msrb.gmra.mxu0 %v3687_v53  ;;  %3724 = vmatmul.f32.vlgmr.msrb.gmra.mxu1 %v3687_v53 }
 0xc0e   :  { %3744 = vmatmul.f32.vlgmr.msrb.gmra.mxu2 %v3687_v53  ;;  %3764 = vmatmul.f32.vlgmr.msrb.gmra.mxu3 %v3687_v53 }
 0xc0f   :  { %4018 = vmatpush.msrb.mxu0 %v8046_v51  ;;  %4038 = vmatpush.msrb.mxu1 %v8048_v48  ;;  %v9851_v51 = vld [vmem:[#allocation60_spill] sm:$0xff]  ;;  %v9852_v48 = vld [vmem:[#allocation66_spill] sm:$0xff] }
 0xc10   :  { %4058 = vmatpush.msrb.mxu2 %v8050_v26  ;;  %4078 = vmatpush.msrb.mxu3 %v8054_v20  ;;  %v9853_v26 = vld [vmem:[#allocation67_spill] sm:$0xff]  ;;  %v9854_v20 = vld [vmem:[#allocation62_spill] sm:$0xff] }
 0xc11   :  { %4019 = vmatpush.msrb.mxu0 %v8060_v37  ;;  %4039 = vmatpush.msrb.mxu1 %v8062_v27  ;;  %v9855_v37 = vld [vmem:[#allocation69_spill] sm:$0xff]  ;;  %v9856_v27 = vld [vmem:[#allocation64_spill] sm:$0xff] }
 0xc12   :  { %4059 = vmatpush.msrb.mxu2 %v8064_v6  ;;  %4079 = vmatpush.msrb.mxu3 %v8068_v39  ;;  %v9857_v6 = vld [vmem:[#allocation45_spill] sm:$0xff]  ;;  %v9858_v39 = vld [vmem:[#allocation40_spill] sm:$0xff] }
 0xc13   :  { %4020 = vmatpush.msrb.mxu0 %v8072_v52  ;;  %4040 = vmatpush.msrb.mxu1 %v8074_v33  ;;  %v9859_v52 = vld [vmem:[#allocation36_spill] sm:$0xff] }
 0xc14   :  { %4060 = vmatpush.msrb.mxu2 %v8078_v32  ;;  %4080 = vmatpush.msrb.mxu3 %v8080_v14  ;;  %v9860_v33 = vld [vmem:[#allocation48_spill] sm:$0xff]  ;;  %v9861_v32 = vld [vmem:[#allocation54_spill] sm:$0xff]  ;;  %v9862_v14 = vld [vmem:[#allocation55_spill] sm:$0xff] }
 0xc15   :  { %4021 = vmatpush.msrb.mxu0 %v8084_v59  ;;  %4041 = vmatpush.msrb.mxu1 %v8086_v24  ;;  %v9863_v59 = vld [vmem:[#allocation49_spill] sm:$0xff] }
 0xc16   :  { %4061 = vmatpush.msrb.mxu2 %v8088_v54  ;;  %4081 = vmatpush.msrb.mxu3 %v8092_v12  ;;  %v9864_v24 = vld [vmem:[#allocation41_spill] sm:$0xff]  ;;  %v9865_v54 = vld [vmem:[#allocation46_spill] sm:$0xff] }
 0xc17   :  { %4022 = vmatpush.msrb.mxu0 %v8096_v57  ;;  %4042 = vmatpush.msrb.mxu1 %v8098_v4  ;;  %v9866_v12 = vld [vmem:[#allocation42_spill] sm:$0xff]  ;;  %v9867_v57 = vld [vmem:[#allocation37_spill] sm:$0xff] }
 0xc18   :  { %4062 = vmatpush.msrb.mxu2 %v8100_v1  ;;  %4082 = vmatpush.msrb.mxu3 %v8105_v10  ;;  %v9868_v4 = vld [vmem:[#allocation50_spill] sm:$0xff]  ;;  %v9869_v1 = vld [vmem:[#allocation56_spill] sm:$0xff]  ;;  %v9870_v10 = vld [vmem:[#allocation57_spill] sm:$0xff] }
 0xc19   :  { %4023 = vmatpush.msrb.mxu0 %v8109_v18  ;;  %4043 = vmatpush.msrb.mxu1 %v8111_v62  ;;  %v9871_v18 = vld [vmem:[#allocation51_spill] sm:$0xff] }
 0xc1a   :  { %4063 = vmatpush.msrb.mxu2 %v8113_v34  ;;  %4083 = vmatpush.msrb.mxu3 %v8117_v45  ;;  %v9872_v62 = vld [vmem:[#allocation43_spill] sm:$0xff]  ;;  %v9874_v45 = vld [vmem:[#allocation44_spill] sm:$0xff] }
 0xc1b   :  { %4024 = vmatpush.msrb.mxu0 %v8121_v25  ;;  %4044 = vmatpush.msrb.mxu1 %v8123_v50  ;;  %v9873_v34 = vld [vmem:[#allocation47_spill] sm:$0xff]  ;;  %v9876_v50 = vld [vmem:[#allocation52_spill] sm:$0xff] }
 0xc1c   :  { %4064 = vmatpush.msrb.mxu2 %v8125_v2  ;;  %4084 = vmatpush.msrb.mxu3 %v8131_v55  ;;  %v9875_v25 = vld [vmem:[#allocation39_spill] sm:$0xff] }
 0xc1d   :  { %4025 = vmatpush.msrb.mxu0 %v8137_v30  ;;  %4045 = vmatpush.msrb.mxu1 %v8139_v49 }
 0xc1e   :  { %4065 = vmatpush.msrb.mxu2 %v8141_v3  ;;  %4085 = vmatpush.msrb.mxu3 %v8146_v13  ;;  %v9877_v3 = vld [vmem:[#allocation53_spill] sm:$0xff] }
 0xc1f   :  { %4026 = vmatpush.msrb.mxu0 %v8148_v19  ;;  %4046 = vmatpush.msrb.mxu1 %v8150_v22  ;;  %v9878_v19 = vld [vmem:[#allocation65_spill] sm:$0xff] }
 0xc20   :  { %4066 = vmatpush.msrb.mxu2 %v8155_v28  ;;  %4086 = vmatpush.msrb.mxu3 %v8157_v60 }
 0xc21   :  { %4027 = vmatpush.msrb.mxu0 %v8159_v17  ;;  %4047 = vmatpush.msrb.mxu1 %v8163_v63 }
 0xc22   :  { %4067 = vmatpush.msrb.mxu2 %v9851_v51  ;;  %4087 = vmatpush.msrb.mxu3 %v9852_v48 }
 0xc23   :  { %4028 = vmatpush.msrb.mxu0 %v9853_v26  ;;  %4048 = vmatpush.msrb.mxu1 %v9854_v20 }
 0xc24   :  { %4068 = vmatpush.msrb.mxu2 %v9855_v37  ;;  %4088 = vmatpush.msrb.mxu3 %v9856_v27  ;;  %v3843_v27 = vrot.slane %v8464_v46, 6 }
 0xc25   :  { %4029 = vmatpush.msrb.mxu0 %v9857_v6  ;;  %4049 = vmatpush.msrb.mxu1 %v9858_v39 }
 0xc26   :  { %4069 = vmatpush.msrb.mxu2 %v9859_v52  ;;  %4089 = vmatpush.msrb.mxu3 %v9860_v33 }
 0xc27   :  { %4030 = vmatpush.msrb.mxu0 %v9861_v32  ;;  %4050 = vmatpush.msrb.mxu1 %v9862_v14 }
 0xc28   :  { %4070 = vmatpush.msrb.mxu2 %v9863_v59  ;;  %4090 = vmatpush.msrb.mxu3 %v9864_v24 }
 0xc29   :  { %4031 = vmatpush.msrb.mxu0 %v9865_v54  ;;  %4051 = vmatpush.msrb.mxu1 %v9866_v12 }
 0xc2a   :  { %4071 = vmatpush.msrb.mxu2 %v9867_v57  ;;  %4091 = vmatpush.msrb.mxu3 %v9868_v4 }
 0xc2b   :  { %4032 = vmatpush.msrb.mxu0 %v9869_v1  ;;  %4052 = vmatpush.msrb.mxu1 %v9870_v10 }
 0xc2c   :  { %4072 = vmatpush.msrb.mxu2 %v9871_v18  ;;  %4092 = vmatpush.msrb.mxu3 %v9872_v62 }
 0xc2d   :  { %4033 = vmatpush.msrb.mxu0 %v9873_v34  ;;  %4053 = vmatpush.msrb.mxu1 %v9874_v45 }
 0xc2e   :  { %4073 = vmatpush.msrb.mxu2 %v9875_v25  ;;  %4093 = vmatpush.msrb.mxu3 %v9876_v50 }
 0xc8a   :  { %v3705_v2 = vpop.f32.mrf.mxu0  ;;  %v3725_v55 = vpop.f32.mrf.mxu1 }
 0xc8b   :  { %v3772_v30 = vrot.slane %v3705_v2, 6  ;;  %v3773_v49 = vrot.slane %v3725_v55, 6 }
 0xc8d   :  { %v3780_v13 = vadd.f32 %v3772_v30, %v9877_v3  ;;  %v3781_v22 = vadd.f32 %v3773_v49, %v9878_v19 }
 0xc8f   :  { %v5025_v28 = vmul.f32 -1.442695, %v3780_v13  ;;  %v5026_v60 = vmul.f32 -1.442695, %v3781_v22 }
 0xc91   :  { %5339 = vpow2.f32 %v5025_v28  ;;  %v3765_v17 = vpop.f32.mrf.mxu3  ;;  %v3745_v5 = vpop.f32.mrf.mxu2 }
 0xc92   :  { %5341 = vpow2.f32 %v5026_v60  ;;  %v3775_v63 = vrot.slane %v3765_v17, 6  ;;  %v3774_v15 = vrot.slane %v3745_v5, 6  ;;  %v8542_v5 = vld [vmem:[#allocation16 + $0x1e8] sm:$0xff] }
 0xc94   :  { %v3783_v31 = vadd.f32 %v3775_v63, %v9879_v43  ;;  %v3782_v56 = vadd.f32 %v3774_v15, %v9880_v38  ;;  %v8545_v15 = vld [vmem:[#allocation16 + $0x1f0] sm:$0xff] }
 0xc96   :  { %v5027_v21 = vmul.f32 -1.442695, %v3783_v31 }
 0xc97   :  { %v5340_v11 = vpop.eup %5339 }
 0xc98   :  { %v5342_v47 = vpop.eup %5341  ;;  %v3787_v0 = vadd.f32 1.0, %v5340_v11  ;;  %5343 = vpow2.f32 %v5027_v21 }
 0xc99   :  { %v3806_v42 = vadd.f32 1.0, %v5342_v47 }
 0xc9a   :  { %5345 = vrcp.f32 %v3787_v0  ;;  %v3799_v35 = vand.u32 2147483648, %v3787_v0  ;;  %v3797_v7 = vand.u32 2147483647, %v3787_v0  ;;  %vm3793_vm15 = vweird.f32 %v3787_v0 }
 0xc9b   :  { %5347 = vrcp.f32 %v3806_v42  ;;  %v3818_v23 = vand.u32 2147483648, %v3806_v42  ;;  %v3816_v53 = vand.u32 2147483647, %v3806_v42  ;;  %vm3812_vm0 = vweird.f32 %v3806_v42 }
 0xc9c   :  { %v3800_v26 = vor.u32 1.1754944e-38, %v3799_v35  ;;  %vm3798_vm3 = vcmp.eq.f32.partialorder %v3797_v7, 8.507059e+37  ;;  %v8575_v35 = vld [vmem:[#allocation16 + $0x180] sm:$0xff]  ;;  %v8584_v7 = vld [vmem:[#allocation16 + $0x198] sm:$0xff] }
 0xc9d   :  { %v3819_v6 = vor.u32 1.1754944e-38, %v3818_v23  ;;  %vm3817_vm4 = vcmp.eq.f32.partialorder %v3816_v53, 8.507059e+37  ;;  %v8578_v23 = vld [vmem:[#allocation16 + $0x188] sm:$0xff] }
 0xc9e   :  { %v5344_v44 = vpop.eup %5343  ;;  %v8590_v53 = vld [vmem:[#allocation16 + $0x168] sm:$0xff] }
 0xc9f   :  { %v3826_v61 = vadd.f32 1.0, %v5344_v44  ;;  %v8548_v44 = vld [vmem:[#allocation16 + $0x1f8] sm:$0xff] }
 0xca0   :  { %v5346_v40 = vpop.eup %5345 }
 0xca1   :  { %v5348_v8 = vpop.eup %5347  ;;  %v3789_v16 = vmul.f32 %v5346_v40, %v3787_v0  ;;  %5349 = vrcp.f32 %v3826_v61  ;;  %vm3794_vm13 = vweird.f32 %v5346_v40  ;;  %v3838_v46 = vand.u32 2147483648, %v3826_v61 }
 0xca2   :  { %v3808_v58 = vmul.f32 %v5348_v8, %v3806_v42  ;;  %5351 = vtanh.f32 %v3782_v56  ;;  %vm3813_vm14 = vweird.f32 %v5348_v8  ;;  %vm3795_vm1 = vmor %vm3793_vm15, %vm3794_vm13  ;;  %vm3832_vm6 = vweird.f32 %v3826_v61  ;;  %v8539_v42 = vld [vmem:[#allocation16 + $0x1e0] sm:$0xff]  ;;  %v8557_v56 = vld [vmem:[#allocation16 + $0x1d0] sm:$0xff] }
 0xca3   :  { %v3790_v9 = vsub.f32 1.0, %v3789_v16  ;;  %vm3814_vm2 = vmor %vm3812_vm0, %vm3813_vm14  ;;  %v3836_v17 = vand.u32 2147483647, %v3826_v61  ;;  %v3839_v31 = vor.u32 1.1754944e-38, %v3838_v46  ;;  %v8563_v16 = vld [vmem:[#allocation16 + $0x1a0] sm:$0xff]  ;;  %v8644_v46 = vld [vmem:[#allocation16 + $0xf8] sm:$0xff] }
 0xca4   :  { %v3809_v36 = vsub.f32 1.0, %v3808_v58  ;;  %v8566_v58 = vld [vmem:[#allocation16 + $0x1a8] sm:$0xff] }
 0xca5   :  { %v3791_v29 = vmul.f32 %v5346_v40, %v3790_v9  ;;  %vm3837_vm8 = vcmp.eq.f32.partialorder %v3836_v17, 8.507059e+37  ;;  %v8569_v9 = vld [vmem:[#allocation16 + $0x1b0] sm:$0xff]  ;;  %v8647_v17 = vld [vmem:[#allocation16 + $0xc0] sm:$0xff] }
 0xca6   :  { %v3810_v41 = vmul.f32 %v5348_v8, %v3809_v36  ;;  %v8572_v36 = vld [vmem:[#allocation16 + $0x1b8] sm:$0xff] }
 0xca7   :  { %v5350_v51 = vpop.eup %5349  ;;  %v3792_v48 = vadd.f32 %v5346_v40, %v3791_v29  ;;  %v8581_v29 = vld [vmem:[#allocation16 + $0x190] sm:$0xff] }
 0xca8   :  { %v3811_v20 = vadd.f32 %v5348_v8, %v3810_v41  ;;  %v3828_v37 = vmul.f32 %v5350_v51, %v3826_v61  ;;  %v5352_v52 = vpop.eup %5351  ;;  %vm3833_vm5 = vweird.f32 %v5350_v51  ;;  %v8551_v61 = vld [vmem:[#allocation16 + $0x1c0] sm:$0xff] }
 0xca9   :  { %v3796_v39 = vsel %vm3795_vm1, %v5346_v40, %v3792_v48  ;;  %vm3834_vm7 = vmor %vm3832_vm6, %vm3833_vm5  ;;  %v8554_v40 = vld [vmem:[#allocation16 + $0x1c8] sm:$0xff]  ;;  %v8587_v41 = vld [vmem:[#allocation16 + $0x160] sm:$0xff] }
 0xcaa   :  { %v3801_v33 = vsel %vm3798_vm3, %v3800_v26, %v3796_v39  ;;  %v3815_v2 = vsel %vm3814_vm2, %v5348_v8, %v3811_v20  ;;  %v3829_v55 = vsub.f32 1.0, %v3828_v37  ;;  %v8560_v8 = vld [vmem:[#allocation16 + $0x1d8] sm:$0xff]  ;;  %v8599_v26 = vld [vmem:[#allocation16 + $0x140] sm:$0xff]  ;;  %v8602_v20 = vld [vmem:[#allocation16 + $0x148] sm:$0xff] }
 0xcab   :  { %v3820_v30 = vsel %vm3817_vm4, %v3819_v6, %v3815_v2  ;;  %v3846_v49 = vmul.f32 %v5352_v52, %v3801_v33  ;;  %v8596_v48 = vld [vmem:[#allocation16 + $0x178] sm:$0xff]  ;;  %v8605_v37 = vld [vmem:[#allocation16 + $0x150] sm:$0xff]  ;;  %v8611_v6 = vld [vmem:[#allocation16 + $0x120] sm:$0xff] }
 0xcac   :  { %v3845_v13 = vmul.f32 %v3843_v27, %v3820_v30  ;;  %v3830_v22 = vmul.f32 %v5350_v51, %v3829_v55  ;;  %v8608_v27 = vld [vmem:[#allocation16 + $0x158] sm:$0xff]  ;;  %v8614_v39 = vld [vmem:[#allocation16 + $0x128] sm:$0xff]  ;;  %v8617_v52 = vld [vmem:[#allocation16 + $0x130] sm:$0xff] }
 0xcad   :  { %v8620_v33 = vld [vmem:[#allocation16 + $0x138] sm:$0xff]  ;;  %v8623_v2 = vld [vmem:[#allocation16 + $0x100] sm:$0xff]  ;;  %v8626_v55 = vld [vmem:[#allocation16 + $0x108] sm:$0xff] }
 0xcae   :  { %v8536_v28 = vadd.f32 %v3846_v49, %v3845_v13  ;;  %v3831_v60 = vadd.f32 %v5350_v51, %v3830_v22  ;;  %v8629_v30 = vld [vmem:[#allocation16 + $0x110] sm:$0xff]  ;;  %v8632_v49 = vld [vmem:[#allocation16 + $0x118] sm:$0xff]  ;;  %v8635_v13 = vld [vmem:[#allocation16 + $0xe0] sm:$0xff] }
 0xcaf   :  { %v8638_v22 = vld [vmem:[#allocation16 + $0xe8] sm:$0xff] }
 0xcb0   :  { %5353 = vtanh.f32 %v8536_v28  ;;  %v3835_v63 = vsel %vm3834_vm7, %v5350_v51, %v3831_v60  ;;  %v8593_v51 = vld [vmem:[#allocation16 + $0x170] sm:$0xff] }
 0xcb1   :  { %v3840_v11 = vsel %vm3837_vm8, %v3839_v31, %v3835_v63  ;;  %v8641_v60 = vld [vmem:[#allocation16 + $0xf0] sm:$0xff]  ;;  %v8650_v63 = vld [vmem:[#allocation16 + $0xc8] sm:$0xff] }
 0xcb2   :  { %9881 = vst [vmem:[#allocation60_spill] sm:$0xff] %v8650_v63  ;;  %v8653_v31 = vld [vmem:[#allocation16 + $0xd0] sm:$0xff] }
 0xcb3   :  { %9882 = vst [vmem:[#allocation66_spill] sm:$0xff] %v8653_v31 }
 0xcb6   :  { %v5354_v21 = vpop.eup %5353 }
 0xcb7   :  { %v3849_v47 = vmul.f32 %v5354_v21, %v3840_v11  ;;  %v8656_v21 = vld [vmem:[#allocation16 + $0xd8] sm:$0xff]  ;;  %v8659_v11 = vld [vmem:[#allocation16 + $0xa0] sm:$0xff] }
 0xcb8   :  { %9883 = vst [vmem:[#allocation67_spill] sm:$0xff] %v8656_v21 }
 0xcb9   :  { %v3851_v0 = vrot.slane %v3849_v47, 2  ;;  %9884 = vst [vmem:[#allocation62_spill] sm:$0xff] %v8659_v11  ;;  %v8662_v47 = vld [vmem:[#allocation16 + $0xa8] sm:$0xff] }
 0xcba   :  { %9885 = vst [vmem:[#allocation69_spill] sm:$0xff] %v8662_v47 }
 0xcbb   :  { %3869 = vmatmul.f32.vlgmr.msra.gmra.mxu0 %v3851_v0  ;;  %3889 = vmatmul.f32.vlgmr.msra.gmra.mxu1 %v3851_v0 }
 0xcbc   :  { %3909 = vmatmul.f32.vlgmr.msra.gmra.mxu2 %v3851_v0  ;;  %3929 = vmatmul.f32.vlgmr.msra.gmra.mxu3 %v3851_v0  ;;  %v8665_v0 = vld [vmem:[#allocation16 + $0xb0] sm:$0xff] }
 0xcbd   :  { %4183 = vmatpush.msra.mxu0 %v8539_v42  ;;  %4203 = vmatpush.msra.mxu1 %v8542_v5  ;;  %9886 = vst [vmem:[#allocation64_spill] sm:$0xff] %v8665_v0 }
 0xcbe   :  { %4223 = vmatpush.msra.mxu2 %v8545_v15  ;;  %4243 = vmatpush.msra.mxu3 %v8548_v44 }
 0xcbf   :  { %4184 = vmatpush.msra.mxu0 %v8551_v61  ;;  %4204 = vmatpush.msra.mxu1 %v8554_v40 }
 0xcc0   :  { %4224 = vmatpush.msra.mxu2 %v8557_v56  ;;  %4244 = vmatpush.msra.mxu3 %v8560_v8 }
 0xcc1   :  { %4185 = vmatpush.msra.mxu0 %v8563_v16  ;;  %4205 = vmatpush.msra.mxu1 %v8566_v58 }
 0xcc2   :  { %4225 = vmatpush.msra.mxu2 %v8569_v9  ;;  %4245 = vmatpush.msra.mxu3 %v8572_v36 }
 0xcc3   :  { %4186 = vmatpush.msra.mxu0 %v8575_v35  ;;  %4206 = vmatpush.msra.mxu1 %v8578_v23 }
 0xcc4   :  { %4226 = vmatpush.msra.mxu2 %v8581_v29  ;;  %4246 = vmatpush.msra.mxu3 %v8584_v7 }
 0xcc5   :  { %4187 = vmatpush.msra.mxu0 %v8587_v41  ;;  %4207 = vmatpush.msra.mxu1 %v8590_v53 }
 0xcc6   :  { %4227 = vmatpush.msra.mxu2 %v8593_v51  ;;  %4247 = vmatpush.msra.mxu3 %v8596_v48 }
 0xcc7   :  { %4188 = vmatpush.msra.mxu0 %v8599_v26  ;;  %4208 = vmatpush.msra.mxu1 %v8602_v20 }
 0xcc8   :  { %4228 = vmatpush.msra.mxu2 %v8605_v37  ;;  %4248 = vmatpush.msra.mxu3 %v8608_v27 }
 0xcc9   :  { %4189 = vmatpush.msra.mxu0 %v8611_v6  ;;  %4209 = vmatpush.msra.mxu1 %v8614_v39 }
 0xcca   :  { %4229 = vmatpush.msra.mxu2 %v8617_v52  ;;  %4249 = vmatpush.msra.mxu3 %v8620_v33 }
 0xccb   :  { %4190 = vmatpush.msra.mxu0 %v8623_v2  ;;  %4210 = vmatpush.msra.mxu1 %v8626_v55 }
 0xccc   :  { %4230 = vmatpush.msra.mxu2 %v8629_v30  ;;  %4250 = vmatpush.msra.mxu3 %v8632_v49 }
 0xccd   :  { %4191 = vmatpush.msra.mxu0 %v8635_v13  ;;  %4211 = vmatpush.msra.mxu1 %v8638_v22 }
 0xcce   :  { %4231 = vmatpush.msra.mxu2 %v8641_v60  ;;  %4251 = vmatpush.msra.mxu3 %v8644_v46 }
 0xccf   :  { %4192 = vmatpush.msra.mxu0 %v8647_v17  ;;  %4212 = vmatpush.msra.mxu1 %v8650_v63  ;;  %v8668_v63 = vld [vmem:[#allocation16 + $0xb8] sm:$0xff] }
 0xcd0   :  { %4232 = vmatpush.msra.mxu2 %v8653_v31  ;;  %4252 = vmatpush.msra.mxu3 %v8656_v21  ;;  %9887 = vst [vmem:[#allocation45_spill] sm:$0xff] %v8668_v63  ;;  %v8671_v31 = vld [vmem:[#allocation16 + $0x80] sm:$0xff]  ;;  %v8674_v21 = vld [vmem:[#allocation16 + $0x88] sm:$0xff] }
 0xcd1   :  { %4193 = vmatpush.msra.mxu0 %v8659_v11  ;;  %4213 = vmatpush.msra.mxu1 %v8662_v47  ;;  %9888 = vst [vmem:[#allocation40_spill] sm:$0xff] %v8671_v31  ;;  %v8677_v11 = vld [vmem:[#allocation16 + $0x90] sm:$0xff]  ;;  %v8680_v47 = vld [vmem:[#allocation16 + $0x98] sm:$0xff] }
 0xcd2   :  { %4233 = vmatpush.msra.mxu2 %v8665_v0  ;;  %4253 = vmatpush.msra.mxu3 %v8668_v63  ;;  %9889 = vst [vmem:[#allocation36_spill] sm:$0xff] %v8674_v21 }
 0xcd3   :  { %4194 = vmatpush.msra.mxu0 %v8671_v31  ;;  %4214 = vmatpush.msra.mxu1 %v8674_v21  ;;  %9890 = vst [vmem:[#allocation48_spill] sm:$0xff] %v8677_v11 }
 0xcd4   :  { %4234 = vmatpush.msra.mxu2 %v8677_v11  ;;  %9891 = vst [vmem:[#allocation54_spill] sm:$0xff] %v8680_v47  ;;  %4254 = vmatpush.msra.mxu3 %v8680_v47 }
 0xcd5   :  { %4195 = vmatpush.msra.mxu0 %v9861_v32  ;;  %4215 = vmatpush.msra.mxu1 %v9862_v14 }
 0xcd6   :  { %4235 = vmatpush.msra.mxu2 %v9863_v59  ;;  %4255 = vmatpush.msra.mxu3 %v9864_v24 }
 0xcd7   :  { %4196 = vmatpush.msra.mxu0 %v9865_v54  ;;  %4216 = vmatpush.msra.mxu1 %v9866_v12 }
 0xcd8   :  { %4236 = vmatpush.msra.mxu2 %v9867_v57  ;;  %4256 = vmatpush.msra.mxu3 %v9868_v4 }
 0xcd9   :  { %4197 = vmatpush.msra.mxu0 %v9869_v1  ;;  %4217 = vmatpush.msra.mxu1 %v9870_v10 }
 0xcda   :  { %4237 = vmatpush.msra.mxu2 %v9871_v18  ;;  %4257 = vmatpush.msra.mxu3 %v9872_v62 }
 0xcdb   :  { %4198 = vmatpush.msra.mxu0 %v9873_v34  ;;  %4218 = vmatpush.msra.mxu1 %v9874_v45 }
 0xcdc   :  { %4238 = vmatpush.msra.mxu2 %v9875_v25  ;;  %4258 = vmatpush.msra.mxu3 %v9876_v50 }
 0xd38   :  { %v3870_v32 = vpop.f32.mrf.mxu0  ;;  %v3890_v14 = vpop.f32.mrf.mxu1 }
 0xd39   :  { %v3937_v59 = vrot.slane %v3870_v32, 4  ;;  %v3938_v24 = vrot.slane %v3890_v14, 4 }
 0xd3b   :  { %v3945_v54 = vadd.f32 %v3937_v59, %v9877_v3  ;;  %v3946_v12 = vadd.f32 %v3938_v24, %v9878_v19 }
 0xd3d   :  { %v5028_v57 = vmul.f32 -1.442695, %v3945_v54  ;;  %v5029_v4 = vmul.f32 -1.442695, %v3946_v12 }
 0xd3f   :  { %5355 = vpow2.f32 %v5028_v57  ;;  %v3930_v1 = vpop.f32.mrf.mxu3  ;;  %v3910_v32 = vpop.f32.mrf.mxu2 }
 0xd40   :  { %5357 = vpow2.f32 %v5029_v4  ;;  %v3940_v10 = vrot.slane %v3930_v1, 4  ;;  %v3939_v14 = vrot.slane %v3910_v32, 4 }
 0xd42   :  { %v3948_v18 = vadd.f32 %v3940_v10, %v9879_v43  ;;  %v3947_v12 = vadd.f32 %v3939_v14, %v9880_v38 }
 0xd44   :  { %v5030_v62 = vmul.f32 -1.442695, %v3948_v18 }
 0xd45   :  { %v5356_v34 = vpop.eup %5355 }
 0xd46   :  { %v5358_v45 = vpop.eup %5357  ;;  %v3952_v25 = vadd.f32 1.0, %v5356_v34  ;;  %5359 = vpow2.f32 %v5030_v62 }
 0xd47   :  { %v3971_v50 = vadd.f32 1.0, %v5358_v45 }
 0xd48   :  { %5361 = vrcp.f32 %v3952_v25  ;;  %v3964_v43 = vand.u32 2147483648, %v3952_v25  ;;  %v3962_v45 = vand.u32 2147483647, %v3952_v25  ;;  %vm3958_vm11 = vweird.f32 %v3952_v25 }
 0xd49   :  { %5363 = vrcp.f32 %v3971_v50  ;;  %v3983_v34 = vand.u32 2147483648, %v3971_v50  ;;  %v3981_v32 = vand.u32 2147483647, %v3971_v50  ;;  %vm3977_vm12 = vweird.f32 %v3971_v50 }
 0xd4a   :  { %v3965_v14 = vor.u32 1.1754944e-38, %v3964_v43  ;;  %vm3963_vm15 = vcmp.eq.f32.partialorder %v3962_v45, 8.507059e+37  ;;  %v9897_v45 = vld [vmem:[#allocation45_spill] sm:$0xff] }
 0xd4b   :  { %vm3982_vm0 = vcmp.eq.f32.partialorder %v3981_v32, 8.507059e+37  ;;  %v9898_v32 = vld [vmem:[#allocation40_spill] sm:$0xff] }
 0xd4c   :  { %v5360_v59 = vpop.eup %5359 }
 0xd4d   :  { %v3991_v24 = vadd.f32 1.0, %v5360_v59 }
 0xd4e   :  { %v5362_v54 = vpop.eup %5361 }
 0xd4f   :  { %v5364_v57 = vpop.eup %5363  ;;  %v3954_v4 = vmul.f32 %v5362_v54, %v3952_v25  ;;  %5365 = vrcp.f32 %v3991_v24  ;;  %vm3959_vm9 = vweird.f32 %v5362_v54  ;;  %vm3997_vm2 = vweird.f32 %v3991_v24 }
 0xd50   :  { %v3973_v1 = vmul.f32 %v5364_v57, %v3971_v50  ;;  %5367 = vtanh.f32 %v3947_v12  ;;  %vm3978_vm10 = vweird.f32 %v5364_v57  ;;  %vm3960_vm13 = vmor %vm3958_vm11, %vm3959_vm9 }
 0xd51   :  { %v3955_v10 = vsub.f32 1.0, %v3954_v4  ;;  %v4008_v4 = vrot.slane %v8536_v28, 6  ;;  %vm3979_vm14 = vmor %vm3977_vm12, %vm3978_vm10  ;;  %v4001_v28 = vand.u32 2147483647, %v3991_v24 }
 0xd52   :  { %v3974_v18 = vsub.f32 1.0, %v3973_v1  ;;  %v3984_v1 = vor.u32 1.1754944e-38, %v3983_v34 }
 0xd53   :  { %v3956_v62 = vmul.f32 %v5362_v54, %v3955_v10  ;;  %vm4002_vm4 = vcmp.eq.f32.partialorder %v4001_v28, 8.507059e+37  ;;  %v8779_v28 = vld [vmem:[#allocation16 + $0x20] sm:$0xff] }
 0xd54   :  { %v3975_v19 = vmul.f32 %v5364_v57, %v3974_v18  ;;  %9910 = vst [vmem:[#allocation57_spill] sm:$0xff] %v8779_v28 }
 0xd55   :  { %v5366_v3 = vpop.eup %5365  ;;  %v3957_v59 = vadd.f32 %v5362_v54, %v3956_v62 }
 0xd56   :  { %v3976_v38 = vadd.f32 %v5364_v57, %v3975_v19  ;;  %v3993_v47 = vmul.f32 %v5366_v3, %v3991_v24  ;;  %v5368_v10 = vpop.eup %5367  ;;  %vm3998_vm1 = vweird.f32 %v5366_v3  ;;  %v4003_v19 = vand.u32 2147483648, %v3991_v24  ;;  %v9896_v24 = vld [vmem:[#allocation69_spill] sm:$0xff] }
 0xd57   :  { %v3961_v12 = vsel %vm3960_vm13, %v5362_v54, %v3957_v59  ;;  %vm3999_vm3 = vmor %vm3997_vm2, %vm3998_vm1  ;;  %v9899_v59 = vld [vmem:[#allocation36_spill] sm:$0xff] }
 0xd58   :  { %v3966_v11 = vsel %vm3963_vm15, %v3965_v14, %v3961_v12  ;;  %v3980_v21 = vsel %vm3979_vm14, %v5364_v57, %v3976_v38  ;;  %v3994_v18 = vsub.f32 1.0, %v3993_v47  ;;  %v4004_v34 = vor.u32 1.1754944e-38, %v4003_v19  ;;  %v9900_v14 = vld [vmem:[#allocation48_spill] sm:$0xff]  ;;  %v8776_v19 = vld [vmem:[#allocation16 + $0x58] sm:$0xff] }
 0xd59   :  { %v3985_v31 = vsel %vm3982_vm0, %v3984_v1, %v3980_v21  ;;  %v4011_v63 = vmul.f32 %v5368_v10, %v3966_v11  ;;  %v9895_v11 = vld [vmem:[#allocation62_spill] sm:$0xff]  ;;  %v8755_v1 = vld [vmem:[#allocation16 + $0x60] sm:$0xff]  ;;  %v8758_v12 = vld [vmem:[#allocation16 + $0x68] sm:$0xff]  ;;  %9909 = vst [vmem:[#allocation56_spill] sm:$0xff] %v8776_v19 }
 0xd5a   :  { %v4010_v62 = vmul.f32 %v4008_v4, %v3985_v31  ;;  %v3995_v25 = vmul.f32 %v5366_v3, %v3994_v18  ;;  %v9894_v31 = vld [vmem:[#allocation67_spill] sm:$0xff]  ;;  %v9901_v4 = vld [vmem:[#allocation54_spill] sm:$0xff]  ;;  %9902 = vst [vmem:[#allocation55_spill] sm:$0xff] %v8755_v1  ;;  %v8761_v10 = vld [vmem:[#allocation16 + $0x70] sm:$0xff] }
 0xd5b   :  { %9903 = vst [vmem:[#allocation49_spill] sm:$0xff] %v8758_v12  ;;  %v8764_v18 = vld [vmem:[#allocation16 + $0x78] sm:$0xff] }
 0xd5c   :  { %v8704_v50 = vadd.f32 %v4011_v63, %v4010_v62  ;;  %v3996_v43 = vadd.f32 %v5366_v3, %v3995_v25  ;;  %v9893_v63 = vld [vmem:[#allocation66_spill] sm:$0xff]  ;;  %9904 = vst [vmem:[#allocation41_spill] sm:$0xff] %v8761_v10  ;;  %v8767_v62 = vld [vmem:[#allocation16 + $0x40] sm:$0xff]  ;;  %v8770_v25 = vld [vmem:[#allocation16 + $0x48] sm:$0xff] }
 0xd5d   :  { %9905 = vst [vmem:[#allocation46_spill] sm:$0xff] %v8764_v18 }
 0xd5e   :  { %5369 = vtanh.f32 %v8704_v50  ;;  %v4000_v54 = vsel %vm3999_vm3, %v5366_v3, %v3996_v43  ;;  %v9892_v3 = vld [vmem:[#allocation60_spill] sm:$0xff]  ;;  %9906 = vst [vmem:[#allocation42_spill] sm:$0xff] %v8767_v62  ;;  %v8773_v43 = vld [vmem:[#allocation16 + $0x50] sm:$0xff] }
 0xd5f   :  { %v4005_v57 = vsel %vm4002_vm4, %v4004_v34, %v4000_v54  ;;  %9907 = vst [vmem:[#allocation37_spill] sm:$0xff] %v8770_v25  ;;  %v8782_v54 = vld [vmem:[#allocation16 + $0x28] sm:$0xff]  ;;  %v8785_v34 = vld [vmem:[#allocation16 + $0x30] sm:$0xff] }
 0xd60   :  { %9908 = vst [vmem:[#allocation50_spill] sm:$0xff] %v8773_v43 }
 0xd61   :  { %9911 = vst [vmem:[#allocation51_spill] sm:$0xff] %v8782_v54 }
 0xd62   :  { %9912 = vst [vmem:[#allocation43_spill] sm:$0xff] %v8785_v34 }
 0xd64   :  { %v5370_v38 = vpop.eup %5369 }
 0xd65   :  { %v4014_v47 = vmul.f32 %v5370_v38, %v4005_v57  ;;  %v8788_v38 = vld [vmem:[#allocation16 + $0x38] sm:$0xff]  ;;  %v8791_v57 = vld [vmem:[#allocation16] sm:$0xff] }
 0xd66   :  { %9913 = vst [vmem:[#allocation47_spill] sm:$0xff] %v8788_v38 }
 0xd67   :  { %v4016_v21 = vrot.slane %v4014_v47, 4  ;;  %9914 = vst [vmem:[#allocation44_spill] sm:$0xff] %v8791_v57  ;;  %v8794_v47 = vld [vmem:[#allocation16 + $0x8] sm:$0xff] }
 0xd68   :  { %9915 = vst [vmem:[#allocation39_spill] sm:$0xff] %v8794_v47 }
 0xd69   :  { %4034 = vmatmul.f32.vlgmr.msrb.gmra.mxu0 %v4016_v21  ;;  %4054 = vmatmul.f32.vlgmr.msrb.gmra.mxu1 %v4016_v21 }
 0xd6a   :  { %4074 = vmatmul.f32.vlgmr.msrb.gmra.mxu2 %v4016_v21  ;;  %4094 = vmatmul.f32.vlgmr.msrb.gmra.mxu3 %v4016_v21  ;;  %v8797_v21 = vld [vmem:[#allocation16 + $0x10] sm:$0xff] }
 0xd6b   :  { %4333 = vmatpush.msrb.mxu0 %v8539_v42  ;;  %4353 = vmatpush.msrb.mxu1 %v8542_v5  ;;  %9916 = vst [vmem:[#allocation52_spill] sm:$0xff] %v8797_v21 }
 0xd6c   :  { %4373 = vmatpush.msrb.mxu2 %v8545_v15  ;;  %4393 = vmatpush.msrb.mxu3 %v8548_v44 }
 0xd6d   :  { %4334 = vmatpush.msrb.mxu0 %v8551_v61  ;;  %4354 = vmatpush.msrb.mxu1 %v8554_v40 }
 0xd6e   :  { %4374 = vmatpush.msrb.mxu2 %v8557_v56  ;;  %4394 = vmatpush.msrb.mxu3 %v8560_v8 }
 0xd6f   :  { %4335 = vmatpush.msrb.mxu0 %v8563_v16  ;;  %4355 = vmatpush.msrb.mxu1 %v8566_v58 }
 0xd70   :  { %4375 = vmatpush.msrb.mxu2 %v8569_v9  ;;  %4395 = vmatpush.msrb.mxu3 %v8572_v36 }
 0xd71   :  { %4336 = vmatpush.msrb.mxu0 %v8575_v35  ;;  %4356 = vmatpush.msrb.mxu1 %v8578_v23 }
 0xd72   :  { %4376 = vmatpush.msrb.mxu2 %v8581_v29  ;;  %4396 = vmatpush.msrb.mxu3 %v8584_v7 }
 0xd73   :  { %4337 = vmatpush.msrb.mxu0 %v8587_v41  ;;  %4357 = vmatpush.msrb.mxu1 %v8590_v53 }
 0xd74   :  { %4377 = vmatpush.msrb.mxu2 %v8593_v51  ;;  %4397 = vmatpush.msrb.mxu3 %v8596_v48 }
 0xd75   :  { %4338 = vmatpush.msrb.mxu0 %v8599_v26  ;;  %4358 = vmatpush.msrb.mxu1 %v8602_v20 }
 0xd76   :  { %4378 = vmatpush.msrb.mxu2 %v8605_v37  ;;  %4398 = vmatpush.msrb.mxu3 %v8608_v27 }
 0xd77   :  { %4339 = vmatpush.msrb.mxu0 %v8611_v6  ;;  %4359 = vmatpush.msrb.mxu1 %v8614_v39 }
 0xd78   :  { %4379 = vmatpush.msrb.mxu2 %v8617_v52  ;;  %4399 = vmatpush.msrb.mxu3 %v8620_v33 }
 0xd79   :  { %4340 = vmatpush.msrb.mxu0 %v8623_v2  ;;  %4360 = vmatpush.msrb.mxu1 %v8626_v55 }
 0xd7a   :  { %4380 = vmatpush.msrb.mxu2 %v8629_v30  ;;  %4400 = vmatpush.msrb.mxu3 %v8632_v49 }
 0xd7b   :  { %4341 = vmatpush.msrb.mxu0 %v8635_v13  ;;  %4361 = vmatpush.msrb.mxu1 %v8638_v22 }
 0xd7c   :  { %4381 = vmatpush.msrb.mxu2 %v8641_v60  ;;  %4401 = vmatpush.msrb.mxu3 %v8644_v46 }
 0xd7d   :  { %4342 = vmatpush.msrb.mxu0 %v8647_v17  ;;  %4362 = vmatpush.msrb.mxu1 %v9892_v3 }
 0xd7e   :  { %4382 = vmatpush.msrb.mxu2 %v9893_v63  ;;  %4402 = vmatpush.msrb.mxu3 %v9894_v31 }
 0xd7f   :  { %4343 = vmatpush.msrb.mxu0 %v9895_v11  ;;  %4363 = vmatpush.msrb.mxu1 %v9896_v24 }
 0xd80   :  { %4383 = vmatpush.msrb.mxu2 %v8665_v0  ;;  %4403 = vmatpush.msrb.mxu3 %v9897_v45 }
 0xd81   :  { %4344 = vmatpush.msrb.mxu0 %v9898_v32  ;;  %4364 = vmatpush.msrb.mxu1 %v9899_v59 }
 0xd82   :  { %4384 = vmatpush.msrb.mxu2 %v9900_v14  ;;  %4404 = vmatpush.msrb.mxu3 %v9901_v4 }
 0xd83   :  { %4345 = vmatpush.msrb.mxu0 %v8755_v1  ;;  %4365 = vmatpush.msrb.mxu1 %v8758_v12  ;;  %v9920_v1 = vld [vmem:[#allocation63_spill] sm:$0xff] }
 0xd84   :  { %4385 = vmatpush.msrb.mxu2 %v8761_v10  ;;  %4405 = vmatpush.msrb.mxu3 %v8764_v18 }
 0xd85   :  { %4346 = vmatpush.msrb.mxu0 %v8767_v62  ;;  %4366 = vmatpush.msrb.mxu1 %v8770_v25  ;;  %v9919_v62 = vld [vmem:[#allocation65_spill] sm:$0xff] }
 0xd86   :  { %4386 = vmatpush.msrb.mxu2 %v8773_v43  ;;  %4406 = vmatpush.msrb.mxu3 %v8776_v19  ;;  %v9918_v43 = vld [vmem:[#allocation53_spill] sm:$0xff] }
 0xd87   :  { %4347 = vmatpush.msrb.mxu0 %v8779_v28  ;;  %4367 = vmatpush.msrb.mxu1 %v8782_v54  ;;  %v8800_v54 = vld [vmem:[#allocation16 + $0x18] sm:$0xff] }
 0xd88   :  { %4387 = vmatpush.msrb.mxu2 %v8785_v34  ;;  %4407 = vmatpush.msrb.mxu3 %v8788_v38  ;;  %9917 = vst [vmem:[#allocation60_spill] sm:$0xff] %v8800_v54 }
 0xd89   :  { %4348 = vmatpush.msrb.mxu0 %v8791_v57  ;;  %4368 = vmatpush.msrb.mxu1 %v8794_v47 }
 0xd8a   :  { %4388 = vmatpush.msrb.mxu2 %v8797_v21  ;;  %4408 = vmatpush.msrb.mxu3 %v8800_v54 }
 0xde6   :  { %v4035_v34 = vpop.f32.mrf.mxu0  ;;  %v4055_v28 = vpop.f32.mrf.mxu1 }
 0xde7   :  { %v4102_v19 = vrot.slane %v4035_v34, 2  ;;  %v4103_v38 = vrot.slane %v4055_v28, 2  ;;  %v9921_v28 = vld [vmem:[#allocation70_spill] sm:$0xff] }
 0xde9   :  { %v4110_v25 = vadd.f32 %v4102_v19, %v9918_v43  ;;  %v4111_v57 = vadd.f32 %v4103_v38, %v9919_v62 }
 0xdeb   :  { %v5031_v18 = vmul.f32 -1.442695, %v4110_v25  ;;  %v5032_v10 = vmul.f32 -1.442695, %v4111_v57 }
 0xded   :  { %5371 = vpow2.f32 %v5031_v18  ;;  %v4095_v47 = vpop.f32.mrf.mxu3  ;;  %v4075_v34 = vpop.f32.mrf.mxu2 }
 0xdee   :  { %5373 = vpow2.f32 %v5032_v10  ;;  %v4105_v12 = vrot.slane %v4095_v47, 2  ;;  %v4104_v43 = vrot.slane %v4075_v34, 2 }
 0xdf0   :  { %v4113_v21 = vadd.f32 %v4105_v12, %v9920_v1  ;;  %v4112_v18 = vadd.f32 %v4104_v43, %v9921_v28 }
 0xdf2   :  { %v5033_v4 = vmul.f32 -1.442695, %v4113_v21 }
 0xdf3   :  { %v5372_v14 = vpop.eup %5371 }
 0xdf4   :  { %v5374_v59 = vpop.eup %5373  ;;  %v4117_v54 = vadd.f32 1.0, %v5372_v14  ;;  %5375 = vpow2.f32 %v5033_v4 }
 0xdf5   :  { %v4136_v32 = vadd.f32 1.0, %v5374_v59 }
 0xdf6   :  { %5377 = vrcp.f32 %v4117_v54  ;;  %v4129_v47 = vand.u32 2147483648, %v4117_v54  ;;  %v4127_v59 = vand.u32 2147483647, %v4117_v54  ;;  %vm4123_vm7 = vweird.f32 %v4117_v54 }
 0xdf7   :  { %5379 = vrcp.f32 %v4136_v32  ;;  %v4148_v14 = vand.u32 2147483648, %v4136_v32  ;;  %v4146_v34 = vand.u32 2147483647, %v4136_v32  ;;  %vm4142_vm8 = vweird.f32 %v4136_v32 }
 0xdf8   :  { %v4130_v43 = vor.u32 1.1754944e-38, %v4129_v47  ;;  %vm4128_vm11 = vcmp.eq.f32.partialorder %v4127_v59, 8.507059e+37 }
 0xdf9   :  { %vm4147_vm12 = vcmp.eq.f32.partialorder %v4146_v34, 8.507059e+37  ;;  %v9927_v34 = vld [vmem:[#allocation45_spill] sm:$0xff] }
 0xdfa   :  { %v5376_v19 = vpop.eup %5375 }
 0xdfb   :  { %v4156_v62 = vadd.f32 1.0, %v5376_v19 }
 0xdfc   :  { %v5378_v25 = vpop.eup %5377 }
 0xdfd   :  { %v5380_v38 = vpop.eup %5379  ;;  %v4119_v10 = vmul.f32 %v5378_v25, %v4117_v54  ;;  %5381 = vrcp.f32 %v4156_v62  ;;  %vm4124_vm5 = vweird.f32 %v5378_v25  ;;  %vm4162_vm14 = vweird.f32 %v4156_v62 }
 0xdfe   :  { %v4138_v57 = vmul.f32 %v5380_v38, %v4136_v32  ;;  %5383 = vtanh.f32 %v4112_v18  ;;  %vm4143_vm6 = vweird.f32 %v5380_v38  ;;  %vm4125_vm9 = vmor %vm4123_vm7, %vm4124_vm5 }
 0xdff   :  { %v4120_v1 = vsub.f32 1.0, %v4119_v10  ;;  %v4173_v10 = vrot.slane %v8704_v50, 6  ;;  %vm4144_vm10 = vmor %vm4142_vm8, %vm4143_vm6  ;;  %v4168_v50 = vand.u32 2147483648, %v4156_v62 }
 0xe00   :  { %v4139_v12 = vsub.f32 1.0, %v4138_v57  ;;  %v4149_v57 = vor.u32 1.1754944e-38, %v4148_v14  ;;  %v4166_v14 = vand.u32 2147483647, %v4156_v62 }
 0xe01   :  { %v4121_v4 = vmul.f32 %v5378_v25, %v4120_v1  ;;  %v4169_v59 = vor.u32 1.1754944e-38, %v4168_v50  ;;  %v9939_v50 = vld [vmem:[#allocation56_spill] sm:$0xff] }
 0xe02   :  { %v4140_v21 = vmul.f32 %v5380_v38, %v4139_v12  ;;  %vm4167_vm0 = vcmp.eq.f32.partialorder %v4166_v14, 8.507059e+37  ;;  %v9940_v14 = vld [vmem:[#allocation57_spill] sm:$0xff] }
 0xe03   :  { %v5382_v45 = vpop.eup %5381  ;;  %v4122_v19 = vadd.f32 %v5378_v25, %v4121_v4 }
 0xe04   :  { %v4141_v28 = vadd.f32 %v5380_v38, %v4140_v21  ;;  %v4158_v0 = vmul.f32 %v5382_v45, %v4156_v62  ;;  %v5384_v1 = vpop.eup %5383  ;;  %vm4163_vm13 = vweird.f32 %v5382_v45  ;;  %v9926_v62 = vld [vmem:[#allocation64_spill] sm:$0xff] }
 0xe05   :  { %v4126_v18 = vsel %vm4125_vm9, %v5378_v25, %v4122_v19  ;;  %vm4164_vm15 = vmor %vm4162_vm14, %vm4163_vm13  ;;  %v9928_v19 = vld [vmem:[#allocation40_spill] sm:$0xff] }
 0xe06   :  { %v4131_v24 = vsel %vm4128_vm11, %v4130_v43, %v4126_v18  ;;  %v4145_v11 = vsel %vm4144_vm10, %v5380_v38, %v4141_v28  ;;  %v4159_v12 = vsub.f32 1.0, %v4158_v0  ;;  %v9929_v43 = vld [vmem:[#allocation36_spill] sm:$0xff]  ;;  %v9933_v18 = vld [vmem:[#allocation49_spill] sm:$0xff] }
 0xe07   :  { %v4150_v31 = vsel %vm4147_vm12, %v4149_v57, %v4145_v11  ;;  %v4176_v63 = vmul.f32 %v5384_v1, %v4131_v24  ;;  %v9924_v24 = vld [vmem:[#allocation62_spill] sm:$0xff]  ;;  %v9930_v28 = vld [vmem:[#allocation48_spill] sm:$0xff]  ;;  %v9932_v57 = vld [vmem:[#allocation55_spill] sm:$0xff] }
 0xe08   :  { %v4175_v4 = vmul.f32 %v4173_v10, %v4150_v31  ;;  %v4160_v54 = vmul.f32 %v5382_v45, %v4159_v12  ;;  %v9923_v31 = vld [vmem:[#allocation67_spill] sm:$0xff]  ;;  %v9931_v10 = vld [vmem:[#allocation54_spill] sm:$0xff]  ;;  %v9934_v1 = vld [vmem:[#allocation41_spill] sm:$0xff] }
 0xe09   :  { %v9935_v12 = vld [vmem:[#allocation46_spill] sm:$0xff] }
 0xe0a   :  { %v8808_v32 = vadd.f32 %v4176_v63, %v4175_v4  ;;  %v4161_v47 = vadd.f32 %v5382_v45, %v4160_v54  ;;  %v9922_v63 = vld [vmem:[#allocation66_spill] sm:$0xff]  ;;  %v9937_v54 = vld [vmem:[#allocation37_spill] sm:$0xff] }
 0xe0b   :  { %v9936_v4 = vld [vmem:[#allocation42_spill] sm:$0xff] }
 0xe0c   :  { %5385 = vtanh.f32 %v8808_v32  ;;  %v4165_v25 = vsel %vm4164_vm15, %v5382_v45, %v4161_v47  ;;  %v9925_v45 = vld [vmem:[#allocation69_spill] sm:$0xff]  ;;  %v9938_v47 = vld [vmem:[#allocation50_spill] sm:$0xff] }
 0xe0d   :  { %v4170_v21 = vsel %vm4167_vm0, %v4169_v59, %v4165_v25  ;;  %v9941_v25 = vld [vmem:[#allocation51_spill] sm:$0xff] }
 0xe0e   :  { %v9942_v59 = vld [vmem:[#allocation43_spill] sm:$0xff] }
 0xe12   :  { %v5386_v38 = vpop.eup %5385 }
 0xe13   :  { %v4179_v0 = vmul.f32 %v5386_v38, %v4170_v21  ;;  %v9943_v38 = vld [vmem:[#allocation47_spill] sm:$0xff]  ;;  %v9944_v21 = vld [vmem:[#allocation44_spill] sm:$0xff] }
 0xe15   :  { %v4181_v11 = vrot.slane %v4179_v0, 6  ;;  %v9945_v0 = vld [vmem:[#allocation39_spill] sm:$0xff] }
 0xe17   :  { %4199 = vmatmul.f32.vlgmr.msra.gmra.mxu0 %v4181_v11  ;;  %4219 = vmatmul.f32.vlgmr.msra.gmra.mxu1 %v4181_v11 }
 0xe18   :  { %4239 = vmatmul.f32.vlgmr.msra.gmra.mxu2 %v4181_v11  ;;  %4259 = vmatmul.f32.vlgmr.msra.gmra.mxu3 %v4181_v11  ;;  %v9946_v11 = vld [vmem:[#allocation52_spill] sm:$0xff] }
 0xe19   :  { %4498 = vmatpush.msra.mxu0 %v8539_v42  ;;  %4518 = vmatpush.msra.mxu1 %v8542_v5 }
 0xe1a   :  { %4538 = vmatpush.msra.mxu2 %v8545_v15  ;;  %4558 = vmatpush.msra.mxu3 %v8548_v44 }
 0xe1b   :  { %4499 = vmatpush.msra.mxu0 %v8551_v61  ;;  %4519 = vmatpush.msra.mxu1 %v8554_v40 }
 0xe1c   :  { %4539 = vmatpush.msra.mxu2 %v8557_v56  ;;  %4559 = vmatpush.msra.mxu3 %v8560_v8 }
 0xe1d   :  { %4500 = vmatpush.msra.mxu0 %v8563_v16  ;;  %4520 = vmatpush.msra.mxu1 %v8566_v58 }
 0xe1e   :  { %4540 = vmatpush.msra.mxu2 %v8569_v9  ;;  %4560 = vmatpush.msra.mxu3 %v8572_v36 }
 0xe1f   :  { %4501 = vmatpush.msra.mxu0 %v8575_v35  ;;  %4521 = vmatpush.msra.mxu1 %v8578_v23 }
 0xe20   :  { %4541 = vmatpush.msra.mxu2 %v8581_v29  ;;  %4561 = vmatpush.msra.mxu3 %v8584_v7 }
 0xe21   :  { %4502 = vmatpush.msra.mxu0 %v8587_v41  ;;  %4522 = vmatpush.msra.mxu1 %v8590_v53 }
 0xe22   :  { %4542 = vmatpush.msra.mxu2 %v8593_v51  ;;  %4562 = vmatpush.msra.mxu3 %v8596_v48 }
 0xe23   :  { %4503 = vmatpush.msra.mxu0 %v8599_v26  ;;  %4523 = vmatpush.msra.mxu1 %v8602_v20 }
 0xe24   :  { %4543 = vmatpush.msra.mxu2 %v8605_v37  ;;  %4563 = vmatpush.msra.mxu3 %v8608_v27 }
 0xe25   :  { %4504 = vmatpush.msra.mxu0 %v8611_v6  ;;  %4524 = vmatpush.msra.mxu1 %v8614_v39 }
 0xe26   :  { %4544 = vmatpush.msra.mxu2 %v8617_v52  ;;  %4564 = vmatpush.msra.mxu3 %v8620_v33 }
 0xe27   :  { %4505 = vmatpush.msra.mxu0 %v8623_v2  ;;  %4525 = vmatpush.msra.mxu1 %v8626_v55 }
 0xe28   :  { %4545 = vmatpush.msra.mxu2 %v8629_v30  ;;  %4565 = vmatpush.msra.mxu3 %v8632_v49 }
 0xe29   :  { %4506 = vmatpush.msra.mxu0 %v8635_v13  ;;  %4526 = vmatpush.msra.mxu1 %v8638_v22 }
 0xe2a   :  { %4546 = vmatpush.msra.mxu2 %v8641_v60  ;;  %4566 = vmatpush.msra.mxu3 %v8644_v46 }
 0xe2b   :  { %4507 = vmatpush.msra.mxu0 %v8647_v17  ;;  %4527 = vmatpush.msra.mxu1 %v9892_v3 }
 0xe2c   :  { %4547 = vmatpush.msra.mxu2 %v9922_v63  ;;  %4567 = vmatpush.msra.mxu3 %v9923_v31 }
 0xe2d   :  { %4508 = vmatpush.msra.mxu0 %v9924_v24  ;;  %4528 = vmatpush.msra.mxu1 %v9925_v45 }
 0xe2e   :  { %4548 = vmatpush.msra.mxu2 %v9926_v62  ;;  %4568 = vmatpush.msra.mxu3 %v9927_v34 }
 0xe2f   :  { %4509 = vmatpush.msra.mxu0 %v9928_v19  ;;  %4529 = vmatpush.msra.mxu1 %v9929_v43 }
 0xe30   :  { %4549 = vmatpush.msra.mxu2 %v9930_v28  ;;  %4569 = vmatpush.msra.mxu3 %v9931_v10 }
 0xe31   :  { %4510 = vmatpush.msra.mxu0 %v9932_v57  ;;  %4530 = vmatpush.msra.mxu1 %v9933_v18  ;;  %v9956_v57 = vld [vmem:[#allocation38_spill] sm:$0xff] }
 0xe32   :  { %4550 = vmatpush.msra.mxu2 %v9934_v1  ;;  %4570 = vmatpush.msra.mxu3 %v9935_v12  ;;  %v9950_v12 = vld [vmem:[#allocation59_spill] sm:$0xff] }
 0xe33   :  { %4511 = vmatpush.msra.mxu0 %v9936_v4  ;;  %4531 = vmatpush.msra.mxu1 %v9937_v54  ;;  %v9947_v4 = vld [vmem:[#allocation60_spill] sm:$0xff]  ;;  %v9948_v54 = vld [vmem:[#allocation58_spill] sm:$0xff] }
 0xe34   :  { %4551 = vmatpush.msra.mxu2 %v9938_v47  ;;  %4571 = vmatpush.msra.mxu3 %v9939_v50  ;;  %v9949_v47 = vperm.slane %v9948_v54, 0 }
 0xe35   :  { %4512 = vmatpush.msra.mxu0 %v9940_v14  ;;  %4532 = vmatpush.msra.mxu1 %v9941_v25  ;;  %v9952_v14 = vperm.slane %v9948_v54, 1  ;;  %v9953_v25 = vld [vmem:[#allocation61_spill] sm:$0xff] }
 0xe36   :  { %4552 = vmatpush.msra.mxu2 %v9942_v59  ;;  %4572 = vmatpush.msra.mxu3 %v9943_v38  ;;  %v8878_v50 = vadd.f32 %v9950_v12, %v9949_v47 }
 0xe37   :  { %4513 = vmatpush.msra.mxu0 %v9944_v21  ;;  %4533 = vmatpush.msra.mxu1 %v9945_v0  ;;  %v8883_v1 = vadd.f32 %v9953_v25, %v9952_v14 }
 0xe38   :  { %4553 = vmatpush.msra.mxu2 %v9946_v11  ;;  %4573 = vmatpush.msra.mxu3 %v9947_v4  ;;  %9951 = vst [vmem:[#allocation53_spill] sm:$0xff] %v8878_v50  ;;  %v9955_v4 = vperm.slane %v9948_v54, 3 }
 0xe39   :  { %9954 = vst [vmem:[#allocation65_spill] sm:$0xff] %v8883_v1 }
 0xe3a   :  { %v8890_v10 = vadd.f32 %v9956_v57, %v9955_v4 }
 0xe3c   :  { %9957 = vst [vmem:[#allocation63_spill] sm:$0xff] %v8890_v10 }
 0xe94   :  { %v4200_v59 = vpop.f32.mrf.mxu0  ;;  %v4220_v38 = vpop.f32.mrf.mxu1 }
 0xe95   :  { %v4263_v21 = vadd.f32 %v4200_v59, %v8878_v50  ;;  %v4264_v0 = vadd.f32 %v4220_v38, %v8883_v1 }
 0xe97   :  { %v5034_v18 = vmul.f32 -1.442695, %v4263_v21  ;;  %v5035_v11 = vmul.f32 -1.442695, %v4264_v0  ;;  %v9959_v0 = vld [vmem:[#allocation68_spill] sm:$0xff] }
 0xe99   :  { %5387 = vpow2.f32 %v5034_v18  ;;  %v9958_v18 = vperm.slane %v9948_v54, 2 }
 0xe9a   :  { %5389 = vpow2.f32 %v5035_v11 }
 0xe9b   :  { %v4260_v12 = vpop.f32.mrf.mxu3  ;;  %v4240_v38 = vpop.f32.mrf.mxu2  ;;  %v8896_v1 = vadd.f32 %v9959_v0, %v9958_v18 }
 0xe9c   :  { %v4266_v47 = vadd.f32 %v4260_v12, %v8890_v10 }
 0xe9d   :  { %9960 = vst [vmem:[#allocation70_spill] sm:$0xff] %v8896_v1  ;;  %v4265_v11 = vadd.f32 %v4240_v38, %v8896_v1 }
 0xe9e   :  { %v5036_v14 = vmul.f32 -1.442695, %v4266_v47 }
 0xe9f   :  { %v5388_v25 = vpop.eup %5387 }
 0xea0   :  { %v5390_v28 = vpop.eup %5389  ;;  %v4270_v43 = vadd.f32 1.0, %v5388_v25  ;;  %5391 = vpow2.f32 %v5036_v14 }
 0xea1   :  { %v4289_v59 = vadd.f32 1.0, %v5390_v28 }
 0xea2   :  { %5393 = vrcp.f32 %v4270_v43  ;;  %v4282_v28 = vand.u32 2147483648, %v4270_v43  ;;  %v4280_v34 = vand.u32 2147483647, %v4270_v43  ;;  %vm4276_vm3 = vweird.f32 %v4270_v43 }
 0xea3   :  { %5395 = vrcp.f32 %v4289_v59  ;;  %v4301_v50 = vand.u32 2147483648, %v4289_v59  ;;  %v4299_v18 = vand.u32 2147483647, %v4289_v59  ;;  %vm4295_vm4 = vweird.f32 %v4289_v59 }
 0xea4   :  { %v4283_v38 = vor.u32 1.1754944e-38, %v4282_v28  ;;  %vm4281_vm7 = vcmp.eq.f32.partialorder %v4280_v34, 8.507059e+37 }
 0xea5   :  { %vm4300_vm8 = vcmp.eq.f32.partialorder %v4299_v18, 8.507059e+37 }
 0xea6   :  { %v5392_v21 = vpop.eup %5391 }
 0xea7   :  { %v4309_v57 = vadd.f32 1.0, %v5392_v21 }
 0xea8   :  { %v5394_v4 = vpop.eup %5393 }
 0xea9   :  { %v5396_v12 = vpop.eup %5395  ;;  %v4272_v47 = vmul.f32 %v5394_v4, %v4270_v43  ;;  %5397 = vrcp.f32 %v4309_v57  ;;  %vm4277_vm1 = vweird.f32 %v5394_v4  ;;  %vm4315_vm10 = vweird.f32 %v4309_v57 }
 0xeaa   :  { %v4291_v10 = vmul.f32 %v5396_v12, %v4289_v59  ;;  %5399 = vtanh.f32 %v4265_v11  ;;  %vm4296_vm2 = vweird.f32 %v5396_v12  ;;  %vm4278_vm5 = vmor %vm4276_vm3, %vm4277_vm1  ;;  %v4326_v11 = vrot.slane %v8808_v32, 6 }
 0xeab   :  { %v4273_v25 = vsub.f32 1.0, %v4272_v47  ;;  %vm4297_vm6 = vmor %vm4295_vm4, %vm4296_vm2  ;;  %v4302_v47 = vor.u32 1.1754944e-38, %v4301_v50  ;;  %v4321_v50 = vand.u32 2147483648, %v4309_v57  ;;  %v4319_v34 = vand.u32 2147483647, %v4309_v57 }
 0xeac   :  { %v4292_v14 = vsub.f32 1.0, %v4291_v10 }
 0xead   :  { %v4274_v19 = vmul.f32 %v5394_v4, %v4273_v25  ;;  %vm4320_vm12 = vcmp.eq.f32.partialorder %v4319_v34, 8.507059e+37 }
 0xeae   :  { %v4293_v54 = vmul.f32 %v5396_v12, %v4292_v14 }
 0xeaf   :  { %v5398_v0 = vpop.eup %5397  ;;  %v4275_v21 = vadd.f32 %v5394_v4, %v4274_v19 }
 0xeb0   :  { %v4294_v1 = vadd.f32 %v5396_v12, %v4293_v54  ;;  %v4311_v62 = vmul.f32 %v5398_v0, %v4309_v57  ;;  %v5400_v25 = vpop.eup %5399  ;;  %vm4316_vm9 = vweird.f32 %v5398_v0 }
 0xeb1   :  { %v4279_v10 = vsel %vm4278_vm5, %v5394_v4, %v4275_v21  ;;  %vm4317_vm11 = vmor %vm4315_vm10, %vm4316_vm9  ;;  %v4322_v4 = vor.u32 1.1754944e-38, %v4321_v50 }
 0xeb2   :  { %v4284_v45 = vsel %vm4281_vm7, %v4283_v38, %v4279_v10  ;;  %v4298_v24 = vsel %vm4297_vm6, %v5396_v12, %v4294_v1  ;;  %v4312_v14 = vsub.f32 1.0, %v4311_v62 }
 0xeb3   :  { %v4303_v31 = vsel %vm4300_vm8, %v4302_v47, %v4298_v24  ;;  %v4329_v63 = vmul.f32 %v5400_v25, %v4284_v45 }
 0xeb4   :  { %v4328_v19 = vmul.f32 %v4326_v11, %v4303_v31  ;;  %v4313_v43 = vmul.f32 %v5398_v0, %v4312_v14  ;;  %v9990_v11 = vld [vmem:[#allocation70_spill] sm:$0xff] }
 0xeb6   :  { %v8900_v59 = vadd.f32 %v4329_v63, %v4328_v19  ;;  %v4314_v28 = vadd.f32 %v5398_v0, %v4313_v43  ;;  %v9989_v63 = vld [vmem:[#allocation63_spill] sm:$0xff] }
 0xeb8   :  { %5401 = vtanh.f32 %v8900_v59  ;;  %v4318_v32 = vsel %vm4317_vm11, %v5398_v0, %v4314_v28 }
 0xeb9   :  { %v4323_v12 = vsel %vm4320_vm12, %v4322_v4, %v4318_v32 }
 0xebe   :  { %v5402_v1 = vpop.eup %5401 }
 0xebf   :  { %v4332_v62 = vmul.f32 %v5402_v1, %v4323_v12 }
 0xec1   :  { %4349 = vmatmul.f32.vlgmr.msrb.gmra.mxu0 %v4332_v62  ;;  %4369 = vmatmul.f32.vlgmr.msrb.gmra.mxu1 %v4332_v62 }
 0xec2   :  { %4389 = vmatmul.f32.vlgmr.msrb.gmra.mxu2 %v4332_v62  ;;  %4409 = vmatmul.f32.vlgmr.msrb.gmra.mxu3 %v4332_v62 }
 0xec3   :  { %4663 = vmatpush.msrb.mxu0 %v8539_v42  ;;  %4683 = vmatpush.msrb.mxu1 %v8542_v5  ;;  %v9961_v42 = vld [vmem:[#allocation66_spill] sm:$0xff]  ;;  %v9962_v5 = vld [vmem:[#allocation67_spill] sm:$0xff] }
 0xec4   :  { %4703 = vmatpush.msrb.mxu2 %v8545_v15  ;;  %4723 = vmatpush.msrb.mxu3 %v8548_v44  ;;  %v9963_v15 = vld [vmem:[#allocation62_spill] sm:$0xff]  ;;  %v9964_v44 = vld [vmem:[#allocation69_spill] sm:$0xff] }
 0xec5   :  { %4664 = vmatpush.msrb.mxu0 %v8551_v61  ;;  %4684 = vmatpush.msrb.mxu1 %v8554_v40  ;;  %v9965_v61 = vld [vmem:[#allocation64_spill] sm:$0xff]  ;;  %v9966_v40 = vld [vmem:[#allocation45_spill] sm:$0xff] }
 0xec6   :  { %4704 = vmatpush.msrb.mxu2 %v8557_v56  ;;  %4724 = vmatpush.msrb.mxu3 %v8560_v8  ;;  %v9967_v56 = vld [vmem:[#allocation40_spill] sm:$0xff] }
 0xec7   :  { %4665 = vmatpush.msrb.mxu0 %v8563_v16  ;;  %4685 = vmatpush.msrb.mxu1 %v8566_v58  ;;  %v9968_v8 = vld [vmem:[#allocation36_spill] sm:$0xff]  ;;  %v9970_v58 = vld [vmem:[#allocation54_spill] sm:$0xff] }
 0xec8   :  { %4705 = vmatpush.msrb.mxu2 %v8569_v9  ;;  %4725 = vmatpush.msrb.mxu3 %v8572_v36  ;;  %v9969_v16 = vld [vmem:[#allocation48_spill] sm:$0xff]  ;;  %v9971_v9 = vld [vmem:[#allocation55_spill] sm:$0xff]  ;;  %v9972_v36 = vld [vmem:[#allocation49_spill] sm:$0xff] }
 0xec9   :  { %4666 = vmatpush.msrb.mxu0 %v8575_v35  ;;  %4686 = vmatpush.msrb.mxu1 %v8578_v23  ;;  %v9973_v35 = vld [vmem:[#allocation41_spill] sm:$0xff]  ;;  %v9974_v23 = vld [vmem:[#allocation46_spill] sm:$0xff] }
 0xeca   :  { %4706 = vmatpush.msrb.mxu2 %v8581_v29  ;;  %4726 = vmatpush.msrb.mxu3 %v8584_v7  ;;  %v9975_v29 = vld [vmem:[#allocation42_spill] sm:$0xff]  ;;  %v9976_v7 = vld [vmem:[#allocation37_spill] sm:$0xff] }
 0xecb   :  { %4667 = vmatpush.msrb.mxu0 %v8587_v41  ;;  %4687 = vmatpush.msrb.mxu1 %v8590_v53  ;;  %v9977_v41 = vld [vmem:[#allocation50_spill] sm:$0xff]  ;;  %v9978_v53 = vld [vmem:[#allocation56_spill] sm:$0xff] }
 0xecc   :  { %4707 = vmatpush.msrb.mxu2 %v8593_v51  ;;  %4727 = vmatpush.msrb.mxu3 %v8596_v48  ;;  %v9979_v51 = vld [vmem:[#allocation57_spill] sm:$0xff]  ;;  %v9980_v48 = vld [vmem:[#allocation51_spill] sm:$0xff] }
 0xecd   :  { %4668 = vmatpush.msrb.mxu0 %v8599_v26  ;;  %4688 = vmatpush.msrb.mxu1 %v8602_v20  ;;  %v9981_v26 = vld [vmem:[#allocation43_spill] sm:$0xff] }
 0xece   :  { %4708 = vmatpush.msrb.mxu2 %v8605_v37  ;;  %4728 = vmatpush.msrb.mxu3 %v8608_v27  ;;  %v9982_v20 = vld [vmem:[#allocation47_spill] sm:$0xff]  ;;  %v9983_v37 = vld [vmem:[#allocation44_spill] sm:$0xff] }
 0xecf   :  { %4669 = vmatpush.msrb.mxu0 %v8611_v6  ;;  %4689 = vmatpush.msrb.mxu1 %v8614_v39  ;;  %v9984_v27 = vld [vmem:[#allocation39_spill] sm:$0xff]  ;;  %v9985_v6 = vld [vmem:[#allocation52_spill] sm:$0xff] }
 0xed0   :  { %4709 = vmatpush.msrb.mxu2 %v8617_v52  ;;  %4729 = vmatpush.msrb.mxu3 %v8620_v33  ;;  %v9986_v39 = vld [vmem:[#allocation60_spill] sm:$0xff] }
 0xed1   :  { %4670 = vmatpush.msrb.mxu0 %v8623_v2  ;;  %4690 = vmatpush.msrb.mxu1 %v8626_v55 }
 0xed2   :  { %4710 = vmatpush.msrb.mxu2 %v8629_v30  ;;  %4730 = vmatpush.msrb.mxu3 %v8632_v49  ;;  %v9987_v30 = vld [vmem:[#allocation53_spill] sm:$0xff] }
 0xed3   :  { %4671 = vmatpush.msrb.mxu0 %v8635_v13  ;;  %4691 = vmatpush.msrb.mxu1 %v8638_v22  ;;  %v9988_v13 = vld [vmem:[#allocation65_spill] sm:$0xff] }
 0xed4   :  { %4711 = vmatpush.msrb.mxu2 %v8641_v60  ;;  %4731 = vmatpush.msrb.mxu3 %v8644_v46 }
 0xed5   :  { %4672 = vmatpush.msrb.mxu0 %v8647_v17  ;;  %4692 = vmatpush.msrb.mxu1 %v9892_v3 }
 0xed6   :  { %4712 = vmatpush.msrb.mxu2 %v9961_v42  ;;  %4732 = vmatpush.msrb.mxu3 %v9962_v5 }
 0xed7   :  { %4673 = vmatpush.msrb.mxu0 %v9963_v15  ;;  %4693 = vmatpush.msrb.mxu1 %v9964_v44 }
 0xed8   :  { %4713 = vmatpush.msrb.mxu2 %v9965_v61  ;;  %4733 = vmatpush.msrb.mxu3 %v9966_v40  ;;  %v4488_v40 = vrot.slane %v8900_v59, 6 }
 0xed9   :  { %4674 = vmatpush.msrb.mxu0 %v9967_v56  ;;  %4694 = vmatpush.msrb.mxu1 %v9968_v8 }
 0xeda   :  { %4714 = vmatpush.msrb.mxu2 %v9969_v16  ;;  %4734 = vmatpush.msrb.mxu3 %v9970_v58 }
 0xedb   :  { %4675 = vmatpush.msrb.mxu0 %v9971_v9  ;;  %4695 = vmatpush.msrb.mxu1 %v9972_v36 }
 0xedc   :  { %4715 = vmatpush.msrb.mxu2 %v9973_v35  ;;  %4735 = vmatpush.msrb.mxu3 %v9974_v23 }
 0xedd   :  { %4676 = vmatpush.msrb.mxu0 %v9975_v29  ;;  %4696 = vmatpush.msrb.mxu1 %v9976_v7 }
 0xede   :  { %4716 = vmatpush.msrb.mxu2 %v9977_v41  ;;  %4736 = vmatpush.msrb.mxu3 %v9978_v53 }
 0xedf   :  { %4677 = vmatpush.msrb.mxu0 %v9979_v51  ;;  %4697 = vmatpush.msrb.mxu1 %v9980_v48 }
 0xee0   :  { %4717 = vmatpush.msrb.mxu2 %v9981_v26  ;;  %4737 = vmatpush.msrb.mxu3 %v9982_v20 }
 0xee1   :  { %4678 = vmatpush.msrb.mxu0 %v9983_v37  ;;  %4698 = vmatpush.msrb.mxu1 %v9984_v27 }
 0xee2   :  { %4718 = vmatpush.msrb.mxu2 %v9985_v6  ;;  %4738 = vmatpush.msrb.mxu3 %v9986_v39 }
 0xf3e   :  { %v4350_v52 = vpop.f32.mrf.mxu0  ;;  %v4370_v33 = vpop.f32.mrf.mxu1 }
 0xf3f   :  { %v4417_v2 = vrot.slane %v4350_v52, 6  ;;  %v4418_v55 = vrot.slane %v4370_v33, 6 }
 0xf41   :  { %v4425_v49 = vadd.f32 %v4417_v2, %v9987_v30  ;;  %v4426_v22 = vadd.f32 %v4418_v55, %v9988_v13 }
 0xf43   :  { %v5037_v60 = vmul.f32 -1.442695, %v4425_v49  ;;  %v5038_v46 = vmul.f32 -1.442695, %v4426_v22 }
 0xf45   :  { %5403 = vpow2.f32 %v5037_v60  ;;  %v4410_v17 = vpop.f32.mrf.mxu3  ;;  %v4390_v0 = vpop.f32.mrf.mxu2 }
 0xf46   :  { %5405 = vpow2.f32 %v5038_v46  ;;  %v4420_v3 = vrot.slane %v4410_v17, 6  ;;  %v4419_v21 = vrot.slane %v4390_v0, 6 }
 0xf48   :  { %v4428_v31 = vadd.f32 %v4420_v3, %v9989_v63  ;;  %v4427_v25 = vadd.f32 %v4419_v21, %v9990_v11 }
 0xf4a   :  { %v5039_v24 = vmul.f32 -1.442695, %v4428_v31 }
 0xf4b   :  { %v5404_v45 = vpop.eup %5403 }
 0xf4c   :  { %v5406_v57 = vpop.eup %5405  ;;  %v4432_v54 = vadd.f32 1.0, %v5404_v45  ;;  %5407 = vpow2.f32 %v5039_v24 }
 0xf4d   :  { %v4451_v18 = vadd.f32 1.0, %v5406_v57 }
 0xf4e   :  { %5409 = vrcp.f32 %v4432_v54  ;;  %v4444_v34 = vand.u32 2147483648, %v4432_v54  ;;  %v4442_v1 = vand.u32 2147483647, %v4432_v54  ;;  %vm4438_vm15 = vweird.f32 %v4432_v54 }
 0xf4f   :  { %5411 = vrcp.f32 %v4451_v18  ;;  %v4463_v32 = vand.u32 2147483648, %v4451_v18  ;;  %v4461_v62 = vand.u32 2147483647, %v4451_v18  ;;  %vm4457_vm0 = vweird.f32 %v4451_v18 }
 0xf50   :  { %v4445_v15 = vor.u32 1.1754944e-38, %v4444_v34  ;;  %vm4443_vm3 = vcmp.eq.f32.partialorder %v4442_v1, 8.507059e+37 }
 0xf51   :  { %v4464_v56 = vor.u32 1.1754944e-38, %v4463_v32  ;;  %vm4462_vm4 = vcmp.eq.f32.partialorder %v4461_v62, 8.507059e+37 }
 0xf52   :  { %v5408_v38 = vpop.eup %5407 }
 0xf53   :  { %v4471_v47 = vadd.f32 1.0, %v5408_v38 }
 0xf54   :  { %v5410_v10 = vpop.eup %5409 }
 0xf55   :  { %v5412_v14 = vpop.eup %5411  ;;  %v4434_v19 = vmul.f32 %v5410_v10, %v4432_v54  ;;  %5413 = vrcp.f32 %v4471_v47  ;;  %vm4439_vm13 = vweird.f32 %v5410_v10  ;;  %v4483_v59 = vand.u32 2147483648, %v4471_v47 }
 0xf56   :  { %v4453_v43 = vmul.f32 %v5412_v14, %v4451_v18  ;;  %5415 = vtanh.f32 %v4427_v25  ;;  %vm4458_vm14 = vweird.f32 %v5412_v14  ;;  %vm4440_vm1 = vmor %vm4438_vm15, %vm4439_vm13  ;;  %vm4477_vm6 = vweird.f32 %v4471_v47 }
 0xf57   :  { %v4435_v28 = vsub.f32 1.0, %v4434_v19  ;;  %vm4459_vm2 = vmor %vm4457_vm0, %vm4458_vm14  ;;  %v4481_v51 = vand.u32 2147483647, %v4471_v47  ;;  %v4484_v26 = vor.u32 1.1754944e-38, %v4483_v59 }
 0xf58   :  { %v4454_v50 = vsub.f32 1.0, %v4453_v43 }
 0xf59   :  { %v4436_v4 = vmul.f32 %v5410_v10, %v4435_v28  ;;  %vm4482_vm8 = vcmp.eq.f32.partialorder %v4481_v51, 8.507059e+37 }
 0xf5a   :  { %v4455_v12 = vmul.f32 %v5412_v14, %v4454_v50 }
 0xf5b   :  { %v5414_v42 = vpop.eup %5413  ;;  %v4437_v5 = vadd.f32 %v5410_v10, %v4436_v4 }
 0xf5c   :  { %v4456_v44 = vadd.f32 %v5412_v14, %v4455_v12  ;;  %v4473_v61 = vmul.f32 %v5414_v42, %v4471_v47  ;;  %v5416_v16 = vpop.eup %5415  ;;  %vm4478_vm5 = vweird.f32 %v5414_v42 }
 0xf5d   :  { %v4441_v8 = vsel %vm4440_vm1, %v5410_v10, %v4437_v5  ;;  %vm4479_vm7 = vmor %vm4477_vm6, %vm4478_vm5 }
 0xf5e   :  { %v4446_v58 = vsel %vm4443_vm3, %v4445_v15, %v4441_v8  ;;  %v4460_v9 = vsel %vm4459_vm2, %v5412_v14, %v4456_v44  ;;  %v4474_v36 = vsub.f32 1.0, %v4473_v61 }
 0xf5f   :  { %v4465_v35 = vsel %vm4462_vm4, %v4464_v56, %v4460_v9  ;;  %v4491_v23 = vmul.f32 %v5416_v16, %v4446_v58 }
 0xf60   :  { %v4490_v29 = vmul.f32 %v4488_v40, %v4465_v35  ;;  %v4475_v7 = vmul.f32 %v5414_v42, %v4474_v36 }
 0xf62   :  { %v8972_v41 = vadd.f32 %v4491_v23, %v4490_v29  ;;  %v4476_v53 = vadd.f32 %v5414_v42, %v4475_v7 }
 0xf64   :  { %5417 = vtanh.f32 %v8972_v41  ;;  %v4480_v48 = vsel %vm4479_vm7, %v5414_v42, %v4476_v53  ;;  %v4653_v61 = vrot.slane %v8972_v41, 6 }
 0xf65   :  { %v4485_v37 = vsel %vm4482_vm8, %v4484_v26, %v4480_v48 }
 0xf6a   :  { %v5418_v20 = vpop.eup %5417 }
 0xf6b   :  { %v4494_v27 = vmul.f32 %v5418_v20, %v4485_v37 }
 0xf6d   :  { %v4496_v6 = vrot.slane %v4494_v27, 2 }
 0xf6f   :  { %4514 = vmatmul.f32.vlgmr.msra.gmra.mxu0 %v4496_v6  ;;  %4534 = vmatmul.f32.vlgmr.msra.gmra.mxu1 %v4496_v6 }
 0xf70   :  { %4554 = vmatmul.f32.vlgmr.msra.gmra.mxu2 %v4496_v6  ;;  %4574 = vmatmul.f32.vlgmr.msra.gmra.mxu3 %v4496_v6  ;;  %v4840_v6 = vld [vmem:[#allocation18 + $0x78] sm:$0xff] }
 0xf71   :  { %4848 = vmatpush.msra.mxu0 %v4840_v6 }
 0xfec   :  { %v4515_v39 = vpop.f32.mrf.mxu0  ;;  %v4535_v52 = vpop.f32.mrf.mxu1 }
 0xfed   :  { %v4582_v33 = vrot.slane %v4515_v39, 4  ;;  %v4583_v2 = vrot.slane %v4535_v52, 4  ;;  %v4839_v39 = vld [vmem:[#allocation18 + $0x70] sm:$0xff]  ;;  %v4838_v52 = vld [vmem:[#allocation18 + $0x68] sm:$0xff] }
 0xfee   :  { %4849 = vmatpush.msra.mxu0 %v4839_v39 }
 0xfef   :  { %v4590_v55 = vadd.f32 %v4582_v33, %v9987_v30  ;;  %v4591_v49 = vadd.f32 %v4583_v2, %v9988_v13  ;;  %v4837_v33 = vld [vmem:[#allocation18 + $0x60] sm:$0xff]  ;;  %v4836_v2 = vld [vmem:[#allocation18 + $0x58] sm:$0xff] }
 0xff0   :  { %4850 = vmatpush.msra.mxu0 %v4838_v52  ;;  %v4893_v52 = vld [vmem:[#allocation21 + $0x38] sm:$0xff] }
 0xff1   :  { %v5040_v22 = vmul.f32 -1.442695, %v4590_v55  ;;  %v5041_v60 = vmul.f32 -1.442695, %v4591_v49  ;;  %v4835_v55 = vld [vmem:[#allocation18 + $0x50] sm:$0xff]  ;;  %v4834_v49 = vld [vmem:[#allocation18 + $0x48] sm:$0xff] }
 0xff2   :  { %4851 = vmatpush.msra.mxu0 %v4837_v33 }
 0xff3   :  { %5419 = vpow2.f32 %v5040_v22  ;;  %v4575_v46 = vpop.f32.mrf.mxu3  ;;  %v4555_v18 = vpop.f32.mrf.mxu2 }
 0xff4   :  { %5421 = vpow2.f32 %v5041_v60  ;;  %v4585_v17 = vrot.slane %v4575_v46, 4  ;;  %v4584_v0 = vrot.slane %v4555_v18, 4  ;;  %4852 = vmatpush.msra.mxu0 %v4836_v2  ;;  %v4833_v46 = vld [vmem:[#allocation18 + $0x40] sm:$0xff] }
 0xff6   :  { %v4593_v3 = vadd.f32 %v4585_v17, %v9989_v63  ;;  %v4592_v10 = vadd.f32 %v4584_v0, %v9990_v11  ;;  %4853 = vmatpush.msra.mxu0 %v4835_v55  ;;  %v4830_v0 = vld [vmem:[#allocation18 + $0x28] sm:$0xff] }
 0xff8   :  { %v5042_v31 = vmul.f32 -1.442695, %v4593_v3  ;;  %4854 = vmatpush.msra.mxu0 %v4834_v49 }
 0xff9   :  { %v5420_v24 = vpop.eup %5419 }
 0xffa   :  { %v5422_v45 = vpop.eup %5421  ;;  %v4597_v57 = vadd.f32 1.0, %v5420_v24  ;;  %5423 = vpow2.f32 %v5042_v31  ;;  %4855 = vmatpush.msra.mxu0 %v4833_v46  ;;  %v4832_v31 = vld [vmem:[#allocation18 + $0x38] sm:$0xff] }
 0xffb   :  { %v4616_v54 = vadd.f32 1.0, %v5422_v45  ;;  %v4892_v46 = vld [vmem:[#allocation21 + $0x30] sm:$0xff] }
 0xffc   :  { %5425 = vrcp.f32 %v4597_v57  ;;  %v4609_v50 = vand.u32 2147483648, %v4597_v57  ;;  %v4607_v4 = vand.u32 2147483647, %v4597_v57  ;;  %vm4603_vm11 = vweird.f32 %v4597_v57  ;;  %4856 = vmatpush.msra.mxu0 %v4832_v31  ;;  %v4891_v31 = vld [vmem:[#allocation21 + $0x28] sm:$0xff] }
 0xffd   :  { %5427 = vrcp.f32 %v4616_v54  ;;  %v4628_v34 = vand.u32 2147483648, %v4616_v54  ;;  %v4626_v12 = vand.u32 2147483647, %v4616_v54  ;;  %vm4622_vm12 = vweird.f32 %v4616_v54 }
 0xffe   :  { %v4610_v5 = vor.u32 1.1754944e-38, %v4609_v50  ;;  %vm4608_vm15 = vcmp.eq.f32.partialorder %v4607_v4, 8.507059e+37  ;;  %v4825_v50 = vld [vmem:[#allocation18] sm:$0xff] }
 0xfff   :  { %v4629_v40 = vor.u32 1.1754944e-38, %v4628_v34  ;;  %vm4627_vm0 = vcmp.eq.f32.partialorder %v4626_v12, 8.507059e+37  ;;  %v4901_v4 = vld [vmem:[#allocation21 + $0x78] sm:$0xff] }
0x1000   :  { %v5424_v21 = vpop.eup %5423  ;;  %4906 = vmatpush.msra.mxu1 %v4901_v4 }
0x1001   :  { %v4636_v38 = vadd.f32 1.0, %v5424_v21  ;;  %v4829_v21 = vld [vmem:[#allocation18 + $0x20] sm:$0xff] }
0x1002   :  { %v5426_v47 = vpop.eup %5425 }
0x1003   :  { %v5428_v25 = vpop.eup %5427  ;;  %v4599_v14 = vmul.f32 %v5426_v47, %v4597_v57  ;;  %5429 = vrcp.f32 %v4636_v38  ;;  %vm4604_vm9 = vweird.f32 %v5426_v47  ;;  %v4648_v41 = vand.u32 2147483648, %v4636_v38  ;;  %v4831_v57 = vld [vmem:[#allocation18 + $0x30] sm:$0xff] }
0x1004   :  { %v4618_v19 = vmul.f32 %v5428_v25, %v4616_v54  ;;  %5431 = vtanh.f32 %v4592_v10  ;;  %vm4623_vm10 = vweird.f32 %v5428_v25  ;;  %vm4605_vm13 = vmor %vm4603_vm11, %vm4604_vm9  ;;  %vm4642_vm2 = vweird.f32 %v4636_v38  ;;  %4857 = vmatpush.msra.mxu0 %v4831_v57  ;;  %v4828_v10 = vld [vmem:[#allocation18 + $0x18] sm:$0xff] }
0x1005   :  { %v4600_v43 = vsub.f32 1.0, %v4599_v14  ;;  %vm4624_vm14 = vmor %vm4622_vm12, %vm4623_vm10  ;;  %v4646_v59 = vand.u32 2147483647, %v4636_v38  ;;  %v4649_v48 = vor.u32 1.1754944e-38, %v4648_v41  ;;  %v4827_v14 = vld [vmem:[#allocation18 + $0x10] sm:$0xff] }
0x1006   :  { %v4619_v28 = vsub.f32 1.0, %v4618_v19  ;;  %4858 = vmatpush.msra.mxu0 %v4830_v0 }
0x1007   :  { %v4601_v32 = vmul.f32 %v5426_v47, %v4600_v43  ;;  %vm4647_vm4 = vcmp.eq.f32.partialorder %v4646_v59, 8.507059e+37 }
0x1008   :  { %v4620_v1 = vmul.f32 %v5428_v25, %v4619_v28  ;;  %4859 = vmatpush.msra.mxu0 %v4829_v21  ;;  %v4888_v21 = vld [vmem:[#allocation21 + $0x10] sm:$0xff] }
0x1009   :  { %v5430_v62 = vpop.eup %5429  ;;  %v4602_v42 = vadd.f32 %v5426_v47, %v4601_v32 }
0x100a   :  { %v4621_v15 = vadd.f32 %v5428_v25, %v4620_v1  ;;  %v4638_v44 = vmul.f32 %v5430_v62, %v4636_v38  ;;  %v5432_v8 = vpop.eup %5431  ;;  %vm4643_vm1 = vweird.f32 %v5430_v62  ;;  %4860 = vmatpush.msra.mxu0 %v4828_v10  ;;  %v4900_v1 = vld [vmem:[#allocation21 + $0x70] sm:$0xff] }
0x100b   :  { %v4606_v56 = vsel %vm4605_vm13, %v5426_v47, %v4602_v42  ;;  %vm4644_vm3 = vmor %vm4642_vm2, %vm4643_vm1  ;;  %4907 = vmatpush.msra.mxu1 %v4900_v1  ;;  %vm4869_vm1 = vcmask 1041408   ;;  %v5066_v1 = vld [vmem:[#allocation22] ss:$0 sm:$0xff] }
0x100c   :  { %v4611_v16 = vsel %vm4608_vm15, %v4610_v5, %v4606_v56  ;;  %v4625_v58 = vsel %vm4624_vm14, %v5428_v25, %v4621_v15  ;;  %v4639_v9 = vsub.f32 1.0, %v4638_v44  ;;  %4861 = vmatpush.msra.mxu0 %v4827_v14  ;;  %v4898_v5 = vld [vmem:[#allocation21 + $0x60] sm:$0xff]  ;;  %v4897_v56 = vld [vmem:[#allocation21 + $0x58] sm:$0xff] }
0x100d   :  { %v4630_v36 = vsel %vm4627_vm0, %v4629_v40, %v4625_v58  ;;  %v4656_v35 = vmul.f32 %v5432_v8, %v4611_v16  ;;  %v4896_v58 = vld [vmem:[#allocation21 + $0x50] sm:$0xff] }
0x100e   :  { %v4655_v23 = vmul.f32 %v4653_v61, %v4630_v36  ;;  %v4640_v29 = vmul.f32 %v5430_v62, %v4639_v9 }
0x1010   :  { %v8980_v7 = vadd.f32 %v4656_v35, %v4655_v23  ;;  %v4641_v53 = vadd.f32 %v5430_v62, %v4640_v29 }
0x1012   :  { %5433 = vtanh.f32 %v8980_v7  ;;  %v4645_v51 = vsel %vm4644_vm3, %v5430_v62, %v4641_v53  ;;  %v4895_v53 = vld [vmem:[#allocation21 + $0x48] sm:$0xff] }
0x1013   :  { %v4650_v20 = vsel %vm4647_vm4, %v4649_v48, %v4645_v51  ;;  %v4894_v48 = vld [vmem:[#allocation21 + $0x40] sm:$0xff] }
0x1018   :  { %v5434_v26 = vpop.eup %5433 }
0x1019   :  { %v4659_v37 = vmul.f32 %v5434_v26, %v4650_v20 }
0x101b   :  { %v4661_v27 = vrot.slane %v4659_v37, 4 }
0x101d   :  { %4679 = vmatmul.f32.vlgmr.msrb.gmra.mxu0 %v4661_v27  ;;  %4699 = vmatmul.f32.vlgmr.msrb.gmra.mxu1 %v4661_v27 }
0x101e   :  { %4719 = vmatmul.f32.vlgmr.msrb.gmra.mxu2 %v4661_v27  ;;  %4739 = vmatmul.f32.vlgmr.msrb.gmra.mxu3 %v4661_v27  ;;  %v4818_v27 = vrot.slane %v8980_v7, 6 }
0x109a   :  { %v4680_v22 = vpop.f32.mrf.mxu0  ;;  %v4700_v60 = vpop.f32.mrf.mxu1 }
0x109b   :  { %v4747_v17 = vrot.slane %v4680_v22, 2  ;;  %v4748_v3 = vrot.slane %v4700_v60, 2 }
0x109d   :  { %v4755_v24 = vadd.f32 %v4747_v17, %v9987_v30  ;;  %v4756_v45 = vadd.f32 %v4748_v3, %v9988_v13  ;;  %v4826_v13 = vld [vmem:[#allocation18 + $0x8] sm:$0xff] }
0x109e   :  { %4862 = vmatpush.msra.mxu0 %v4826_v13  ;;  %v4886_v13 = vld [vmem:[#allocation21] sm:$0xff] }
0x109f   :  { %v5043_v54 = vmul.f32 -1.442695, %v4755_v24  ;;  %v5044_v18 = vmul.f32 -1.442695, %v4756_v45  ;;  %v4890_v45 = vld [vmem:[#allocation21 + $0x20] sm:$0xff] }
0x10a0   :  { %4863 = vmatpush.msra.mxu0 %v4825_v50 }
0x10a1   :  { %5435 = vpow2.f32 %v5043_v54  ;;  %v4740_v38 = vpop.f32.mrf.mxu3  ;;  %v4720_v32 = vpop.f32.mrf.mxu2 }
0x10a2   :  { %5437 = vpow2.f32 %v5044_v18  ;;  %v4750_v47 = vrot.slane %v4740_v38, 2  ;;  %v4749_v12 = vrot.slane %v4720_v32, 2  ;;  %v4889_v18 = vld [vmem:[#allocation21 + $0x18] sm:$0xff] }
0x10a4   :  { %v4758_v25 = vadd.f32 %v4750_v47, %v9989_v63  ;;  %v4899_v63 = vld [vmem:[#allocation21 + $0x68] sm:$0xff]  ;;  %v4757_v44 = vadd.f32 %v4749_v12, %v9990_v11 }
0x10a5   :  { %4908 = vmatpush.msra.mxu1 %v4899_v63 }
0x10a6   :  { %v5045_v30 = vmul.f32 -1.442695, %v4758_v25 }
0x10a7   :  { %v5436_v19 = vpop.eup %5435  ;;  %4909 = vmatpush.msra.mxu1 %v4898_v5 }
0x10a8   :  { %v5438_v43 = vpop.eup %5437  ;;  %v4762_v28 = vadd.f32 1.0, %v5436_v19  ;;  %5439 = vpow2.f32 %v5045_v30  ;;  %v4887_v30 = vld [vmem:[#allocation21 + $0x8] sm:$0xff]  ;;  %v5065_v19 = vld [vmem:[#allocation19] ss:$0 sm:$0xff] }
0x10a9   :  { %v4781_v34 = vadd.f32 1.0, %v5438_v43  ;;  %4910 = vmatpush.msra.mxu1 %v4897_v56 }
0x10aa   :  { %5441 = vrcp.f32 %v4762_v28  ;;  %v4774_v36 = vand.u32 2147483648, %v4762_v28  ;;  %v4772_v29 = vand.u32 2147483647, %v4762_v28  ;;  %vm4768_vm7 = vweird.f32 %v4762_v28 }
0x10ab   :  { %5443 = vrcp.f32 %v4781_v34  ;;  %v4793_v35 = vand.u32 2147483648, %v4781_v34  ;;  %v4791_v41 = vand.u32 2147483647, %v4781_v34  ;;  %4911 = vmatpush.msra.mxu1 %v4896_v58  ;;  %vm4787_vm8 = vweird.f32 %v4781_v34 }
0x10ac   :  { %v4775_v26 = vor.u32 1.1754944e-38, %v4774_v36  ;;  %vm4773_vm10 = vcmp.eq.f32.partialorder %v4772_v29, 8.507059e+37 }
0x10ad   :  { %4912 = vmatpush.msra.mxu1 %v4895_v53  ;;  %v4794_v6 = vor.u32 1.1754944e-38, %v4793_v35  ;;  %vm4792_vm12 = vcmp.eq.f32.partialorder %v4791_v41, 8.507059e+37 }
0x10ae   :  { %v5440_v62 = vpop.eup %5439 }
0x10af   :  { %v8986_v42 = vadd.f32 1.0, %v5440_v62  ;;  %4913 = vmatpush.msra.mxu1 %v4894_v48 }
0x10b0   :  { %v5442_v15 = vpop.eup %5441 }
0x10b1   :  { %v5444_v61 = vpop.eup %5443  ;;  %v4764_v40 = vmul.f32 %v5442_v15, %v4762_v28  ;;  %5445 = vrcp.f32 %v8986_v42  ;;  %vm4769_vm5 = vweird.f32 %v5442_v15  ;;  %4914 = vmatpush.msra.mxu1 %v4893_v52  ;;  %v4813_v57 = vand.u32 2147483648, %v8986_v42 }
0x10b2   :  { %v4783_v8 = vmul.f32 %v5444_v61, %v4781_v34  ;;  %5447 = vtanh.f32 %v4757_v44  ;;  %vm4788_vm6 = vweird.f32 %v5444_v61  ;;  %vm4770_vm9 = vmor %vm4768_vm7, %vm4769_vm5  ;;  %vm4807_vm14 = vweird.f32 %v8986_v42 }
0x10b3   :  { %v4765_v16 = vsub.f32 1.0, %v4764_v40  ;;  %vm4789_vm11 = vmor %vm4787_vm8, %vm4788_vm6  ;;  %4915 = vmatpush.msra.mxu1 %v4892_v46  ;;  %v4811_v54 = vand.u32 2147483647, %v8986_v42  ;;  %v4814_v38 = vor.u32 1.1754944e-38, %v4813_v57 }
0x10b4   :  { %v4784_v9 = vsub.f32 1.0, %v4783_v8 }
0x10b5   :  { %v4766_v23 = vmul.f32 %v5442_v15, %v4765_v16  ;;  %4916 = vmatpush.msra.mxu1 %v4891_v31  ;;  %vm4812_vm0 = vcmp.eq.f32.partialorder %v4811_v54, 8.507059e+37 }
0x10b6   :  { %v4785_v11 = vmul.f32 %v5444_v61, %v4784_v9 }
0x10b7   :  { %v5446_v59 = vpop.eup %5445  ;;  %v4767_v51 = vadd.f32 %v5442_v15, %v4766_v23  ;;  %4917 = vmatpush.msra.mxu1 %v4890_v45 }
0x10b8   :  { %v4786_v20 = vadd.f32 %v5444_v61, %v4785_v11  ;;  %v4803_v37 = vmul.f32 %v5446_v59, %v8986_v42  ;;  %v5448_v33 = vpop.eup %5447  ;;  %vm4808_vm13 = vweird.f32 %v5446_v59 }
0x10b9   :  { %v4771_v39 = vsel %vm4770_vm9, %v5442_v15, %v4767_v51  ;;  %vm4809_vm15 = vmor %vm4807_vm14, %vm4808_vm13  ;;  %4918 = vmatpush.msra.mxu1 %v4889_v18 }
0x10ba   :  { %v4776_v2 = vsel %vm4773_vm10, %v4775_v26, %v4771_v39  ;;  %v4790_v55 = vsel %vm4789_vm11, %v5444_v61, %v4786_v20  ;;  %v4804_v49 = vsub.f32 1.0, %v4803_v37 }
0x10bb   :  { %v4795_v22 = vsel %vm4792_vm12, %v4794_v6, %v4790_v55  ;;  %v4821_v60 = vmul.f32 %v5448_v33, %v4776_v2  ;;  %4919 = vmatpush.msra.mxu1 %v4888_v21 }
0x10bc   :  { %v4820_v17 = vmul.f32 %v4818_v27, %v4795_v22  ;;  %v4805_v3 = vmul.f32 %v5446_v59, %v4804_v49 }
0x10bd   :  { %4920 = vmatpush.msra.mxu1 %v4887_v30 }
0x10be   :  { %v4822_v7 = vadd.f32 %v4821_v60, %v4820_v17  ;;  %v4806_v24 = vadd.f32 %v5446_v59, %v4805_v3 }
0x10bf   :  { %4921 = vmatpush.msra.mxu1 %v4886_v13 }
0x10c0   :  { %5449 = vtanh.f32 %v4822_v7  ;;  %v4810_v0 = vsel %vm4809_vm15, %v5446_v59, %v4806_v24 }
0x10c1   :  { %v4815_v10 = vsel %vm4812_vm0, %v4814_v38, %v4810_v0 }
0x10c6   :  { %v5450_v47 = vpop.eup %5449 }
0x10c7   :  { %v4824_v25 = vmul.f32 %v5450_v47, %v4815_v10 }
0x10c9   :  { %v4846_v14 = vrot.slane %v4824_v25, 6 }
0x10cb   :  { %4864 = vmatmul.f32.vlgmr.msra.gmra.mxu0 %v4846_v14 }
0x1148   :  { %v4865_v43 = vpop.f32.mrf.mxu0 }
0x1149   :  { %v4866_v28 = vadd.f32 %v5065_v19, %v4865_v43 }
0x114b   :  { %4922 = vmatmul.f32.vlgmr.msra.gmra.mxu1 %v4866_v28  ;;  %v4868_v50 = vmul.f32 %v4866_v28, %v4866_v28 }
0x114d   :  { %v4870_v34 = vsel %vm4869_vm1, %v4868_v50, 0.0 }
0x114e   :  { %4871 = vadd.xlane.f32.xlu0 %v4870_v34 }
0x11c1   :  { %v4872_v32 = vpop.xlane.xlu0 %4871 }
0x11c2   :  { %v4873_v4 = vadd.f32 1e-12, %v4872_v32 }
0x11c4   :  { %5451 = vrsqrt.f32 %v4873_v4  ;;  %vm4880_vm3 = vweird.f32 %v4873_v4 }
0x11c8   :  { %v4923_v12 = vpop.f32.mrf.mxu1 }
0x11c9   :  { %v4924_v63 = vadd.f32 %v5066_v1, %v4923_v12 }
0x11ca   :  { %v5452_v62 = vpop.eup %5451 }
0x11cb   :  { %v4875_v42 = vmul.f32 %v5452_v62, %v4873_v4  ;;  %4926 = vst [vmem:[#allocation24] sm:$0x3] %v4924_v63  ;;  %vm4881_vm2 = vweird.f32 %v5452_v62 }
0x11cc   :  { %4937 = dma.vmem_to_hbm [thread:$0]  %s4933_s11, 32, %s4935_s5, [#allocation6]   ;;  %vm4882_vm4 = vmor %vm4880_vm3, %vm4881_vm2 }
0x11cd   :  { %v4876_v5 = vmul.f32 %v5452_v62, %v4875_v42 }
0x11cf   :  { %v4877_v15 = vmul.f32 0.5, %v4876_v5 }
0x11d1   :  { %v4878_v44 = vsub.f32 1.5, %v4877_v15 }
0x11d3   :  { %v4879_v61 = vmul.f32 %v5452_v62, %v4878_v44 }
0x11d5   :  { %v4883_v40 = vsel %vm4882_vm4, %v5452_v62, %v4879_v61 }
0x11d6   :  { %v4884_v56 = vmul.f32 %v4883_v40, %v4866_v28 }
0x11d8   :  { %4885 = vst [vmem:[#allocation25] sm:$0x3] %v4884_v56 }
0x11d9   :  { %4948 = dma.vmem_to_hbm [thread:$0]  %s4944_s25, 32, %s4946_s14, [#allocation26]  }
0x11da   :  { %5995 = dma.done.wait [#allocation6], 32  }
0x11db   :  { %5996 = vsyncadd [#allocation6], 4294967264 }
0x11dc   :  { %5997 = dma.done.wait [#allocation26], 32  }
0x11dd   :  { %5998 = vsyncadd [#allocation26], 4294967264 }
0x11de   :  { %4957 = vsyncpa [#allocation5], 1 }
0x11df   :  { %4958 = vsyncpa [#allocation8], 1 }
0x11e0   :  { %4959 = vsyncpa [#allocation11], 1 }
0x11e1   :  { %4960 = vsyncpa [#allocation14], 1 }
0x11e2   :  { %4961 = vsyncpa [#allocation17], 1 }
0x11e3   :  { %4962 = vsyncpa [#allocation20], 1 }
0x11e4   :  { %4963 = vsyncpa [#allocation23], 1 }
0x11e5   :  { %4964 = vsyncpa [#allocation6], 1 }
0x11e6   :  { %4965 = vsyncpa [#allocation26], 1 }

</bundles_post_ra>
